<compile_context>
chip_gen: v7x
topology: tpu7x:2x2x1
jax: 0.10.0
libtpu: 0.0.40
codegen_flags: <defaults>
</compile_context>

<pallas_src>
import jax
import jax.numpy as jnp
from jax import lax
from jax.experimental import pallas as pl
from jax.experimental.pallas import tpu as pltpu


# MXU operand dtype (f32 accumulation via preferred_element_type). bf16 is native on the
# MXU of v5e/v6e/v7x; set to jnp.float32 for bit-closer parity runs.
MXU_DTYPE = jnp.bfloat16


def _choose_tb(B, N):
    """Batch-fold factor: fold TB batch elements into lanes (target TB*N = 128) while
    keeping at least 2 grid steps when possible (both v7x TensorCores busy)."""
    tb = max(1, min(B, 128 // max(N, 1)))
    while tb > 1 and B % tb != 0:
        tb -= 1
    while tb > 1 and B // tb < 2:
        tb //= 2
        while tb > 1 and B % tb != 0:
            tb -= 1
    return max(tb, 1)


# ----------------------------------------------------------------------------
# Fully fused forward kernel (one grid step = TB folded batch elements)
# ----------------------------------------------------------------------------
def _make_fused_kernel(*, A, E, K, N, TB, kinds):
    TBN = TB * N          # folded node/lane dimension
    NK = TBN * K          # folded edge dimension

    def _dot(a, b):
        return jnp.dot(a.astype(MXU_DTYPE), b.astype(MXU_DTYPE),
                       preferred_element_type=jnp.float32)

    def kernel(pts_ref, idx_ref, w1a_ref, w1d_ref, b1_ref, w2_ref, b2_ref, *rest):
        # ---- parse the variable-length weight ref list -------------------------------
        pos = 0
        layer_refs = []
        for kind in kinds:
            n = 3 if kind == "res_gnn" else 2
            layer_refs.append(tuple(rest[pos:pos + n]))
            pos += n
        wg_glb_ref, wg_nf_ref, bg_ref = rest[pos], rest[pos + 1], rest[pos + 2]
        out_ref = rest[pos + 3]

        x0 = pts_ref[0]                                   # (C, TBN)  f32
        idx = idx_ref[0]                                  # (1, NK)   int32, batch-offset

        # ---- data-independent selection matrices (iotas, once per grid step) ---------
        m_iota = lax.broadcasted_iota(jnp.int32, (TBN, NK), 0)
        nk_iota = lax.broadcasted_iota(jnp.int32, (TBN, NK), 1)
        # G[m, nk] = [idx[nk] == m]  : x @ G gathers neighbor features (exact one-hot)
        G = (m_iota == idx).astype(jnp.float32)
        # R[m, nk] = [nk // K == m]  : x @ R repeats each node's column K times (center)
        R = jnp.logical_and(nk_iota >= m_iota * K,
                            nk_iota < (m_iota + 1) * K).astype(jnp.float32)
        # P[nk, n] = [nk // K == n]  : pools the K edge slots of each node
        nk_p = lax.broadcasted_iota(jnp.int32, (NK, TBN), 0)
        n_p = lax.broadcasted_iota(jnp.int32, (NK, TBN), 1)
        P = jnp.logical_and(nk_p >= n_p * K,
                            nk_p < (n_p + 1) * K).astype(jnp.float32)
        # TODO(synk): for production N*K, build G / M_e in NK-chunks (accumulate into
        #   M_cat) and set vmem_limit_bytes so the (TBN, NK) masks fit v7x's 64 MiB VMEM.

        # ---- etype net, concat-free:  w1 @ [knn-ctr; ctr] == (w1a@x0)@G + (w1d@x0)@R --
        p = _dot(w1a_ref[...], x0)                        # (H, TBN)
        q = _dot(w1d_ref[...], x0)                        # (H, TBN)
        h = jnp.maximum(_dot(p, G) + _dot(q, R) + b1_ref[...], 0.0)      # (H, NK)
        logits = _dot(w2_ref[...], h) + b2_ref[...]       # (E, NK)
        mx = jnp.max(logits, axis=0, keepdims=True)
        ex = jnp.exp(logits - mx)
        et = ex * pl.reciprocal(jnp.sum(ex, axis=0, keepdims=True))      # exact recip

        # ---- per-edge-type soft adjacency, lane-concatenated: M_cat (TBN, E*TBN) ------
        # M_e[m, n] = sum_k etype[e, n, k] * [nn_idx[n, k] == m]; block-diagonal over the
        # folded batch because idx was offset by t*N host-side.
        M_cat = jnp.concatenate(
            [_dot(G * et[e:e + 1, :], P) for e in range(E)], axis=1)
        colsum = jnp.sum(M_cat, axis=0, keepdims=True)    # (1, E*TBN) per-node edge sums

        # ---- embedding stack (everything stays in VMEM/registers) --------------------
        nf = [x0] * A
        shared = True                                     # anchors still see the same x
        for l, kind in enumerate(kinds):
            if kind == "res_gnn":
                wx_ref, wagg_ref, b_ref = layer_refs[l]
                agg_s = _dot(nf[0], M_cat) if shared else None   # hoisted when shared
                new_nf = []
                for a in range(A):
                    x = nf[a]
                    agg = agg_s if shared else _dot(x, M_cat)    # (Cin, E*TBN), one dot
                    y = _dot(wx_ref[a], x) + b_ref[a]
                    for e in range(E):
                        y = y + _dot(wagg_ref[a, e], agg[:, e * TBN:(e + 1) * TBN])
                    new_nf.append(jnp.maximum(y + x, 0.0))       # residual + relu
            else:                                                # dim_change_conv
                w_ref, b_ref = layer_refs[l]
                new_nf = [jnp.maximum(_dot(w_ref[a], nf[a]) + b_ref[a], 0.0)
                          for a in range(A)]
            nf = new_nf
            shared = shared and (A == 1)

        # ---- segmented (per folded batch element) max over nodes, broadcast back ------
        nf_all = jnp.concatenate(nf, axis=0)              # (A*Cl, TBN)
        lane = lax.broadcasted_iota(jnp.int32, (1, TBN), 1)
        glb_b = jnp.zeros_like(nf_all)
        for t in range(TB):
            seg = jnp.logical_and(lane >= t * N, lane < (t + 1) * N)
            m_t = jnp.max(jnp.where(seg, nf_all, -jnp.inf), axis=1, keepdims=True)
            glb_b = glb_b + jnp.where(seg, m_t, 0.0)

        # glb_b is lane-constant per batch segment and M_e is block-diagonal, so
        # glb_b @ M_e == glb_b * colsum(M_e)  -> anchor-invariant, computed once.
        g_terms = [glb_b] + [glb_b * colsum[:, e * TBN:(e + 1) * TBN] for e in range(E)]

        # ---- global gnn hop (no residual, no relu) ------------------------------------
        for a in range(A):
            agg = _dot(nf[a], M_cat)                      # (Cl, E*TBN)
            y = _dot(wg_nf_ref[a, 0], nf[a]) + bg_ref[a]
            for e in range(E):
                y = y + _dot(wg_nf_ref[a, e + 1], agg[:, e * TBN:(e + 1) * TBN])
            for j in range(E + 1):
                y = y + _dot(wg_glb_ref[a, j], g_terms[j])
            out_ref[0, a] = y                             # lane-dense (Cout, TBN) store

    return kernel


# ----------------------------------------------------------------------------
# graph_embedding_v1 forward (single fused pallas_call)
# ----------------------------------------------------------------------------
def graph_embedding_v1_forward(params, pts, nn_idx, anum, tb=None):
    B, C, N = pts.shape
    K = nn_idx.shape[-1]
    A = anum

    w1, b1, w2, b2 = params["etype_net"]
    E = w2.shape[0]
    kinds = tuple(params["kinds"])
    layers = params["embedding"]
    wg, bg = params["global"]["w"], params["global"]["b"]
    Cl = wg.shape[1]                       # global nout == hidden_size[-1]

    TB = _choose_tb(B, N) if tb is None else tb
    assert B % TB == 0
    GB = B // TB
    TBN = TB * N
    NK = TBN * K

    # ---- fold TB batch elements into the lane dimension (host-side layout plumbing) ---
    pts_f = pts.reshape(GB, TB, C, N).transpose(0, 2, 1, 3).reshape(GB, C, TBN)
    offs = (jnp.arange(TB, dtype=jnp.int32) * N)[None, :, None, None]
    idx_f = (nn_idx.astype(jnp.int32).reshape(GB, TB, N, K) + offs).reshape(GB, 1, NK)

    # ---- host-side weight splits (no in-kernel sublane concats) ------------------------
    w1a = w1[:, :C]                        # acts on knn
    w1d = w1[:, C:] - w1[:, :C]            # acts on ctr (w1 @ [knn-ctr; ctr])

    layer_arrays = []
    for kind, layer in zip(kinds, layers):
        w, b = layer["w"], layer["b"]
        if kind == "res_gnn":
            Cout = w.shape[1]
            Cin = w.shape[2] // (E + 1)
            w_x = w[:, :, :Cin]                                              # (A,Cout,Cin)
            w_agg = w[:, :, Cin:].reshape(A, Cout, E, Cin).transpose(0, 2, 1, 3)
            layer_arrays += [w_x, w_agg, b]
        else:
            layer_arrays += [w, b]

    wg_r = wg.reshape(A, Cl, E + 1, (A + 1) * Cl)
    wg_glb = wg_r[:, :, :, :A * Cl].transpose(0, 2, 1, 3)    # (A, E+1, Cl, A*Cl)
    wg_nf = wg_r[:, :, :, A * Cl:].transpose(0, 2, 1, 3)     # (A, E+1, Cl, Cl)

    kernel = _make_fused_kernel(A=A, E=E, K=K, N=N, TB=TB, kinds=kinds)

    def _const_spec(arr):
        nd = arr.ndim
        return pl.BlockSpec(arr.shape, lambda g, _nd=nd: (0,) * _nd)

    in_arrays = [pts_f, idx_f, w1a, w1d, b1, w2, b2] + layer_arrays + [wg_glb, wg_nf, bg]
    in_specs = ([pl.BlockSpec((1, C, TBN), lambda g: (g, 0, 0)),
                 pl.BlockSpec((1, 1, NK), lambda g: (g, 0, 0))]
                + [_const_spec(a) for a in in_arrays[2:]])

    out = pl.pallas_call(
        kernel,
        out_shape=jax.ShapeDtypeStruct((GB, A, Cl, TBN), jnp.float32),
        grid=(GB,),
        in_specs=in_specs,
        out_specs=pl.BlockSpec((1, A, Cl, TBN), lambda g: (g, 0, 0, 0)),
        compiler_params=pltpu.CompilerParams(dimension_semantics=("parallel",)),
    )(*in_arrays)

    # ---- unfold the batch and restore the PyTorch output shape (B, A, Cout, N, 1) -----
    out = out.reshape(GB, A, Cl, TB, N).transpose(0, 3, 1, 2, 4).reshape(B, A, Cl, N)
    return out[..., None]


# ----------------------------------------------------------------------------
# Deterministic parameter init (synthetic weights, same shapes as the module)
# ----------------------------------------------------------------------------
def init_params(key, hidden_size, etypes, anum):
    E = etypes[1]
    keys = iter(jax.random.split(key, 64))

    def rnd(shape, scale=0.1):
        return jax.random.normal(next(keys), shape, jnp.float32) * scale

    H = 16  # etype_net hidden width
    params = {
        "etype_net": (rnd((H, etypes[0])), rnd((H, 1)), rnd((E, H)), rnd((E, 1))),
        "kinds": [],
        "embedding": [],
    }
    for l in range(len(hidden_size) - 1):
        nin, nout = hidden_size[l], hidden_size[l + 1]
        if nin == nout:
            params["kinds"].append("res_gnn")
            params["embedding"].append(
                dict(w=rnd((anum, nout, (E + 1) * nin)), b=rnd((anum, nout, 1))))
        else:
            params["kinds"].append("dim_change")
            params["embedding"].append(
                dict(w=rnd((anum, nout, nin)), b=rnd((anum, nout, 1))))
    nin_g = hidden_size[-1] * (anum + 1)
    params["global"] = dict(w=rnd((anum, hidden_size[-1], (E + 1) * nin_g)),
                            b=rnd((anum, hidden_size[-1], 1)))
    return params


if __name__ == "__main__":
    key = jax.random.PRNGKey(0)
    B, C, N, K = 16, 4, 16, 8        # TB=8 -> 128-lane fold, grid=(2,) for v7x dual-TC
    anum = 2
    hidden_size = [4, 4, 8, 8]       # res_gnn(4->4), dim_change(4->8), res_gnn(8->8)
    etypes = (2 * C, 3)              # (edge-feature channels, num edge types)

    k1, k2, k3 = jax.random.split(key, 3)
    pts = jax.random.normal(k1, (B, C, N), jnp.float32)
    nn_idx = jax.random.randint(k2, (B, N, K), 0, N, jnp.int32)
    params = init_params(k3, hidden_size, etypes, anum)

    out = graph_embedding_v1_forward(params, pts, nn_idx, anum)
    out = jax.block_until_ready(out)
    assert out.shape == (B, anum, hidden_size[-1], N, 1), out.shape
    assert bool(jnp.all(jnp.isfinite(out)))
    print("KERNEL_OK")
</pallas_src>

<mosaic_0001>
module attributes {stable_mosaic.version = 11 : i64} {
  func.func @kernel(%arg0: i32, %arg1: memref<1x4x128xf32, #tpu.memory_space<vmem>>, %arg2: memref<1x1x1024xi32, #tpu.memory_space<vmem>>, %arg3: memref<16x4xf32, #tpu.memory_space<vmem>>, %arg4: memref<16x4xf32, #tpu.memory_space<vmem>>, %arg5: memref<16x1xf32, #tpu.memory_space<vmem>>, %arg6: memref<3x16xf32, #tpu.memory_space<vmem>>, %arg7: memref<3x1xf32, #tpu.memory_space<vmem>>, %arg8: memref<2x4x4xf32, #tpu.memory_space<vmem>>, %arg9: memref<2x3x4x4xf32, #tpu.memory_space<vmem>>, %arg10: memref<2x4x1xf32, #tpu.memory_space<vmem>>, %arg11: memref<2x8x4xf32, #tpu.memory_space<vmem>>, %arg12: memref<2x8x1xf32, #tpu.memory_space<vmem>>, %arg13: memref<2x8x8xf32, #tpu.memory_space<vmem>>, %arg14: memref<2x3x8x8xf32, #tpu.memory_space<vmem>>, %arg15: memref<2x8x1xf32, #tpu.memory_space<vmem>>, %arg16: memref<2x4x8x16xf32, #tpu.memory_space<vmem>>, %arg17: memref<2x4x8x8xf32, #tpu.memory_space<vmem>>, %arg18: memref<2x8x1xf32, #tpu.memory_space<vmem>>, %arg19: memref<1x2x8x128xf32, #tpu.memory_space<vmem>>) attributes {dimension_semantics = [#tpu.dimension_semantics<parallel>], iteration_bounds = array<i64: 2>, scalar_prefetch = 0 : i64, scratch_operands = 0 : i64, tpu.core_type = #tpu.core_type<tc>, window_params = [{transform_indices = @transform_0, window_bounds = array<i64: 1, 4, 128>}, {transform_indices = @transform_1, window_bounds = array<i64: 1, 1, 1024>}, {pipeline_mode = #tpu.pipeline_mode<synchronous>, transform_indices = @transform_2, window_bounds = array<i64: 16, 4>}, {pipeline_mode = #tpu.pipeline_mode<synchronous>, transform_indices = @transform_3, window_bounds = array<i64: 16, 4>}, {pipeline_mode = #tpu.pipeline_mode<synchronous>, transform_indices = @transform_4, window_bounds = array<i64: 16, 1>}, {pipeline_mode = #tpu.pipeline_mode<synchronous>, transform_indices = @transform_5, window_bounds = array<i64: 3, 16>}, {pipeline_mode = #tpu.pipeline_mode<synchronous>, transform_indices = @transform_6, window_bounds = array<i64: 3, 1>}, {pipeline_mode = #tpu.pipeline_mode<synchronous>, transform_indices = @transform_7, window_bounds = array<i64: 2, 4, 4>}, {pipeline_mode = #tpu.pipeline_mode<synchronous>, transform_indices = @transform_8, window_bounds = array<i64: 2, 3, 4, 4>}, {pipeline_mode = #tpu.pipeline_mode<synchronous>, transform_indices = @transform_9, window_bounds = array<i64: 2, 4, 1>}, {pipeline_mode = #tpu.pipeline_mode<synchronous>, transform_indices = @transform_10, window_bounds = array<i64: 2, 8, 4>}, {pipeline_mode = #tpu.pipeline_mode<synchronous>, transform_indices = @transform_11, window_bounds = array<i64: 2, 8, 1>}, {pipeline_mode = #tpu.pipeline_mode<synchronous>, transform_indices = @transform_12, window_bounds = array<i64: 2, 8, 8>}, {pipeline_mode = #tpu.pipeline_mode<synchronous>, transform_indices = @transform_13, window_bounds = array<i64: 2, 3, 8, 8>}, {pipeline_mode = #tpu.pipeline_mode<synchronous>, transform_indices = @transform_14, window_bounds = array<i64: 2, 8, 1>}, {pipeline_mode = #tpu.pipeline_mode<synchronous>, transform_indices = @transform_15, window_bounds = array<i64: 2, 4, 8, 16>}, {pipeline_mode = #tpu.pipeline_mode<synchronous>, transform_indices = @transform_16, window_bounds = array<i64: 2, 4, 8, 8>}, {pipeline_mode = #tpu.pipeline_mode<synchronous>, transform_indices = @transform_17, window_bounds = array<i64: 2, 8, 1>}, {transform_indices = @transform_18, window_bounds = array<i64: 1, 2, 8, 128>}]} {
    %c0 = arith.constant 0 : index
    %c0_0 = arith.constant 0 : index
    %c0_1 = arith.constant 0 : index
    %0 = vector.load %arg1[%c0, %c0_0, %c0_1] : memref<1x4x128xf32, #tpu.memory_space<vmem>>, vector<1x4x128xf32>
    %1 = vector.shape_cast %0 : vector<1x4x128xf32> to vector<4x128xf32>
    %c0_2 = arith.constant 0 : index
    %c0_3 = arith.constant 0 : index
    %c0_4 = arith.constant 0 : index
    %2 = vector.load %arg2[%c0_2, %c0_3, %c0_4] : memref<1x1x1024xi32, #tpu.memory_space<vmem>>, vector<1x1x1024xi32>
    %3 = vector.shape_cast %2 : vector<1x1x1024xi32> to vector<1x1024xi32>
    %4 = tpu.iota {dimensions = array<i32: 0>} : vector<128x1024xi32>
    %5 = tpu.iota {dimensions = array<i32: 1>} : vector<128x1024xi32>
    %6 = vector.broadcast %3 : vector<1x1024xi32> to vector<128x1024xi32>
    %7 = arith.cmpi eq, %4, %6 : vector<128x1024xi32>
    %8 = arith.extui %7 : vector<128x1024xi1> to vector<128x1024xi32>
    %9 = arith.sitofp %8 : vector<128x1024xi32> to vector<128x1024xf32>
    %c8_i32 = arith.constant 8 : i32
    %10 = vector.broadcast %c8_i32 : i32 to vector<128x1024xi32>
    %11 = arith.muli %4, %10 : vector<128x1024xi32>
    %12 = arith.cmpi sge, %5, %11 : vector<128x1024xi32>
    %c1_i32 = arith.constant 1 : i32
    %13 = vector.broadcast %c1_i32 : i32 to vector<128x1024xi32>
    %14 = arith.addi %4, %13 : vector<128x1024xi32>
    %c8_i32_5 = arith.constant 8 : i32
    %15 = vector.broadcast %c8_i32_5 : i32 to vector<128x1024xi32>
    %16 = arith.muli %14, %15 : vector<128x1024xi32>
    %17 = arith.cmpi slt, %5, %16 : vector<128x1024xi32>
    %18 = arith.andi %12, %17 : vector<128x1024xi1>
    %19 = arith.extui %18 : vector<128x1024xi1> to vector<128x1024xi32>
    %20 = arith.sitofp %19 : vector<128x1024xi32> to vector<128x1024xf32>
    %21 = tpu.iota {dimensions = array<i32: 0>} : vector<1024x128xi32>
    %22 = tpu.iota {dimensions = array<i32: 1>} : vector<1024x128xi32>
    %c8_i32_6 = arith.constant 8 : i32
    %23 = vector.broadcast %c8_i32_6 : i32 to vector<1024x128xi32>
    %24 = arith.muli %22, %23 : vector<1024x128xi32>
    %25 = arith.cmpi sge, %21, %24 : vector<1024x128xi32>
    %c1_i32_7 = arith.constant 1 : i32
    %26 = vector.broadcast %c1_i32_7 : i32 to vector<1024x128xi32>
    %27 = arith.addi %22, %26 : vector<1024x128xi32>
    %c8_i32_8 = arith.constant 8 : i32
    %28 = vector.broadcast %c8_i32_8 : i32 to vector<1024x128xi32>
    %29 = arith.muli %27, %28 : vector<1024x128xi32>
    %30 = arith.cmpi slt, %21, %29 : vector<1024x128xi32>
    %31 = arith.andi %25, %30 : vector<1024x128xi1>
    %32 = arith.extui %31 : vector<1024x128xi1> to vector<1024x128xi32>
    %33 = arith.sitofp %32 : vector<1024x128xi32> to vector<1024x128xf32>
    %c0_9 = arith.constant 0 : index
    %c0_10 = arith.constant 0 : index
    %34 = vector.load %arg3[%c0_9, %c0_10] : memref<16x4xf32, #tpu.memory_space<vmem>>, vector<16x4xf32>
    %35 = arith.truncf %34 : vector<16x4xf32> to vector<16x4xbf16>
    %36 = arith.truncf %1 : vector<4x128xf32> to vector<4x128xbf16>
    %cst = arith.constant dense<0.000000e+00> : vector<16x128xf32>
    %37 = tpu.matmul %35, %36, %cst {dimension_numbers = #tpu.dot_dimension_numbers<[1], [0], [0], [1], [0, 0, 1, 1], [], []>} : vector<16x4xbf16>, vector<4x128xbf16>, vector<16x128xf32> -> vector<16x128xf32>
    %c0_11 = arith.constant 0 : index
    %c0_12 = arith.constant 0 : index
    %38 = vector.load %arg4[%c0_11, %c0_12] : memref<16x4xf32, #tpu.memory_space<vmem>>, vector<16x4xf32>
    %39 = arith.truncf %38 : vector<16x4xf32> to vector<16x4xbf16>
    %40 = arith.truncf %1 : vector<4x128xf32> to vector<4x128xbf16>
    %cst_13 = arith.constant dense<0.000000e+00> : vector<16x128xf32>
    %41 = tpu.matmul %39, %40, %cst_13 {dimension_numbers = #tpu.dot_dimension_numbers<[1], [0], [0], [1], [0, 0, 1, 1], [], []>} : vector<16x4xbf16>, vector<4x128xbf16>, vector<16x128xf32> -> vector<16x128xf32>
    %42 = arith.truncf %37 : vector<16x128xf32> to vector<16x128xbf16>
    %43 = arith.truncf %9 : vector<128x1024xf32> to vector<128x1024xbf16>
    %cst_14 = arith.constant dense<0.000000e+00> : vector<16x1024xf32>
    %44 = tpu.matmul %42, %43, %cst_14 {dimension_numbers = #tpu.dot_dimension_numbers<[1], [0], [0], [1], [0, 0, 1, 1], [], []>} : vector<16x128xbf16>, vector<128x1024xbf16>, vector<16x1024xf32> -> vector<16x1024xf32>
    %45 = arith.truncf %41 : vector<16x128xf32> to vector<16x128xbf16>
    %46 = arith.truncf %20 : vector<128x1024xf32> to vector<128x1024xbf16>
    %cst_15 = arith.constant dense<0.000000e+00> : vector<16x1024xf32>
    %47 = tpu.matmul %45, %46, %cst_15 {dimension_numbers = #tpu.dot_dimension_numbers<[1], [0], [0], [1], [0, 0, 1, 1], [], []>} : vector<16x128xbf16>, vector<128x1024xbf16>, vector<16x1024xf32> -> vector<16x1024xf32>
    %48 = arith.addf %44, %47 : vector<16x1024xf32>
    %c0_16 = arith.constant 0 : index
    %c0_17 = arith.constant 0 : index
    %49 = vector.load %arg5[%c0_16, %c0_17] : memref<16x1xf32, #tpu.memory_space<vmem>>, vector<16x1xf32>
    %50 = vector.broadcast %49 : vector<16x1xf32> to vector<16x1024xf32>
    %51 = arith.addf %48, %50 : vector<16x1024xf32>
    %cst_18 = arith.constant 0.000000e+00 : f32
    %52 = vector.broadcast %cst_18 : f32 to vector<16x1024xf32>
    %53 = arith.maximumf %51, %52 : vector<16x1024xf32>
    %c0_19 = arith.constant 0 : index
    %c0_20 = arith.constant 0 : index
    %54 = vector.load %arg6[%c0_19, %c0_20] : memref<3x16xf32, #tpu.memory_space<vmem>>, vector<3x16xf32>
    %55 = arith.truncf %54 : vector<3x16xf32> to vector<3x16xbf16>
    %56 = arith.truncf %53 : vector<16x1024xf32> to vector<16x1024xbf16>
    %cst_21 = arith.constant dense<0.000000e+00> : vector<3x1024xf32>
    %57 = tpu.matmul %55, %56, %cst_21 {dimension_numbers = #tpu.dot_dimension_numbers<[1], [0], [0], [1], [0, 0, 1, 1], [], []>} : vector<3x16xbf16>, vector<16x1024xbf16>, vector<3x1024xf32> -> vector<3x1024xf32>
    %c0_22 = arith.constant 0 : index
    %c0_23 = arith.constant 0 : index
    %58 = vector.load %arg7[%c0_22, %c0_23] : memref<3x1xf32, #tpu.memory_space<vmem>>, vector<3x1xf32>
    %59 = vector.broadcast %58 : vector<3x1xf32> to vector<3x1024xf32>
    %60 = arith.addf %57, %59 : vector<3x1024xf32>
    %cst_24 = arith.constant dense<0xFF800000> : vector<1024xf32>
    %61 = vector.multi_reduction <maximumf>, %60, %cst_24 [0] : vector<3x1024xf32> to vector<1024xf32>
    %62 = vector.shape_cast %61 : vector<1024xf32> to vector<1x1024xf32>
    %63 = vector.broadcast %62 : vector<1x1024xf32> to vector<3x1024xf32>
    %64 = arith.subf %60, %63 : vector<3x1024xf32>
    %65 = math.exp %64 : vector<3x1024xf32>
    %cst_25 = arith.constant dense<0.000000e+00> : vector<1024xf32>
    %66 = vector.multi_reduction <add>, %65, %cst_25 [0] : vector<3x1024xf32> to vector<1024xf32>
    %67 = vector.shape_cast %66 : vector<1024xf32> to vector<1x1024xf32>
    %68 = tpu.reciprocal %67 : vector<1x1024xf32> -> vector<1x1024xf32>
    %69 = vector.broadcast %68 : vector<1x1024xf32> to vector<3x1024xf32>
    %70 = arith.mulf %65, %69 : vector<3x1024xf32>
    %71 = vector.extract_strided_slice %70 {offsets = [0, 0], sizes = [1, 1024], strides = [1, 1]} : vector<3x1024xf32> to vector<1x1024xf32>
    %72 = vector.broadcast %71 : vector<1x1024xf32> to vector<128x1024xf32>
    %73 = arith.mulf %9, %72 : vector<128x1024xf32>
    %74 = arith.truncf %73 : vector<128x1024xf32> to vector<128x1024xbf16>
    %75 = arith.truncf %33 : vector<1024x128xf32> to vector<1024x128xbf16>
    %cst_26 = arith.constant dense<0.000000e+00> : vector<128x128xf32>
    %76 = tpu.matmul %74, %75, %cst_26 {dimension_numbers = #tpu.dot_dimension_numbers<[1], [0], [0], [1], [0, 0, 1, 1], [], []>} : vector<128x1024xbf16>, vector<1024x128xbf16>, vector<128x128xf32> -> vector<128x128xf32>
    %77 = vector.extract_strided_slice %70 {offsets = [1, 0], sizes = [1, 1024], strides = [1, 1]} : vector<3x1024xf32> to vector<1x1024xf32>
    %78 = vector.broadcast %77 : vector<1x1024xf32> to vector<128x1024xf32>
    %79 = arith.mulf %9, %78 : vector<128x1024xf32>
    %80 = arith.truncf %79 : vector<128x1024xf32> to vector<128x1024xbf16>
    %81 = arith.truncf %33 : vector<1024x128xf32> to vector<1024x128xbf16>
    %cst_27 = arith.constant dense<0.000000e+00> : vector<128x128xf32>
    %82 = tpu.matmul %80, %81, %cst_27 {dimension_numbers = #tpu.dot_dimension_numbers<[1], [0], [0], [1], [0, 0, 1, 1], [], []>} : vector<128x1024xbf16>, vector<1024x128xbf16>, vector<128x128xf32> -> vector<128x128xf32>
    %83 = vector.extract_strided_slice %70 {offsets = [2, 0], sizes = [1, 1024], strides = [1, 1]} : vector<3x1024xf32> to vector<1x1024xf32>
    %84 = vector.broadcast %83 : vector<1x1024xf32> to vector<128x1024xf32>
    %85 = arith.mulf %9, %84 : vector<128x1024xf32>
    %86 = arith.truncf %85 : vector<128x1024xf32> to vector<128x1024xbf16>
    %87 = arith.truncf %33 : vector<1024x128xf32> to vector<1024x128xbf16>
    %cst_28 = arith.constant dense<0.000000e+00> : vector<128x128xf32>
    %88 = tpu.matmul %86, %87, %cst_28 {dimension_numbers = #tpu.dot_dimension_numbers<[1], [0], [0], [1], [0, 0, 1, 1], [], []>} : vector<128x1024xbf16>, vector<1024x128xbf16>, vector<128x128xf32> -> vector<128x128xf32>
    %89 = tpu.concatenate %76, %82, %88 in 1 : vector<128x128xf32>, vector<128x128xf32>, vector<128x128xf32> -> vector<128x384xf32>
    %cst_29 = arith.constant dense<0.000000e+00> : vector<384xf32>
    %90 = vector.multi_reduction <add>, %89, %cst_29 [0] : vector<128x384xf32> to vector<384xf32>
    %91 = vector.shape_cast %90 : vector<384xf32> to vector<1x384xf32>
    %92 = arith.truncf %1 : vector<4x128xf32> to vector<4x128xbf16>
    %93 = arith.truncf %89 : vector<128x384xf32> to vector<128x384xbf16>
    %cst_30 = arith.constant dense<0.000000e+00> : vector<4x384xf32>
    %94 = tpu.matmul %92, %93, %cst_30 {dimension_numbers = #tpu.dot_dimension_numbers<[1], [0], [0], [1], [0, 0, 1, 1], [], []>} : vector<4x128xbf16>, vector<128x384xbf16>, vector<4x384xf32> -> vector<4x384xf32>
    %c0_31 = arith.constant 0 : index
    %c0_32 = arith.constant 0 : index
    %c0_33 = arith.constant 0 : index
    %95 = vector.load %arg8[%c0_31, %c0_32, %c0_33] : memref<2x4x4xf32, #tpu.memory_space<vmem>>, vector<1x4x4xf32>
    %96 = vector.shape_cast %95 : vector<1x4x4xf32> to vector<4x4xf32>
    %97 = arith.truncf %96 : vector<4x4xf32> to vector<4x4xbf16>
    %98 = arith.truncf %1 : vector<4x128xf32> to vector<4x128xbf16>
    %cst_34 = arith.constant dense<0.000000e+00> : vector<4x128xf32>
    %99 = tpu.matmul %97, %98, %cst_34 {dimension_numbers = #tpu.dot_dimension_numbers<[1], [0], [0], [1], [0, 0, 1, 1], [], []>} : vector<4x4xbf16>, vector<4x128xbf16>, vector<4x128xf32> -> vector<4x128xf32>
    %c0_35 = arith.constant 0 : index
    %c0_36 = arith.constant 0 : index
    %c0_37 = arith.constant 0 : index
    %100 = vector.load %arg10[%c0_35, %c0_36, %c0_37] : memref<2x4x1xf32, #tpu.memory_space<vmem>>, vector<1x4x1xf32>
    %101 = vector.shape_cast %100 : vector<1x4x1xf32> to vector<4x1xf32>
    %102 = vector.broadcast %101 : vector<4x1xf32> to vector<4x128xf32>
    %103 = arith.addf %99, %102 : vector<4x128xf32>
    %c0_38 = arith.constant 0 : index
    %c0_39 = arith.constant 0 : index
    %c0_40 = arith.constant 0 : index
    %c0_41 = arith.constant 0 : index
    %104 = vector.load %arg9[%c0_38, %c0_39, %c0_40, %c0_41] : memref<2x3x4x4xf32, #tpu.memory_space<vmem>>, vector<1x1x4x4xf32>
    %105 = vector.shape_cast %104 : vector<1x1x4x4xf32> to vector<4x4xf32>
    %106 = vector.extract_strided_slice %94 {offsets = [0, 0], sizes = [4, 128], strides = [1, 1]} : vector<4x384xf32> to vector<4x128xf32>
    %107 = arith.truncf %105 : vector<4x4xf32> to vector<4x4xbf16>
    %108 = arith.truncf %106 : vector<4x128xf32> to vector<4x128xbf16>
    %cst_42 = arith.constant dense<0.000000e+00> : vector<4x128xf32>
    %109 = tpu.matmul %107, %108, %cst_42 {dimension_numbers = #tpu.dot_dimension_numbers<[1], [0], [0], [1], [0, 0, 1, 1], [], []>} : vector<4x4xbf16>, vector<4x128xbf16>, vector<4x128xf32> -> vector<4x128xf32>
    %110 = arith.addf %103, %109 : vector<4x128xf32>
    %c0_43 = arith.constant 0 : index
    %c1 = arith.constant 1 : index
    %c0_44 = arith.constant 0 : index
    %c0_45 = arith.constant 0 : index
    %111 = vector.load %arg9[%c0_43, %c1, %c0_44, %c0_45] : memref<2x3x4x4xf32, #tpu.memory_space<vmem>>, vector<1x1x4x4xf32>
    %112 = vector.shape_cast %111 : vector<1x1x4x4xf32> to vector<4x4xf32>
    %113 = vector.extract_strided_slice %94 {offsets = [0, 128], sizes = [4, 128], strides = [1, 1]} : vector<4x384xf32> to vector<4x128xf32>
    %114 = arith.truncf %112 : vector<4x4xf32> to vector<4x4xbf16>
    %115 = arith.truncf %113 : vector<4x128xf32> to vector<4x128xbf16>
    %cst_46 = arith.constant dense<0.000000e+00> : vector<4x128xf32>
    %116 = tpu.matmul %114, %115, %cst_46 {dimension_numbers = #tpu.dot_dimension_numbers<[1], [0], [0], [1], [0, 0, 1, 1], [], []>} : vector<4x4xbf16>, vector<4x128xbf16>, vector<4x128xf32> -> vector<4x128xf32>
    %117 = arith.addf %110, %116 : vector<4x128xf32>
    %c0_47 = arith.constant 0 : index
    %c2 = arith.constant 2 : index
    %c0_48 = arith.constant 0 : index
    %c0_49 = arith.constant 0 : index
    %118 = vector.load %arg9[%c0_47, %c2, %c0_48, %c0_49] : memref<2x3x4x4xf32, #tpu.memory_space<vmem>>, vector<1x1x4x4xf32>
    %119 = vector.shape_cast %118 : vector<1x1x4x4xf32> to vector<4x4xf32>
    %120 = vector.extract_strided_slice %94 {offsets = [0, 256], sizes = [4, 128], strides = [1, 1]} : vector<4x384xf32> to vector<4x128xf32>
    %121 = arith.truncf %119 : vector<4x4xf32> to vector<4x4xbf16>
    %122 = arith.truncf %120 : vector<4x128xf32> to vector<4x128xbf16>
    %cst_50 = arith.constant dense<0.000000e+00> : vector<4x128xf32>
    %123 = tpu.matmul %121, %122, %cst_50 {dimension_numbers = #tpu.dot_dimension_numbers<[1], [0], [0], [1], [0, 0, 1, 1], [], []>} : vector<4x4xbf16>, vector<4x128xbf16>, vector<4x128xf32> -> vector<4x128xf32>
    %124 = arith.addf %117, %123 : vector<4x128xf32>
    %125 = arith.addf %124, %1 : vector<4x128xf32>
    %cst_51 = arith.constant 0.000000e+00 : f32
    %126 = vector.broadcast %cst_51 : f32 to vector<4x128xf32>
    %127 = arith.maximumf %125, %126 : vector<4x128xf32>
    %c1_52 = arith.constant 1 : index
    %c0_53 = arith.constant 0 : index
    %c0_54 = arith.constant 0 : index
    %128 = vector.load %arg8[%c1_52, %c0_53, %c0_54] : memref<2x4x4xf32, #tpu.memory_space<vmem>>, vector<1x4x4xf32>
    %129 = vector.shape_cast %128 : vector<1x4x4xf32> to vector<4x4xf32>
    %130 = arith.truncf %129 : vector<4x4xf32> to vector<4x4xbf16>
    %131 = arith.truncf %1 : vector<4x128xf32> to vector<4x128xbf16>
    %cst_55 = arith.constant dense<0.000000e+00> : vector<4x128xf32>
    %132 = tpu.matmul %130, %131, %cst_55 {dimension_numbers = #tpu.dot_dimension_numbers<[1], [0], [0], [1], [0, 0, 1, 1], [], []>} : vector<4x4xbf16>, vector<4x128xbf16>, vector<4x128xf32> -> vector<4x128xf32>
    %c1_56 = arith.constant 1 : index
    %c0_57 = arith.constant 0 : index
    %c0_58 = arith.constant 0 : index
    %133 = vector.load %arg10[%c1_56, %c0_57, %c0_58] : memref<2x4x1xf32, #tpu.memory_space<vmem>>, vector<1x4x1xf32>
    %134 = vector.shape_cast %133 : vector<1x4x1xf32> to vector<4x1xf32>
    %135 = vector.broadcast %134 : vector<4x1xf32> to vector<4x128xf32>
    %136 = arith.addf %132, %135 : vector<4x128xf32>
    %c1_59 = arith.constant 1 : index
    %c0_60 = arith.constant 0 : index
    %c0_61 = arith.constant 0 : index
    %c0_62 = arith.constant 0 : index
    %137 = vector.load %arg9[%c1_59, %c0_60, %c0_61, %c0_62] : memref<2x3x4x4xf32, #tpu.memory_space<vmem>>, vector<1x1x4x4xf32>
    %138 = vector.shape_cast %137 : vector<1x1x4x4xf32> to vector<4x4xf32>
    %139 = vector.extract_strided_slice %94 {offsets = [0, 0], sizes = [4, 128], strides = [1, 1]} : vector<4x384xf32> to vector<4x128xf32>
    %140 = arith.truncf %138 : vector<4x4xf32> to vector<4x4xbf16>
    %141 = arith.truncf %139 : vector<4x128xf32> to vector<4x128xbf16>
    %cst_63 = arith.constant dense<0.000000e+00> : vector<4x128xf32>
    %142 = tpu.matmul %140, %141, %cst_63 {dimension_numbers = #tpu.dot_dimension_numbers<[1], [0], [0], [1], [0, 0, 1, 1], [], []>} : vector<4x4xbf16>, vector<4x128xbf16>, vector<4x128xf32> -> vector<4x128xf32>
    %143 = arith.addf %136, %142 : vector<4x128xf32>
    %c1_64 = arith.constant 1 : index
    %c1_65 = arith.constant 1 : index
    %c0_66 = arith.constant 0 : index
    %c0_67 = arith.constant 0 : index
    %144 = vector.load %arg9[%c1_64, %c1_65, %c0_66, %c0_67] : memref<2x3x4x4xf32, #tpu.memory_space<vmem>>, vector<1x1x4x4xf32>
    %145 = vector.shape_cast %144 : vector<1x1x4x4xf32> to vector<4x4xf32>
    %146 = vector.extract_strided_slice %94 {offsets = [0, 128], sizes = [4, 128], strides = [1, 1]} : vector<4x384xf32> to vector<4x128xf32>
    %147 = arith.truncf %145 : vector<4x4xf32> to vector<4x4xbf16>
    %148 = arith.truncf %146 : vector<4x128xf32> to vector<4x128xbf16>
    %cst_68 = arith.constant dense<0.000000e+00> : vector<4x128xf32>
    %149 = tpu.matmul %147, %148, %cst_68 {dimension_numbers = #tpu.dot_dimension_numbers<[1], [0], [0], [1], [0, 0, 1, 1], [], []>} : vector<4x4xbf16>, vector<4x128xbf16>, vector<4x128xf32> -> vector<4x128xf32>
    %150 = arith.addf %143, %149 : vector<4x128xf32>
    %c1_69 = arith.constant 1 : index
    %c2_70 = arith.constant 2 : index
    %c0_71 = arith.constant 0 : index
    %c0_72 = arith.constant 0 : index
    %151 = vector.load %arg9[%c1_69, %c2_70, %c0_71, %c0_72] : memref<2x3x4x4xf32, #tpu.memory_space<vmem>>, vector<1x1x4x4xf32>
    %152 = vector.shape_cast %151 : vector<1x1x4x4xf32> to vector<4x4xf32>
    %153 = vector.extract_strided_slice %94 {offsets = [0, 256], sizes = [4, 128], strides = [1, 1]} : vector<4x384xf32> to vector<4x128xf32>
    %154 = arith.truncf %152 : vector<4x4xf32> to vector<4x4xbf16>
    %155 = arith.truncf %153 : vector<4x128xf32> to vector<4x128xbf16>
    %cst_73 = arith.constant dense<0.000000e+00> : vector<4x128xf32>
    %156 = tpu.matmul %154, %155, %cst_73 {dimension_numbers = #tpu.dot_dimension_numbers<[1], [0], [0], [1], [0, 0, 1, 1], [], []>} : vector<4x4xbf16>, vector<4x128xbf16>, vector<4x128xf32> -> vector<4x128xf32>
    %157 = arith.addf %150, %156 : vector<4x128xf32>
    %158 = arith.addf %157, %1 : vector<4x128xf32>
    %cst_74 = arith.constant 0.000000e+00 : f32
    %159 = vector.broadcast %cst_74 : f32 to vector<4x128xf32>
    %160 = arith.maximumf %158, %159 : vector<4x128xf32>
    %c0_75 = arith.constant 0 : index
    %c0_76 = arith.constant 0 : index
    %c0_77 = arith.constant 0 : index
    %161 = vector.load %arg11[%c0_75, %c0_76, %c0_77] : memref<2x8x4xf32, #tpu.memory_space<vmem>>, vector<1x8x4xf32>
    %162 = vector.shape_cast %161 : vector<1x8x4xf32> to vector<8x4xf32>
    %163 = arith.truncf %162 : vector<8x4xf32> to vector<8x4xbf16>
    %164 = arith.truncf %127 : vector<4x128xf32> to vector<4x128xbf16>
    %cst_78 = arith.constant dense<0.000000e+00> : vector<8x128xf32>
    %165 = tpu.matmul %163, %164, %cst_78 {dimension_numbers = #tpu.dot_dimension_numbers<[1], [0], [0], [1], [0, 0, 1, 1], [], []>} : vector<8x4xbf16>, vector<4x128xbf16>, vector<8x128xf32> -> vector<8x128xf32>
    %c0_79 = arith.constant 0 : index
    %c0_80 = arith.constant 0 : index
    %c0_81 = arith.constant 0 : index
    %166 = vector.load %arg12[%c0_79, %c0_80, %c0_81] : memref<2x8x1xf32, #tpu.memory_space<vmem>>, vector<1x8x1xf32>
    %167 = vector.shape_cast %166 : vector<1x8x1xf32> to vector<8x1xf32>
    %168 = vector.broadcast %167 : vector<8x1xf32> to vector<8x128xf32>
    %169 = arith.addf %165, %168 : vector<8x128xf32>
    %cst_82 = arith.constant 0.000000e+00 : f32
    %170 = vector.broadcast %cst_82 : f32 to vector<8x128xf32>
    %171 = arith.maximumf %169, %170 : vector<8x128xf32>
    %c1_83 = arith.constant 1 : index
    %c0_84 = arith.constant 0 : index
    %c0_85 = arith.constant 0 : index
    %172 = vector.load %arg11[%c1_83, %c0_84, %c0_85] : memref<2x8x4xf32, #tpu.memory_space<vmem>>, vector<1x8x4xf32>
    %173 = vector.shape_cast %172 : vector<1x8x4xf32> to vector<8x4xf32>
    %174 = arith.truncf %173 : vector<8x4xf32> to vector<8x4xbf16>
    %175 = arith.truncf %160 : vector<4x128xf32> to vector<4x128xbf16>
    %cst_86 = arith.constant dense<0.000000e+00> : vector<8x128xf32>
    %176 = tpu.matmul %174, %175, %cst_86 {dimension_numbers = #tpu.dot_dimension_numbers<[1], [0], [0], [1], [0, 0, 1, 1], [], []>} : vector<8x4xbf16>, vector<4x128xbf16>, vector<8x128xf32> -> vector<8x128xf32>
    %c1_87 = arith.constant 1 : index
    %c0_88 = arith.constant 0 : index
    %c0_89 = arith.constant 0 : index
    %177 = vector.load %arg12[%c1_87, %c0_88, %c0_89] : memref<2x8x1xf32, #tpu.memory_space<vmem>>, vector<1x8x1xf32>
    %178 = vector.shape_cast %177 : vector<1x8x1xf32> to vector<8x1xf32>
    %179 = vector.broadcast %178 : vector<8x1xf32> to vector<8x128xf32>
    %180 = arith.addf %176, %179 : vector<8x128xf32>
    %cst_90 = arith.constant 0.000000e+00 : f32
    %181 = vector.broadcast %cst_90 : f32 to vector<8x128xf32>
    %182 = arith.maximumf %180, %181 : vector<8x128xf32>
    %183 = arith.truncf %171 : vector<8x128xf32> to vector<8x128xbf16>
    %184 = arith.truncf %89 : vector<128x384xf32> to vector<128x384xbf16>
    %cst_91 = arith.constant dense<0.000000e+00> : vector<8x384xf32>
    %185 = tpu.matmul %183, %184, %cst_91 {dimension_numbers = #tpu.dot_dimension_numbers<[1], [0], [0], [1], [0, 0, 1, 1], [], []>} : vector<8x128xbf16>, vector<128x384xbf16>, vector<8x384xf32> -> vector<8x384xf32>
    %c0_92 = arith.constant 0 : index
    %c0_93 = arith.constant 0 : index
    %c0_94 = arith.constant 0 : index
    %186 = vector.load %arg13[%c0_92, %c0_93, %c0_94] : memref<2x8x8xf32, #tpu.memory_space<vmem>>, vector<1x8x8xf32>
    %187 = vector.shape_cast %186 : vector<1x8x8xf32> to vector<8x8xf32>
    %188 = arith.truncf %187 : vector<8x8xf32> to vector<8x8xbf16>
    %189 = arith.truncf %171 : vector<8x128xf32> to vector<8x128xbf16>
    %cst_95 = arith.constant dense<0.000000e+00> : vector<8x128xf32>
    %190 = tpu.matmul %188, %189, %cst_95 {dimension_numbers = #tpu.dot_dimension_numbers<[1], [0], [0], [1], [0, 0, 1, 1], [], []>} : vector<8x8xbf16>, vector<8x128xbf16>, vector<8x128xf32> -> vector<8x128xf32>
    %c0_96 = arith.constant 0 : index
    %c0_97 = arith.constant 0 : index
    %c0_98 = arith.constant 0 : index
    %191 = vector.load %arg15[%c0_96, %c0_97, %c0_98] : memref<2x8x1xf32, #tpu.memory_space<vmem>>, vector<1x8x1xf32>
    %192 = vector.shape_cast %191 : vector<1x8x1xf32> to vector<8x1xf32>
    %193 = vector.broadcast %192 : vector<8x1xf32> to vector<8x128xf32>
    %194 = arith.addf %190, %193 : vector<8x128xf32>
    %c0_99 = arith.constant 0 : index
    %c0_100 = arith.constant 0 : index
    %c0_101 = arith.constant 0 : index
    %c0_102 = arith.constant 0 : index
    %195 = vector.load %arg14[%c0_99, %c0_100, %c0_101, %c0_102] : memref<2x3x8x8xf32, #tpu.memory_space<vmem>>, vector<1x1x8x8xf32>
    %196 = vector.shape_cast %195 : vector<1x1x8x8xf32> to vector<8x8xf32>
    %197 = vector.extract_strided_slice %185 {offsets = [0, 0], sizes = [8, 128], strides = [1, 1]} : vector<8x384xf32> to vector<8x128xf32>
    %198 = arith.truncf %196 : vector<8x8xf32> to vector<8x8xbf16>
    %199 = arith.truncf %197 : vector<8x128xf32> to vector<8x128xbf16>
    %cst_103 = arith.constant dense<0.000000e+00> : vector<8x128xf32>
    %200 = tpu.matmul %198, %199, %cst_103 {dimension_numbers = #tpu.dot_dimension_numbers<[1], [0], [0], [1], [0, 0, 1, 1], [], []>} : vector<8x8xbf16>, vector<8x128xbf16>, vector<8x128xf32> -> vector<8x128xf32>
    %201 = arith.addf %194, %200 : vector<8x128xf32>
    %c0_104 = arith.constant 0 : index
    %c1_105 = arith.constant 1 : index
    %c0_106 = arith.constant 0 : index
    %c0_107 = arith.constant 0 : index
    %202 = vector.load %arg14[%c0_104, %c1_105, %c0_106, %c0_107] : memref<2x3x8x8xf32, #tpu.memory_space<vmem>>, vector<1x1x8x8xf32>
    %203 = vector.shape_cast %202 : vector<1x1x8x8xf32> to vector<8x8xf32>
    %204 = vector.extract_strided_slice %185 {offsets = [0, 128], sizes = [8, 128], strides = [1, 1]} : vector<8x384xf32> to vector<8x128xf32>
    %205 = arith.truncf %203 : vector<8x8xf32> to vector<8x8xbf16>
    %206 = arith.truncf %204 : vector<8x128xf32> to vector<8x128xbf16>
    %cst_108 = arith.constant dense<0.000000e+00> : vector<8x128xf32>
    %207 = tpu.matmul %205, %206, %cst_108 {dimension_numbers = #tpu.dot_dimension_numbers<[1], [0], [0], [1], [0, 0, 1, 1], [], []>} : vector<8x8xbf16>, vector<8x128xbf16>, vector<8x128xf32> -> vector<8x128xf32>
    %208 = arith.addf %201, %207 : vector<8x128xf32>
    %c0_109 = arith.constant 0 : index
    %c2_110 = arith.constant 2 : index
    %c0_111 = arith.constant 0 : index
    %c0_112 = arith.constant 0 : index
    %209 = vector.load %arg14[%c0_109, %c2_110, %c0_111, %c0_112] : memref<2x3x8x8xf32, #tpu.memory_space<vmem>>, vector<1x1x8x8xf32>
    %210 = vector.shape_cast %209 : vector<1x1x8x8xf32> to vector<8x8xf32>
    %211 = vector.extract_strided_slice %185 {offsets = [0, 256], sizes = [8, 128], strides = [1, 1]} : vector<8x384xf32> to vector<8x128xf32>
    %212 = arith.truncf %210 : vector<8x8xf32> to vector<8x8xbf16>
    %213 = arith.truncf %211 : vector<8x128xf32> to vector<8x128xbf16>
    %cst_113 = arith.constant dense<0.000000e+00> : vector<8x128xf32>
    %214 = tpu.matmul %212, %213, %cst_113 {dimension_numbers = #tpu.dot_dimension_numbers<[1], [0], [0], [1], [0, 0, 1, 1], [], []>} : vector<8x8xbf16>, vector<8x128xbf16>, vector<8x128xf32> -> vector<8x128xf32>
    %215 = arith.addf %208, %214 : vector<8x128xf32>
    %216 = arith.addf %215, %171 : vector<8x128xf32>
    %cst_114 = arith.constant 0.000000e+00 : f32
    %217 = vector.broadcast %cst_114 : f32 to vector<8x128xf32>
    %218 = arith.maximumf %216, %217 : vector<8x128xf32>
    %219 = arith.truncf %182 : vector<8x128xf32> to vector<8x128xbf16>
    %220 = arith.truncf %89 : vector<128x384xf32> to vector<128x384xbf16>
    %cst_115 = arith.constant dense<0.000000e+00> : vector<8x384xf32>
    %221 = tpu.matmul %219, %220, %cst_115 {dimension_numbers = #tpu.dot_dimension_numbers<[1], [0], [0], [1], [0, 0, 1, 1], [], []>} : vector<8x128xbf16>, vector<128x384xbf16>, vector<8x384xf32> -> vector<8x384xf32>
    %c1_116 = arith.constant 1 : index
    %c0_117 = arith.constant 0 : index
    %c0_118 = arith.constant 0 : index
    %222 = vector.load %arg13[%c1_116, %c0_117, %c0_118] : memref<2x8x8xf32, #tpu.memory_space<vmem>>, vector<1x8x8xf32>
    %223 = vector.shape_cast %222 : vector<1x8x8xf32> to vector<8x8xf32>
    %224 = arith.truncf %223 : vector<8x8xf32> to vector<8x8xbf16>
    %225 = arith.truncf %182 : vector<8x128xf32> to vector<8x128xbf16>
    %cst_119 = arith.constant dense<0.000000e+00> : vector<8x128xf32>
    %226 = tpu.matmul %224, %225, %cst_119 {dimension_numbers = #tpu.dot_dimension_numbers<[1], [0], [0], [1], [0, 0, 1, 1], [], []>} : vector<8x8xbf16>, vector<8x128xbf16>, vector<8x128xf32> -> vector<8x128xf32>
    %c1_120 = arith.constant 1 : index
    %c0_121 = arith.constant 0 : index
    %c0_122 = arith.constant 0 : index
    %227 = vector.load %arg15[%c1_120, %c0_121, %c0_122] : memref<2x8x1xf32, #tpu.memory_space<vmem>>, vector<1x8x1xf32>
    %228 = vector.shape_cast %227 : vector<1x8x1xf32> to vector<8x1xf32>
    %229 = vector.broadcast %228 : vector<8x1xf32> to vector<8x128xf32>
    %230 = arith.addf %226, %229 : vector<8x128xf32>
    %c1_123 = arith.constant 1 : index
    %c0_124 = arith.constant 0 : index
    %c0_125 = arith.constant 0 : index
    %c0_126 = arith.constant 0 : index
    %231 = vector.load %arg14[%c1_123, %c0_124, %c0_125, %c0_126] : memref<2x3x8x8xf32, #tpu.memory_space<vmem>>, vector<1x1x8x8xf32>
    %232 = vector.shape_cast %231 : vector<1x1x8x8xf32> to vector<8x8xf32>
    %233 = vector.extract_strided_slice %221 {offsets = [0, 0], sizes = [8, 128], strides = [1, 1]} : vector<8x384xf32> to vector<8x128xf32>
    %234 = arith.truncf %232 : vector<8x8xf32> to vector<8x8xbf16>
    %235 = arith.truncf %233 : vector<8x128xf32> to vector<8x128xbf16>
    %cst_127 = arith.constant dense<0.000000e+00> : vector<8x128xf32>
    %236 = tpu.matmul %234, %235, %cst_127 {dimension_numbers = #tpu.dot_dimension_numbers<[1], [0], [0], [1], [0, 0, 1, 1], [], []>} : vector<8x8xbf16>, vector<8x128xbf16>, vector<8x128xf32> -> vector<8x128xf32>
    %237 = arith.addf %230, %236 : vector<8x128xf32>
    %c1_128 = arith.constant 1 : index
    %c1_129 = arith.constant 1 : index
    %c0_130 = arith.constant 0 : index
    %c0_131 = arith.constant 0 : index
    %238 = vector.load %arg14[%c1_128, %c1_129, %c0_130, %c0_131] : memref<2x3x8x8xf32, #tpu.memory_space<vmem>>, vector<1x1x8x8xf32>
    %239 = vector.shape_cast %238 : vector<1x1x8x8xf32> to vector<8x8xf32>
    %240 = vector.extract_strided_slice %221 {offsets = [0, 128], sizes = [8, 128], strides = [1, 1]} : vector<8x384xf32> to vector<8x128xf32>
    %241 = arith.truncf %239 : vector<8x8xf32> to vector<8x8xbf16>
    %242 = arith.truncf %240 : vector<8x128xf32> to vector<8x128xbf16>
    %cst_132 = arith.constant dense<0.000000e+00> : vector<8x128xf32>
    %243 = tpu.matmul %241, %242, %cst_132 {dimension_numbers = #tpu.dot_dimension_numbers<[1], [0], [0], [1], [0, 0, 1, 1], [], []>} : vector<8x8xbf16>, vector<8x128xbf16>, vector<8x128xf32> -> vector<8x128xf32>
    %244 = arith.addf %237, %243 : vector<8x128xf32>
    %c1_133 = arith.constant 1 : index
    %c2_134 = arith.constant 2 : index
    %c0_135 = arith.constant 0 : index
    %c0_136 = arith.constant 0 : index
    %245 = vector.load %arg14[%c1_133, %c2_134, %c0_135, %c0_136] : memref<2x3x8x8xf32, #tpu.memory_space<vmem>>, vector<1x1x8x8xf32>
    %246 = vector.shape_cast %245 : vector<1x1x8x8xf32> to vector<8x8xf32>
    %247 = vector.extract_strided_slice %221 {offsets = [0, 256], sizes = [8, 128], strides = [1, 1]} : vector<8x384xf32> to vector<8x128xf32>
    %248 = arith.truncf %246 : vector<8x8xf32> to vector<8x8xbf16>
    %249 = arith.truncf %247 : vector<8x128xf32> to vector<8x128xbf16>
    %cst_137 = arith.constant dense<0.000000e+00> : vector<8x128xf32>
    %250 = tpu.matmul %248, %249, %cst_137 {dimension_numbers = #tpu.dot_dimension_numbers<[1], [0], [0], [1], [0, 0, 1, 1], [], []>} : vector<8x8xbf16>, vector<8x128xbf16>, vector<8x128xf32> -> vector<8x128xf32>
    %251 = arith.addf %244, %250 : vector<8x128xf32>
    %252 = arith.addf %251, %182 : vector<8x128xf32>
    %cst_138 = arith.constant 0.000000e+00 : f32
    %253 = vector.broadcast %cst_138 : f32 to vector<8x128xf32>
    %254 = arith.maximumf %252, %253 : vector<8x128xf32>
    %255 = tpu.concatenate %218, %254 in 0 : vector<8x128xf32>, vector<8x128xf32> -> vector<16x128xf32>
    %256 = tpu.iota {dimensions = array<i32: 1>} : vector<1x128xi32>
    %cst_139 = arith.constant 0.000000e+00 : f32
    %257 = vector.broadcast %cst_139 : f32 to vector<16x128xf32>
    %c0_i32 = arith.constant 0 : i32
    %258 = vector.broadcast %c0_i32 : i32 to vector<1x128xi32>
    %259 = arith.cmpi sge, %256, %258 : vector<1x128xi32>
    %c16_i32 = arith.constant 16 : i32
    %260 = vector.broadcast %c16_i32 : i32 to vector<1x128xi32>
    %261 = arith.cmpi slt, %256, %260 : vector<1x128xi32>
    %262 = arith.andi %259, %261 : vector<1x128xi1>
    %cst_140 = arith.constant 0xFF800000 : f32
    %263 = vector.shape_cast %262 : vector<1x128xi1> to vector<1x128xi1>
    %264 = vector.broadcast %263 : vector<1x128xi1> to vector<16x128xi1>
    %265 = vector.broadcast %cst_140 : f32 to vector<16x128xf32>
    %266 = arith.select %264, %255, %265 : vector<16x128xi1>, vector<16x128xf32>
    %cst_141 = arith.constant dense<0xFF800000> : vector<16xf32>
    %267 = vector.multi_reduction <maximumf>, %266, %cst_141 [1] : vector<16x128xf32> to vector<16xf32>
    %268 = vector.shape_cast %267 : vector<16xf32> to vector<16x1xf32>
    %cst_142 = arith.constant 0.000000e+00 : f32
    %269 = vector.shape_cast %262 : vector<1x128xi1> to vector<1x128xi1>
    %270 = vector.broadcast %269 : vector<1x128xi1> to vector<16x128xi1>
    %271 = vector.shape_cast %268 : vector<16x1xf32> to vector<16x1xf32>
    %272 = vector.broadcast %271 : vector<16x1xf32> to vector<16x128xf32>
    %273 = vector.broadcast %cst_142 : f32 to vector<16x128xf32>
    %274 = arith.select %270, %272, %273 : vector<16x128xi1>, vector<16x128xf32>
    %275 = arith.addf %257, %274 : vector<16x128xf32>
    %c16_i32_143 = arith.constant 16 : i32
    %276 = vector.broadcast %c16_i32_143 : i32 to vector<1x128xi32>
    %277 = arith.cmpi sge, %256, %276 : vector<1x128xi32>
    %c32_i32 = arith.constant 32 : i32
    %278 = vector.broadcast %c32_i32 : i32 to vector<1x128xi32>
    %279 = arith.cmpi slt, %256, %278 : vector<1x128xi32>
    %280 = arith.andi %277, %279 : vector<1x128xi1>
    %cst_144 = arith.constant 0xFF800000 : f32
    %281 = vector.shape_cast %280 : vector<1x128xi1> to vector<1x128xi1>
    %282 = vector.broadcast %281 : vector<1x128xi1> to vector<16x128xi1>
    %283 = vector.broadcast %cst_144 : f32 to vector<16x128xf32>
    %284 = arith.select %282, %255, %283 : vector<16x128xi1>, vector<16x128xf32>
    %cst_145 = arith.constant dense<0xFF800000> : vector<16xf32>
    %285 = vector.multi_reduction <maximumf>, %284, %cst_145 [1] : vector<16x128xf32> to vector<16xf32>
    %286 = vector.shape_cast %285 : vector<16xf32> to vector<16x1xf32>
    %cst_146 = arith.constant 0.000000e+00 : f32
    %287 = vector.shape_cast %280 : vector<1x128xi1> to vector<1x128xi1>
    %288 = vector.broadcast %287 : vector<1x128xi1> to vector<16x128xi1>
    %289 = vector.shape_cast %286 : vector<16x1xf32> to vector<16x1xf32>
    %290 = vector.broadcast %289 : vector<16x1xf32> to vector<16x128xf32>
    %291 = vector.broadcast %cst_146 : f32 to vector<16x128xf32>
    %292 = arith.select %288, %290, %291 : vector<16x128xi1>, vector<16x128xf32>
    %293 = arith.addf %275, %292 : vector<16x128xf32>
    %c32_i32_147 = arith.constant 32 : i32
    %294 = vector.broadcast %c32_i32_147 : i32 to vector<1x128xi32>
    %295 = arith.cmpi sge, %256, %294 : vector<1x128xi32>
    %c48_i32 = arith.constant 48 : i32
    %296 = vector.broadcast %c48_i32 : i32 to vector<1x128xi32>
    %297 = arith.cmpi slt, %256, %296 : vector<1x128xi32>
    %298 = arith.andi %295, %297 : vector<1x128xi1>
    %cst_148 = arith.constant 0xFF800000 : f32
    %299 = vector.shape_cast %298 : vector<1x128xi1> to vector<1x128xi1>
    %300 = vector.broadcast %299 : vector<1x128xi1> to vector<16x128xi1>
    %301 = vector.broadcast %cst_148 : f32 to vector<16x128xf32>
    %302 = arith.select %300, %255, %301 : vector<16x128xi1>, vector<16x128xf32>
    %cst_149 = arith.constant dense<0xFF800000> : vector<16xf32>
    %303 = vector.multi_reduction <maximumf>, %302, %cst_149 [1] : vector<16x128xf32> to vector<16xf32>
    %304 = vector.shape_cast %303 : vector<16xf32> to vector<16x1xf32>
    %cst_150 = arith.constant 0.000000e+00 : f32
    %305 = vector.shape_cast %298 : vector<1x128xi1> to vector<1x128xi1>
    %306 = vector.broadcast %305 : vector<1x128xi1> to vector<16x128xi1>
    %307 = vector.shape_cast %304 : vector<16x1xf32> to vector<16x1xf32>
    %308 = vector.broadcast %307 : vector<16x1xf32> to vector<16x128xf32>
    %309 = vector.broadcast %cst_150 : f32 to vector<16x128xf32>
    %310 = arith.select %306, %308, %309 : vector<16x128xi1>, vector<16x128xf32>
    %311 = arith.addf %293, %310 : vector<16x128xf32>
    %c48_i32_151 = arith.constant 48 : i32
    %312 = vector.broadcast %c48_i32_151 : i32 to vector<1x128xi32>
    %313 = arith.cmpi sge, %256, %312 : vector<1x128xi32>
    %c64_i32 = arith.constant 64 : i32
    %314 = vector.broadcast %c64_i32 : i32 to vector<1x128xi32>
    %315 = arith.cmpi slt, %256, %314 : vector<1x128xi32>
    %316 = arith.andi %313, %315 : vector<1x128xi1>
    %cst_152 = arith.constant 0xFF800000 : f32
    %317 = vector.shape_cast %316 : vector<1x128xi1> to vector<1x128xi1>
    %318 = vector.broadcast %317 : vector<1x128xi1> to vector<16x128xi1>
    %319 = vector.broadcast %cst_152 : f32 to vector<16x128xf32>
    %320 = arith.select %318, %255, %319 : vector<16x128xi1>, vector<16x128xf32>
    %cst_153 = arith.constant dense<0xFF800000> : vector<16xf32>
    %321 = vector.multi_reduction <maximumf>, %320, %cst_153 [1] : vector<16x128xf32> to vector<16xf32>
    %322 = vector.shape_cast %321 : vector<16xf32> to vector<16x1xf32>
    %cst_154 = arith.constant 0.000000e+00 : f32
    %323 = vector.shape_cast %316 : vector<1x128xi1> to vector<1x128xi1>
    %324 = vector.broadcast %323 : vector<1x128xi1> to vector<16x128xi1>
    %325 = vector.shape_cast %322 : vector<16x1xf32> to vector<16x1xf32>
    %326 = vector.broadcast %325 : vector<16x1xf32> to vector<16x128xf32>
    %327 = vector.broadcast %cst_154 : f32 to vector<16x128xf32>
    %328 = arith.select %324, %326, %327 : vector<16x128xi1>, vector<16x128xf32>
    %329 = arith.addf %311, %328 : vector<16x128xf32>
    %c64_i32_155 = arith.constant 64 : i32
    %330 = vector.broadcast %c64_i32_155 : i32 to vector<1x128xi32>
    %331 = arith.cmpi sge, %256, %330 : vector<1x128xi32>
    %c80_i32 = arith.constant 80 : i32
    %332 = vector.broadcast %c80_i32 : i32 to vector<1x128xi32>
    %333 = arith.cmpi slt, %256, %332 : vector<1x128xi32>
    %334 = arith.andi %331, %333 : vector<1x128xi1>
    %cst_156 = arith.constant 0xFF800000 : f32
    %335 = vector.shape_cast %334 : vector<1x128xi1> to vector<1x128xi1>
    %336 = vector.broadcast %335 : vector<1x128xi1> to vector<16x128xi1>
    %337 = vector.broadcast %cst_156 : f32 to vector<16x128xf32>
    %338 = arith.select %336, %255, %337 : vector<16x128xi1>, vector<16x128xf32>
    %cst_157 = arith.constant dense<0xFF800000> : vector<16xf32>
    %339 = vector.multi_reduction <maximumf>, %338, %cst_157 [1] : vector<16x128xf32> to vector<16xf32>
    %340 = vector.shape_cast %339 : vector<16xf32> to vector<16x1xf32>
    %cst_158 = arith.constant 0.000000e+00 : f32
    %341 = vector.shape_cast %334 : vector<1x128xi1> to vector<1x128xi1>
    %342 = vector.broadcast %341 : vector<1x128xi1> to vector<16x128xi1>
    %343 = vector.shape_cast %340 : vector<16x1xf32> to vector<16x1xf32>
    %344 = vector.broadcast %343 : vector<16x1xf32> to vector<16x128xf32>
    %345 = vector.broadcast %cst_158 : f32 to vector<16x128xf32>
    %346 = arith.select %342, %344, %345 : vector<16x128xi1>, vector<16x128xf32>
    %347 = arith.addf %329, %346 : vector<16x128xf32>
    %c80_i32_159 = arith.constant 80 : i32
    %348 = vector.broadcast %c80_i32_159 : i32 to vector<1x128xi32>
    %349 = arith.cmpi sge, %256, %348 : vector<1x128xi32>
    %c96_i32 = arith.constant 96 : i32
    %350 = vector.broadcast %c96_i32 : i32 to vector<1x128xi32>
    %351 = arith.cmpi slt, %256, %350 : vector<1x128xi32>
    %352 = arith.andi %349, %351 : vector<1x128xi1>
    %cst_160 = arith.constant 0xFF800000 : f32
    %353 = vector.shape_cast %352 : vector<1x128xi1> to vector<1x128xi1>
    %354 = vector.broadcast %353 : vector<1x128xi1> to vector<16x128xi1>
    %355 = vector.broadcast %cst_160 : f32 to vector<16x128xf32>
    %356 = arith.select %354, %255, %355 : vector<16x128xi1>, vector<16x128xf32>
    %cst_161 = arith.constant dense<0xFF800000> : vector<16xf32>
    %357 = vector.multi_reduction <maximumf>, %356, %cst_161 [1] : vector<16x128xf32> to vector<16xf32>
    %358 = vector.shape_cast %357 : vector<16xf32> to vector<16x1xf32>
    %cst_162 = arith.constant 0.000000e+00 : f32
    %359 = vector.shape_cast %352 : vector<1x128xi1> to vector<1x128xi1>
    %360 = vector.broadcast %359 : vector<1x128xi1> to vector<16x128xi1>
    %361 = vector.shape_cast %358 : vector<16x1xf32> to vector<16x1xf32>
    %362 = vector.broadcast %361 : vector<16x1xf32> to vector<16x128xf32>
    %363 = vector.broadcast %cst_162 : f32 to vector<16x128xf32>
    %364 = arith.select %360, %362, %363 : vector<16x128xi1>, vector<16x128xf32>
    %365 = arith.addf %347, %364 : vector<16x128xf32>
    %c96_i32_163 = arith.constant 96 : i32
    %366 = vector.broadcast %c96_i32_163 : i32 to vector<1x128xi32>
    %367 = arith.cmpi sge, %256, %366 : vector<1x128xi32>
    %c112_i32 = arith.constant 112 : i32
    %368 = vector.broadcast %c112_i32 : i32 to vector<1x128xi32>
    %369 = arith.cmpi slt, %256, %368 : vector<1x128xi32>
    %370 = arith.andi %367, %369 : vector<1x128xi1>
    %cst_164 = arith.constant 0xFF800000 : f32
    %371 = vector.shape_cast %370 : vector<1x128xi1> to vector<1x128xi1>
    %372 = vector.broadcast %371 : vector<1x128xi1> to vector<16x128xi1>
    %373 = vector.broadcast %cst_164 : f32 to vector<16x128xf32>
    %374 = arith.select %372, %255, %373 : vector<16x128xi1>, vector<16x128xf32>
    %cst_165 = arith.constant dense<0xFF800000> : vector<16xf32>
    %375 = vector.multi_reduction <maximumf>, %374, %cst_165 [1] : vector<16x128xf32> to vector<16xf32>
    %376 = vector.shape_cast %375 : vector<16xf32> to vector<16x1xf32>
    %cst_166 = arith.constant 0.000000e+00 : f32
    %377 = vector.shape_cast %370 : vector<1x128xi1> to vector<1x128xi1>
    %378 = vector.broadcast %377 : vector<1x128xi1> to vector<16x128xi1>
    %379 = vector.shape_cast %376 : vector<16x1xf32> to vector<16x1xf32>
    %380 = vector.broadcast %379 : vector<16x1xf32> to vector<16x128xf32>
    %381 = vector.broadcast %cst_166 : f32 to vector<16x128xf32>
    %382 = arith.select %378, %380, %381 : vector<16x128xi1>, vector<16x128xf32>
    %383 = arith.addf %365, %382 : vector<16x128xf32>
    %c112_i32_167 = arith.constant 112 : i32
    %384 = vector.broadcast %c112_i32_167 : i32 to vector<1x128xi32>
    %385 = arith.cmpi sge, %256, %384 : vector<1x128xi32>
    %c128_i32 = arith.constant 128 : i32
    %386 = vector.broadcast %c128_i32 : i32 to vector<1x128xi32>
    %387 = arith.cmpi slt, %256, %386 : vector<1x128xi32>
    %388 = arith.andi %385, %387 : vector<1x128xi1>
    %cst_168 = arith.constant 0xFF800000 : f32
    %389 = vector.shape_cast %388 : vector<1x128xi1> to vector<1x128xi1>
    %390 = vector.broadcast %389 : vector<1x128xi1> to vector<16x128xi1>
    %391 = vector.broadcast %cst_168 : f32 to vector<16x128xf32>
    %392 = arith.select %390, %255, %391 : vector<16x128xi1>, vector<16x128xf32>
    %cst_169 = arith.constant dense<0xFF800000> : vector<16xf32>
    %393 = vector.multi_reduction <maximumf>, %392, %cst_169 [1] : vector<16x128xf32> to vector<16xf32>
    %394 = vector.shape_cast %393 : vector<16xf32> to vector<16x1xf32>
    %cst_170 = arith.constant 0.000000e+00 : f32
    %395 = vector.shape_cast %388 : vector<1x128xi1> to vector<1x128xi1>
    %396 = vector.broadcast %395 : vector<1x128xi1> to vector<16x128xi1>
    %397 = vector.shape_cast %394 : vector<16x1xf32> to vector<16x1xf32>
    %398 = vector.broadcast %397 : vector<16x1xf32> to vector<16x128xf32>
    %399 = vector.broadcast %cst_170 : f32 to vector<16x128xf32>
    %400 = arith.select %396, %398, %399 : vector<16x128xi1>, vector<16x128xf32>
    %401 = arith.addf %383, %400 : vector<16x128xf32>
    %402 = vector.extract_strided_slice %91 {offsets = [0, 0], sizes = [1, 128], strides = [1, 1]} : vector<1x384xf32> to vector<1x128xf32>
    %403 = vector.broadcast %402 : vector<1x128xf32> to vector<16x128xf32>
    %404 = arith.mulf %401, %403 : vector<16x128xf32>
    %405 = vector.extract_strided_slice %91 {offsets = [0, 128], sizes = [1, 128], strides = [1, 1]} : vector<1x384xf32> to vector<1x128xf32>
    %406 = vector.broadcast %405 : vector<1x128xf32> to vector<16x128xf32>
    %407 = arith.mulf %401, %406 : vector<16x128xf32>
    %408 = vector.extract_strided_slice %91 {offsets = [0, 256], sizes = [1, 128], strides = [1, 1]} : vector<1x384xf32> to vector<1x128xf32>
    %409 = vector.broadcast %408 : vector<1x128xf32> to vector<16x128xf32>
    %410 = arith.mulf %401, %409 : vector<16x128xf32>
    %411 = arith.truncf %218 : vector<8x128xf32> to vector<8x128xbf16>
    %412 = arith.truncf %89 : vector<128x384xf32> to vector<128x384xbf16>
    %cst_171 = arith.constant dense<0.000000e+00> : vector<8x384xf32>
    %413 = tpu.matmul %411, %412, %cst_171 {dimension_numbers = #tpu.dot_dimension_numbers<[1], [0], [0], [1], [0, 0, 1, 1], [], []>} : vector<8x128xbf16>, vector<128x384xbf16>, vector<8x384xf32> -> vector<8x384xf32>
    %c0_172 = arith.constant 0 : index
    %c0_173 = arith.constant 0 : index
    %c0_174 = arith.constant 0 : index
    %c0_175 = arith.constant 0 : index
    %414 = vector.load %arg17[%c0_172, %c0_173, %c0_174, %c0_175] : memref<2x4x8x8xf32, #tpu.memory_space<vmem>>, vector<1x1x8x8xf32>
    %415 = vector.shape_cast %414 : vector<1x1x8x8xf32> to vector<8x8xf32>
    %416 = arith.truncf %415 : vector<8x8xf32> to vector<8x8xbf16>
    %417 = arith.truncf %218 : vector<8x128xf32> to vector<8x128xbf16>
    %cst_176 = arith.constant dense<0.000000e+00> : vector<8x128xf32>
    %418 = tpu.matmul %416, %417, %cst_176 {dimension_numbers = #tpu.dot_dimension_numbers<[1], [0], [0], [1], [0, 0, 1, 1], [], []>} : vector<8x8xbf16>, vector<8x128xbf16>, vector<8x128xf32> -> vector<8x128xf32>
    %c0_177 = arith.constant 0 : index
    %c0_178 = arith.constant 0 : index
    %c0_179 = arith.constant 0 : index
    %419 = vector.load %arg18[%c0_177, %c0_178, %c0_179] : memref<2x8x1xf32, #tpu.memory_space<vmem>>, vector<1x8x1xf32>
    %420 = vector.shape_cast %419 : vector<1x8x1xf32> to vector<8x1xf32>
    %421 = vector.broadcast %420 : vector<8x1xf32> to vector<8x128xf32>
    %422 = arith.addf %418, %421 : vector<8x128xf32>
    %c0_180 = arith.constant 0 : index
    %c1_181 = arith.constant 1 : index
    %c0_182 = arith.constant 0 : index
    %c0_183 = arith.constant 0 : index
    %423 = vector.load %arg17[%c0_180, %c1_181, %c0_182, %c0_183] : memref<2x4x8x8xf32, #tpu.memory_space<vmem>>, vector<1x1x8x8xf32>
    %424 = vector.shape_cast %423 : vector<1x1x8x8xf32> to vector<8x8xf32>
    %425 = vector.extract_strided_slice %413 {offsets = [0, 0], sizes = [8, 128], strides = [1, 1]} : vector<8x384xf32> to vector<8x128xf32>
    %426 = arith.truncf %424 : vector<8x8xf32> to vector<8x8xbf16>
    %427 = arith.truncf %425 : vector<8x128xf32> to vector<8x128xbf16>
    %cst_184 = arith.constant dense<0.000000e+00> : vector<8x128xf32>
    %428 = tpu.matmul %426, %427, %cst_184 {dimension_numbers = #tpu.dot_dimension_numbers<[1], [0], [0], [1], [0, 0, 1, 1], [], []>} : vector<8x8xbf16>, vector<8x128xbf16>, vector<8x128xf32> -> vector<8x128xf32>
    %429 = arith.addf %422, %428 : vector<8x128xf32>
    %c0_185 = arith.constant 0 : index
    %c2_186 = arith.constant 2 : index
    %c0_187 = arith.constant 0 : index
    %c0_188 = arith.constant 0 : index
    %430 = vector.load %arg17[%c0_185, %c2_186, %c0_187, %c0_188] : memref<2x4x8x8xf32, #tpu.memory_space<vmem>>, vector<1x1x8x8xf32>
    %431 = vector.shape_cast %430 : vector<1x1x8x8xf32> to vector<8x8xf32>
    %432 = vector.extract_strided_slice %413 {offsets = [0, 128], sizes = [8, 128], strides = [1, 1]} : vector<8x384xf32> to vector<8x128xf32>
    %433 = arith.truncf %431 : vector<8x8xf32> to vector<8x8xbf16>
    %434 = arith.truncf %432 : vector<8x128xf32> to vector<8x128xbf16>
    %cst_189 = arith.constant dense<0.000000e+00> : vector<8x128xf32>
    %435 = tpu.matmul %433, %434, %cst_189 {dimension_numbers = #tpu.dot_dimension_numbers<[1], [0], [0], [1], [0, 0, 1, 1], [], []>} : vector<8x8xbf16>, vector<8x128xbf16>, vector<8x128xf32> -> vector<8x128xf32>
    %436 = arith.addf %429, %435 : vector<8x128xf32>
    %c0_190 = arith.constant 0 : index
    %c3 = arith.constant 3 : index
    %c0_191 = arith.constant 0 : index
    %c0_192 = arith.constant 0 : index
    %437 = vector.load %arg17[%c0_190, %c3, %c0_191, %c0_192] : memref<2x4x8x8xf32, #tpu.memory_space<vmem>>, vector<1x1x8x8xf32>
    %438 = vector.shape_cast %437 : vector<1x1x8x8xf32> to vector<8x8xf32>
    %439 = vector.extract_strided_slice %413 {offsets = [0, 256], sizes = [8, 128], strides = [1, 1]} : vector<8x384xf32> to vector<8x128xf32>
    %440 = arith.truncf %438 : vector<8x8xf32> to vector<8x8xbf16>
    %441 = arith.truncf %439 : vector<8x128xf32> to vector<8x128xbf16>
    %cst_193 = arith.constant dense<0.000000e+00> : vector<8x128xf32>
    %442 = tpu.matmul %440, %441, %cst_193 {dimension_numbers = #tpu.dot_dimension_numbers<[1], [0], [0], [1], [0, 0, 1, 1], [], []>} : vector<8x8xbf16>, vector<8x128xbf16>, vector<8x128xf32> -> vector<8x128xf32>
    %443 = arith.addf %436, %442 : vector<8x128xf32>
    %c0_194 = arith.constant 0 : index
    %c0_195 = arith.constant 0 : index
    %c0_196 = arith.constant 0 : index
    %c0_197 = arith.constant 0 : index
    %444 = vector.load %arg16[%c0_194, %c0_195, %c0_196, %c0_197] : memref<2x4x8x16xf32, #tpu.memory_space<vmem>>, vector<1x1x8x16xf32>
    %445 = vector.shape_cast %444 : vector<1x1x8x16xf32> to vector<8x16xf32>
    %446 = arith.truncf %445 : vector<8x16xf32> to vector<8x16xbf16>
    %447 = arith.truncf %401 : vector<16x128xf32> to vector<16x128xbf16>
    %cst_198 = arith.constant dense<0.000000e+00> : vector<8x128xf32>
    %448 = tpu.matmul %446, %447, %cst_198 {dimension_numbers = #tpu.dot_dimension_numbers<[1], [0], [0], [1], [0, 0, 1, 1], [], []>} : vector<8x16xbf16>, vector<16x128xbf16>, vector<8x128xf32> -> vector<8x128xf32>
    %449 = arith.addf %443, %448 : vector<8x128xf32>
    %c0_199 = arith.constant 0 : index
    %c1_200 = arith.constant 1 : index
    %c0_201 = arith.constant 0 : index
    %c0_202 = arith.constant 0 : index
    %450 = vector.load %arg16[%c0_199, %c1_200, %c0_201, %c0_202] : memref<2x4x8x16xf32, #tpu.memory_space<vmem>>, vector<1x1x8x16xf32>
    %451 = vector.shape_cast %450 : vector<1x1x8x16xf32> to vector<8x16xf32>
    %452 = arith.truncf %451 : vector<8x16xf32> to vector<8x16xbf16>
    %453 = arith.truncf %404 : vector<16x128xf32> to vector<16x128xbf16>
    %cst_203 = arith.constant dense<0.000000e+00> : vector<8x128xf32>
    %454 = tpu.matmul %452, %453, %cst_203 {dimension_numbers = #tpu.dot_dimension_numbers<[1], [0], [0], [1], [0, 0, 1, 1], [], []>} : vector<8x16xbf16>, vector<16x128xbf16>, vector<8x128xf32> -> vector<8x128xf32>
    %455 = arith.addf %449, %454 : vector<8x128xf32>
    %c0_204 = arith.constant 0 : index
    %c2_205 = arith.constant 2 : index
    %c0_206 = arith.constant 0 : index
    %c0_207 = arith.constant 0 : index
    %456 = vector.load %arg16[%c0_204, %c2_205, %c0_206, %c0_207] : memref<2x4x8x16xf32, #tpu.memory_space<vmem>>, vector<1x1x8x16xf32>
    %457 = vector.shape_cast %456 : vector<1x1x8x16xf32> to vector<8x16xf32>
    %458 = arith.truncf %457 : vector<8x16xf32> to vector<8x16xbf16>
    %459 = arith.truncf %407 : vector<16x128xf32> to vector<16x128xbf16>
    %cst_208 = arith.constant dense<0.000000e+00> : vector<8x128xf32>
    %460 = tpu.matmul %458, %459, %cst_208 {dimension_numbers = #tpu.dot_dimension_numbers<[1], [0], [0], [1], [0, 0, 1, 1], [], []>} : vector<8x16xbf16>, vector<16x128xbf16>, vector<8x128xf32> -> vector<8x128xf32>
    %461 = arith.addf %455, %460 : vector<8x128xf32>
    %c0_209 = arith.constant 0 : index
    %c3_210 = arith.constant 3 : index
    %c0_211 = arith.constant 0 : index
    %c0_212 = arith.constant 0 : index
    %462 = vector.load %arg16[%c0_209, %c3_210, %c0_211, %c0_212] : memref<2x4x8x16xf32, #tpu.memory_space<vmem>>, vector<1x1x8x16xf32>
    %463 = vector.shape_cast %462 : vector<1x1x8x16xf32> to vector<8x16xf32>
    %464 = arith.truncf %463 : vector<8x16xf32> to vector<8x16xbf16>
    %465 = arith.truncf %410 : vector<16x128xf32> to vector<16x128xbf16>
    %cst_213 = arith.constant dense<0.000000e+00> : vector<8x128xf32>
    %466 = tpu.matmul %464, %465, %cst_213 {dimension_numbers = #tpu.dot_dimension_numbers<[1], [0], [0], [1], [0, 0, 1, 1], [], []>} : vector<8x16xbf16>, vector<16x128xbf16>, vector<8x128xf32> -> vector<8x128xf32>
    %467 = arith.addf %461, %466 : vector<8x128xf32>
    %c0_214 = arith.constant 0 : index
    %c0_215 = arith.constant 0 : index
    %c0_216 = arith.constant 0 : index
    %c0_217 = arith.constant 0 : index
    %468 = vector.load %arg19[%c0_214, %c0_215, %c0_216, %c0_217] : memref<1x2x8x128xf32, #tpu.memory_space<vmem>>, vector<1x1x8x128xf32>
    %469 = vector.shape_cast %468 : vector<1x1x8x128xf32> to vector<8x128xf32>
    %470 = vector.shape_cast %467 : vector<8x128xf32> to vector<1x1x8x128xf32>
    tpu.vector_store %arg19[%c0_214, %c0_215, %c0_216, %c0_217], %470 {strides = array<i32>} : memref<1x2x8x128xf32, #tpu.memory_space<vmem>>, vector<1x1x8x128xf32>,
    %471 = arith.truncf %254 : vector<8x128xf32> to vector<8x128xbf16>
    %472 = arith.truncf %89 : vector<128x384xf32> to vector<128x384xbf16>
    %cst_218 = arith.constant dense<0.000000e+00> : vector<8x384xf32>
    %473 = tpu.matmul %471, %472, %cst_218 {dimension_numbers = #tpu.dot_dimension_numbers<[1], [0], [0], [1], [0, 0, 1, 1], [], []>} : vector<8x128xbf16>, vector<128x384xbf16>, vector<8x384xf32> -> vector<8x384xf32>
    %c1_219 = arith.constant 1 : index
    %c0_220 = arith.constant 0 : index
    %c0_221 = arith.constant 0 : index
    %c0_222 = arith.constant 0 : index
    %474 = vector.load %arg17[%c1_219, %c0_220, %c0_221, %c0_222] : memref<2x4x8x8xf32, #tpu.memory_space<vmem>>, vector<1x1x8x8xf32>
    %475 = vector.shape_cast %474 : vector<1x1x8x8xf32> to vector<8x8xf32>
    %476 = arith.truncf %475 : vector<8x8xf32> to vector<8x8xbf16>
    %477 = arith.truncf %254 : vector<8x128xf32> to vector<8x128xbf16>
    %cst_223 = arith.constant dense<0.000000e+00> : vector<8x128xf32>
    %478 = tpu.matmul %476, %477, %cst_223 {dimension_numbers = #tpu.dot_dimension_numbers<[1], [0], [0], [1], [0, 0, 1, 1], [], []>} : vector<8x8xbf16>, vector<8x128xbf16>, vector<8x128xf32> -> vector<8x128xf32>
    %c1_224 = arith.constant 1 : index
    %c0_225 = arith.constant 0 : index
    %c0_226 = arith.constant 0 : index
    %479 = vector.load %arg18[%c1_224, %c0_225, %c0_226] : memref<2x8x1xf32, #tpu.memory_space<vmem>>, vector<1x8x1xf32>
    %480 = vector.shape_cast %479 : vector<1x8x1xf32> to vector<8x1xf32>
    %481 = vector.broadcast %480 : vector<8x1xf32> to vector<8x128xf32>
    %482 = arith.addf %478, %481 : vector<8x128xf32>
    %c1_227 = arith.constant 1 : index
    %c1_228 = arith.constant 1 : index
    %c0_229 = arith.constant 0 : index
    %c0_230 = arith.constant 0 : index
    %483 = vector.load %arg17[%c1_227, %c1_228, %c0_229, %c0_230] : memref<2x4x8x8xf32, #tpu.memory_space<vmem>>, vector<1x1x8x8xf32>
    %484 = vector.shape_cast %483 : vector<1x1x8x8xf32> to vector<8x8xf32>
    %485 = vector.extract_strided_slice %473 {offsets = [0, 0], sizes = [8, 128], strides = [1, 1]} : vector<8x384xf32> to vector<8x128xf32>
    %486 = arith.truncf %484 : vector<8x8xf32> to vector<8x8xbf16>
    %487 = arith.truncf %485 : vector<8x128xf32> to vector<8x128xbf16>
    %cst_231 = arith.constant dense<0.000000e+00> : vector<8x128xf32>
    %488 = tpu.matmul %486, %487, %cst_231 {dimension_numbers = #tpu.dot_dimension_numbers<[1], [0], [0], [1], [0, 0, 1, 1], [], []>} : vector<8x8xbf16>, vector<8x128xbf16>, vector<8x128xf32> -> vector<8x128xf32>
    %489 = arith.addf %482, %488 : vector<8x128xf32>
    %c1_232 = arith.constant 1 : index
    %c2_233 = arith.constant 2 : index
    %c0_234 = arith.constant 0 : index
    %c0_235 = arith.constant 0 : index
    %490 = vector.load %arg17[%c1_232, %c2_233, %c0_234, %c0_235] : memref<2x4x8x8xf32, #tpu.memory_space<vmem>>, vector<1x1x8x8xf32>
    %491 = vector.shape_cast %490 : vector<1x1x8x8xf32> to vector<8x8xf32>
    %492 = vector.extract_strided_slice %473 {offsets = [0, 128], sizes = [8, 128], strides = [1, 1]} : vector<8x384xf32> to vector<8x128xf32>
    %493 = arith.truncf %491 : vector<8x8xf32> to vector<8x8xbf16>
    %494 = arith.truncf %492 : vector<8x128xf32> to vector<8x128xbf16>
    %cst_236 = arith.constant dense<0.000000e+00> : vector<8x128xf32>
    %495 = tpu.matmul %493, %494, %cst_236 {dimension_numbers = #tpu.dot_dimension_numbers<[1], [0], [0], [1], [0, 0, 1, 1], [], []>} : vector<8x8xbf16>, vector<8x128xbf16>, vector<8x128xf32> -> vector<8x128xf32>
    %496 = arith.addf %489, %495 : vector<8x128xf32>
    %c1_237 = arith.constant 1 : index
    %c3_238 = arith.constant 3 : index
    %c0_239 = arith.constant 0 : index
    %c0_240 = arith.constant 0 : index
    %497 = vector.load %arg17[%c1_237, %c3_238, %c0_239, %c0_240] : memref<2x4x8x8xf32, #tpu.memory_space<vmem>>, vector<1x1x8x8xf32>
    %498 = vector.shape_cast %497 : vector<1x1x8x8xf32> to vector<8x8xf32>
    %499 = vector.extract_strided_slice %473 {offsets = [0, 256], sizes = [8, 128], strides = [1, 1]} : vector<8x384xf32> to vector<8x128xf32>
    %500 = arith.truncf %498 : vector<8x8xf32> to vector<8x8xbf16>
    %501 = arith.truncf %499 : vector<8x128xf32> to vector<8x128xbf16>
    %cst_241 = arith.constant dense<0.000000e+00> : vector<8x128xf32>
    %502 = tpu.matmul %500, %501, %cst_241 {dimension_numbers = #tpu.dot_dimension_numbers<[1], [0], [0], [1], [0, 0, 1, 1], [], []>} : vector<8x8xbf16>, vector<8x128xbf16>, vector<8x128xf32> -> vector<8x128xf32>
    %503 = arith.addf %496, %502 : vector<8x128xf32>
    %c1_242 = arith.constant 1 : index
    %c0_243 = arith.constant 0 : index
    %c0_244 = arith.constant 0 : index
    %c0_245 = arith.constant 0 : index
    %504 = vector.load %arg16[%c1_242, %c0_243, %c0_244, %c0_245] : memref<2x4x8x16xf32, #tpu.memory_space<vmem>>, vector<1x1x8x16xf32>
    %505 = vector.shape_cast %504 : vector<1x1x8x16xf32> to vector<8x16xf32>
    %506 = arith.truncf %505 : vector<8x16xf32> to vector<8x16xbf16>
    %507 = arith.truncf %401 : vector<16x128xf32> to vector<16x128xbf16>
    %cst_246 = arith.constant dense<0.000000e+00> : vector<8x128xf32>
    %508 = tpu.matmul %506, %507, %cst_246 {dimension_numbers = #tpu.dot_dimension_numbers<[1], [0], [0], [1], [0, 0, 1, 1], [], []>} : vector<8x16xbf16>, vector<16x128xbf16>, vector<8x128xf32> -> vector<8x128xf32>
    %509 = arith.addf %503, %508 : vector<8x128xf32>
    %c1_247 = arith.constant 1 : index
    %c1_248 = arith.constant 1 : index
    %c0_249 = arith.constant 0 : index
    %c0_250 = arith.constant 0 : index
    %510 = vector.load %arg16[%c1_247, %c1_248, %c0_249, %c0_250] : memref<2x4x8x16xf32, #tpu.memory_space<vmem>>, vector<1x1x8x16xf32>
    %511 = vector.shape_cast %510 : vector<1x1x8x16xf32> to vector<8x16xf32>
    %512 = arith.truncf %511 : vector<8x16xf32> to vector<8x16xbf16>
    %513 = arith.truncf %404 : vector<16x128xf32> to vector<16x128xbf16>
    %cst_251 = arith.constant dense<0.000000e+00> : vector<8x128xf32>
    %514 = tpu.matmul %512, %513, %cst_251 {dimension_numbers = #tpu.dot_dimension_numbers<[1], [0], [0], [1], [0, 0, 1, 1], [], []>} : vector<8x16xbf16>, vector<16x128xbf16>, vector<8x128xf32> -> vector<8x128xf32>
    %515 = arith.addf %509, %514 : vector<8x128xf32>
    %c1_252 = arith.constant 1 : index
    %c2_253 = arith.constant 2 : index
    %c0_254 = arith.constant 0 : index
    %c0_255 = arith.constant 0 : index
    %516 = vector.load %arg16[%c1_252, %c2_253, %c0_254, %c0_255] : memref<2x4x8x16xf32, #tpu.memory_space<vmem>>, vector<1x1x8x16xf32>
    %517 = vector.shape_cast %516 : vector<1x1x8x16xf32> to vector<8x16xf32>
    %518 = arith.truncf %517 : vector<8x16xf32> to vector<8x16xbf16>
    %519 = arith.truncf %407 : vector<16x128xf32> to vector<16x128xbf16>
    %cst_256 = arith.constant dense<0.000000e+00> : vector<8x128xf32>
    %520 = tpu.matmul %518, %519, %cst_256 {dimension_numbers = #tpu.dot_dimension_numbers<[1], [0], [0], [1], [0, 0, 1, 1], [], []>} : vector<8x16xbf16>, vector<16x128xbf16>, vector<8x128xf32> -> vector<8x128xf32>
    %521 = arith.addf %515, %520 : vector<8x128xf32>
    %c1_257 = arith.constant 1 : index
    %c3_258 = arith.constant 3 : index
    %c0_259 = arith.constant 0 : index
    %c0_260 = arith.constant 0 : index
    %522 = vector.load %arg16[%c1_257, %c3_258, %c0_259, %c0_260] : memref<2x4x8x16xf32, #tpu.memory_space<vmem>>, vector<1x1x8x16xf32>
    %523 = vector.shape_cast %522 : vector<1x1x8x16xf32> to vector<8x16xf32>
    %524 = arith.truncf %523 : vector<8x16xf32> to vector<8x16xbf16>
    %525 = arith.truncf %410 : vector<16x128xf32> to vector<16x128xbf16>
    %cst_261 = arith.constant dense<0.000000e+00> : vector<8x128xf32>
    %526 = tpu.matmul %524, %525, %cst_261 {dimension_numbers = #tpu.dot_dimension_numbers<[1], [0], [0], [1], [0, 0, 1, 1], [], []>} : vector<8x16xbf16>, vector<16x128xbf16>, vector<8x128xf32> -> vector<8x128xf32>
    %527 = arith.addf %521, %526 : vector<8x128xf32>
    %c0_262 = arith.constant 0 : index
    %c1_263 = arith.constant 1 : index
    %c0_264 = arith.constant 0 : index
    %c0_265 = arith.constant 0 : index
    %528 = vector.load %arg19[%c0_262, %c1_263, %c0_264, %c0_265] : memref<1x2x8x128xf32, #tpu.memory_space<vmem>>, vector<1x1x8x128xf32>
    %529 = vector.shape_cast %528 : vector<1x1x8x128xf32> to vector<8x128xf32>
    %530 = vector.shape_cast %527 : vector<8x128xf32> to vector<1x1x8x128xf32>
    tpu.vector_store %arg19[%c0_262, %c1_263, %c0_264, %c0_265], %530 {strides = array<i32>} : memref<1x2x8x128xf32, #tpu.memory_space<vmem>>, vector<1x1x8x128xf32>,
    return
  }
  func.func @transform_0(%arg0: i32) -> (i32, i32, i32) {
    %c0_i32 = arith.constant 0 : i32
    %c0_i32_0 = arith.constant 0 : i32
    %c0_i32_1 = arith.constant 0 : i32
    return %arg0, %c0_i32, %c0_i32_0 : i32, i32, i32
  }
  func.func @transform_1(%arg0: i32) -> (i32, i32, i32) {
    %c0_i32 = arith.constant 0 : i32
    %c0_i32_0 = arith.constant 0 : i32
    %c0_i32_1 = arith.constant 0 : i32
    return %arg0, %c0_i32, %c0_i32_0 : i32, i32, i32
  }
  func.func @transform_2(%arg0: i32) -> (i32, i32) {
    %c0_i32 = arith.constant 0 : i32
    %c0_i32_0 = arith.constant 0 : i32
    %c0_i32_1 = arith.constant 0 : i32
    return %c0_i32, %c0_i32_0 : i32, i32
  }
  func.func @transform_3(%arg0: i32) -> (i32, i32) {
    %c0_i32 = arith.constant 0 : i32
    %c0_i32_0 = arith.constant 0 : i32
    %c0_i32_1 = arith.constant 0 : i32
    return %c0_i32, %c0_i32_0 : i32, i32
  }
  func.func @transform_4(%arg0: i32) -> (i32, i32) {
    %c0_i32 = arith.constant 0 : i32
    %c0_i32_0 = arith.constant 0 : i32
    %c0_i32_1 = arith.constant 0 : i32
    return %c0_i32, %c0_i32_0 : i32, i32
  }
  func.func @transform_5(%arg0: i32) -> (i32, i32) {
    %c0_i32 = arith.constant 0 : i32
    %c0_i32_0 = arith.constant 0 : i32
    %c0_i32_1 = arith.constant 0 : i32
    return %c0_i32, %c0_i32_0 : i32, i32
  }
  func.func @transform_6(%arg0: i32) -> (i32, i32) {
    %c0_i32 = arith.constant 0 : i32
    %c0_i32_0 = arith.constant 0 : i32
    %c0_i32_1 = arith.constant 0 : i32
    return %c0_i32, %c0_i32_0 : i32, i32
  }
  func.func @transform_7(%arg0: i32) -> (i32, i32, i32) {
    %c0_i32 = arith.constant 0 : i32
    %c0_i32_0 = arith.constant 0 : i32
    %c0_i32_1 = arith.constant 0 : i32
    %c0_i32_2 = arith.constant 0 : i32
    return %c0_i32, %c0_i32_0, %c0_i32_1 : i32, i32, i32
  }
  func.func @transform_8(%arg0: i32) -> (i32, i32, i32, i32) {
    %c0_i32 = arith.constant 0 : i32
    %c0_i32_0 = arith.constant 0 : i32
    %c0_i32_1 = arith.constant 0 : i32
    %c0_i32_2 = arith.constant 0 : i32
    %c0_i32_3 = arith.constant 0 : i32
    return %c0_i32, %c0_i32_0, %c0_i32_1, %c0_i32_2 : i32, i32, i32, i32
  }
  func.func @transform_9(%arg0: i32) -> (i32, i32, i32) {
    %c0_i32 = arith.constant 0 : i32
    %c0_i32_0 = arith.constant 0 : i32
    %c0_i32_1 = arith.constant 0 : i32
    %c0_i32_2 = arith.constant 0 : i32
    return %c0_i32, %c0_i32_0, %c0_i32_1 : i32, i32, i32
  }
  func.func @transform_10(%arg0: i32) -> (i32, i32, i32) {
    %c0_i32 = arith.constant 0 : i32
    %c0_i32_0 = arith.constant 0 : i32
    %c0_i32_1 = arith.constant 0 : i32
    %c0_i32_2 = arith.constant 0 : i32
    return %c0_i32, %c0_i32_0, %c0_i32_1 : i32, i32, i32
  }
  func.func @transform_11(%arg0: i32) -> (i32, i32, i32) {
    %c0_i32 = arith.constant 0 : i32
    %c0_i32_0 = arith.constant 0 : i32
    %c0_i32_1 = arith.constant 0 : i32
    %c0_i32_2 = arith.constant 0 : i32
    return %c0_i32, %c0_i32_0, %c0_i32_1 : i32, i32, i32
  }
  func.func @transform_12(%arg0: i32) -> (i32, i32, i32) {
    %c0_i32 = arith.constant 0 : i32
    %c0_i32_0 = arith.constant 0 : i32
    %c0_i32_1 = arith.constant 0 : i32
    %c0_i32_2 = arith.constant 0 : i32
    return %c0_i32, %c0_i32_0, %c0_i32_1 : i32, i32, i32
  }
  func.func @transform_13(%arg0: i32) -> (i32, i32, i32, i32) {
    %c0_i32 = arith.constant 0 : i32
    %c0_i32_0 = arith.constant 0 : i32
    %c0_i32_1 = arith.constant 0 : i32
    %c0_i32_2 = arith.constant 0 : i32
    %c0_i32_3 = arith.constant 0 : i32
    return %c0_i32, %c0_i32_0, %c0_i32_1, %c0_i32_2 : i32, i32, i32, i32
  }
  func.func @transform_14(%arg0: i32) -> (i32, i32, i32) {
    %c0_i32 = arith.constant 0 : i32
    %c0_i32_0 = arith.constant 0 : i32
    %c0_i32_1 = arith.constant 0 : i32
    %c0_i32_2 = arith.constant 0 : i32
    return %c0_i32, %c0_i32_0, %c0_i32_1 : i32, i32, i32
  }
  func.func @transform_15(%arg0: i32) -> (i32, i32, i32, i32) {
    %c0_i32 = arith.constant 0 : i32
    %c0_i32_0 = arith.constant 0 : i32
    %c0_i32_1 = arith.constant 0 : i32
    %c0_i32_2 = arith.constant 0 : i32
    %c0_i32_3 = arith.constant 0 : i32
    return %c0_i32, %c0_i32_0, %c0_i32_1, %c0_i32_2 : i32, i32, i32, i32
  }
  func.func @transform_16(%arg0: i32) -> (i32, i32, i32, i32) {
    %c0_i32 = arith.constant 0 : i32
    %c0_i32_0 = arith.constant 0 : i32
    %c0_i32_1 = arith.constant 0 : i32
    %c0_i32_2 = arith.constant 0 : i32
    %c0_i32_3 = arith.constant 0 : i32
    return %c0_i32, %c0_i32_0, %c0_i32_1, %c0_i32_2 : i32, i32, i32, i32
  }
  func.func @transform_17(%arg0: i32) -> (i32, i32, i32) {
    %c0_i32 = arith.constant 0 : i32
    %c0_i32_0 = arith.constant 0 : i32
    %c0_i32_1 = arith.constant 0 : i32
    %c0_i32_2 = arith.constant 0 : i32
    return %c0_i32, %c0_i32_0, %c0_i32_1 : i32, i32, i32
  }
  func.func @transform_18(%arg0: i32) -> (i32, i32, i32, i32) {
    %c0_i32 = arith.constant 0 : i32
    %c0_i32_0 = arith.constant 0 : i32
    %c0_i32_1 = arith.constant 0 : i32
    %c0_i32_2 = arith.constant 0 : i32
    return %arg0, %c0_i32, %c0_i32_0, %c0_i32_1 : i32, i32, i32, i32
  }
}

</mosaic_0001>

<bundles_post_ra>
// kernel: tpu_custom_call.1
= control target key start
LH: loop header
LB: loop body
LE: loop exit
PB: predicated region body
PF: predicated region fallthrough
CT: control target
= control target key end

     0   :  { %s18316_s0 = inlined_call_operand.hbm [shape: f32[2,4,128], index: 0, kind: input, shape index: {}]   ;;  %s18317_s1 = inlined_call_operand.hbm [shape: s32[2,1,1024], index: 1, kind: input, shape index: {}]   ;;  %s18318_s2 = inlined_call_operand.vmem [shape: f32[16,4], index: 2, kind: input, shape index: {}]   ;;  %s18319_s3 = inlined_call_operand.vmem [shape: f32[16,4], index: 3, kind: input, shape index: {}]   ;;  %s18320_s4 = inlined_call_operand.vmem [shape: f32[16,1], index: 4, kind: input, shape index: {}]   ;;  %s18321_s5 = inlined_call_operand.hbm [shape: f32[3,16], index: 5, kind: input, shape index: {}]   ;;  %s18322_s6 = inlined_call_operand.vmem [shape: f32[3,1], index: 6, kind: input, shape index: {}]   ;;  %s18323_s7 = inlined_call_operand.hbm [shape: f32[2,4,4], index: 7, kind: input, shape index: {}]   ;;  %s18324_s8 = inlined_call_operand.hbm [shape: f32[2,3,4,4], index: 8, kind: input, shape index: {}]   ;;  %s18325_s9 = inlined_call_operand.vmem [shape: f32[2,4,1], index: 9, kind: input, shape index: {}]   ;;  %s18326_s10 = inlined_call_operand.vmem [shape: f32[2,8,4], index: 10, kind: input, shape index: {}]   ;;  %s18327_s11 = inlined_call_operand.vmem [shape: f32[2,8,1], index: 11, kind: input, shape index: {}]   ;;  %s18328_s12 = inlined_call_operand.vmem [shape: f32[2,8,8], index: 12, kind: input, shape index: {}]   ;;  %s18329_s13 = inlined_call_operand.vmem [shape: f32[2,3,8,8], index: 13, kind: input, shape index: {}]   ;;  %s18330_s14 = inlined_call_operand.vmem [shape: f32[2,8,1], index: 14, kind: input, shape index: {}]   ;;  %s18331_s15 = inlined_call_operand.vmem [shape: f32[2,4,8,16], index: 15, kind: input, shape index: {}]   ;;  %s18332_s16 = inlined_call_operand.vmem [shape: f32[2,4,8,8], index: 16, kind: input, shape index: {}]   ;;  %s18333_s17 = inlined_call_operand.vmem [shape: f32[2,8,1], index: 17, kind: input, shape index: {}]   ;;  %s18334_s18 = inlined_call_operand.hbm [shape: f32[2,2,8,128], index: 18, kind: output, shape index: {}]  }
   0x1   :  { %19015 = sst [smem:[#allocation201_spill]] %s18316_s0 }
   0x2   :  { %19016 = sst [smem:[#allocation202_spill]] %s18317_s1 }
   0x3   :  { %19017 = sst [smem:[#allocation203_spill]] %s18318_s2 }
   0x4   :  { %19018 = sst [smem:[#allocation204_spill]] %s18321_s5 }
   0x5   :  { %19019 = sst [smem:[#allocation205_spill]] %s18323_s7 }
   0x6   :  { %19020 = sst [smem:[#allocation206_spill]] %s18324_s8 }
   0x7   :  { %19021 = sst [smem:[#allocation207_spill]] %s18329_s13 }
   0x8   :  { %19022 = sst [smem:[#allocation208_spill]] %s18331_s15 }
   0x9   :  { %19023 = sst [smem:[#allocation209_spill]] %s18332_s16 }
   0xa   :  { %19024 = sst [smem:[#allocation210_spill]] %s18333_s17 }
   0xb   :  { %19025 = sst [smem:[#allocation211_spill]] %s18334_s18 }
   0xc   :  { %23 = vsyncpa [#allocation3], 0 }
   0xd   :  { %25 = vsyncpa [#allocation3 + $0x1], 0 }
   0xe   :  { %26 = vsyncpa [#allocation6], 0 }
   0xf   :  { %28 = vsyncpa [#allocation6 + $0x1], 0 }
  0x10   :  { %29 = vsyncpa [#allocation9], 0 }
  0x11   :  { %30 = vsyncpa [#allocation4], 0 }
  0x12   :  { %32 = vsyncpa [#allocation4 + $0x1], 0  ;;  %s10755_s27 = smov 0   ;;  %s10757_s28 = smov 0  }
  0x13   :  { %s10759_s29 = smov 0   ;;  %s10761_s30 = smov 0  }
  0x14 LB: > { %19026 = sst [smem:[#allocation17_spill]] %s10632_s27  ;;  %s10776_s0 = sadd.s32 4294967295, %s10644_s30   ;;  %s10644_s30 = sphi %s10761_s30, %s20773_s30   ;;  %s10640_s29 = sphi %s10759_s29, %s20770_s29   ;;  %s10636_s28 = sphi %s10757_s28, %s20772_s28   ;;  %s10632_s27 = sphi %s10755_s27, %s20771_s27  }
  0x15   : > { %19027 = sst [smem:[#allocation18_spill]] %s10640_s29  ;;  %s7907_s19 = sadd.s32 4294967294, %s10644_s30  }
  0x16   : > { %p58_p0 = scmp.ne.s32.totalorder %s10636_s28, %s10632_s27  ;;  %p18343_p1 = scmp.eq.s32.totalorder %s10776_s0, 0 }
  0x17   : > { %p450_p3 = scmp.eq.s32.totalorder %s7907_s19, 1  ;;  %p7908_p5 = scmp.ge.s32.totalorder %s10644_s30, 1 }
  0x18   : > { %p10785_p4 = por %p18343_p1, %p58_p0  ;;  %p457_p7 = scmp.lt.s32.totalorder %s10644_s30, 3 }
  0x19   : > { %p10790_p6 = por %p450_p3, %p58_p0  ;;  %s10646_s22 = smov [#allocation7]  }
  0x1a   : > { %s19028_s1 = scalar_select %p10785_p4, 1, 0 }
  0x1b   : > { %s19029_s20 = scalar_select %p10790_p6, 1, 0 }
  0x1c   : > { %p10795_p8 = pnand %p7908_p5, %p457_p7  ;;  %s479_s2 = sshll.u32 %s10646_s22, 4  ;;  %s480_s2 = int_to_ptr.vmem [resolvable:$true] %s479_s2 }
  0x1d   : > { %19030 = sst [smem:[#allocation19_spill]] %s19029_s20  ;;  %s10647_s23 = smov [#allocation8]  }
  0x1e   : > { %s19031_s21 = scalar_select %p10795_p8, 1, 0 }
  0x1f   : > { %p10315_p10 = pneg %p10795_p8  ;;  %s492_s24 = sshll.u32 %s10647_s23, 4  ;;  %s10808_s24 = int_to_ptr.vmem [resolvable:$true] %s492_s24 }
  0x20   : > { %s10648_s26 = smov [#allocation10]   ;;  %s19033_s5 = sld [smem:[#allocation204_spill]] }
  0x21   : > { %p10804_p11 = pnand %p10315_p10, %p18343_p1  ;;  %s10810_s19 = sshll.u32 %s10648_s26, 4  ;;  %s506_s19 = int_to_ptr.vmem [resolvable:$true] %s10810_s19 }
  0x23   : > { %p10820_p13 = pneg %p10804_p11 }
  0x26   : > { %s10422_s22 = scalar_lea.hbm %s19033_s5, 64 }
  0x27   : > { %p10423_p12 = scmp.ne.s32.totalorder %s19033_s5, %s10422_s22  ;;  %p10429_p5 = scmp.lt.u32.totalorder %s10422_s22, %s19033_s5 }
  0x29   : > { %p10425_p0 = pnand %p10820_p13, %p10423_p12 }
  0x2b   : > { %p10426_p3 = pneg %p10425_p0 }
  0x2d   : > { %p10431_p7 = pnand %p10429_p5, %p10426_p3 }
  0x2f   : > { %10434 = shalt.err (!%p10431_p7)
}
  0x30   : > { %s10435_s27 = scalar_lea.vmem %s480_s2, 64  ;;  %p10443_p2 = scmp.lt.s32.totalorder %s480_s2, %s480_s2 }
  0x31   : > { %p10436_p10 = scmp.ne.s32.totalorder %s480_s2, %s10435_s27  ;;  %p10444_p6 = scmp.lt.s32.totalorder %s10435_s27, %s10435_s27 }
  0x33   : > { %p10438_p9 = pnand %p10436_p10, %p10820_p13  ;;  %p10445_p4 = por %p10444_p6, %p10443_p2 }
  0x35   : > { %p10439_p1 = pneg %p10438_p9 }
  0x37   : > { %p10446_p8 = pnand %p10445_p4, %p10439_p1 }
  0x39   : > { %10449 = shalt.err (!%p10446_p8)
}
  0x3a   : > { %10318 = dma.hbm_to_vmem [thread:$0]  (!%p10804_p11), %s19033_s5, 64, %s480_s2, [#allocation6]  }
  0x3b   : > { %s19035_s7 = sld [smem:[#allocation205_spill]] }
  0x41   : > { %s10450_s22 = scalar_lea.hbm %s19035_s7, 128 }
  0x42   : > { %p10451_p9 = scmp.ne.s32.totalorder %s19035_s7, %s10450_s22  ;;  %p10457_p1 = scmp.lt.u32.totalorder %s10450_s22, %s19035_s7 }
  0x44   : > { %p10453_p12 = pnand %p10451_p9, %p10820_p13 }
  0x46   : > { %p10454_p2 = pneg %p10453_p12 }
  0x48   : > { %p10459_p4 = pnand %p10457_p1, %p10454_p2 }
  0x4a   : > { %10462 = shalt.err (!%p10459_p4)
}
  0x4b   : > { %s10463_s2 = scalar_lea.vmem %s10808_s24, 128  ;;  %p10471_p3 = scmp.lt.s32.totalorder %s10808_s24, %s10808_s24 }
  0x4c   : > { %p10464_p6 = scmp.ne.s32.totalorder %s10808_s24, %s10463_s2  ;;  %p10472_p5 = scmp.lt.s32.totalorder %s10463_s2, %s10463_s2 }
  0x4e   : > { %p10466_p8 = pnand %p10464_p6, %p10820_p13  ;;  %p10473_p7 = por %p10472_p5, %p10471_p3 }
  0x50   : > { %p10467_p0 = pneg %p10466_p8 }
  0x52   : > { %p10474_p10 = pnand %p10473_p7, %p10467_p0 }
  0x54   : > { %10477 = shalt.err (!%p10474_p10)
}
  0x55   : > { %s10649_s16 = smov 64   ;;  %s10650_s13 = smov 4  }
  0x56   : > { %10321 = dma.hbm_to_vmem [thread:$0]  (!%p10804_p11), %s19035_s7, 128, %s10808_s24, [#allocation9], %s10649_s16, %s10649_s16, %s10650_s13  }
  0x57   : > { %s19036_s8 = sld [smem:[#allocation206_spill]] }
  0x5d   : > { %s10478_s22 = scalar_lea.hbm %s19036_s8, 384 }
  0x5e   : > { %p10479_p9 = scmp.ne.s32.totalorder %s19036_s8, %s10478_s22  ;;  %p10485_p1 = scmp.lt.u32.totalorder %s10478_s22, %s19036_s8 }
  0x60   : > { %p10481_p12 = pnand %p10479_p9, %p10820_p13 }
  0x62   : > { %p10482_p2 = pneg %p10481_p12 }
  0x64   : > { %p10487_p4 = pnand %p10485_p1, %p10482_p2 }
  0x66   : > { %10490 = shalt.err (!%p10487_p4)
}
  0x67   : > { %s10491_s15 = scalar_lea.vmem %s506_s19, 384  ;;  %p10499_p3 = scmp.lt.s32.totalorder %s506_s19, %s506_s19 }
  0x68   : > { %p10492_p6 = scmp.ne.s32.totalorder %s506_s19, %s10491_s15  ;;  %p10500_p5 = scmp.lt.s32.totalorder %s10491_s15, %s10491_s15 }
  0x6a   : > { %p10494_p8 = pnand %p10492_p6, %p10820_p13  ;;  %p10501_p7 = por %p10500_p5, %p10499_p3 }
  0x6c   : > { %p10495_p0 = pneg %p10494_p8 }
  0x6e   : > { %p10502_p10 = pnand %p10501_p7, %p10495_p0 }
  0x70   : > { %10505 = shalt.err (!%p10502_p10)
}
  0x71   : > { %10324 = dma.hbm_to_vmem [thread:$0]  (!%p10804_p11), %s19036_s8, 384, %s506_s19, [#allocation9], %s10649_s16, %s10649_s16, %s10650_s13  }
  0x72   : > { %s10879_s5 = sadd.s32 1, %s10644_s30   ;;  %s45_s25 = sadd.s32 1, %s10640_s29 }
  0x73   : > { %s42_s23 = ssub.s32 %s10644_s30, %s10879_s5  ;;  %p52_p9 = scmp.ne.s32.totalorder %s10640_s29, %s10636_s28 }
  0x74   : > { %p43_p13 = scmp.eq.s32.totalorder %s42_s23, 0  ;;  %p53_p12 = scmp.eq.s32.totalorder %s10644_s30, 0 }
  0x75   : > { %p10339_p2 = scmp.lt.s32.totalorder %s10644_s30, 2  ;;  %p19038_p4 = scmp.eq.s32.totalorder %s10776_s0, 1 }
  0x76   : > { %s10889_s17 = scalar_select %p43_p13, %s10640_s29, %s45_s25  }
  0x77   : > { %p54_p1 = por %p53_p12, %p52_p9  ;;  %p10893_p6 = por %p19038_p4, %p52_p9 }
  0x78   : > { %19037 = sst [smem:[#allocation20_spill]] %s10889_s17  ;;  %s10898_s22 = sand.u32 1, %s10640_s29  }
  0x79   : > { %s19039_s20 = scalar_select %p10893_p6, 1, 0 }
  0x7a   : > { %s7914_s19 = sshll.u32 %s10644_s30, 6  ;;  %s7913_s16 = sshll.u32 %s10898_s22, 2 }
  0x7b   : > { %s19040_s27 = sld [smem:[#allocation201_spill]]  ;;  %s550_s24 = scalar_lea.vmem [#allocation2], %s7913_s16 }
  0x7c   : > { %s557_s18 = sshll.u32 %s550_s24, 4  ;;  %p10907_p11 = pnand %p10339_p2, %p54_p1  ;;  %s10911_s18 = int_to_ptr.vmem [resolvable:$true] %s557_s18 }
  0x7d   : > { %s547_s7 = scalar_lea.sflag [#allocation3], %s10898_s22 }
  0x7e   : > { %p10508_p0 = pneg %p10907_p11 }
  0x81   : > { %s19041_s2 = smov %s19040_s27  ;;  %s10905_s15 = scalar_lea.hbm %s19040_s27, %s7914_s19 }
  0x82   : > { %s10506_s8 = scalar_lea.hbm %s10905_s15, 64  ;;  %s10511_s13 = scalar_lea.hbm %s19041_s2, 128 }
  0x83   : > { %p10507_p8 = scmp.ne.s32.totalorder %s10905_s15, %s10506_s8  ;;  %p10512_p7 = scmp.lt.u32.totalorder %s10905_s15, %s19041_s2 }
  0x84   : > { %p10513_p10 = scmp.lt.u32.totalorder %s10511_s13, %s10506_s8  ;;  %p10515_p9 = scmp.lt.u32.totalorder %s10506_s8, %s10905_s15 }
  0x85   : > { %p10509_p3 = pnand %p10508_p0, %p10507_p8 }
  0x86   : > { %p10514_p13 = por %p10513_p10, %p10512_p7 }
  0x87   : > { %p10510_p5 = pneg %p10509_p3 }
  0x88   : > { %p10516_p12 = por %p10515_p9, %p10514_p13 }
  0x8a   : > { %p10517_p2 = pnand %p10516_p12, %p10510_p5 }
  0x8c   : > { %10520 = shalt.err (!%p10517_p2)
}
  0x8d   : > { %s10521_s24 = scalar_lea.vmem %s10911_s18, 64  ;;  %s10651_s19 = smov [#allocation2]  }
  0x8e   : > { %p10522_p1 = scmp.ne.s32.totalorder %s10911_s18, %s10521_s24  ;;  %s10526_s16 = sshll.u32 %s10651_s19, 4  ;;  %s10527_s16 = int_to_ptr.vmem [resolvable:$false] %s10526_s16 }
  0x8f   : > { %s10528_s26 = scalar_lea.vmem %s10527_s16, 128  ;;  %p10529_p3 = scmp.lt.s32.totalorder %s10911_s18, %s10527_s16 }
  0x90   : > { %p10524_p4 = pnand %p10522_p1, %p10508_p0  ;;  %p10530_p7 = scmp.lt.s32.totalorder %s10528_s26, %s10521_s24 }
  0x92   : > { %p10525_p8 = pneg %p10524_p4  ;;  %p10531_p10 = por %p10530_p7, %p10529_p3 }
  0x94   : > { %p10532_p13 = pnand %p10531_p10, %p10525_p8 }
  0x96   : > { %10535 = shalt.err (!%p10532_p13)
}
  0x97   : > { %10328 = dma.hbm_to_vmem [thread:$0]  (!%p10907_p11), %s10905_s15, 64, %s10911_s18, %s547_s7  }
  0x98   : > { %s7915_s8 = sshll.u32 %s10898_s22, 3  ;;  %s9020_s13 = sshll.u32 %s10644_s30, 7 }
  0x99   : > { %s19043_s25 = sld [smem:[#allocation202_spill]]  ;;  %s568_s24 = scalar_lea.vmem [#allocation5], %s7915_s8 }
  0x9a   : > { %s576_s16 = sshll.u32 %s568_s24, 4  ;;  %s19044_s26 = sand.u32 1, %s10644_s30   ;;  %s577_s16 = int_to_ptr.vmem [resolvable:$true] %s576_s16 }
  0x9b   : > { %s565_s17 = scalar_lea.sflag [#allocation6], %s19044_s26 }
  0x9f   : > { %s10945_s2 = scalar_lea.hbm %s19043_s25, %s9020_s13  ;;  %s10541_s15 = scalar_lea.hbm %s19043_s25, 256 }
  0xa0   : > { %s10536_s29 = scalar_lea.hbm %s10945_s2, 128  ;;  %p10542_p2 = scmp.lt.u32.totalorder %s10945_s2, %s19043_s25 }
  0xa1   : > { %p10537_p5 = scmp.ne.s32.totalorder %s10945_s2, %s10536_s29  ;;  %p10543_p1 = scmp.lt.u32.totalorder %s10541_s15, %s10536_s29 }
  0xa2   : > { %p10545_p8 = scmp.lt.u32.totalorder %s10536_s29, %s10945_s2 }
  0xa3   : > { %p10539_p9 = pnand %p10537_p5, %p10508_p0  ;;  %p10544_p4 = por %p10543_p1, %p10542_p2 }
  0xa5   : > { %p10540_p12 = pneg %p10539_p9  ;;  %p10546_p3 = por %p10545_p8, %p10544_p4 }
  0xa7   : > { %p10547_p7 = pnand %p10546_p3, %p10540_p12 }
  0xa9   : > { %10550 = shalt.err (!%p10547_p7)
}
  0xaa   : > { %s10551_s8 = scalar_lea.vmem %s577_s16, 128  ;;  %s10652_s27 = smov [#allocation5]  }
  0xab   : > { %p10552_p10 = scmp.ne.s32.totalorder %s577_s16, %s10551_s8  ;;  %s10556_s19 = sshll.u32 %s10652_s27, 4  ;;  %s10557_s19 = int_to_ptr.vmem [resolvable:$false] %s10556_s19 }
  0xac   : > { %s10558_s24 = scalar_lea.vmem %s10557_s19, 256  ;;  %p10559_p9 = scmp.lt.s32.totalorder %s577_s16, %s10557_s19 }
  0xad   : > { %p10554_p13 = pnand %p10552_p10, %p10508_p0  ;;  %p10560_p6 = scmp.lt.s32.totalorder %s10558_s24, %s10551_s8 }
  0xaf   : > { %p10555_p5 = pneg %p10554_p13  ;;  %p10561_p1 = por %p10560_p6, %p10559_p9 }
  0xb1   : > { %p10562_p2 = pnand %p10561_p1, %p10555_p5 }
  0xb3   : > { %10565 = shalt.err (!%p10562_p2)
}
  0xb4   : > { %10331 = dma.hbm_to_vmem [thread:$0]  (!%p10907_p11), %s10945_s2, 128, %s577_s16, %s565_s17  }
  0xb5   : > { %p19045_p12 = scmp.ne.s32.totalorder %s19031_s21, 0 }
  0xb7   : > { %585 = sbr.rel (%p19045_p12) target bundleno = 3589 (0xe05), region = 92 }
  0xbe   : > { %s10971_s29 = sand.u32 1, %s10636_s28   ;;  %p19046_p6 = scmp.ne.s32.totalorder %s19028_s1, 0 }
  0xbf   : > { %s7919_s26 = sshll.u32 %s10971_s29, 2  ;;  %s588_s7 = scalar_lea.sflag [#allocation3], %s10971_s29 }
  0xc0   : > { %s10975_s22 = scalar_lea.vmem [#allocation2], %s7919_s26 }
  0xc1   : > { %10611 = dma.done.wait (%p19046_p6), %s588_s7, 64  }
  0xc2   : > { %10613 = vsyncadd (%p19046_p6), %s588_s7, 4294967232  ;;  %s596_s21 = sand.u32 1, %s10776_s0   ;;  %s7920_s17 = sshll.u32 %s10971_s29, 3 }
  0xc3   : > { %s597_s2 = scalar_lea.sflag [#allocation6], %s596_s21  ;;  %s10983_s23 = scalar_lea.vmem [#allocation5], %s7920_s17 }
  0xc4   : > { %10615 = dma.done.wait (%p19046_p6), %s597_s2, 128  }
  0xc5   : > { %10617 = vsyncadd (%p19046_p6), %s597_s2, 4294967168  ;;  %p19047_p11 = scmp.eq.s32.totalorder %s10776_s0, 0 }
  0xc7   : > { %10619 = dma.done.wait (%p19047_p11), [#allocation6], 64   ;;  %p19048_p0 = pmov %p19047_p11 }
  0xc9   : > { %10621 = vsyncadd (%p19048_p0), [#allocation6], 4294967232  ;;  %p19049_p4 = pmov %p19048_p0 }
  0xca   : > { %p19050_p8 = pmov %p19048_p0 }
  0xcb   : > { %10623 = dma.done.wait (%p19049_p4), [#allocation9], 512  }
  0xcc   : > { %10625 = vsyncadd (%p19050_p8), [#allocation9], 4294966784  ;;  %v18353_v0 = vmov 0.0   ;;  %vm18355_vm0 = vmmov 0   ;;  %v673_v1 = vlaneseq  ;;  %vm18351_vm1 = vcmask 1041408   ;;  %v2099_v10 = vld [vmem:[%s18319_s3] sm:$0xff] }
  0xcd   : > { %9913 = vmatprep.subr.bf16.mxu1 %v18353_v0  ;;  %9915 = vmatprep.mubr.msk.bf16.mxu1 %vm18355_vm0, %v18353_v0  ;;  %v671_v9 = vld [vmem:[%s10975_s22] sm:$0xf]  ;;  %v2100_v11 = vld [vmem:[%s18319_s3 + $0x8] sm:$0xff]  ;;  %s19054_s27 = sld [smem:[#allocation203_spill]]  ;;  %vm18352_vm5 = vcmask 31744   ;;  %s20748_s26 = sld [smem:[#allocation209_spill]] }
  0xce   : > { %9907 = vmatprep.subr.bf16.mxu0 %v18353_v0  ;;  %9909 = vmatprep.mubr.msk.bf16.mxu0 %vm18355_vm0, %v18353_v0  ;;  %v11003_v2 = vshrl.u32 %v673_v1, 7  ;;  %v11005_v3 = vand.u32 127, %v673_v1  ;;  %v11031_v14 = vpack.c.bf16 %v671_v9, %v671_v9  ;;  %v2101_v22 = vpack.c.bf16 %v2100_v11, %v2099_v10  ;;  %s20754_s7 = sld [smem:[#allocation208_spill]]  ;;  %s7924_s21 = sshll.u32 %s10971_s29, 4 }
  0xcf   : > { %v18361_v28 = vmov 1.0|1.0   ;;  %v19092_v0 = vmov 0  ;;  %s669_s17 = scalar_lea.vmem [#allocation11], %s7924_s21  ;;  %s20763_s15 = sld [smem:[#allocation211_spill]] }
  0xd0   : > { %19051 = vst [vmem:[#allocation21_spill] sm:$0xff] %v11005_v3  ;;  %v11008_v4 = vadd.s32 8, %v11003_v2  ;;  %v11011_v5 = vadd.s32 128, %v11005_v3  ;;  %v11014_v6 = vmul.u32 8, %v11003_v2  ;;  %v1259_v7 = vadd.s32 1, %v11003_v2  ;;  %19053 = vst [vmem:[#allocation23_spill] sm:$0xff] %v11031_v14 }
  0xd1   : > { %v11018_v8 = vadd.s32 640, %v11005_v3  ;;  %v11048_v19 = vadd.s32 16, %v11003_v2  ;;  %v11051_v20 = vadd.s32 24, %v11003_v2  ;;  %v11055_v21 = vsel %vm18351_vm1, %v11031_v14, 0  ;;  %v8966_v14 = vld [vmem:[%s18327_s11 + $0x8] sm:$0xff]  ;;  %s7783_s2 = sshll.u32 %s669_s17, 4  ;;  %s18267_s2 = int_to_ptr.vmem [resolvable:$true] %s7783_s2 }
  0xd2   : > { %19052 = vst [vmem:[#allocation22_spill] sm:$0xff] %v11008_v4  ;;  %v11028_v12 = vmul.u32 8, %v11008_v4  ;;  %v1260_v13 = vadd.s32 1, %v11008_v4  ;;  %vm1132_vm2 = vcmp.ge.s32.totalorder %v11011_v5, %v11014_v6  ;;  %v11041_v17 = vmul.u32 8, %v1259_v7  ;;  %19059 = vst [vmem:[#allocation27_spill] sm:$0xff] %v11055_v21  ;;  %9914 = vmatpush3.bf16.msra.mxu1 %v11055_v21  ;;  %9908 = vmatpush3.bf16.msra.mxu0 %v11055_v21  ;;  %s7770_s13 = scalar_lea.sflag [#allocation4], %s10971_s29 }
  0xd3   : > { %s19055_s19 = smov %s19054_s27  ;;  %v2046_v15 = vld [vmem:[%s19054_s27] sm:$0xff]  ;;  %19057 = vst [vmem:[#allocation25_spill] sm:$0xff] %v11048_v19  ;;  %19058 = vst [vmem:[#allocation26_spill] sm:$0xff] %v11051_v20  ;;  %vm1136_vm8 = vcmp.ge.s32.totalorder %v11018_v8, %v11014_v6  ;;  %v11081_v25 = vadd.s32 512, %v11005_v3  ;;  %v1261_v26 = vadd.s32 1, %v11048_v19  ;;  %vm1131_vm15 = vcmp.ge.s32.totalorder %v11005_v3, %v11014_v6  ;;  %s20737_s27 = sld [smem:[#allocation207_spill]] }
  0xd4   : > { %v2047_v16 = vld [vmem:[%s19055_s19 + $0x8] sm:$0xff]  ;;  %vm1140_vm3 = vcmp.ge.s32.totalorder %v11011_v5, %v11028_v12  ;;  %v11045_v18 = vmul.u32 8, %v1260_v13  ;;  %vm1292_vm4 = vcmp.lt.s32.totalorder %v11011_v5, %v11041_v17  ;;  %vm1296_vm9 = vcmp.lt.s32.totalorder %v11018_v8, %v11041_v17  ;;  %s10566_s8 = scalar_lea.vmem %s18267_s2, 256  ;;  %p20764_p7 = scmp.ne.s32.totalorder %s19039_s20, 0 }
  0xd5   : > { %v2048_v23 = vpack.c.bf16 %v2047_v16, %v2046_v15  ;;  %vm11063_vm7 = vmand %vm1132_vm2, %vm1292_vm4  ;;  %vm1144_vm11 = vcmp.ge.s32.totalorder %v11018_v8, %v11028_v12  ;;  %9916 = vmatmul.mubr.msk.bf16.vlgmr.msra.gmra.mrb[0].mxu1 %vm18352_vm5, %v2101_v22  ;;  %vm1291_vm2 = vcmp.lt.s32.totalorder %v11005_v3, %v11041_v17  ;;  %v1262_v27 = vadd.s32 1, %v11051_v20  ;;  %p10567_p3 = scmp.ne.s32.totalorder %s18267_s2, %s10566_s8 }
  0xd6   : > { %19056 = vst [vmem:[#allocation24_spill] sm:$0xff] %v11045_v18  ;;  %vm1300_vm6 = vcmp.lt.s32.totalorder %v11011_v5, %v11045_v18  ;;  %vm1304_vm12 = vcmp.lt.s32.totalorder %v11018_v8, %v11045_v18  ;;  %vm1424_vm14 = vmand %vm1136_vm8, %vm1296_vm9  ;;  %vm1139_vm4 = vcmp.ge.s32.totalorder %v11005_v3, %v11028_v12  ;;  %v11097_v29 = vmul.u32 8, %v11048_v19 }
  0xd7   : > { %vm1428_vm10 = vmand %vm1140_vm3, %vm1300_vm6  ;;  %9910 = vmatmul.mubr.msk.bf16.vlgmr.msra.gmra.mrb[0].mxu0 %vm18352_vm5, %v2048_v23  ;;  %vm1299_vm6 = vcmp.lt.s32.totalorder %v11005_v3, %v11045_v18  ;;  %v11099_v30 = vmul.u32 8, %v1261_v26  ;;  %vm1135_vm9 = vcmp.ge.s32.totalorder %v11081_v25, %v11014_v6  ;;  %v11107_v31 = vmul.u32 8, %v11051_v20  ;;  %p10568_p10 = pnand %p10567_p3, %p20764_p7 }
  0xd8   : > { %vm8183_vm13 = vmpackc.low %vm1428_vm10, %vm11063_vm7  ;;  %19062 = vst [vmem:[#allocation28_spill] sm:$0xff] %v11097_v29  ;;  %vm1295_vm10 = vcmp.lt.s32.totalorder %v11081_v25, %v11041_v17  ;;  %v11109_v32 = vmul.u32 8, %v1262_v27  ;;  %v11121_v33 = vadd.s32 32, %v11003_v2  ;;  %v11128_v34 = vadd.s32 40, %v11003_v2 }
  0xd9   : > { %8184 = vmatprep.subr.msk.bf16.mxu1 %vm8183_vm13, %v18361_v28  ;;  %vm1432_vm3 = vmand %vm1144_vm11, %vm1304_vm12  ;;  %19063 = vst [vmem:[#allocation29_spill] sm:$0xff] %v11099_v30  ;;  %vm1143_vm12 = vcmp.ge.s32.totalorder %v11081_v25, %v11028_v12  ;;  %vm1303_vm13 = vcmp.lt.s32.totalorder %v11081_v25, %v11045_v18  ;;  %v11175_v41 = vadd.s32 48, %v11003_v2  ;;  %v11182_v42 = vadd.s32 56, %v11003_v2  ;;  %s20738_s24 = smov %s20737_s27  ;;  %p10569_p13 = pneg %p10568_p10 }
  0xda   : > { %vm8247_vm7 = vmpackc.low %vm1432_vm3, %vm1424_vm14  ;;  %19064 = vst [vmem:[#allocation30_spill] sm:$0xff] %v11107_v31  ;;  %vm1308_vm3 = vcmp.lt.s32.totalorder %v11011_v5, %v11099_v30  ;;  %v1263_v35 = vadd.s32 1, %v11121_v33  ;;  %v1264_v36 = vadd.s32 1, %v11128_v34  ;;  %v11151_v37 = vmul.u32 8, %v11121_v33 }
  0xdb   : > { %8248 = vmatprep.subr.msk.bf16.mxu0 %vm8247_vm7, %v18361_v28  ;;  %vm1419_vm8 = vmand %vm1131_vm15, %vm1291_vm2  ;;  %19065 = vst [vmem:[#allocation31_spill] sm:$0xff] %v11109_v32  ;;  %vm1148_vm2 = vcmp.ge.s32.totalorder %v11011_v5, %v11097_v29  ;;  %vm1316_vm7 = vcmp.lt.s32.totalorder %v11011_v5, %v11109_v32  ;;  %v11161_v39 = vmul.u32 8, %v11128_v34  ;;  %v1265_v43 = vadd.s32 1, %v11175_v41 }
  0xdc   : > { %vm1427_vm11 = vmand %vm1139_vm4, %vm1299_vm6  ;;  %vm1156_vm6 = vcmp.ge.s32.totalorder %v11011_v5, %v11107_v31  ;;  %19066 = vst [vmem:[#allocation32_spill] sm:$0xff] %v11151_v37  ;;  %v11153_v38 = vmul.u32 8, %v1263_v35  ;;  %v11163_v40 = vmul.u32 8, %v1264_v36  ;;  %v1266_v44 = vadd.s32 1, %v11182_v42 }
  0xdd   : > { %vm8185_vm14 = vmpackc.low %vm1427_vm11, %vm1419_vm8  ;;  %vm1312_vm11 = vcmp.lt.s32.totalorder %v11018_v8, %v11099_v30  ;;  %19068 = vst [vmem:[#allocation34_spill] sm:$0xff] %v11161_v39  ;;  %v11205_v45 = vmul.u32 8, %v11175_v41  ;;  %v11207_v46 = vmul.u32 8, %v1265_v43  ;;  %v11229_v49 = vadd.s32 64, %v11003_v2 }
  0xde   : > { %8186 = vmatpush1.bf16.msk.msra.mxu1 %vm8185_vm14, %v18361_v28  ;;  %vm1423_vm15 = vmand %vm1135_vm9, %vm1295_vm10  ;;  %vm1152_vm10 = vcmp.ge.s32.totalorder %v11018_v8, %v11097_v29  ;;  %vm1320_vm14 = vcmp.lt.s32.totalorder %v11018_v8, %v11109_v32  ;;  %19067 = vst [vmem:[#allocation33_spill] sm:$0xff] %v11153_v38  ;;  %v11215_v47 = vmul.u32 8, %v11182_v42  ;;  %v11217_v48 = vmul.u32 8, %v1266_v44 }
  0xdf   : > { %vm1431_vm4 = vmand %vm1143_vm12, %vm1303_vm13  ;;  %vm1160_vm13 = vcmp.ge.s32.totalorder %v11018_v8, %v11107_v31  ;;  %19069 = vst [vmem:[#allocation35_spill] sm:$0xff] %v11163_v40  ;;  %v11236_v50 = vadd.s32 72, %v11003_v2  ;;  %v1267_v51 = vadd.s32 1, %v11229_v49  ;;  %v11259_v53 = vmul.u32 8, %v11229_v49 }
  0xe0   : > { %vm8249_vm8 = vmpackc.low %vm1431_vm4, %vm1423_vm15  ;;  %19070 = vst [vmem:[#allocation36_spill] sm:$0xff] %v11182_v42  ;;  %v11283_v57 = vadd.s32 80, %v11003_v2  ;;  %v11290_v58 = vadd.s32 88, %v11003_v2  ;;  %v11337_v7 = vadd.s32 96, %v11003_v2  ;;  %v11344_v9 = vadd.s32 104, %v11003_v2 }
  0xe1   : > { %8250 = vmatpush1.bf16.msk.msra.mxu0 %vm8249_vm8, %v18361_v28  ;;  %vm1436_vm9 = vmand %vm1148_vm2, %vm1308_vm3  ;;  %vm1147_vm2 = vcmp.ge.s32.totalorder %v11005_v3, %v11097_v29  ;;  %vm1307_vm3 = vcmp.lt.s32.totalorder %v11005_v3, %v11099_v30  ;;  %19071 = vst [vmem:[#allocation37_spill] sm:$0xff] %v11205_v45  ;;  %v1268_v52 = vadd.s32 1, %v11236_v50  ;;  %v11261_v54 = vmul.u32 8, %v1267_v51 }
  0xe2   : > { %vm1444_vm12 = vmand %vm1156_vm6, %vm1316_vm7  ;;  %vm1155_vm6 = vcmp.ge.s32.totalorder %v11005_v3, %v11107_v31  ;;  %vm1315_vm7 = vcmp.lt.s32.totalorder %v11005_v3, %v11109_v32  ;;  %19072 = vst [vmem:[#allocation38_spill] sm:$0xff] %v11207_v46  ;;  %v11269_v55 = vmul.u32 8, %v11236_v50  ;;  %v1269_v59 = vadd.s32 1, %v11283_v57 }
  0xe3   : > { %vm8187_vm1 = vmpackc.low %vm1444_vm12, %vm1436_vm9  ;;  %vm1151_vm9 = vcmp.ge.s32.totalorder %v11081_v25, %v11097_v29  ;;  %vm1159_vm12 = vcmp.ge.s32.totalorder %v11081_v25, %v11107_v31  ;;  %19073 = vst [vmem:[#allocation39_spill] sm:$0xff] %v11217_v48  ;;  %v11271_v56 = vmul.u32 8, %v1268_v52  ;;  %v1270_v60 = vadd.s32 1, %v11290_v58  ;;  %v11475_v52 = vld [vmem:[%s10983_s23] sm:$0xff]  ;;  %s9021_s23 = sshll.u32 %s10776_s0, 8  ;;  %s10657_s0 = smov [#allocation11]  }
  0xe4   : > { %8188 = vmatprep.subr.msk.bf16.mxu1 %vm8187_vm1, %v18361_v28  ;;  %vm1440_vm15 = vmand %vm1152_vm10, %vm1312_vm11  ;;  %vm1311_vm10 = vcmp.lt.s32.totalorder %v11081_v25, %v11099_v30  ;;  %19074 = vst [vmem:[#allocation40_spill] sm:$0xff] %v11229_v49  ;;  %v11313_v61 = vmul.u32 8, %v11283_v57  ;;  %v11315_v62 = vmul.u32 8, %v1269_v59  ;;  %v1271_v10 = vadd.s32 1, %v11337_v7  ;;  %s18272_s18 = scalar_lea.hbm %s20763_s15, %s9021_s23 }
  0xe5   : > { %vm1448_vm4 = vmand %vm1160_vm13, %vm1320_vm14  ;;  %vm1319_vm13 = vcmp.lt.s32.totalorder %v11081_v25, %v11109_v32  ;;  %19075 = vst [vmem:[#allocation41_spill] sm:$0xff] %v11236_v50  ;;  %v11323_v63 = vmul.u32 8, %v11290_v58  ;;  %v11325_v1 = vmul.u32 8, %v1270_v60  ;;  %v1272_v11 = vadd.s32 1, %v11344_v9 }
  0xe6   : > { %vm8251_vm8 = vmpackc.low %vm1448_vm4, %vm1440_vm15  ;;  %19076 = vst [vmem:[#allocation42_spill] sm:$0xff] %v11283_v57  ;;  %v11367_v13 = vmul.u32 8, %v11337_v7  ;;  %v11369_v15 = vmul.u32 8, %v1271_v10  ;;  %v11413_v23 = vadd.s32 112, %v11003_v2  ;;  %v11416_v24 = vadd.s32 120, %v11003_v2 }
  0xe7   : > { %8252 = vmatprep.subr.msk.bf16.mxu0 %vm8251_vm8, %v18361_v28  ;;  %vm1435_vm1 = vmand %vm1147_vm2, %vm1307_vm3  ;;  %vm1164_vm2 = vcmp.ge.s32.totalorder %v11011_v5, %v11151_v37  ;;  %vm1324_vm3 = vcmp.lt.s32.totalorder %v11011_v5, %v11153_v38  ;;  %19077 = vst [vmem:[#allocation43_spill] sm:$0xff] %v11290_v58  ;;  %v11377_v16 = vmul.u32 8, %v11344_v9  ;;  %v11379_v22 = vmul.u32 8, %v1272_v11 }
  0xe8   : > { %vm1443_vm11 = vmand %vm1155_vm6, %vm1315_vm7  ;;  %vm1172_vm6 = vcmp.ge.s32.totalorder %v11011_v5, %v11161_v39  ;;  %vm1332_vm7 = vcmp.lt.s32.totalorder %v11011_v5, %v11163_v40  ;;  %19078 = vst [vmem:[#allocation44_spill] sm:$0xff] %v11337_v7  ;;  %v1273_v26 = vadd.s32 1, %v11413_v23  ;;  %v1274_v27 = vadd.s32 1, %v11416_v24 }
  0xe9   : > { %vm8189_vm14 = vmpackc.low %vm1443_vm11, %vm1435_vm1  ;;  %19079 = vst [vmem:[#allocation45_spill] sm:$0xff] %v11344_v9  ;;  %v11431_v35 = vmul.u32 8, %v11413_v23  ;;  %v11434_v36 = vmul.u32 8, %v11416_v24  ;;  %v11471_v51 = vadd.s32 384, %v11005_v3  ;;  %v11518_v60 = vsub.s32 0, %v11003_v2 }
  0xea   : > { %8190 = vmatpush1.bf16.msk.msra.mxu1 %vm8189_vm14, %v18361_v28  ;;  %vm1439_vm15 = vmand %vm1151_vm9, %vm1311_vm10  ;;  %vm1168_vm9 = vcmp.ge.s32.totalorder %v11018_v8, %v11151_v37  ;;  %vm1328_vm10 = vcmp.lt.s32.totalorder %v11018_v8, %v11153_v38  ;;  %19080 = vst [vmem:[#allocation46_spill] sm:$0xff] %v11379_v22  ;;  %v11436_v43 = vmul.u32 8, %v1273_v26  ;;  %v11438_v44 = vmul.u32 8, %v1274_v27  ;;  %v2876_v26 = vld [vmem:[%s18320_s4] sm:$0xff] }
  0xeb   : > { %vm1447_vm4 = vmand %vm1159_vm12, %vm1319_vm13  ;;  %vm1176_vm12 = vcmp.ge.s32.totalorder %v11018_v8, %v11161_v39  ;;  %vm1336_vm13 = vcmp.lt.s32.totalorder %v11018_v8, %v11163_v40  ;;  %19081 = vst [vmem:[#allocation47_spill] sm:$0xff] %v11413_v23  ;;  %v11530_v10 = vrot.slane %v11475_v52, %v11518_v60  ;;  %v19088_v11 = vmov 0 }
  0xec   : > { %vm8253_vm8 = vmpackc.low %vm1447_vm4, %vm1439_vm15  ;;  %19082 = vst [vmem:[#allocation48_spill] sm:$0xff] %v11416_v24  ;;  %v19099_v21 = vmov 0  ;;  %v19187_v27 = vmov 0  }
  0xed   : > { %8254 = vmatpush1.bf16.msk.msra.mxu0 %vm8253_vm8, %v18361_v28  ;;  %vm1452_vm1 = vmand %vm1164_vm2, %vm1324_vm3  ;;  %vm1163_vm2 = vcmp.ge.s32.totalorder %v11005_v3, %v11151_v37  ;;  %vm1323_vm3 = vcmp.lt.s32.totalorder %v11005_v3, %v11153_v38  ;;  %19084 = vst [vmem:[#allocation50_spill] sm:$0xff] %v11475_v52 }
  0xee   : > { %vm1460_vm11 = vmand %vm1172_vm6, %vm1332_vm7  ;;  %vm1171_vm6 = vcmp.ge.s32.totalorder %v11005_v3, %v11161_v39  ;;  %vm1331_vm7 = vcmp.lt.s32.totalorder %v11005_v3, %v11163_v40  ;;  %19086 = vst [vmem:[#allocation52_spill] sm:$0xff] %v11518_v60  ;;  %v19111_v60 = vmov 0 }
  0xef   : > { %vm8191_vm14 = vmpackc.low %vm1460_vm11, %vm1452_vm1  ;;  %19087 = vst [vmem:[#allocation53_spill] sm:$0xff] %v11530_v10 }
  0xf0   : > { %8192 = vmatprep.subr.msk.bf16.mxu1 %vm8191_vm14, %v18361_v28  ;;  %vm1456_vm15 = vmand %vm1168_vm9, %vm1328_vm10  ;;  %vm1167_vm9 = vcmp.ge.s32.totalorder %v11081_v25, %v11151_v37  ;;  %vm1327_vm10 = vcmp.lt.s32.totalorder %v11081_v25, %v11153_v38 }
  0xf1   : > { %vm1464_vm4 = vmand %vm1176_vm12, %vm1336_vm13  ;;  %vm1175_vm12 = vcmp.ge.s32.totalorder %v11081_v25, %v11161_v39  ;;  %vm1335_vm13 = vcmp.lt.s32.totalorder %v11081_v25, %v11163_v40 }
  0xf2   : > { %vm8255_vm8 = vmpackc.low %vm1464_vm4, %vm1456_vm15 }
  0xf3   : > { %8256 = vmatprep.subr.msk.bf16.mxu0 %vm8255_vm8, %v18361_v28  ;;  %vm1451_vm1 = vmand %vm1163_vm2, %vm1323_vm3  ;;  %vm1180_vm2 = vcmp.ge.s32.totalorder %v11011_v5, %v11205_v45  ;;  %vm1340_vm3 = vcmp.lt.s32.totalorder %v11011_v5, %v11207_v46 }
  0xf4   : > { %vm1459_vm11 = vmand %vm1171_vm6, %vm1331_vm7  ;;  %vm1188_vm6 = vcmp.ge.s32.totalorder %v11011_v5, %v11215_v47  ;;  %vm1348_vm7 = vcmp.lt.s32.totalorder %v11011_v5, %v11217_v48 }
  0xf5   : > { %vm8193_vm14 = vmpackc.low %vm1459_vm11, %vm1451_vm1 }
  0xf6   : > { %8194 = vmatpush1.bf16.msk.msra.mxu1 %vm8193_vm14, %v18361_v28  ;;  %vm1455_vm15 = vmand %vm1167_vm9, %vm1327_vm10  ;;  %vm1184_vm9 = vcmp.ge.s32.totalorder %v11018_v8, %v11205_v45  ;;  %vm1344_vm10 = vcmp.lt.s32.totalorder %v11018_v8, %v11207_v46 }
  0xf7   : > { %vm1463_vm4 = vmand %vm1175_vm12, %vm1335_vm13  ;;  %vm1192_vm12 = vcmp.ge.s32.totalorder %v11018_v8, %v11215_v47  ;;  %vm1352_vm13 = vcmp.lt.s32.totalorder %v11018_v8, %v11217_v48 }
  0xf8   : > { %vm8257_vm8 = vmpackc.low %vm1463_vm4, %vm1455_vm15 }
  0xf9   : > { %8258 = vmatpush1.bf16.msk.msra.mxu0 %vm8257_vm8, %v18361_v28  ;;  %vm1468_vm1 = vmand %vm1180_vm2, %vm1340_vm3  ;;  %vm1179_vm2 = vcmp.ge.s32.totalorder %v11005_v3, %v11205_v45  ;;  %vm1339_vm3 = vcmp.lt.s32.totalorder %v11005_v3, %v11207_v46 }
  0xfa   : > { %vm1476_vm11 = vmand %vm1188_vm6, %vm1348_vm7  ;;  %vm1187_vm6 = vcmp.ge.s32.totalorder %v11005_v3, %v11215_v47  ;;  %vm1347_vm7 = vcmp.lt.s32.totalorder %v11005_v3, %v11217_v48 }
  0xfb   : > { %vm8195_vm14 = vmpackc.low %vm1476_vm11, %vm1468_vm1 }
  0xfc   : > { %8196 = vmatprep.subr.msk.bf16.mxu1 %vm8195_vm14, %v18361_v28  ;;  %vm1472_vm15 = vmand %vm1184_vm9, %vm1344_vm10  ;;  %vm1183_vm9 = vcmp.ge.s32.totalorder %v11081_v25, %v11205_v45  ;;  %vm1343_vm10 = vcmp.lt.s32.totalorder %v11081_v25, %v11207_v46 }
  0xfd   : > { %vm1480_vm4 = vmand %vm1192_vm12, %vm1352_vm13  ;;  %vm1191_vm12 = vcmp.ge.s32.totalorder %v11081_v25, %v11215_v47  ;;  %vm1351_vm13 = vcmp.lt.s32.totalorder %v11081_v25, %v11217_v48 }
  0xfe   : > { %vm8259_vm8 = vmpackc.low %vm1480_vm4, %vm1472_vm15 }
  0xff   : > { %8260 = vmatprep.subr.msk.bf16.mxu0 %vm8259_vm8, %v18361_v28  ;;  %vm1467_vm1 = vmand %vm1179_vm2, %vm1339_vm3  ;;  %vm1196_vm2 = vcmp.ge.s32.totalorder %v11011_v5, %v11259_v53  ;;  %vm1356_vm3 = vcmp.lt.s32.totalorder %v11011_v5, %v11261_v54 }
 0x100   : > { %vm1475_vm11 = vmand %vm1187_vm6, %vm1347_vm7  ;;  %vm1204_vm6 = vcmp.ge.s32.totalorder %v11011_v5, %v11269_v55  ;;  %vm1364_vm7 = vcmp.lt.s32.totalorder %v11011_v5, %v11271_v56 }
 0x101   : > { %vm8197_vm14 = vmpackc.low %vm1475_vm11, %vm1467_vm1 }
 0x102   : > { %8198 = vmatpush1.bf16.msk.msra.mxu1 %vm8197_vm14, %v18361_v28  ;;  %vm1471_vm15 = vmand %vm1183_vm9, %vm1343_vm10  ;;  %vm1200_vm9 = vcmp.ge.s32.totalorder %v11018_v8, %v11259_v53  ;;  %vm1360_vm10 = vcmp.lt.s32.totalorder %v11018_v8, %v11261_v54 }
 0x103   : > { %vm1479_vm4 = vmand %vm1191_vm12, %vm1351_vm13  ;;  %vm1208_vm12 = vcmp.ge.s32.totalorder %v11018_v8, %v11269_v55  ;;  %vm1368_vm13 = vcmp.lt.s32.totalorder %v11018_v8, %v11271_v56 }
 0x104   : > { %vm8261_vm8 = vmpackc.low %vm1479_vm4, %vm1471_vm15 }
 0x105   : > { %8262 = vmatpush1.bf16.msk.msra.mxu0 %vm8261_vm8, %v18361_v28  ;;  %vm1484_vm1 = vmand %vm1196_vm2, %vm1356_vm3  ;;  %vm1195_vm2 = vcmp.ge.s32.totalorder %v11005_v3, %v11259_v53  ;;  %vm1355_vm3 = vcmp.lt.s32.totalorder %v11005_v3, %v11261_v54 }
 0x106   : > { %vm1492_vm11 = vmand %vm1204_vm6, %vm1364_vm7  ;;  %vm1203_vm6 = vcmp.ge.s32.totalorder %v11005_v3, %v11269_v55  ;;  %vm1363_vm7 = vcmp.lt.s32.totalorder %v11005_v3, %v11271_v56 }
 0x107   : > { %vm8199_vm14 = vmpackc.low %vm1492_vm11, %vm1484_vm1 }
 0x108   : > { %8200 = vmatprep.subr.msk.bf16.mxu1 %vm8199_vm14, %v18361_v28  ;;  %vm1488_vm15 = vmand %vm1200_vm9, %vm1360_vm10  ;;  %vm1199_vm9 = vcmp.ge.s32.totalorder %v11081_v25, %v11259_v53  ;;  %vm1359_vm10 = vcmp.lt.s32.totalorder %v11081_v25, %v11261_v54 }
 0x109   : > { %vm1496_vm4 = vmand %vm1208_vm12, %vm1368_vm13  ;;  %vm1207_vm12 = vcmp.ge.s32.totalorder %v11081_v25, %v11269_v55  ;;  %vm1367_vm13 = vcmp.lt.s32.totalorder %v11081_v25, %v11271_v56 }
 0x10a   : > { %vm8263_vm8 = vmpackc.low %vm1496_vm4, %vm1488_vm15 }
 0x10b   : > { %8264 = vmatprep.subr.msk.bf16.mxu0 %vm8263_vm8, %v18361_v28  ;;  %vm1483_vm1 = vmand %vm1195_vm2, %vm1355_vm3  ;;  %vm1212_vm2 = vcmp.ge.s32.totalorder %v11011_v5, %v11313_v61  ;;  %vm1372_vm3 = vcmp.lt.s32.totalorder %v11011_v5, %v11315_v62 }
 0x10c   : > { %vm1491_vm11 = vmand %vm1203_vm6, %vm1363_vm7  ;;  %vm1220_vm6 = vcmp.ge.s32.totalorder %v11011_v5, %v11323_v63  ;;  %vm1380_vm7 = vcmp.lt.s32.totalorder %v11011_v5, %v11325_v1 }
 0x10d   : > { %vm8201_vm14 = vmpackc.low %vm1491_vm11, %vm1483_vm1 }
 0x10e   : > { %8202 = vmatpush1.bf16.msk.msra.mxu1 %vm8201_vm14, %v18361_v28  ;;  %vm1487_vm15 = vmand %vm1199_vm9, %vm1359_vm10  ;;  %vm1216_vm9 = vcmp.ge.s32.totalorder %v11018_v8, %v11313_v61  ;;  %vm1376_vm10 = vcmp.lt.s32.totalorder %v11018_v8, %v11315_v62 }
 0x10f   : > { %vm1495_vm4 = vmand %vm1207_vm12, %vm1367_vm13  ;;  %vm1224_vm12 = vcmp.ge.s32.totalorder %v11018_v8, %v11323_v63  ;;  %vm1384_vm13 = vcmp.lt.s32.totalorder %v11018_v8, %v11325_v1 }
 0x110   : > { %vm8265_vm8 = vmpackc.low %vm1495_vm4, %vm1487_vm15 }
 0x111   : > { %8266 = vmatpush1.bf16.msk.msra.mxu0 %vm8265_vm8, %v18361_v28  ;;  %vm1500_vm1 = vmand %vm1212_vm2, %vm1372_vm3  ;;  %vm1211_vm2 = vcmp.ge.s32.totalorder %v11005_v3, %v11313_v61  ;;  %vm1371_vm3 = vcmp.lt.s32.totalorder %v11005_v3, %v11315_v62 }
 0x112   : > { %vm1508_vm11 = vmand %vm1220_vm6, %vm1380_vm7  ;;  %vm1219_vm6 = vcmp.ge.s32.totalorder %v11005_v3, %v11323_v63  ;;  %vm1379_vm7 = vcmp.lt.s32.totalorder %v11005_v3, %v11325_v1 }
 0x113   : > { %vm8203_vm14 = vmpackc.low %vm1508_vm11, %vm1500_vm1 }
 0x114   : > { %8204 = vmatprep.subr.msk.bf16.mxu1 %vm8203_vm14, %v18361_v28  ;;  %vm1504_vm15 = vmand %vm1216_vm9, %vm1376_vm10  ;;  %vm1215_vm9 = vcmp.ge.s32.totalorder %v11081_v25, %v11313_v61  ;;  %vm1375_vm10 = vcmp.lt.s32.totalorder %v11081_v25, %v11315_v62 }
 0x115   : > { %vm1512_vm4 = vmand %vm1224_vm12, %vm1384_vm13  ;;  %vm1223_vm12 = vcmp.ge.s32.totalorder %v11081_v25, %v11323_v63  ;;  %vm1383_vm13 = vcmp.lt.s32.totalorder %v11081_v25, %v11325_v1 }
 0x116   : > { %vm8267_vm8 = vmpackc.low %vm1512_vm4, %vm1504_vm15 }
 0x117   : > { %8268 = vmatprep.subr.msk.bf16.mxu0 %vm8267_vm8, %v18361_v28  ;;  %vm1499_vm1 = vmand %vm1211_vm2, %vm1371_vm3  ;;  %vm1228_vm2 = vcmp.ge.s32.totalorder %v11011_v5, %v11367_v13  ;;  %vm1388_vm3 = vcmp.lt.s32.totalorder %v11011_v5, %v11369_v15 }
 0x118   : > { %vm1507_vm11 = vmand %vm1219_vm6, %vm1379_vm7  ;;  %vm1236_vm6 = vcmp.ge.s32.totalorder %v11011_v5, %v11377_v16  ;;  %vm1396_vm7 = vcmp.lt.s32.totalorder %v11011_v5, %v11379_v22 }
 0x119   : > { %vm8205_vm14 = vmpackc.low %vm1507_vm11, %vm1499_vm1 }
 0x11a   : > { %8206 = vmatpush1.bf16.msk.msra.mxu1 %vm8205_vm14, %v18361_v28  ;;  %vm1503_vm15 = vmand %vm1215_vm9, %vm1375_vm10  ;;  %vm1232_vm9 = vcmp.ge.s32.totalorder %v11018_v8, %v11367_v13  ;;  %vm1392_vm10 = vcmp.lt.s32.totalorder %v11018_v8, %v11369_v15 }
 0x11b   : > { %vm1511_vm4 = vmand %vm1223_vm12, %vm1383_vm13  ;;  %vm1240_vm12 = vcmp.ge.s32.totalorder %v11018_v8, %v11377_v16  ;;  %vm1400_vm13 = vcmp.lt.s32.totalorder %v11018_v8, %v11379_v22 }
 0x11c   : > { %vm8269_vm8 = vmpackc.low %vm1511_vm4, %vm1503_vm15 }
 0x11d   : > { %8270 = vmatpush1.bf16.msk.msra.mxu0 %vm8269_vm8, %v18361_v28  ;;  %vm1516_vm1 = vmand %vm1228_vm2, %vm1388_vm3  ;;  %vm1227_vm2 = vcmp.ge.s32.totalorder %v11005_v3, %v11367_v13  ;;  %vm1387_vm3 = vcmp.lt.s32.totalorder %v11005_v3, %v11369_v15 }
 0x11e   : > { %vm1524_vm11 = vmand %vm1236_vm6, %vm1396_vm7  ;;  %vm1235_vm6 = vcmp.ge.s32.totalorder %v11005_v3, %v11377_v16  ;;  %vm1395_vm7 = vcmp.lt.s32.totalorder %v11005_v3, %v11379_v22 }
 0x11f   : > { %vm8207_vm14 = vmpackc.low %vm1524_vm11, %vm1516_vm1 }
 0x120   : > { %8208 = vmatprep.subr.msk.bf16.mxu1 %vm8207_vm14, %v18361_v28  ;;  %vm1520_vm15 = vmand %vm1232_vm9, %vm1392_vm10  ;;  %vm1231_vm9 = vcmp.ge.s32.totalorder %v11081_v25, %v11367_v13  ;;  %vm1391_vm10 = vcmp.lt.s32.totalorder %v11081_v25, %v11369_v15 }
 0x121   : > { %vm1528_vm4 = vmand %vm1240_vm12, %vm1400_vm13  ;;  %vm1239_vm12 = vcmp.ge.s32.totalorder %v11081_v25, %v11377_v16  ;;  %vm1399_vm13 = vcmp.lt.s32.totalorder %v11081_v25, %v11379_v22 }
 0x122   : > { %vm8271_vm8 = vmpackc.low %vm1528_vm4, %vm1520_vm15  ;;  %vm1244_vm4 = vcmp.ge.s32.totalorder %v11011_v5, %v11431_v35 }
 0x123   : > { %8272 = vmatprep.subr.msk.bf16.mxu0 %vm8271_vm8, %v18361_v28  ;;  %vm1515_vm1 = vmand %vm1227_vm2, %vm1387_vm3  ;;  %vm1412_vm8 = vcmp.lt.s32.totalorder %v11011_v5, %v11438_v44 }
 0x124   : > { %vm1523_vm11 = vmand %vm1235_vm6, %vm1395_vm7  ;;  %vm1252_vm6 = vcmp.ge.s32.totalorder %v11011_v5, %v11434_v36  ;;  %vm1404_vm7 = vcmp.lt.s32.totalorder %v11011_v5, %v11436_v43  ;;  %v11467_v5 = vsub.s32 1, %v11003_v2 }
 0x125   : > { %vm8209_vm14 = vmpackc.low %vm1523_vm11, %vm1515_vm1 }
 0x126   : > { %8210 = vmatpush1.bf16.msk.msra.mxu1 %vm8209_vm14, %v18361_v28  ;;  %vm1519_vm15 = vmand %vm1231_vm9, %vm1391_vm10  ;;  %vm1248_vm9 = vcmp.ge.s32.totalorder %v11018_v8, %v11431_v35  ;;  %vm1408_vm10 = vcmp.lt.s32.totalorder %v11018_v8, %v11436_v43  ;;  %19083 = vst [vmem:[#allocation49_spill] sm:$0xff] %v11467_v5  ;;  %v11489_v59 = vrot.slane %v11475_v52, %v11467_v5  ;;  %v19103_v5 = vmov 0 }
 0x127   : > { %vm1527_vm2 = vmand %vm1239_vm12, %vm1399_vm13  ;;  %vm1256_vm12 = vcmp.ge.s32.totalorder %v11018_v8, %v11434_v36  ;;  %vm1416_vm13 = vcmp.lt.s32.totalorder %v11018_v8, %v11438_v44  ;;  %v18357_v8 = vmov 0  }
 0x128   : > { %vm8273_vm3 = vmpackc.low %vm1527_vm2, %vm1519_vm15  ;;  %vm1243_vm2 = vcmp.ge.s32.totalorder %v11005_v3, %v11431_v35  ;;  %2564 = vmatprep.mubr.bf16.mxu1 %v18357_v8  ;;  %2650 = vmatprep.mubr.bf16.mxu0 %v18357_v8  ;;  %19085 = vst [vmem:[#allocation51_spill] sm:$0xff] %v11489_v59 }
 0x129   : > { %8274 = vmatpush1.bf16.msk.msra.mxu0 %vm8273_vm3, %v18361_v28  ;;  %vm1532_vm1 = vmand %vm1244_vm4, %vm1404_vm7  ;;  %vm1403_vm3 = vcmp.lt.s32.totalorder %v11005_v3, %v11436_v43  ;;  %vm1411_vm7 = vcmp.lt.s32.totalorder %v11005_v3, %v11438_v44  ;;  %10387 = vset.pattern.permute.xlu0 %v18357_v8 }
 0x12a   : > { %vm1540_vm11 = vmand %vm1252_vm6, %vm1412_vm8  ;;  %vm1251_vm6 = vcmp.ge.s32.totalorder %v11005_v3, %v11434_v36  ;;  %10388 = vset.pattern.permute.xlu1 %v18357_v8  ;;  %2880 = vperm.xlu0 %10387, %v2876_v26   ;;  %v19094_v8 = vmov 0  ;;  %v19215_v26 = vmov 0 }
 0x12b   : > { %vm8211_vm14 = vmpackc.low %vm1540_vm11, %vm1532_vm1 }
 0x12c   : > { %8212 = vmatprep.subr.msk.bf16.mxu1 %vm8211_vm14, %v18361_v28  ;;  %vm1536_vm15 = vmand %vm1248_vm9, %vm1408_vm10  ;;  %vm1247_vm9 = vcmp.ge.s32.totalorder %v11081_v25, %v11431_v35  ;;  %vm1407_vm10 = vcmp.lt.s32.totalorder %v11081_v25, %v11436_v43 }
 0x12d   : > { %vm1544_vm4 = vmand %vm1256_vm12, %vm1416_vm13  ;;  %vm1255_vm12 = vcmp.ge.s32.totalorder %v11081_v25, %v11434_v36  ;;  %vm1415_vm13 = vcmp.lt.s32.totalorder %v11081_v25, %v11438_v44  ;;  %v11515_v25 = vadd.s32 256, %v11005_v3 }
 0x12e   : > { %vm8275_vm8 = vmpackc.low %vm1544_vm4, %vm1536_vm15 }
 0x12f   : > { %8276 = vmatprep.subr.msk.bf16.mxu0 %vm8275_vm8, %v18361_v28  ;;  %vm1531_vm1 = vmand %vm1243_vm2, %vm1403_vm3  ;;  %vm1134_vm2 = vcmp.ge.s32.totalorder %v11471_v51, %v11014_v6  ;;  %vm1294_vm3 = vcmp.lt.s32.totalorder %v11471_v51, %v11041_v17 }
 0x130   : > { %vm1539_vm11 = vmand %vm1251_vm6, %vm1411_vm7  ;;  %vm1142_vm6 = vcmp.ge.s32.totalorder %v11471_v51, %v11028_v12  ;;  %vm1302_vm7 = vcmp.lt.s32.totalorder %v11471_v51, %v11045_v18 }
 0x131   : > { %vm8213_vm14 = vmpackc.low %vm1539_vm11, %vm1531_vm1 }
 0x132   : > { %8214 = vmatpush1.bf16.msk.msra.mxu1 %vm8213_vm14, %v18361_v28  ;;  %vm1535_vm15 = vmand %vm1247_vm9, %vm1407_vm10  ;;  %vm18360_vm9 = vcmp.eq.s32.totalorder %v11003_v2, %v11489_v59  ;;  %vm18359_vm10 = vcmp.eq.s32.totalorder %v11008_v4, %v11489_v59 }
 0x133   : > { %vm1543_vm4 = vmand %vm1255_vm12, %vm1415_vm13  ;;  %vm1133_vm13 = vcmp.ge.s32.totalorder %v11515_v25, %v11014_v6 }
 0x134   : > { %vm8277_vm8 = vmpackc.low %vm1543_vm4, %vm1535_vm15  ;;  %vm1293_vm15 = vcmp.lt.s32.totalorder %v11515_v25, %v11041_v17  ;;  %vm1150_vm4 = vcmp.ge.s32.totalorder %v11471_v51, %v11097_v29 }
 0x135   : > { %8278 = vmatpush1.bf16.msk.msra.mxu0 %vm8277_vm8, %v18361_v28  ;;  %vm1422_vm1 = vmand %vm1134_vm2, %vm1294_vm3  ;;  %vm1141_vm2 = vcmp.ge.s32.totalorder %v11515_v25, %v11028_v12  ;;  %vm1301_vm3 = vcmp.lt.s32.totalorder %v11515_v25, %v11045_v18  ;;  %vm1158_vm8 = vcmp.ge.s32.totalorder %v11471_v51, %v11107_v31 }
 0x136   : > { %vm1430_vm11 = vmand %vm1142_vm6, %vm1302_vm7  ;;  %vm1310_vm6 = vcmp.lt.s32.totalorder %v11471_v51, %v11099_v30 }
 0x137   : > { %vm8215_vm14 = vmpackc.low %vm1430_vm11, %vm1422_vm1  ;;  %vm1318_vm1 = vcmp.lt.s32.totalorder %v11471_v51, %v11109_v32 }
 0x138   : > { %8216 = vmatprep.subr.msk.bf16.mxu1 %vm8215_vm14, %v18361_v28  ;;  %vm8311_vm12 = vmpackc.low %vm18359_vm10, %vm18360_vm9  ;;  %vm1149_vm14 = vcmp.ge.s32.totalorder %v11515_v25, %v11097_v29  ;;  %vm18371_vm10 = vcmp.eq.s32.totalorder %v11048_v19, %v11489_v59  ;;  %vm18370_vm9 = vcmp.eq.s32.totalorder %v11051_v20, %v11489_v59 }
 0x139   : > { %8312 = vmatprep.subr.msk.bf16.mxu0 %vm8311_vm12, %v18361_v28  ;;  %vm11536_vm7 = vmand %vm1133_vm13, %vm1293_vm15  ;;  %vm1309_vm12 = vcmp.lt.s32.totalorder %v11515_v25, %v11099_v30  ;;  %vm18369_vm13 = vcmp.eq.s32.totalorder %v11003_v2, %v11530_v10  ;;  %v2877_v28 = vld [vmem:[%s18320_s4 + $0x8] sm:$0xff]  ;;  %v19131_v30 = vmov 0 }
 0x13a   : > { %v19089_v11 = vsel %vm11536_vm7, 4294967295, %v19088_v11  ;;  %vm11547_vm11 = vmand %vm1141_vm2, %vm1301_vm3  ;;  %vm1157_vm2 = vcmp.ge.s32.totalorder %v11515_v25, %v11107_v31  ;;  %vm1317_vm3 = vcmp.lt.s32.totalorder %v11515_v25, %v11109_v32  ;;  %2885 = vperm.xlu0 %10387, %v2877_v28   ;;  %v19107_v28 = vmov 0 }
 0x13b   : > { %vm11559_vm5 = vmand %vm1150_vm4, %vm1310_vm6  ;;  %vm1325_vm4 = vcmp.lt.s32.totalorder %v11515_v25, %v11153_v38  ;;  %vm19106_vm6 = vcmp.ge.s32.totalorder %v11471_v51, %v11151_v37 }
 0x13c   : > { %v19093_v0 = vsel %vm11559_vm5, 4294967295, %v19092_v0  ;;  %vm11567_vm0 = vmand %vm1158_vm8, %vm1318_vm1  ;;  %vm19126_vm5 = vcmp.ge.s32.totalorder %v11471_v51, %v11205_v45 }
 0x13d   : > { %v19095_v8 = vsel %vm11567_vm0, 4294967295, %v19094_v8  ;;  %vm11579_vm15 = vmand %vm1149_vm14, %vm1309_vm12  ;;  %vm19098_vm14 = vcmp.eq.s32.totalorder %v11008_v4, %v11530_v10  ;;  %vm1342_vm0 = vcmp.lt.s32.totalorder %v11471_v51, %v11207_v46  ;;  %v19260_v4 = vld [vmem:[#allocation24_spill] sm:$0xff] }
 0x13e   : > { %vm11600_vm12 = vmpackc.low %vm19098_vm14, %vm18369_vm13  ;;  %vm19105_vm13 = vcmp.lt.s32.totalorder %v11471_v51, %v11153_v38  ;;  %vm19110_vm14 = vcmp.ge.s32.totalorder %v11471_v51, %v11161_v39  ;;  %v19120_v38 = vmov 0 }
 0x13f   : > { %v19100_v21 = vsel %vm11600_vm12, 4294967295, %v19099_v21  ;;  %vm11604_vm8 = vmand %vm1157_vm2, %vm1317_vm3  ;;  %vm19109_vm3 = vcmp.lt.s32.totalorder %v11471_v51, %v11163_v40  ;;  %vm19113_vm12 = vcmp.ge.s32.totalorder %v11515_v25, %v11151_v37 }
 0x140   : > { %vm11622_vm2 = vmpackc.low %vm18370_vm9, %vm18371_vm10  ;;  %vm1173_vm9 = vcmp.ge.s32.totalorder %v11515_v25, %v11161_v39  ;;  %vm1333_vm10 = vcmp.lt.s32.totalorder %v11515_v25, %v11163_v40  ;;  %v19114_v40 = vmov 0  ;;  %v19203_v39 = vmov 0 }
 0x141   : > { %v19104_v5 = vsel %vm11622_vm2, 4294967295, %v19103_v5  ;;  %vm11636_vm1 = vmand %vm19106_vm6, %vm19105_vm13  ;;  %vm19116_vm6 = vcmp.eq.s32.totalorder %v11048_v19, %v11530_v10  ;;  %v19127_v19 = vmov 0 }
 0x142   : > { %v19108_v28 = vsel %vm11636_vm1, 4294967295, %v19107_v28  ;;  %vm11650_vm2 = vmand %vm19110_vm14, %vm19109_vm3  ;;  %vm19130_vm3 = vcmp.ge.s32.totalorder %v11471_v51, %v11215_v47  ;;  %vm19142_vm1 = vcmp.lt.s32.totalorder %v11515_v25, %v11217_v48 }
 0x143   : > { %v19112_v60 = vsel %vm11650_vm2, 4294967295, %v19111_v60  ;;  %vm11665_vm7 = vmand %vm19113_vm12, %vm1325_vm4  ;;  %vm19117_vm4 = vcmp.eq.s32.totalorder %v11051_v20, %v11530_v10  ;;  %v19124_v20 = vmov 0 }
 0x144   : > { %v19115_v40 = vsel %vm11665_vm7, 4294967295, %v19114_v40  ;;  %vm11683_vm12 = vmpackc.low %vm19117_vm4, %vm19116_vm6  ;;  %vm19122_vm6 = vcmp.eq.s32.totalorder %v11121_v33, %v11489_v59  ;;  %vm19151_vm7 = vcmp.lt.s32.totalorder %v11471_v51, %v11261_v54 }
 0x145   : > { %vm11687_vm13 = vmand %vm1173_vm9, %vm1333_vm10  ;;  %vm19123_vm9 = vcmp.eq.s32.totalorder %v11128_v34, %v11489_v59 }
 0x146   : > { %v19121_v38 = vsel %vm11687_vm13, 4294967295, %v19120_v38  ;;  %vm11705_vm10 = vmpackc.low %vm19123_vm9, %vm19122_vm6  ;;  %vm19129_vm9 = vcmp.lt.s32.totalorder %v11471_v51, %v11217_v48  ;;  %vm19143_vm6 = vcmp.ge.s32.totalorder %v11515_v25, %v11215_v47  ;;  %v19149_v48 = vmov 0 }
 0x147   : > { %v19125_v20 = vsel %vm11705_vm10, 4294967295, %v19124_v20  ;;  %vm11716_vm14 = vmand %vm19126_vm5, %vm1342_vm0  ;;  %vm19139_vm5 = vcmp.eq.s32.totalorder %v11128_v34, %v11530_v10 }
 0x148   : > { %v19128_v19 = vsel %vm11716_vm14, 4294967295, %v19127_v19  ;;  %vm11730_vm4 = vmand %vm19130_vm3, %vm19129_vm9  ;;  %vm19133_vm3 = vcmp.lt.s32.totalorder %v11515_v25, %v11207_v46  ;;  %vm19134_vm9 = vcmp.ge.s32.totalorder %v11515_v25, %v11205_v45  ;;  %v19140_v45 = vmov 0 }
 0x149   : > { %v19132_v30 = vsel %vm11730_vm4, 4294967295, %v19131_v30  ;;  %vm11748_vm10 = vmand %vm19134_vm9, %vm19133_vm3  ;;  %vm19138_vm9 = vcmp.eq.s32.totalorder %v11121_v33, %v11530_v10  ;;  %vm19155_vm3 = vcmp.lt.s32.totalorder %v11471_v51, %v11271_v56 }
 0x14a   : > { %vm11770_vm0 = vmpackc.low %vm19139_vm5, %vm19138_vm9 }
 0x14b   : > { %v19141_v45 = vsel %vm11770_vm0, 4294967295, %v19140_v45  ;;  %vm11780_vm2 = vmand %vm19143_vm6, %vm19142_vm1  ;;  %vm19147_vm1 = vcmp.eq.s32.totalorder %v11175_v41, %v11489_v59  ;;  %vm19148_vm6 = vcmp.eq.s32.totalorder %v11182_v42, %v11489_v59  ;;  %vm19152_vm0 = vcmp.ge.s32.totalorder %v11471_v51, %v11259_v53 }
 0x14c   : > { %vm11800_vm9 = vmpackc.low %vm19148_vm6, %vm19147_vm1  ;;  %vm19164_vm1 = vcmp.ge.s32.totalorder %v11515_v25, %v11259_v53  ;;  %vm19171_vm6 = vcmp.eq.s32.totalorder %v11175_v41, %v11530_v10 }
 0x14d   : > { %v19150_v48 = vsel %vm11800_vm9, 4294967295, %v19149_v48  ;;  %vm11812_vm5 = vmand %vm19152_vm0, %vm19151_vm7  ;;  %vm19156_vm7 = vcmp.ge.s32.totalorder %v11471_v51, %v11269_v55  ;;  %vm19160_vm9 = vnez %v19089_v11  ;;  %v19185_v11 = vmov 0 }
 0x14e   : > { %vm11830_vm0 = vmand %vm19156_vm7, %vm19155_vm3  ;;  %vm19162_vm3 = vnez %v19100_v21  ;;  %vm19163_vm7 = vcmp.lt.s32.totalorder %v11515_v25, %v11261_v54  ;;  %v8959_v21 = vld [vmem:[%s18325_s9 + $0x4] sm:$0xf] }
 0x14f   : > { %vm19161_vm4 = vmpackc.low %vm11547_vm11, %vm19160_vm9  ;;  %vm19168_vm9 = vnez %v19093_v0  ;;  %vm19172_vm11 = vcmp.eq.s32.totalorder %v11182_v42, %v11530_v10  ;;  %v19177_v0 = vmov 0  ;;  %5793 = vperm.xlu0 %10387, %v8959_v21   ;;  %v12069_v21 = vadd.s32 896, %v11005_v3 }
 0x150   : > { %vm11855_vm14 = vmand %vm19164_vm1, %vm19163_vm7  ;;  %vm19170_vm1 = vnez %v19104_v5  ;;  %v19181_v5 = vmov 0  ;;  %vm19183_vm7 = vcmp.lt.s32.totalorder %v11471_v51, %v11315_v62 }
 0x151   : > { %vm11885_vm13 = vmpackc.low %vm19172_vm11, %vm19171_vm6  ;;  %vm19184_vm6 = vcmp.ge.s32.totalorder %v11471_v51, %v11313_v61 }
 0x152   : > { %vm11927_vm11 = vmand %vm19184_vm6, %vm19183_vm7 }
 0x153   : > { %v19186_v11 = vsel %vm11927_vm11, 4294967295, %v19185_v11  ;;  %6046 = vperm.xlu0 %10387, %v8966_v14   ;;  %vm19226_vm11 = vcmp.ge.s32.totalorder %v11515_v25, %v11367_v13  ;;  %v717_v14 = vsub.s32 4, %v11003_v2 }
 0x1a8   : > { %v2139_v37 = vpop.f32.mrb[0].mxu1 }
 0x1a9   : > { %v9917_v31 = vpop.f32.mrb[1].mxu1 }
 0x1aa   : > { %v2092_v32 = vpop.f32.mrb[0].mxu0  ;;  %v2142_v29 = vpop.f32.mrb[2].mxu1 }
 0x1ab   : > { %v9911_v31 = vpop.f32.mrb[1].mxu0  ;;  %v11758_v18 = vpack.c.bf16 %v2142_v29, %v2139_v37  ;;  %v9918_v46 = vpop.f32.mrb[3].mxu1  ;;  %v6180_v29 = vld [vmem:[%s18330_s14] sm:$0xff] }
 0x1ac   : > { %v2095_v31 = vpop.f32.mrb[2].mxu0 }
 0x1ad   : > { %19137 = vst [vmem:[#allocation54_spill] sm:$0xff] %v11758_v18  ;;  %v11788_v37 = vpack.c.bf16 %v2095_v31, %v2092_v32  ;;  %v9912_v46 = vpop.f32.mrb[3].mxu0  ;;  %v19153_v32 = vmov 0  ;;  %2565 = vmatmul.mubr.bf16.vlgmr.msra.gmra.mrb[4].mxu1 %v11758_v18  ;;  %2651 = vmatmul.mubr.bf16.vlgmr.msra.gmra.mrb[4].mxu0 %v11758_v18  ;;  %v19190_v18 = vmov 0  ;;  %v12285_v31 = vrot.slane %v11475_v52, %v717_v14  ;;  %v19287_v14 = vld [vmem:[#allocation29_spill] sm:$0xff] }
 0x1ae   : > { %v19154_v32 = vsel %vm11812_vm5, 4294967295, %v19153_v32  ;;  %v19159_v46 = vmov 1.0|1.0   ;;  %2607 = vmatprep.mubr.bf16.mxu1 %v19187_v27  ;;  %2736 = vmatprep.mubr.bf16.mxu0 %v19187_v27  ;;  %v19333_v27 = vld [vmem:[#allocation35_spill] sm:$0xff] }
 0x1af   : > { %19146 = vst [vmem:[#allocation55_spill] sm:$0xff] %v11788_v37  ;;  %8218 = vmatpush1.bf16.msk.msra.mxu1 %vm19161_vm4, %v19159_v46  ;;  %8314 = vmatpush1.bf16.msk.msra.mxu0 %vm19162_vm3, %v19159_v46  ;;  %v19165_v37 = vmov 0  ;;  %vm19167_vm4 = vnez %v19095_v8  ;;  %v19173_v8 = vmov 0  ;;  %19280 = vst [vmem:[#allocation24_spill] sm:$0xff] %v12285_v31 }
 0x1b0   : > { %v19166_v37 = vsel %vm11855_vm14, 4294967295, %v19165_v37  ;;  %vm19169_vm3 = vmpackc.low %vm19167_vm4, %vm19168_vm9  ;;  %8316 = vmatprep.subr.msk.bf16.mxu0 %vm19170_vm1, %v19159_v46  ;;  %v19174_v8 = vsel %vm11885_vm13, 4294967295, %v19173_v8  ;;  %vm19175_vm4 = vcmp.lt.s32.totalorder %v11515_v25, %v11271_v56  ;;  %vm19176_vm9 = vcmp.ge.s32.totalorder %v11515_v25, %v11269_v55 }
 0x1b1   : > { %8220 = vmatprep.subr.msk.bf16.mxu1 %vm19169_vm3, %v19159_v46  ;;  %vm11895_vm3 = vmand %vm19176_vm9, %vm19175_vm4  ;;  %vm19179_vm4 = vcmp.eq.s32.totalorder %v11229_v49, %v11489_v59  ;;  %vm19180_vm9 = vcmp.eq.s32.totalorder %v11236_v50, %v11489_v59  ;;  %vm19189_vm1 = vcmp.ge.s32.totalorder %v11471_v51, %v11323_v63  ;;  %vm19245_vm14 = vcmp.lt.s32.totalorder %v11471_v51, %v11436_v43 }
 0x1b2   : > { %v19178_v0 = vsel %vm11895_vm3, 4294967295, %v19177_v0  ;;  %vm11915_vm13 = vmpackc.low %vm19180_vm9, %vm19179_vm4  ;;  %vm19188_vm9 = vcmp.lt.s32.totalorder %v11471_v51, %v11325_v1  ;;  %vm19194_vm4 = vcmp.ge.s32.totalorder %v11515_v25, %v11313_v61 }
 0x1b3   : > { %v19182_v5 = vsel %vm11915_vm13, 4294967295, %v19181_v5  ;;  %vm11943_vm7 = vmand %vm19189_vm1, %vm19188_vm9  ;;  %8318 = vmatpush1.bf16.msk.msra.mxu0 %vm11683_vm12, %v19159_v46  ;;  %vm19193_vm9 = vcmp.lt.s32.totalorder %v11515_v25, %v11315_v62  ;;  %vm19197_vm12 = vnez %v19112_v60  ;;  %v19211_v60 = vmov 0 }
 0x1b4   : > { %v19191_v18 = vsel %vm11943_vm7, 4294967295, %v19190_v18  ;;  %vm19192_vm1 = vmpackc.low %vm11604_vm8, %vm11579_vm15  ;;  %vm19201_vm15 = vcmp.eq.s32.totalorder %v11229_v49, %v11530_v10  ;;  %vm19202_vm8 = vcmp.eq.s32.totalorder %v11236_v50, %v11530_v10  ;;  %vm19214_vm13 = vcmp.ge.s32.totalorder %v11471_v51, %v11367_v13 }
 0x1b5   : > { %8222 = vmatpush1.bf16.msk.msra.mxu1 %vm19192_vm1, %v19159_v46  ;;  %vm11970_vm5 = vmand %vm19194_vm4, %vm19193_vm9  ;;  %vm19198_vm4 = vnez %v19108_v28  ;;  %vm19200_vm9 = vnez %v19125_v20  ;;  %v721_v50 = vsub.s32 5, %v11003_v2  ;;  %v19227_v49 = vmov 0 }
 0x1b6   : > { %vm19199_vm1 = vmpackc.low %vm19197_vm12, %vm19198_vm4  ;;  %8320 = vmatprep.subr.msk.bf16.mxu0 %vm19200_vm9, %v19159_v46  ;;  %vm19205_vm12 = vcmp.lt.s32.totalorder %v11515_v25, %v11325_v1  ;;  %vm19206_vm4 = vcmp.ge.s32.totalorder %v11515_v25, %v11323_v63  ;;  %vm19213_vm9 = vcmp.lt.s32.totalorder %v11471_v51, %v11369_v15  ;;  %v19339_v20 = vmov 0 }
 0x1b7   : > { %8224 = vmatprep.subr.msk.bf16.mxu1 %vm19199_vm1, %v19159_v46  ;;  %vm12002_vm6 = vmpackc.low %vm19202_vm8, %vm19201_vm15  ;;  %vm19225_vm8 = vcmp.lt.s32.totalorder %v11515_v25, %v11369_v15  ;;  %v19351_v28 = vmov 0 }
 0x1b8   : > { %v19204_v39 = vsel %vm12002_vm6, 4294967295, %v19203_v39  ;;  %vm12012_vm1 = vmand %vm19206_vm4, %vm19205_vm12  ;;  %vm19209_vm12 = vcmp.eq.s32.totalorder %v11283_v57, %v11489_v59  ;;  %vm19210_vm4 = vcmp.eq.s32.totalorder %v11290_v58, %v11489_v59 }
 0x1b9   : > { %vm12032_vm6 = vmpackc.low %vm19210_vm4, %vm19209_vm12  ;;  %vm19221_vm12 = vnez %v19121_v38  ;;  %vm19224_vm4 = vnez %v19141_v45  ;;  %v8975_v38 = vld [vmem:[%s18330_s14 + $0x8] sm:$0xff]  ;;  %v19243_v45 = vmov 0 }
 0x1ba   : > { %v19212_v60 = vsel %vm12032_vm6, 4294967295, %v19211_v60  ;;  %vm12042_vm15 = vmand %vm19214_vm13, %vm19213_vm9  ;;  %vm19217_vm6 = vcmp.lt.s32.totalorder %v11471_v51, %v11379_v22  ;;  %vm19218_vm13 = vcmp.ge.s32.totalorder %v11471_v51, %v11377_v16  ;;  %8322 = vmatpush1.bf16.msk.msra.mxu0 %vm19224_vm4, %v19159_v46  ;;  %vm19229_vm4 = vnez %v19132_v30  ;;  %6477 = vperm.xlu0 %10387, %v8975_v38   ;;  %v19286_v38 = vld [vmem:[#allocation28_spill] sm:$0xff] }
 0x1bb   : > { %v19216_v26 = vsel %vm12042_vm15, 4294967295, %v19215_v26  ;;  %vm12060_vm9 = vmand %vm19218_vm13, %vm19217_vm6  ;;  %vm19222_vm6 = vnez %v19115_v40  ;;  %v19235_v30 = vmov 0  ;;  %v12140_v40 = vadd.s32 768, %v11005_v3 }
 0x1bc   : > { %vm19223_vm13 = vmpackc.low %vm19221_vm12, %vm19222_vm6  ;;  %vm19233_vm12 = vcmp.eq.s32.totalorder %v11283_v57, %v11530_v10  ;;  %vm19234_vm6 = vcmp.eq.s32.totalorder %v11290_v58, %v11530_v10  ;;  %v19251_v3 = vmov 0  ;;  %vm19256_vm15 = vcmp.lt.s32.totalorder %v11515_v25, %v11436_v43 }
 0x1bd   : > { %8226 = vmatpush1.bf16.msk.msra.mxu1 %vm19223_vm13, %v19159_v46  ;;  %vm12087_vm7 = vmand %vm19226_vm11, %vm19225_vm8  ;;  %vm19230_vm11 = vnez %v19128_v19  ;;  %vm19232_vm13 = vnez %v19150_v48  ;;  %v19239_v19 = vmov 0  ;;  %v19247_v48 = vmov 0 }
 0x1be   : > { %v19228_v49 = vsel %vm12087_vm7, 4294967295, %v19227_v49  ;;  %vm19231_vm8 = vmpackc.low %vm19229_vm4, %vm19230_vm11  ;;  %8324 = vmatprep.subr.msk.bf16.mxu0 %vm19232_vm13, %v19159_v46  ;;  %vm19237_vm4 = vcmp.lt.s32.totalorder %v11515_v25, %v11379_v22  ;;  %vm19238_vm11 = vcmp.ge.s32.totalorder %v11515_v25, %v11377_v16  ;;  %v12190_v22 = vrot.slane %v11475_v52, %v721_v50  ;;  %v19296_v52 = vld [vmem:[#allocation30_spill] sm:$0xff] }
 0x1bf   : > { %8228 = vmatprep.subr.msk.bf16.mxu1 %vm19231_vm8, %v19159_v46  ;;  %vm12119_vm3 = vmpackc.low %vm19234_vm6, %vm19233_vm12  ;;  %vm19246_vm12 = vcmp.ge.s32.totalorder %v11471_v51, %v11431_v35  ;;  %vm19291_vm7 = vnez %v19204_v39  ;;  %v19323_v39 = vld [vmem:[#allocation26_spill] sm:$0xff]  ;;  %v19403_v50 = vmov 0 }
 0x1c0   : > { %v19236_v30 = vsel %vm12119_vm3, 4294967295, %v19235_v30  ;;  %vm12129_vm8 = vmand %vm19238_vm11, %vm19237_vm4  ;;  %vm19241_vm4 = vcmp.eq.s32.totalorder %v11337_v7, %v11489_v59  ;;  %vm19242_vm11 = vcmp.eq.s32.totalorder %v11344_v9, %v11489_v59  ;;  %19253 = vst [vmem:[#allocation56_spill] sm:$0xff] %v12190_v22 }
 0x1c1   : > { %v19240_v19 = vsel %vm12129_vm8, 4294967295, %v19239_v19  ;;  %vm12152_vm13 = vmpackc.low %vm19242_vm11, %vm19241_vm4  ;;  %vm19249_vm11 = vcmp.lt.s32.totalorder %v11471_v51, %v11438_v44  ;;  %vm19257_vm4 = vcmp.ge.s32.totalorder %v11515_v25, %v11431_v35  ;;  %vm19301_vm8 = vnez %v19212_v60  ;;  %v19324_v60 = vld [vmem:[#allocation32_spill] sm:$0xff] }
 0x1c2   : > { %v19244_v45 = vsel %vm12152_vm13, 4294967295, %v19243_v45  ;;  %vm12162_vm3 = vmand %vm19246_vm12, %vm19245_vm14  ;;  %vm19250_vm14 = vcmp.ge.s32.totalorder %v11471_v51, %v11434_v36  ;;  %vm19265_vm13 = vcmp.eq.s32.totalorder %v11344_v9, %v11530_v10  ;;  %v19266_v51 = vmov 0 }
 0x1c3   : > { %v19248_v48 = vsel %vm12162_vm3, 4294967295, %v19247_v48  ;;  %vm12179_vm12 = vmand %vm19250_vm14, %vm19249_vm11  ;;  %vm19255_vm14 = vnez %v19174_v8  ;;  %vm19293_vm3 = vcmp.ge.s32.totalorder %v12140_v40, %v11014_v6  ;;  %v19417_v8 = vld [vmem:[#allocation54_spill] sm:$0xff] }
 0x1c4   : > { %v19252_v3 = vsel %vm12179_vm12, 4294967295, %v19251_v3  ;;  %vm19254_vm11 = vmpackc.low %vm11780_vm2, %vm11748_vm10  ;;  %8326 = vmatpush1.bf16.msk.msra.mxu0 %vm19255_vm14, %v19159_v46  ;;  %vm19261_vm10 = vnez %v19154_v32  ;;  %vm19263_vm14 = vnez %v19182_v5  ;;  %v19278_v32 = vmov 0  ;;  %v19285_v5 = vld [vmem:[#allocation22_spill] sm:$0xff] }
 0x1c5   : > { %8230 = vmatpush1.bf16.msk.msra.mxu1 %vm19254_vm11, %v19159_v46  ;;  %vm12207_vm6 = vmand %vm19257_vm4, %vm19256_vm15  ;;  %8328 = vmatprep.subr.msk.bf16.mxu0 %vm19263_vm14, %v19159_v46  ;;  %vm19264_vm4 = vcmp.eq.s32.totalorder %v11337_v7, %v11530_v10  ;;  %vm19276_vm15 = vcmp.lt.s32.totalorder %v12069_v21, %v11041_v17  ;;  %vm19282_vm14 = vcmp.ge.s32.totalorder %v12069_v21, %v11028_v12 }
 0x1c6   : > { %vm19262_vm11 = vmpackc.low %vm11830_vm0, %vm19261_vm10  ;;  %vm19268_vm0 = vcmp.lt.s32.totalorder %v11515_v25, %v11438_v44  ;;  %vm19269_vm10 = vcmp.ge.s32.totalorder %v11515_v25, %v11434_v36  ;;  %v19274_v25 = vmov 0  ;;  %vm19288_vm12 = vnez %v19178_v0 }
 0x1c7   : > { %8232 = vmatprep.subr.msk.bf16.mxu1 %vm19262_vm11, %v19159_v46  ;;  %vm12234_vm2 = vmpackc.low %vm19265_vm13, %vm19264_vm4  ;;  %vm19277_vm13 = vcmp.ge.s32.totalorder %v12069_v21, %v11014_v6  ;;  %v19304_v6 = vmov 0  ;;  %v19320_v0 = vmov 0 }
 0x1c8   : > { %v19267_v51 = vsel %vm12234_vm2, 4294967295, %v19266_v51  ;;  %vm12244_vm11 = vmand %vm19269_vm10, %vm19268_vm0  ;;  %vm19272_vm0 = vcmp.eq.s32.totalorder %v11413_v23, %v11489_v59  ;;  %vm19273_vm10 = vcmp.eq.s32.totalorder %v11416_v24, %v11489_v59  ;;  %8330 = vmatpush1.bf16.msk.msra.mxu0 %vm19291_vm7, %v19159_v46  ;;  %v19294_v59 = vmov 0 }
 0x1c9   : > { %vm12264_vm2 = vmpackc.low %vm19273_vm10, %vm19272_vm0  ;;  %vm19281_vm10 = vcmp.lt.s32.totalorder %v12069_v21, %v19260_v4  ;;  %vm19299_vm7 = vnez %v19186_v11  ;;  %8332 = vmatprep.subr.msk.bf16.mxu0 %vm19301_vm8, %v19159_v46  ;;  %vm19303_vm0 = vcmp.eq.s32.totalorder %v11416_v24, %v11530_v10  ;;  %vm19307_vm8 = vcmp.ge.s32.totalorder %v12140_v40, %v11028_v12  ;;  %v19322_v11 = vld [vmem:[#allocation25_spill] sm:$0xff]  ;;  %v19332_v24 = vld [vmem:[#allocation34_spill] sm:$0xff] }
 0x1ca   : > { %v19275_v25 = vsel %vm12264_vm2, 4294967295, %v19274_v25  ;;  %vm12276_vm4 = vmand %vm19277_vm13, %vm19276_vm15  ;;  %vm19292_vm13 = vcmp.lt.s32.totalorder %v12140_v40, %v11041_v17  ;;  %v19308_v17 = vmov 0  ;;  %v19312_v12 = vmov 0 }
 0x1cb   : > { %v19279_v32 = vsel %vm12276_vm4, 4294967295, %v19278_v32  ;;  %vm12293_vm2 = vmand %vm19282_vm14, %vm19281_vm10  ;;  %vm19289_vm14 = vnez %v19166_v37  ;;  %v19297_v37 = vld [vmem:[#allocation31_spill] sm:$0xff] }
 0x1cc   : > { %vm19290_vm10 = vmpackc.low %vm19288_vm12, %vm19289_vm14  ;;  %vm19298_vm14 = vnez %v19191_v18  ;;  %v19316_v18 = vmov 0 }
 0x1cd   : > { %8234 = vmatpush1.bf16.msk.msra.mxu1 %vm19290_vm10, %v19159_v46  ;;  %vm12320_vm15 = vmand %vm19293_vm3, %vm19292_vm13  ;;  %vm19302_vm13 = vcmp.eq.s32.totalorder %v11413_v23, %v11530_v10  ;;  %vm19319_vm3 = vcmp.ge.s32.totalorder %v12069_v21, %v19296_v52  ;;  %v19465_v10 = vmov 0 }
 0x1ce   : > { %v19295_v59 = vsel %vm12320_vm15, 4294967295, %v19294_v59  ;;  %vm19300_vm10 = vmpackc.low %vm19298_vm14, %vm19299_vm7  ;;  %vm19306_vm14 = vcmp.lt.s32.totalorder %v12140_v40, %v19260_v4  ;;  %v19325_v4 = vld [vmem:[#allocation33_spill] sm:$0xff]  ;;  %vm19362_vm15 = vnez %v19267_v51  ;;  %v19390_v51 = vmov 0 }
 0x1cf   : > { %8236 = vmatprep.subr.msk.bf16.mxu1 %vm19300_vm10, %v19159_v46  ;;  %vm12347_vm12 = vmpackc.low %vm19303_vm0, %vm19302_vm13  ;;  %vm19310_vm13 = vcmp.eq.s32.totalorder %v11003_v2, %v12190_v22  ;;  %vm19315_vm0 = vcmp.ge.s32.totalorder %v12069_v21, %v19286_v38  ;;  %vm19318_vm10 = vcmp.lt.s32.totalorder %v12069_v21, %v19297_v37 }
 0x1d0   : > { %v19305_v6 = vsel %vm12347_vm12, 4294967295, %v19304_v6  ;;  %vm12357_vm7 = vmand %vm19307_vm8, %vm19306_vm14  ;;  %vm19311_vm14 = vcmp.eq.s32.totalorder %v19285_v5, %v12190_v22  ;;  %vm19314_vm12 = vcmp.lt.s32.totalorder %v12069_v21, %v19287_v14 }
 0x1d1   : > { %v19309_v17 = vsel %vm12357_vm7, 4294967295, %v19308_v17  ;;  %vm12375_vm8 = vmpackc.low %vm19311_vm14, %vm19310_vm13  ;;  %vm19329_vm13 = vcmp.ge.s32.totalorder %v12140_v40, %v19286_v38  ;;  %vm19338_vm14 = vcmp.eq.s32.totalorder %v19285_v5, %v12285_v31  ;;  %v19358_v38 = vld [vmem:[#allocation38_spill] sm:$0xff]  ;;  %vm19371_vm7 = vnez %v19275_v25  ;;  %v5583_v25 = vld [vmem:[%s18325_s9] sm:$0xf] }
 0x1d2   : > { %v19313_v12 = vsel %vm12375_vm8, 4294967295, %v19312_v12  ;;  %vm12389_vm4 = vmand %vm19315_vm0, %vm19314_vm12  ;;  %vm19328_vm0 = vcmp.lt.s32.totalorder %v12140_v40, %v19287_v14  ;;  %v19365_v14 = vmov 0 }
 0x1d3   : > { %v19317_v18 = vsel %vm12389_vm4, 4294967295, %v19316_v18  ;;  %vm12403_vm8 = vmand %vm19319_vm3, %vm19318_vm10  ;;  %vm19327_vm10 = vnez %v19236_v30 }
 0x1d4   : > { %v19321_v0 = vsel %vm12403_vm8, 4294967295, %v19320_v0  ;;  %vm19326_vm3 = vmpackc.low %vm12012_vm1, %vm11970_vm5  ;;  %8334 = vmatpush1.bf16.msk.msra.mxu0 %vm19327_vm10, %v19159_v46  ;;  %vm19334_vm1 = vnez %v19216_v26  ;;  %vm19336_vm10 = vnez %v19244_v45  ;;  %v19357_v45 = vld [vmem:[#allocation37_spill] sm:$0xff]  ;;  %vm19359_vm8 = vnez %v19240_v19 }
 0x1d5   : > { %8238 = vmatpush1.bf16.msk.msra.mxu1 %vm19326_vm3, %v19159_v46  ;;  %vm12430_vm12 = vmand %vm19329_vm13, %vm19328_vm0  ;;  %8336 = vmatprep.subr.msk.bf16.mxu0 %vm19336_vm10, %v19159_v46  ;;  %vm19337_vm0 = vcmp.eq.s32.totalorder %v11003_v2, %v12285_v31  ;;  %vm19353_vm10 = vcmp.lt.s32.totalorder %v12069_v21, %v19333_v27  ;;  %vm19354_vm13 = vcmp.ge.s32.totalorder %v12069_v21, %v19332_v24  ;;  %v19378_v19 = vmov 0 }
 0x1d6   : > { %vm19335_vm3 = vmpackc.low %vm12060_vm9, %vm19334_vm1  ;;  %vm19341_vm9 = vcmp.lt.s32.totalorder %v12140_v40, %v19297_v37  ;;  %vm19342_vm1 = vcmp.ge.s32.totalorder %v12140_v40, %v19296_v52  ;;  %v19347_v52 = vmov 0  ;;  %v19418_v37 = vld [vmem:[#allocation55_spill] sm:$0xff]  ;;  %v713_v26 = vsub.s32 3, %v11003_v2 }
 0x1d7   : > { %8240 = vmatprep.subr.msk.bf16.mxu1 %vm19335_vm3, %v19159_v46  ;;  %vm12457_vm5 = vmpackc.low %vm19338_vm14, %vm19337_vm0  ;;  %vm19345_vm0 = vcmp.eq.s32.totalorder %v19322_v11, %v12190_v22  ;;  %vm19350_vm14 = vcmp.ge.s32.totalorder %v12069_v21, %v19324_v60 }
 0x1d8   : > { %v19340_v20 = vsel %vm12457_vm5, 4294967295, %v19339_v20  ;;  %vm12467_vm3 = vmand %vm19342_vm1, %vm19341_vm9  ;;  %vm19346_vm9 = vcmp.eq.s32.totalorder %v19323_v39, %v12190_v22  ;;  %vm19349_vm5 = vcmp.lt.s32.totalorder %v12069_v21, %v19325_v4  ;;  %8338 = vmatpush1.bf16.msk.msra.mxu0 %vm19362_vm15, %v19159_v46  ;;  %vm19369_vm15 = vnez %v19248_v48 }
 0x1d9   : > { %vm12485_vm1 = vmpackc.low %vm19346_vm9, %vm19345_vm0  ;;  %vm19364_vm0 = vcmp.ge.s32.totalorder %v12140_v40, %v19324_v60  ;;  %8340 = vmatprep.subr.msk.bf16.mxu0 %vm19371_vm7, %v19159_v46  ;;  %vm19373_vm9 = vcmp.eq.s32.totalorder %v19323_v39, %v12285_v31  ;;  %vm19377_vm7 = vcmp.ge.s32.totalorder %v12140_v40, %v19332_v24  ;;  %v19382_v24 = vmov 0 }
 0x1da   : > { %v19348_v52 = vsel %vm12485_vm1, 4294967295, %v19347_v52  ;;  %vm12499_vm4 = vmand %vm19350_vm14, %vm19349_vm5  ;;  %vm19363_vm14 = vcmp.lt.s32.totalorder %v12140_v40, %v19325_v4  ;;  %v19386_v48 = vmov 0  ;;  %v19471_v4 = vld [vmem:[#allocation46_spill] sm:$0xff] }
 0x1db   : > { %v19352_v28 = vsel %vm12499_vm4, 4294967295, %v19351_v28  ;;  %vm12513_vm1 = vmand %vm19354_vm13, %vm19353_vm10  ;;  %vm19360_vm13 = vnez %v19228_v49  ;;  %v19367_v49 = vld [vmem:[#allocation39_spill] sm:$0xff] }
 0x1dc   : > { %vm19361_vm10 = vmpackc.low %vm19359_vm8, %vm19360_vm13  ;;  %vm19368_vm13 = vnez %v19252_v3  ;;  %v19374_v3 = vmov 0 }
 0x1dd   : > { %8242 = vmatpush1.bf16.msk.msra.mxu1 %vm19361_vm10, %v19159_v46  ;;  %vm12540_vm5 = vmand %vm19364_vm0, %vm19363_vm14  ;;  %vm19372_vm14 = vcmp.eq.s32.totalorder %v19322_v11, %v12285_v31  ;;  %vm19389_vm0 = vcmp.ge.s32.totalorder %v12069_v21, %v11215_v47 }
 0x1de   : > { %v19366_v14 = vsel %vm12540_vm5, 4294967295, %v19365_v14  ;;  %vm19370_vm10 = vmpackc.low %vm19368_vm13, %vm19369_vm15  ;;  %vm19376_vm13 = vcmp.lt.s32.totalorder %v12140_v40, %v19333_v27  ;;  %vm19426_vm5 = vnez %v19340_v20  ;;  %v19480_v27 = vmov 0 }
 0x1df   : > { %8244 = vmatprep.subr.msk.bf16.mxu1 %vm19370_vm10, %v19159_v46  ;;  %vm12567_vm8 = vmpackc.low %vm19373_vm9, %vm19372_vm14  ;;  %vm19380_vm14 = vcmp.eq.s32.totalorder %v11121_v33, %v12190_v22  ;;  %vm19385_vm9 = vcmp.ge.s32.totalorder %v12069_v21, %v19357_v45  ;;  %vm19388_vm10 = vcmp.lt.s32.totalorder %v12069_v21, %v19367_v49  ;;  %v19508_v20 = vmov 0 }
 0x1e0   : > { %v19375_v3 = vsel %vm12567_vm8, 4294967295, %v19374_v3  ;;  %vm12577_vm15 = vmand %vm19377_vm7, %vm19376_vm13  ;;  %vm19381_vm13 = vcmp.eq.s32.totalorder %v11128_v34, %v12190_v22  ;;  %vm19384_vm8 = vcmp.lt.s32.totalorder %v12069_v21, %v19358_v38 }
 0x1e1   : > { %v19379_v19 = vsel %vm12577_vm15, 4294967295, %v19378_v19  ;;  %vm12595_vm7 = vmpackc.low %vm19381_vm13, %vm19380_vm14  ;;  %vm19395_vm14 = vcmp.ge.s32.totalorder %v12140_v40, %v19357_v45  ;;  %vm19402_vm13 = vcmp.eq.s32.totalorder %v11128_v34, %v12285_v31  ;;  %vm19434_vm15 = vnez %v19348_v52 }
 0x1e2   : > { %v19383_v24 = vsel %vm12595_vm7, 4294967295, %v19382_v24  ;;  %vm12609_vm4 = vmand %vm19385_vm9, %vm19384_vm8  ;;  %vm19394_vm9 = vcmp.lt.s32.totalorder %v12140_v40, %v19358_v38  ;;  %v729_v45 = vsub.s32 7, %v11003_v2  ;;  %v725_v38 = vsub.s32 6, %v11003_v2 }
 0x1e3   : > { %v19387_v48 = vsel %vm12609_vm4, 4294967295, %v19386_v48  ;;  %vm12623_vm7 = vmand %vm19389_vm0, %vm19388_vm10  ;;  %vm19393_vm10 = vnez %v19305_v6  ;;  %v19421_v6 = vmov 0 }
 0x1e4   : > { %v19391_v51 = vsel %vm12623_vm7, 4294967295, %v19390_v51  ;;  %vm19392_vm0 = vmpackc.low %vm12244_vm11, %vm12207_vm6  ;;  %8342 = vmatpush1.bf16.msk.msra.mxu0 %vm19393_vm10, %v19159_v46  ;;  %vm19398_vm11 = vnez %v19279_v32  ;;  %vm19400_vm10 = vnez %v19313_v12  ;;  %v19415_v32 = vmov 0 }
 0x1e5   : > { %8246 = vmatpush1.bf16.msk.msra.mxu1 %vm19392_vm0, %v19159_v46  ;;  %vm12650_vm8 = vmand %vm19395_vm14, %vm19394_vm9  ;;  %8376 = vmatprep.subr.msk.bf16.mxu0 %vm19400_vm10, %v19159_v46  ;;  %vm19401_vm9 = vcmp.eq.s32.totalorder %v11121_v33, %v12285_v31  ;;  %vm19419_vm14 = vcmp.lt.s32.totalorder %v12069_v21, %v11271_v56  ;;  %vm19420_vm10 = vcmp.ge.s32.totalorder %v12069_v21, %v11269_v55  ;;  %v19429_v12 = vmov 0 }
 0x1e6   : > { %vm19399_vm0 = vmpackc.low %vm12293_vm2, %vm19398_vm11  ;;  %vm19405_vm2 = vcmp.lt.s32.totalorder %v12140_v40, %v19367_v49  ;;  %vm19406_vm11 = vcmp.ge.s32.totalorder %v12140_v40, %v11215_v47  ;;  %v19411_v47 = vmov 0 }
 0x1e7   : > { %8280 = vmatprep.subr.msk.bf16.mxu1 %vm19399_vm0, %v19159_v46  ;;  %vm12677_vm6 = vmpackc.low %vm19402_vm13, %vm19401_vm9  ;;  %vm19409_vm9 = vcmp.eq.s32.totalorder %v11175_v41, %v12190_v22  ;;  %vm19414_vm13 = vcmp.ge.s32.totalorder %v12069_v21, %v11259_v53  ;;  %2737 = vmatmul.mubr.bf16.vlgmr.msra.gmra.mrb[8].mxu0 %v19418_v37 }
 0x1e8   : > { %v19404_v50 = vsel %vm12677_vm6, 4294967295, %v19403_v50  ;;  %vm12687_vm0 = vmand %vm19406_vm11, %vm19405_vm2  ;;  %vm19410_vm2 = vcmp.eq.s32.totalorder %v11182_v42, %v12190_v22  ;;  %vm19413_vm6 = vcmp.lt.s32.totalorder %v12069_v21, %v11261_v54  ;;  %2608 = vmatmul.mubr.bf16.vlgmr.msra.gmra.mrb[8].mxu1 %v19417_v8  ;;  %8378 = vmatpush1.bf16.msk.msra.mxu0 %vm19426_vm5, %v19159_v46  ;;  %vm19432_vm5 = vnez %v19317_v18 }
 0x1e9   : > { %vm12705_vm11 = vmpackc.low %vm19410_vm2, %vm19409_vm9  ;;  %vm19423_vm2 = vnez %v19309_v17  ;;  %8380 = vmatprep.subr.msk.bf16.mxu0 %vm19434_vm15, %v19159_v46  ;;  %vm19436_vm9 = vcmp.eq.s32.totalorder %v11182_v42, %v12285_v31  ;;  %v19443_v17 = vmov 0  ;;  %vm19451_vm15 = vcmp.ge.s32.totalorder %v12069_v21, %v11323_v63 }
 0x1ea   : > { %v19412_v47 = vsel %vm12705_vm11, 4294967295, %v19411_v47  ;;  %vm12719_vm4 = vmand %vm19414_vm13, %vm19413_vm6  ;;  %vm19424_vm11 = vnez %v19295_v59  ;;  %v19440_v59 = vld [vmem:[#allocation41_spill] sm:$0xff]  ;;  %v19452_v18 = vmov 0 }
 0x1eb   : > { %v19416_v32 = vsel %vm12719_vm4, 4294967295, %v19415_v32  ;;  %vm12735_vm6 = vmand %vm19420_vm10, %vm19419_vm14  ;;  %vm19427_vm14 = vcmp.lt.s32.totalorder %v12140_v40, %v11261_v54  ;;  %vm19428_vm10 = vcmp.ge.s32.totalorder %v12140_v40, %v11259_v53  ;;  %v19437_v53 = vmov 0  ;;  %v19439_v54 = vld [vmem:[#allocation40_spill] sm:$0xff] }
 0x1ec   : > { %v19422_v6 = vsel %vm12735_vm6, 4294967295, %v19421_v6  ;;  %vm19425_vm7 = vmpackc.low %vm19423_vm2, %vm19424_vm11  ;;  %vm19431_vm11 = vnez %v19321_v0  ;;  %v19458_v0 = vmov 0  ;;  %vm1234_vm4 = vcmp.ge.s32.totalorder %v12069_v21, %v11367_v13 }
 0x1ed   : > { %8282 = vmatpush1.bf16.msk.msra.mxu1 %vm19425_vm7, %v19159_v46  ;;  %vm12758_vm13 = vmand %vm19428_vm10, %vm19427_vm14  ;;  %vm19435_vm10 = vcmp.eq.s32.totalorder %v11175_v41, %v12285_v31 }
 0x1ee   : > { %v19430_v12 = vsel %vm12758_vm13, 4294967295, %v19429_v12  ;;  %vm19433_vm2 = vmpackc.low %vm19431_vm11, %vm19432_vm5  ;;  %vm19441_vm5 = vcmp.lt.s32.totalorder %v12140_v40, %v11271_v56  ;;  %vm19445_vm11 = vcmp.lt.s32.totalorder %v12069_v21, %v11315_v62  ;;  %v19449_v56 = vmov 0  }
 0x1ef   : > { %8284 = vmatprep.subr.msk.bf16.mxu1 %vm19433_vm2, %v19159_v46  ;;  %vm12785_vm7 = vmpackc.low %vm19436_vm9, %vm19435_vm10  ;;  %vm19442_vm2 = vcmp.ge.s32.totalorder %v12140_v40, %v11269_v55  ;;  %v19447_v55 = vmov 0  ;;  %2693 = vmatprep.mubr.bf16.mxu1 %v19449_v56  ;;  %vm19450_vm10 = vcmp.lt.s32.totalorder %v12069_v21, %v11325_v1  ;;  %vm19456_vm9 = vcmp.eq.s32.totalorder %v19439_v54, %v12190_v22 }
 0x1f0   : > { %v19438_v53 = vsel %vm12785_vm7, 4294967295, %v19437_v53  ;;  %vm12799_vm14 = vmand %vm19442_vm2, %vm19441_vm5  ;;  %vm19446_vm5 = vcmp.ge.s32.totalorder %v12069_v21, %v11313_v61  ;;  %2822 = vmatprep.mubr.bf16.mxu0 %v19449_v56  ;;  %vm19457_vm7 = vcmp.eq.s32.totalorder %v19440_v59, %v12190_v22  ;;  %vm19477_vm13 = vcmp.ge.s32.totalorder %v12140_v40, %v11323_v63 }
 0x1f1   : > { %v19444_v17 = vsel %vm12799_vm14, 4294967295, %v19443_v17  ;;  %vm12817_vm2 = vmand %vm19446_vm5, %vm19445_vm11  ;;  %v19486_v63 = vmov 0 }
 0x1f2   : > { %v19448_v55 = vsel %vm12817_vm2, 4294967295, %v19447_v55  ;;  %vm12833_vm11 = vmand %vm19451_vm15, %vm19450_vm10  ;;  %vm19455_vm10 = vnez %v19375_v3 }
 0x1f3   : > { %v19453_v18 = vsel %vm12833_vm11, 4294967295, %v19452_v18  ;;  %vm19454_vm15 = vmpackc.low %vm12467_vm3, %vm12430_vm12  ;;  %8382 = vmatpush1.bf16.msk.msra.mxu0 %vm19455_vm10, %v19159_v46  ;;  %vm1394_vm12 = vcmp.lt.s32.totalorder %v12069_v21, %v11369_v15  ;;  %vm19460_vm3 = vnez %v19352_v28  ;;  %vm19462_vm10 = vnez %v19383_v24  ;;  %v19526_v28 = vld [vmem:[#allocation50_spill] sm:$0xff] }
 0x1f4   : > { %8286 = vmatpush1.bf16.msk.msra.mxu1 %vm19454_vm15, %v19159_v46  ;;  %vm12860_vm5 = vmpackc.low %vm19457_vm7, %vm19456_vm9  ;;  %8384 = vmatprep.subr.msk.bf16.mxu0 %vm19462_vm10, %v19159_v46  ;;  %vm19463_vm9 = vcmp.eq.s32.totalorder %v19439_v54, %v12285_v31  ;;  %vm1242_vm10 = vcmp.ge.s32.totalorder %v12069_v21, %v11377_v16  ;;  %vm1402_vm7 = vcmp.lt.s32.totalorder %v12069_v21, %v19471_v4 }
 0x1f5   : > { %v19459_v0 = vsel %vm12860_vm5, 4294967295, %v19458_v0  ;;  %vm19461_vm15 = vmpackc.low %vm12513_vm1, %vm19460_vm3  ;;  %vm19464_vm5 = vcmp.eq.s32.totalorder %v19440_v59, %v12285_v31  ;;  %vm19467_vm1 = vcmp.lt.s32.totalorder %v12140_v40, %v11315_v62  ;;  %vm19468_vm3 = vcmp.ge.s32.totalorder %v12140_v40, %v11313_v61 }
 0x1f6   : > { %8288 = vmatprep.subr.msk.bf16.mxu1 %vm19461_vm15, %v19159_v46  ;;  %vm12887_vm6 = vmpackc.low %vm19464_vm5, %vm19463_vm9  ;;  %vm19472_vm9 = vcmp.eq.s32.totalorder %v11283_v57, %v12190_v22  ;;  %v19474_v61 = vmov 0  ;;  %vm19491_vm5 = vnez %v19412_v47  ;;  %v13098_v30 = vrot.slane %v19526_v28, %v713_v26  ;;  %v13548_v47 = vpop.permute.xlu0 %2880 }
 0x1f7   : > { %v19466_v10 = vsel %vm12887_vm6, 4294967295, %v19465_v10  ;;  %vm12897_vm15 = vmand %vm19468_vm3, %vm19467_vm1  ;;  %vm19473_vm1 = vcmp.eq.s32.totalorder %v11290_v58, %v12190_v22  ;;  %vm19476_vm6 = vcmp.lt.s32.totalorder %v12140_v40, %v11325_v1  ;;  %v19494_v1 = vmov 0 }
 0x1f8   : > { %vm12915_vm3 = vmpackc.low %vm19473_vm1, %vm19472_vm9  ;;  %vm19482_vm1 = vnez %v19379_v19  ;;  %19527 = vst [vmem:[#allocation29_spill] sm:$0xff] %v13098_v30  ;;  %v13345_v49 = vrot.slane %v19526_v28, %v725_v38 }
 0x1f9   : > { %v19475_v61 = vsel %vm12915_vm3, 4294967295, %v19474_v61  ;;  %vm12925_vm14 = vmand %vm19477_vm13, %vm19476_vm6  ;;  %vm19483_vm3 = vnez %v19366_v14  ;;  %vm19485_vm6 = vnez %v19404_v50  ;;  %v13324_v14 = vrot.slane %v19526_v28, %v729_v45  ;;  %v5985_v50 = vld [vmem:[%s18327_s11] sm:$0xff] }
 0x1fa   : > { %vm12933_vm9 = vmand %vm1234_vm4, %vm1394_vm12  ;;  %8386 = vmatpush1.bf16.msk.msra.mxu0 %vm19485_vm6, %v19159_v46  ;;  %vm19488_vm4 = vnez %v19391_v51  ;;  %vm19489_vm12 = vnez %v19387_v48  ;;  %vm1393_vm6 = vcmp.lt.s32.totalorder %v12140_v40, %v11369_v15  ;;  %19546 = vst [vmem:[#allocation32_spill] sm:$0xff] %v13345_v49  ;;  %v2930_v51 = vld [vmem:[%s18322_s6] sm:$0x7] }
 0x1fb   : > { %v19481_v27 = vsel %vm12933_vm9, 4294967295, %v19480_v27  ;;  %vm19484_vm11 = vmpackc.low %vm19482_vm1, %vm19483_vm3  ;;  %8388 = vmatprep.subr.msk.bf16.mxu0 %vm19491_vm5, %v19159_v46  ;;  %vm19492_vm3 = vcmp.eq.s32.totalorder %v11283_v57, %v12285_v31  ;;  %vm1233_vm5 = vcmp.ge.s32.totalorder %v12140_v40, %v11367_v13  ;;  %v19498_v13 = vmov 0  ;;  %19545 = vst [vmem:[#allocation31_spill] sm:$0xff] %v13324_v14  ;;  %2933 = vperm.xlu1 %10388, %v2930_v51  }
 0x1fc   : > { %8290 = vmatpush1.bf16.msk.msra.mxu1 %vm19484_vm11, %v19159_v46  ;;  %vm12946_vm13 = vmand %vm1242_vm10, %vm1402_vm7  ;;  %vm18462_vm7 = vcmp.eq.s32.totalorder %v11337_v7, %v12190_v22  ;;  %vm18461_vm10 = vcmp.eq.s32.totalorder %v11344_v9, %v12190_v22  ;;  %vm19497_vm11 = vnez %v19438_v53  ;;  %vm1250_vm9 = vcmp.ge.s32.totalorder %v12069_v21, %v11431_v35  ;;  %v13550_v53 = vpop.permute.xlu0 %2885 }
 0x1fd   : > { %v19487_v63 = vsel %vm12946_vm13, 4294967295, %v19486_v63  ;;  %vm19490_vm2 = vmpackc.low %vm19488_vm4, %vm19489_vm12  ;;  %vm1241_vm12 = vcmp.ge.s32.totalorder %v12140_v40, %v11377_v16  ;;  %vm19503_vm13 = vnez %v19459_v0 }
 0x1fe   : > { %8292 = vmatprep.subr.msk.bf16.mxu1 %vm19490_vm2, %v19159_v46  ;;  %vm19493_vm2 = vcmp.eq.s32.totalorder %v11290_v58, %v12285_v31  ;;  %8390 = vmatpush1.bf16.msk.msra.mxu0 %vm19497_vm11, %v19159_v46  ;;  %vm13004_vm4 = vmpackc.low %vm18461_vm10, %vm18462_vm7  ;;  %vm19501_vm11 = vnez %v19416_v32  ;;  %vm1258_vm7 = vcmp.ge.s32.totalorder %v12069_v21, %v11434_v36 }
 0x1ff   : > { %vm12973_vm1 = vmpackc.low %vm19493_vm2, %vm19492_vm3  ;;  %vm1401_vm3 = vcmp.lt.s32.totalorder %v12140_v40, %v19471_v4  ;;  %v19499_v13 = vsel %vm13004_vm4, 4294967295, %v19498_v13  ;;  %8392 = vmatprep.subr.msk.bf16.mxu0 %vm19503_vm13, %v19159_v46  ;;  %vm1418_vm4 = vcmp.lt.s32.totalorder %v12069_v21, %v11438_v44  ;;  %5586 = vperm.xlu1 %10388, %v5583_v25  }
 0x200   : > { %v19495_v1 = vsel %vm12973_vm1, 4294967295, %v19494_v1  ;;  %vm19496_vm2 = vmpackc.low %vm12687_vm0, %vm12650_vm8  ;;  %vm1410_vm8 = vcmp.lt.s32.totalorder %v12069_v21, %v11436_v43  ;;  %vm19500_vm0 = vnez %v19422_v6  ;;  %v19514_v21 = vmov 0 }
 0x201   : > { %8294 = vmatpush1.bf16.msk.msra.mxu1 %vm19496_vm2, %v19159_v46  ;;  %vm19502_vm2 = vmpackc.low %vm19500_vm0, %vm19501_vm11  ;;  %vm19513_vm11 = vnez %v19466_v10  ;;  %vm19519_vm0 = vnez %v19475_v61 }
 0x202   : > { %8296 = vmatprep.subr.msk.bf16.mxu1 %vm19502_vm2, %v19159_v46  ;;  %vm13021_vm10 = vmand %vm1233_vm5, %vm1393_vm6  ;;  %vm19510_vm6 = vnez %v19444_v17  ;;  %8394 = vmatpush1.bf16.msk.msra.mxu0 %vm19513_vm11, %v19159_v46  ;;  %vm1417_vm11 = vcmp.lt.s32.totalorder %v12140_v40, %v11438_v44 }
 0x203   : > { %vm13029_vm1 = vmand %vm1241_vm12, %vm1401_vm3  ;;  %vm19511_vm12 = vnez %v19430_v12  ;;  %8396 = vmatprep.subr.msk.bf16.mxu0 %vm19519_vm0, %v19159_v46  ;;  %vm1257_vm0 = vcmp.ge.s32.totalorder %v12140_v40, %v11434_v36  ;;  %5988 = vperm.xlu1 %10388, %v5985_v50  }
 0x204   : > { %vm13037_vm5 = vmand %vm1250_vm9, %vm1410_vm8  ;;  %vm19516_vm9 = vnez %v19453_v18  ;;  %vm19517_vm8 = vnez %v19448_v55 }
 0x205   : > { %v19509_v20 = vsel %vm13037_vm5, 4294967295, %v19508_v20  ;;  %vm19512_vm3 = vmpackc.low %vm19510_vm6, %vm19511_vm12  ;;  %vm19520_vm12 = vcmp.eq.s32.totalorder %v11337_v7, %v12285_v31  ;;  %vm19529_vm6 = vnez %v19495_v1 }
 0x206   : > { %8298 = vmatpush1.bf16.msk.msra.mxu1 %vm19512_vm3, %v19159_v46  ;;  %vm13051_vm2 = vmand %vm1258_vm7, %vm1418_vm4  ;;  %vm1249_vm7 = vcmp.ge.s32.totalorder %v12140_v40, %v11431_v35  ;;  %vm1409_vm4 = vcmp.lt.s32.totalorder %v12140_v40, %v11436_v43  ;;  %v13087_v35 = vsub.s32 2, %v11003_v2  ;;  %v19525_v43 = vld [vmem:[#allocation48_spill] sm:$0xff]  ;;  %8398 = vmatpush1.bf16.msk.msra.mxu0 %vm19529_vm6, %v19159_v46 }
 0x207   : > { %v19515_v21 = vsel %vm13051_vm2, 4294967295, %v19514_v21  ;;  %vm19518_vm13 = vmpackc.low %vm19516_vm9, %vm19517_vm8  ;;  %vm19533_vm8 = vnez %v19481_v27  ;;  %vm19535_vm2 = vnez %v19499_v13  ;;  %vm19539_vm6 = vcmp.eq.s32.totalorder %v19525_v43, %v12190_v22  ;;  %6183 = vperm.xlu1 %10388, %v6180_v29   ;;  %v2920_v13 = vld [vmem:[#allocation7] sm:$0x7] }
 0x208   : > { %8300 = vmatprep.subr.msk.bf16.mxu1 %vm19518_vm13, %v19159_v46  ;;  %vm19521_vm13 = vcmp.eq.s32.totalorder %v11344_v9, %v12285_v31  ;;  %19524 = vst [vmem:[#allocation28_spill] sm:$0xff] %v13087_v35  ;;  %vm13109_vm9 = vmand %vm1249_vm7, %vm1409_vm4  ;;  %8400 = vmatprep.subr.msk.bf16.mxu0 %vm19535_vm2, %v19159_v46  ;;  %vm18466_vm4 = vcmp.eq.s32.totalorder %v11413_v23, %v12285_v31 }
 0x209   : > { %vm13078_vm3 = vmpackc.low %vm19521_vm13, %vm19520_vm12  ;;  %vm19532_vm12 = vnez %v19487_v63  ;;  %v13138_v40 = vrot.slane %v19526_v28, %v13087_v35  ;;  %vm18531_vm2 = vcmp.eq.s32.totalorder %v11003_v2, %v13098_v30  ;;  %v2921_v16 = vpack.c.bf16 %v2920_v13, %v2920_v13 }
 0x20a   : > { %vm19528_vm13 = vmpackc.low %vm12925_vm14, %vm12897_vm15  ;;  %vm19538_vm15 = vcmp.eq.s32.totalorder %v11413_v23, %v12190_v22  ;;  %8402 = vmatpush1.bf16.msk.msra.mxu0 %vm13078_vm3, %v19159_v46  ;;  %v1571_v35 = vadd.s32 320, %v11003_v2 }
 0x20b   : > { %8302 = vmatpush1.bf16.msk.msra.mxu1 %vm19528_vm13, %v19159_v46  ;;  %vm19534_vm5 = vmpackc.low %vm19532_vm12, %vm19533_vm8  ;;  %19540 = vst [vmem:[#allocation30_spill] sm:$0xff] %v13138_v40  ;;  %vm19542_vm12 = vnez %v19515_v21  ;;  %vm19543_vm13 = vnez %v19509_v20  ;;  %vm18529_vm3 = vcmp.eq.s32.totalorder %v11003_v2, %v13138_v40 }
 0x20c   : > { %8304 = vmatprep.subr.msk.bf16.mxu1 %vm19534_vm5, %v19159_v46  ;;  %vm13122_vm14 = vmand %vm1257_vm0, %vm1417_vm11  ;;  %vm18465_vm5 = vcmp.eq.s32.totalorder %v19525_v43, %v12285_v31  ;;  %vm18530_vm0 = vcmp.eq.s32.totalorder %v19285_v5, %v13098_v30 }
 0x20d   : > { %vm8403_vm7 = vmpackc.low %vm19539_vm6, %vm19538_vm15  ;;  %vm18526_vm6 = vcmp.eq.s32.totalorder %v19323_v39, %v13098_v30 }
 0x20e   : > { %vm19541_vm11 = vmpackc.low %vm13029_vm1, %vm13021_vm10  ;;  %8404 = vmatprep.subr.msk.bf16.mxu0 %vm8403_vm7, %v19159_v46 }
 0x20f   : > { %8306 = vmatpush1.bf16.msk.msra.mxu1 %vm19541_vm11, %v19159_v46  ;;  %vm8309_vm8 = vmpackc.low %vm13122_vm14, %vm13109_vm9  ;;  %vm18528_vm9 = vcmp.eq.s32.totalorder %v19285_v5, %v13138_v40  ;;  %vm18527_vm14 = vcmp.eq.s32.totalorder %v19322_v11, %v13098_v30 }
 0x210   : > { %vm19544_vm15 = vmpackc.low %vm19542_vm12, %vm19543_vm13  ;;  %vm18469_vm12 = vcmp.eq.s32.totalorder %v19323_v39, %v13138_v40  ;;  %vm18468_vm13 = vcmp.eq.s32.totalorder %v11121_v33, %v13098_v30 }
 0x211   : > { %8308 = vmatprep.subr.msk.bf16.mxu1 %vm19544_vm15, %v19159_v46  ;;  %vm8405_vm10 = vmpackc.low %vm18465_vm5, %vm18466_vm4  ;;  %vm18467_vm15 = vcmp.eq.s32.totalorder %v11128_v34, %v13098_v30  ;;  %vm18472_vm5 = vcmp.eq.s32.totalorder %v11175_v41, %v13098_v30  ;;  %vm18471_vm4 = vcmp.eq.s32.totalorder %v11182_v42, %v13098_v30 }
 0x212   : > { %vm8343_vm1 = vmpackc.low %vm18530_vm0, %vm18531_vm2  ;;  %8406 = vmatpush1.bf16.msk.msra.mxu0 %vm8405_vm10, %v19159_v46 }
 0x213   : > { %8310 = vmatpush1.bf16.msk.msra.mxu1 %vm8309_vm8, %v19159_v46  ;;  %vm8345_vm7 = vmpackc.low %vm18528_vm9, %vm18529_vm3  ;;  %vm18470_vm8 = vcmp.eq.s32.totalorder %v19322_v11, %v13138_v40 }
 0x214   : > { %8344 = vmatprep.subr.msk.bf16.mxu1 %vm8343_vm1, %v19159_v46  ;;  %vm8347_vm11 = vmpackc.low %vm18526_vm6, %vm18527_vm14 }
 0x215   : > { %2823 = vmatmul.mubr.bf16.vlgmr.msra.gmra.mrb[4].mxu0 %v19418_v37  ;;  %vm8349_vm10 = vmpackc.low %vm18469_vm12, %vm18470_vm8  ;;  %vm18478_vm12 = vcmp.eq.s32.totalorder %v11175_v41, %v13138_v40  ;;  %vm18475_vm8 = vcmp.eq.s32.totalorder %v19440_v59, %v13098_v30 }
 0x216   : > { %2694 = vmatmul.mubr.bf16.vlgmr.msra.gmra.mrb[12].mxu1 %v19417_v8  ;;  %2972 = vmatprep.mubr.bf16.mxu0 %v19449_v56  ;;  %vm8351_vm1 = vmpackc.low %vm18467_vm15, %vm18468_vm13 }
 0x217   : > { %8346 = vmatpush1.bf16.msk.msra.mxu1 %vm8345_vm7, %v19159_v46  ;;  %2779 = vmatprep.mubr.bf16.mxu1 %v19449_v56  ;;  %vm18474_vm7 = vcmp.eq.s32.totalorder %v11121_v33, %v13138_v40  ;;  %vm8355_vm13 = vmpackc.low %vm18471_vm4, %vm18472_vm5 }
 0x218   : > { %8348 = vmatprep.subr.msk.bf16.mxu1 %vm8347_vm11, %v19159_v46  ;;  %vm18473_vm11 = vcmp.eq.s32.totalorder %v11128_v34, %v13138_v40 }
 0x219   : > { %vm8353_vm15 = vmpackc.low %vm18473_vm11, %vm18474_vm7  ;;  %vm18490_vm11 = vcmp.eq.s32.totalorder %v19439_v54, %v13138_v40  ;;  %vm18479_vm7 = vcmp.eq.s32.totalorder %v11290_v58, %v13098_v30 }
 0x21b   : > { %8350 = vmatpush1.bf16.msk.msra.mxu1 %vm8349_vm10, %v19159_v46  ;;  %vm18477_vm10 = vcmp.eq.s32.totalorder %v11182_v42, %v13138_v40 }
 0x21c   : > { %8352 = vmatprep.subr.msk.bf16.mxu1 %vm8351_vm1, %v19159_v46  ;;  %vm18476_vm1 = vcmp.eq.s32.totalorder %v19439_v54, %v13098_v30  ;;  %vm8357_vm4 = vmpackc.low %vm18477_vm10, %vm18478_vm12  ;;  %vm18485_vm10 = vcmp.eq.s32.totalorder %v11283_v57, %v13138_v40  ;;  %vm18483_vm12 = vcmp.eq.s32.totalorder %v11344_v9, %v13098_v30 }
 0x21d   : > { %vm8359_vm5 = vmpackc.low %vm18475_vm8, %vm18476_vm1 }
 0x21f   : > { %8354 = vmatpush1.bf16.msk.msra.mxu1 %vm8353_vm15, %v19159_v46  ;;  %vm18480_vm15 = vcmp.eq.s32.totalorder %v11283_v57, %v13098_v30 }
 0x220   : > { %8356 = vmatprep.subr.msk.bf16.mxu1 %vm8355_vm13, %v19159_v46  ;;  %vm18481_vm13 = vcmp.eq.s32.totalorder %v19440_v59, %v13138_v40  ;;  %vm8363_vm1 = vmpackc.low %vm18479_vm7, %vm18480_vm15 }
 0x221   : > { %vm8361_vm8 = vmpackc.low %vm18481_vm13, %vm18490_vm11  ;;  %vm18489_vm13 = vcmp.eq.s32.totalorder %v11337_v7, %v13138_v40  ;;  %vm18495_vm11 = vcmp.eq.s32.totalorder %v19323_v39, %v13324_v14 }
 0x223   : > { %8358 = vmatpush1.bf16.msk.msra.mxu1 %vm8357_vm4, %v19159_v46  ;;  %vm18482_vm4 = vcmp.eq.s32.totalorder %v11290_v58, %v13138_v40 }
 0x224   : > { %8360 = vmatprep.subr.msk.bf16.mxu1 %vm8359_vm5, %v19159_v46  ;;  %vm18484_vm5 = vcmp.eq.s32.totalorder %v11337_v7, %v13098_v30  ;;  %vm8365_vm7 = vmpackc.low %vm18482_vm4, %vm18485_vm10  ;;  %vm18487_vm4 = vcmp.eq.s32.totalorder %v19525_v43, %v13098_v30  ;;  %vm18498_vm10 = vcmp.eq.s32.totalorder %v11413_v23, %v13138_v40 }
 0x225   : > { %vm8367_vm15 = vmpackc.low %vm18483_vm12, %vm18484_vm5 }
 0x227   : > { %8362 = vmatpush1.bf16.msk.msra.mxu1 %vm8361_vm8, %v19159_v46  ;;  %vm18486_vm8 = vcmp.eq.s32.totalorder %v11344_v9, %v13138_v40 }
 0x228   : > { %8364 = vmatprep.subr.msk.bf16.mxu1 %vm8363_vm1, %v19159_v46  ;;  %vm18488_vm1 = vcmp.eq.s32.totalorder %v11413_v23, %v13098_v30  ;;  %vm8369_vm12 = vmpackc.low %vm18486_vm8, %vm18489_vm13  ;;  %vm18491_vm8 = vcmp.eq.s32.totalorder %v19285_v5, %v13324_v14  ;;  %vm18497_vm13 = vcmp.eq.s32.totalorder %v11003_v2, %v13345_v49 }
 0x229   : > { %vm8371_vm5 = vmpackc.low %vm18487_vm4, %vm18488_vm1 }
 0x22b   : > { %8366 = vmatpush1.bf16.msk.msra.mxu1 %vm8365_vm7, %v19159_v46  ;;  %vm18493_vm7 = vcmp.eq.s32.totalorder %v19525_v43, %v13138_v40 }
 0x22c   : > { %8368 = vmatprep.subr.msk.bf16.mxu1 %vm8367_vm15, %v19159_v46  ;;  %vm18492_vm15 = vcmp.eq.s32.totalorder %v11003_v2, %v13324_v14  ;;  %vm8373_vm4 = vmpackc.low %vm18493_vm7, %vm18498_vm10  ;;  %vm18502_vm7 = vcmp.eq.s32.totalorder %v19322_v11, %v13345_v49  ;;  %vm18503_vm10 = vcmp.eq.s32.totalorder %v11182_v42, %v13324_v14 }
 0x22d   : > { %vm8407_vm1 = vmpackc.low %vm18491_vm8, %vm18492_vm15 }
 0x22f   : > { %8370 = vmatpush1.bf16.msk.msra.mxu1 %vm8369_vm12, %v19159_v46  ;;  %vm18494_vm12 = vcmp.eq.s32.totalorder %v19285_v5, %v13345_v49 }
 0x230   : > { %8372 = vmatprep.subr.msk.bf16.mxu1 %vm8371_vm5, %v19159_v46  ;;  %vm18496_vm5 = vcmp.eq.s32.totalorder %v19322_v11, %v13324_v14  ;;  %vm8409_vm8 = vmpackc.low %vm18494_vm12, %vm18497_vm13  ;;  %vm18499_vm12 = vcmp.eq.s32.totalorder %v11128_v34, %v13324_v14  ;;  %vm18504_vm13 = vcmp.eq.s32.totalorder %v11175_v41, %v13324_v14 }
 0x231   : > { %vm8411_vm15 = vmpackc.low %vm18495_vm11, %vm18496_vm5 }
 0x233   : > { %8374 = vmatpush1.bf16.msk.msra.mxu1 %vm8373_vm4, %v19159_v46  ;;  %vm18501_vm4 = vcmp.eq.s32.totalorder %v19323_v39, %v13345_v49 }
 0x234   : > { %8408 = vmatprep.subr.msk.bf16.mxu1 %vm8407_vm1, %v19159_v46  ;;  %vm18500_vm1 = vcmp.eq.s32.totalorder %v11121_v33, %v13324_v14  ;;  %vm8413_vm11 = vmpackc.low %vm18501_vm4, %vm18502_vm7  ;;  %vm18510_vm4 = vcmp.eq.s32.totalorder %v11175_v41, %v13345_v49  ;;  %vm18507_vm7 = vcmp.eq.s32.totalorder %v19440_v59, %v13324_v14 }
 0x235   : > { %vm8415_vm5 = vmpackc.low %vm18499_vm12, %vm18500_vm1 }
 0x236   : > { %2780 = vmatmul.mubr.bf16.vlgmr.msra.gmra.mrb[8].mxu1 %v19418_v37  ;;  %vm8419_vm1 = vmpackc.low %vm18503_vm10, %vm18504_vm13 }
 0x237   : > { %8410 = vmatpush1.bf16.msk.msra.mxu1 %vm8409_vm8, %v19159_v46  ;;  %2865 = vmatprep.mubr.bf16.mxu1 %v19449_v56  ;;  %vm18506_vm8 = vcmp.eq.s32.totalorder %v11121_v33, %v13345_v49 }
 0x238   : > { %8412 = vmatprep.subr.msk.bf16.mxu1 %vm8411_vm15, %v19159_v46  ;;  %vm18505_vm15 = vcmp.eq.s32.totalorder %v11128_v34, %v13345_v49 }
 0x239   : > { %vm8417_vm12 = vmpackc.low %vm18505_vm15, %vm18506_vm8  ;;  %vm18514_vm15 = vcmp.eq.s32.totalorder %v19439_v54, %v13345_v49  ;;  %vm18511_vm8 = vcmp.eq.s32.totalorder %v11290_v58, %v13324_v14 }
 0x23b   : > { %8414 = vmatpush1.bf16.msk.msra.mxu1 %vm8413_vm11, %v19159_v46  ;;  %vm18509_vm11 = vcmp.eq.s32.totalorder %v11182_v42, %v13345_v49 }
 0x23c   : > { %8416 = vmatprep.subr.msk.bf16.mxu1 %vm8415_vm5, %v19159_v46  ;;  %vm18508_vm5 = vcmp.eq.s32.totalorder %v19439_v54, %v13324_v14  ;;  %vm8421_vm10 = vmpackc.low %vm18509_vm11, %vm18510_vm4  ;;  %vm18525_vm11 = vcmp.eq.s32.totalorder %v11283_v57, %v13345_v49  ;;  %vm18515_vm4 = vcmp.eq.s32.totalorder %v11344_v9, %v13324_v14 }
 0x23d   : > { %vm8423_vm13 = vmpackc.low %vm18507_vm7, %vm18508_vm5 }
 0x23f   : > { %8418 = vmatpush1.bf16.msk.msra.mxu1 %vm8417_vm12, %v19159_v46  ;;  %vm18513_vm12 = vcmp.eq.s32.totalorder %v19440_v59, %v13345_v49 }
 0x240   : > { %8420 = vmatprep.subr.msk.bf16.mxu1 %vm8419_vm1, %v19159_v46  ;;  %vm18512_vm1 = vcmp.eq.s32.totalorder %v11283_v57, %v13324_v14  ;;  %vm8425_vm7 = vmpackc.low %vm18513_vm12, %vm18514_vm15  ;;  %vm18524_vm12 = vcmp.eq.s32.totalorder %v11337_v7, %v13345_v49  ;;  %vm18521_vm15 = vcmp.eq.s32.totalorder %v19525_v43, %v13324_v14 }
 0x241   : > { %vm8427_vm5 = vmpackc.low %vm18511_vm8, %vm18512_vm1 }
 0x243   : > { %8422 = vmatpush1.bf16.msk.msra.mxu1 %vm8421_vm10, %v19159_v46  ;;  %vm18517_vm10 = vcmp.eq.s32.totalorder %v11290_v58, %v13345_v49 }
 0x244   : > { %8424 = vmatprep.subr.msk.bf16.mxu1 %vm8423_vm13, %v19159_v46  ;;  %vm18516_vm13 = vcmp.eq.s32.totalorder %v11337_v7, %v13324_v14  ;;  %vm8429_vm8 = vmpackc.low %vm18517_vm10, %vm18525_vm11  ;;  %vm18519_vm10 = vcmp.eq.s32.totalorder %v11413_v23, %v13345_v49 }
 0x245   : > { %vm8431_vm1 = vmpackc.low %vm18515_vm4, %vm18516_vm13 }
 0x247   : > { %8426 = vmatpush1.bf16.msk.msra.mxu1 %vm8425_vm7, %v19159_v46  ;;  %vm18523_vm7 = vcmp.eq.s32.totalorder %v11344_v9, %v13345_v49 }
 0x248   : > { %8428 = vmatprep.subr.msk.bf16.mxu1 %vm8427_vm5, %v19159_v46  ;;  %vm18522_vm5 = vcmp.eq.s32.totalorder %v11413_v23, %v13324_v14  ;;  %vm8433_vm4 = vmpackc.low %vm18523_vm7, %vm18524_vm12 }
 0x249   : > { %vm8435_vm13 = vmpackc.low %vm18521_vm15, %vm18522_vm5 }
 0x24b   : > { %8430 = vmatpush1.bf16.msk.msra.mxu1 %vm8429_vm8, %v19159_v46  ;;  %vm18518_vm8 = vcmp.eq.s32.totalorder %v19525_v43, %v13345_v49 }
 0x24c   : > { %8432 = vmatprep.subr.msk.bf16.mxu1 %vm8431_vm1, %v19159_v46  ;;  %vm8437_vm1 = vmpackc.low %vm18518_vm8, %vm18519_vm10 }
 0x24f   : > { %8434 = vmatpush1.bf16.msk.msra.mxu1 %vm8433_vm4, %v19159_v46  ;;  %vm18520_vm4 = vcmask 130048  }
 0x250   : > { %8436 = vmatprep.subr.msk.bf16.mxu1 %vm8435_vm13, %v19159_v46 }
 0x253   : > { %8438 = vmatpush1.bf16.msk.msra.mxu1 %vm8437_vm1, %v19159_v46 }
 0x256   : > { %2866 = vmatmul.mubr.bf16.vlgmr.msra.gmra.mrb[12].mxu1 %v19418_v37 }
 0x257   : > { %3013 = vmatprep.mubr.bf16.mxu1 %v19449_v56 }
 0x280   : > { %v2566_v3 = vpop.f32.mrb[4].mxu1 }
 0x281   : > { %v2568_v19 = vpop.f32.mrb[5].mxu1 }
 0x282   : > { %v2570_v24 = vpop.f32.mrb[6].mxu1 }
 0x283   : > { %v2572_v48 = vpop.f32.mrb[7].mxu1 }
 0x2ba   : > { %v2738_v32 = vpop.f32.mrb[8].mxu0 }
 0x2bb   : > { %v2739_v8 = vadd.f32 %v2738_v32, %v2566_v3  ;;  %v2740_v37 = vpop.f32.mrb[9].mxu0 }
 0x2bc   : > { %v2741_v6 = vadd.f32 %v2740_v37, %v2568_v19  ;;  %v2742_v12 = vpop.f32.mrb[10].mxu0 }
 0x2bd   : > { %v2888_v17 = vadd.f32 %v13548_v47, %v2739_v8  ;;  %v2743_v55 = vadd.f32 %v2742_v12, %v2570_v24  ;;  %v2744_v18 = vpop.f32.mrb[11].mxu0 }
 0x2be   : > { %v2889_v0 = vadd.f32 %v13548_v47, %v2741_v6  ;;  %v2745_v10 = vadd.f32 %v2744_v18, %v2572_v48 }
 0x2bf   : > { %v2896_v60 = vadd.f32 %v13550_v53, %v2743_v55  ;;  %v2904_v61 = vmax.f32 %v2888_v17, 0.0 }
 0x2c0   : > { %v2897_v4 = vadd.f32 %v13550_v53, %v2745_v10  ;;  %v2905_v27 = vmax.f32 %v2889_v0, 0.0 }
 0x2c1   : > { %v2912_v62 = vmax.f32 %v2896_v60, 0.0 }
 0x2c2   : > { %v2913_v63 = vmax.f32 %v2897_v4, 0.0 }
 0x2c3   : > { %v2922_v1 = vpack.c.bf16 %v2912_v62, %v2904_v61 }
 0x2c4   : > { %v2923_v15 = vpack.c.bf16 %v2913_v63, %v2905_v27 }
 0x2c6   : > { %2940 = vmatprep.subr.bf16.mxu0 %v2923_v15 }
 0x2c7   : > { %2941 = vmatpush1.bf16.msra.mxu0 %v2922_v1 }
 0x2ca   : > { %8439 = vmatmul.mubr.msk.bf16.vlgmr.msra.gmra.mrb[12].mxu0 %vm18520_vm4, %v2921_v16 }
 0x2cb   : > { %3054 = vmatprep.mubr.bf16.mxu0 %v19449_v56 }
 0x2e8   : > { %v2824_v20 = vpop.f32.mrb[4].mxu0 }
 0x2e9   : > { %v2826_v26 = vpop.f32.mrb[5].mxu0  ;;  %v2892_v21 = vadd.f32 %v13548_v47, %v2824_v20 }
 0x2ea   : > { %v2828_v52 = vpop.f32.mrb[6].mxu0  ;;  %v2893_v28 = vadd.f32 %v13548_v47, %v2826_v26 }
 0x2eb   : > { %v2830_v36 = vpop.f32.mrb[7].mxu0  ;;  %v2900_v44 = vadd.f32 %v13550_v53, %v2828_v52  ;;  %v2908_v38 = vmax.f32 %v2892_v21, 0.0 }
 0x2ec   : > { %v2901_v45 = vadd.f32 %v13550_v53, %v2830_v36  ;;  %v2909_v19 = vmax.f32 %v2893_v28, 0.0 }
 0x2ed   : > { %v2916_v3 = vmax.f32 %v2900_v44, 0.0  ;;  %v19547_v44 = vld [vmem:[#allocation21_spill] sm:$0xff] }
 0x2ee   : > { %v2917_v24 = vmax.f32 %v2901_v45, 0.0  ;;  %v1788_v45 = vadd.s32 1, %v19547_v44 }
 0x2ef   : > { %v2926_v48 = vpack.c.bf16 %v2916_v3, %v2908_v38  ;;  %v1548_v38 = vadd.s32 136, %v11003_v2  ;;  %v13578_v3 = vmul.u32 8, %v19547_v44 }
 0x2f0   : > { %v2927_v51 = vpack.c.bf16 %v2917_v24, %v2909_v19  ;;  %v1550_v19 = vadd.s32 152, %v11003_v2  ;;  %v19548_v24 = vmov 0 }
 0x2f1   : > { %vm1677_vm1 = vcmp.ge.s32.totalorder %v1548_v38, %v13578_v3  ;;  %vm1660_vm15 = vcmp.ge.s32.totalorder %v11003_v2, %v13578_v3  ;;  %vm1661_vm12 = vcmp.ge.s32.totalorder %v19285_v5, %v13578_v3 }
 0x2f2   : > { %3022 = vmatprep.subr.bf16.mxu0 %v2927_v51  ;;  %vm1679_vm14 = vcmp.ge.s32.totalorder %v1550_v19, %v13578_v3  ;;  %v1551_v51 = vadd.s32 160, %v11003_v2 }
 0x2f3   : > { %3023 = vmatpush1.bf16.msra.mxu0 %v2926_v48  ;;  %v19551_v48 = vmov 0 }
 0x2f6   : > { %8441 = vmatmul.mubr.msk.bf16.vlgmr.msra.gmra.mrb[16].mxu0 %vm18520_vm4, %v2921_v16 }
 0x309   : > { %v2781_v25 = vpop.f32.mrb[8].mxu1 }
 0x30a   : > { %v2890_v50 = vadd.f32 %v13548_v47, %v2781_v25  ;;  %v2783_v29 = vpop.f32.mrb[9].mxu1  ;;  %v1552_v25 = vadd.s32 168, %v11003_v2 }
 0x30b   : > { %v2891_v32 = vadd.f32 %v13548_v47, %v2783_v29  ;;  %v2785_v8 = vpop.f32.mrb[10].mxu1  ;;  %v19557_v29 = vmov 0 }
 0x30c   : > { %v2898_v37 = vadd.f32 %v13550_v53, %v2785_v8  ;;  %v2787_v6 = vpop.f32.mrb[11].mxu1  ;;  %v2906_v17 = vmax.f32 %v2890_v50, 0.0  ;;  %v19554_v50 = vmov 0  ;;  %v1554_v8 = vadd.s32 184, %v11003_v2 }
 0x30d   : > { %v2899_v12 = vadd.f32 %v13550_v53, %v2787_v6  ;;  %v2907_v18 = vmax.f32 %v2891_v32, 0.0  ;;  %v1553_v32 = vadd.s32 176, %v11003_v2  ;;  %v19563_v6 = vmov 0 }
 0x30e   : > { %v2914_v55 = vmax.f32 %v2898_v37, 0.0  ;;  %v19560_v37 = vmov 0 }
 0x30f   : > { %v2915_v0 = vmax.f32 %v2899_v12, 0.0  ;;  %v1555_v12 = vadd.s32 192, %v11003_v2 }
 0x310   : > { %v2924_v10 = vpack.c.bf16 %v2914_v55, %v2906_v17  ;;  %v1556_v17 = vadd.s32 200, %v11003_v2  ;;  %v19566_v55 = vmov 0 }
 0x311   : > { %v2925_v60 = vpack.c.bf16 %v2915_v0, %v2907_v18  ;;  %v19569_v18 = vmov 0  ;;  %v1557_v0 = vadd.s32 208, %v11003_v2 }
 0x313   : > { %2981 = vmatprep.subr.bf16.mxu1 %v2925_v60  ;;  %v19572_v60 = vmov 0 }
 0x314   : > { %2982 = vmatpush1.bf16.msra.mxu1 %v2924_v10  ;;  %v1558_v10 = vadd.s32 216, %v11003_v2 }
 0x317   : > { %8440 = vmatmul.mubr.msk.bf16.vlgmr.msra.gmra.mrb[16].mxu1 %vm18520_vm4, %v2921_v16 }
 0x318   : > { %3095 = vmatprep.mubr.bf16.mxu1 %v19449_v56 }
 0x329   : > { %v2867_v4 = vpop.f32.mrb[12].mxu1 }
 0x32a   : > { %v2894_v61 = vadd.f32 %v13548_v47, %v2867_v4  ;;  %v2869_v62 = vpop.f32.mrb[13].mxu1  ;;  %v19575_v4 = vmov 0 }
 0x32b   : > { %v2895_v27 = vadd.f32 %v13548_v47, %v2869_v62  ;;  %v2871_v63 = vpop.f32.mrb[14].mxu1  ;;  %v1547_v47 = vadd.s32 128, %v11003_v2  ;;  %v1560_v62 = vadd.s32 232, %v11003_v2 }
 0x32c   : > { %v2902_v1 = vadd.f32 %v13550_v53, %v2871_v63  ;;  %v2873_v13 = vpop.f32.mrb[15].mxu1  ;;  %v2910_v20 = vmax.f32 %v2894_v61, 0.0  ;;  %v1559_v61 = vadd.s32 224, %v11003_v2  ;;  %v19581_v63 = vmov 0 }
 0x32d   : > { %v2903_v15 = vadd.f32 %v13550_v53, %v2873_v13  ;;  %v2911_v21 = vmax.f32 %v2895_v27, 0.0  ;;  %v13580_v53 = vmul.u32 8, %v1788_v45  ;;  %vm1676_vm13 = vcmp.ge.s32.totalorder %v1547_v47, %v13578_v3 }
 0x32e   : > { %v2918_v26 = vmax.f32 %v2902_v1, 0.0  ;;  %v19578_v27 = vmov 0  ;;  %v1561_v1 = vadd.s32 240, %v11003_v2  ;;  %v1562_v13 = vadd.s32 248, %v11003_v2 }
 0x32f   : > { %v2919_v52 = vmax.f32 %v2903_v15, 0.0  ;;  %vm1806_vm8 = vcmp.lt.s32.totalorder %v1547_v47, %v13580_v53  ;;  %vm1807_vm10 = vcmp.lt.s32.totalorder %v1548_v38, %v13580_v53  ;;  %vm1790_vm5 = vcmp.lt.s32.totalorder %v11003_v2, %v13580_v53 }
 0x330   : > { %v2928_v28 = vpack.c.bf16 %v2918_v26, %v2910_v20  ;;  %vm1935_vm7 = vmand %vm1677_vm1, %vm1807_vm10  ;;  %vm1791_vm11 = vcmp.lt.s32.totalorder %v19285_v5, %v13580_v53  ;;  %vm1809_vm9 = vcmp.lt.s32.totalorder %v1550_v19, %v13580_v53  ;;  %vm1811_vm0 = vcmp.lt.s32.totalorder %v1552_v25, %v13580_v53 }
 0x331   : > { %v2929_v36 = vpack.c.bf16 %v2919_v52, %v2911_v21  ;;  %vm1919_vm1 = vmand %vm1661_vm12, %vm1791_vm11  ;;  %vm1792_vm11 = vcmp.lt.s32.totalorder %v19322_v11, %v13580_v53  ;;  %v19584_v15 = vmov 0  ;;  %v19587_v20 = vmov 0 }
 0x332   : > { %vm1937_vm12 = vmand %vm1679_vm14, %vm1809_vm9  ;;  %vm1681_vm14 = vcmp.ge.s32.totalorder %v1552_v25, %v13578_v3  ;;  %v19590_v26 = vmov 0  ;;  %v19593_v21 = vmov 0  ;;  %v1579_v52 = vadd.s32 384, %v11003_v2 }
 0x333   : > { %3063 = vmatprep.subr.bf16.mxu1 %v2929_v36  ;;  %v1563_v36 = vadd.s32 256, %v11003_v2  ;;  %v1564_v45 = vadd.s32 264, %v11003_v2  ;;  %v1611_v47 = vadd.s32 640, %v11003_v2  ;;  %v1612_v38 = vadd.s32 648, %v11003_v2 }
 0x334   : > { %3064 = vmatpush1.bf16.msra.mxu1 %v2928_v28  ;;  %v1580_v28 = vadd.s32 392, %v11003_v2  ;;  %v19599_v19 = vmov 0  ;;  %v1582_v25 = vadd.s32 408, %v11003_v2 }
 0x337   : > { %8442 = vmatmul.mubr.msk.bf16.vlgmr.msra.gmra.mrb[20].mxu1 %vm18520_vm4, %v2921_v16  ;;  %vm1934_vm4 = vmand %vm1676_vm13, %vm1806_vm8  ;;  %v1549_v16 = vadd.s32 144, %v11003_v2 }
 0x338   : > { %vm13596_vm6 = vmpackc.low %vm1935_vm7, %vm1934_vm4  ;;  %vm1662_vm7 = vcmp.ge.s32.totalorder %v19322_v11, %v13578_v3  ;;  %vm1793_vm4 = vcmp.lt.s32.totalorder %v19323_v39, %v13580_v53 }
 0x339   : > { %v19549_v24 = vsel %vm13596_vm6, 4294967295, %v19548_v24  ;;  %9026 = vmatprep.subr.msk.bf16.mxu0 %vm13596_vm6, %v19159_v46  ;;  %vm1918_vm8 = vmand %vm1660_vm15, %vm1790_vm5  ;;  %vm1678_vm10 = vcmp.ge.s32.totalorder %v1549_v16, %v13578_v3  ;;  %vm1808_vm13 = vcmp.lt.s32.totalorder %v1549_v16, %v13580_v53  ;;  %vm1663_vm5 = vcmp.ge.s32.totalorder %v19323_v39, %v13578_v3 }
 0x33a   : > { %19550 = vst [vmem:[#allocation33_spill] sm:$0xff] %v19549_v24  ;;  %vm13607_vm3 = vmpackc.low %vm1919_vm1, %vm1918_vm8  ;;  %vm1810_vm1 = vcmp.lt.s32.totalorder %v1551_v51, %v13580_v53  ;;  %v19596_v16 = vmov 0 }
 0x33b   : > { %v19552_v48 = vsel %vm13607_vm3, 4294967295, %v19551_v48  ;;  %9027 = vmatpush3.bf16.msk.msra.mxu0 %vm13607_vm3, %v19159_v46  ;;  %vm1936_vm15 = vmand %vm1678_vm10, %vm1808_vm13  ;;  %vm1680_vm13 = vcmp.ge.s32.totalorder %v1551_v51, %v13578_v3  ;;  %v1581_v51 = vadd.s32 400, %v11003_v2 }
 0x33c   : > { %19553 = vst [vmem:[#allocation34_spill] sm:$0xff] %v19552_v48  ;;  %vm13624_vm8 = vmpackc.low %vm1937_vm12, %vm1936_vm15  ;;  %v1592_v48 = vadd.s32 488, %v11003_v2 }
 0x33d   : > { %v19555_v50 = vsel %vm13624_vm8, 4294967295, %v19554_v50  ;;  %9028 = vmatprep.subr.msk.bf16.mxu0 %vm13624_vm8, %v19159_v46  ;;  %vm1920_vm10 = vmand %vm1662_vm7, %vm1792_vm11  ;;  %vm1664_vm7 = vcmp.ge.s32.totalorder %v11121_v33, %v13578_v3  ;;  %vm1794_vm11 = vcmp.lt.s32.totalorder %v11121_v33, %v13580_v53 }
 0x33e   : > { %19556 = vst [vmem:[#allocation35_spill] sm:$0xff] %v19555_v50  ;;  %vm1921_vm9 = vmand %vm1663_vm5, %vm1793_vm4  ;;  %vm1665_vm5 = vcmp.ge.s32.totalorder %v11128_v34, %v13578_v3  ;;  %vm1795_vm4 = vcmp.lt.s32.totalorder %v11128_v34, %v13580_v53  ;;  %v14163_v50 = vadd.s32 528, %v11003_v2 }
 0x33f   : > { %vm13635_vm2 = vmpackc.low %vm1921_vm9, %vm1920_vm10  ;;  %vm1812_vm9 = vcmp.lt.s32.totalorder %v1553_v32, %v13580_v53 }
 0x340   : > { %v19558_v29 = vsel %vm13635_vm2, 4294967295, %v19557_v29  ;;  %9029 = vmatpush3.bf16.msk.msra.mxu0 %vm13635_vm2, %v19159_v46  ;;  %vm1938_vm15 = vmand %vm1680_vm13, %vm1810_vm1  ;;  %vm1682_vm1 = vcmp.ge.s32.totalorder %v1553_v32, %v13578_v3  ;;  %vm1813_vm2 = vcmp.lt.s32.totalorder %v1554_v8, %v13580_v53  ;;  %v19602_v32 = vmov 0 }
 0x341   : > { %19559 = vst [vmem:[#allocation37_spill] sm:$0xff] %v19558_v29  ;;  %vm1939_vm12 = vmand %vm1681_vm14, %vm1811_vm0  ;;  %vm1683_vm14 = vcmp.ge.s32.totalorder %v1554_v8, %v13578_v3  ;;  %v1565_v8 = vadd.s32 272, %v11003_v2 }
 0x342   : > { %vm13652_vm10 = vmpackc.low %vm1939_vm12, %vm1938_vm15 }
 0x343   : > { %v19561_v37 = vsel %vm13652_vm10, 4294967295, %v19560_v37  ;;  %9030 = vmatprep.subr.msk.bf16.mxu0 %vm13652_vm10, %v19159_v46  ;;  %vm1922_vm13 = vmand %vm1664_vm7, %vm1794_vm11  ;;  %vm1666_vm7 = vcmp.ge.s32.totalorder %v11175_v41, %v13578_v3  ;;  %vm1796_vm11 = vcmp.lt.s32.totalorder %v11175_v41, %v13580_v53 }
 0x344   : > { %19562 = vst [vmem:[#allocation38_spill] sm:$0xff] %v19561_v37  ;;  %vm1923_vm0 = vmand %vm1665_vm5, %vm1795_vm4  ;;  %vm1667_vm5 = vcmp.ge.s32.totalorder %v11182_v42, %v13578_v3  ;;  %vm1797_vm4 = vcmp.lt.s32.totalorder %v11182_v42, %v13580_v53 }
 0x345   : > { %vm13663_vm8 = vmpackc.low %vm1923_vm0, %vm1922_vm13  ;;  %vm1814_vm0 = vcmp.lt.s32.totalorder %v1555_v12, %v13580_v53 }
 0x346   : > { %v19564_v6 = vsel %vm13663_vm8, 4294967295, %v19563_v6  ;;  %9031 = vmatpush3.bf16.msk.msra.mxu0 %vm13663_vm8, %v19159_v46  ;;  %vm1940_vm15 = vmand %vm1682_vm1, %vm1812_vm9  ;;  %vm1684_vm9 = vcmp.ge.s32.totalorder %v1555_v12, %v13578_v3  ;;  %vm1815_vm8 = vcmp.lt.s32.totalorder %v1556_v17, %v13580_v53  ;;  %v1566_v12 = vadd.s32 280, %v11003_v2 }
 0x347   : > { %19565 = vst [vmem:[#allocation39_spill] sm:$0xff] %v19564_v6  ;;  %vm1941_vm12 = vmand %vm1683_vm14, %vm1813_vm2  ;;  %vm1685_vm14 = vcmp.ge.s32.totalorder %v1556_v17, %v13578_v3  ;;  %v19605_v17 = vmov 0 }
 0x348   : > { %vm13680_vm13 = vmpackc.low %vm1941_vm12, %vm1940_vm15 }
 0x349   : > { %v19567_v55 = vsel %vm13680_vm13, 4294967295, %v19566_v55  ;;  %9032 = vmatprep.subr.msk.bf16.mxu0 %vm13680_vm13, %v19159_v46  ;;  %vm1924_vm1 = vmand %vm1666_vm7, %vm1796_vm11  ;;  %vm1668_vm7 = vcmp.ge.s32.totalorder %v19439_v54, %v13578_v3  ;;  %vm1798_vm11 = vcmp.lt.s32.totalorder %v19439_v54, %v13580_v53 }
 0x34a   : > { %19568 = vst [vmem:[#allocation54_spill] sm:$0xff] %v19567_v55  ;;  %vm1925_vm2 = vmand %vm1667_vm5, %vm1797_vm4  ;;  %vm1669_vm5 = vcmp.ge.s32.totalorder %v19440_v59, %v13578_v3  ;;  %vm1799_vm4 = vcmp.lt.s32.totalorder %v19440_v59, %v13580_v53 }
 0x34b   : > { %vm13691_vm10 = vmpackc.low %vm1925_vm2, %vm1924_vm1  ;;  %vm1816_vm2 = vcmp.lt.s32.totalorder %v1557_v0, %v13580_v53 }
 0x34c   : > { %v19570_v18 = vsel %vm13691_vm10, 4294967295, %v19569_v18  ;;  %9033 = vmatpush3.bf16.msk.msra.mxu0 %vm13691_vm10, %v19159_v46  ;;  %vm1942_vm15 = vmand %vm1684_vm9, %vm1814_vm0  ;;  %vm1686_vm0 = vcmp.ge.s32.totalorder %v1557_v0, %v13578_v3  ;;  %vm1817_vm10 = vcmp.lt.s32.totalorder %v1558_v10, %v13580_v53  ;;  %v19608_v0 = vmov 0 }
 0x34d   : > { %19571 = vst [vmem:[#allocation55_spill] sm:$0xff] %v19570_v18  ;;  %vm1943_vm12 = vmand %vm1685_vm14, %vm1815_vm8  ;;  %vm1687_vm14 = vcmp.ge.s32.totalorder %v1558_v10, %v13578_v3  ;;  %v1583_v10 = vadd.s32 416, %v11003_v2  ;;  %v19687_v18 = vmov 0 }
 0x34e   : > { %vm13708_vm1 = vmpackc.low %vm1943_vm12, %vm1942_vm15 }
 0x34f   : > { %v19573_v60 = vsel %vm13708_vm1, 4294967295, %v19572_v60  ;;  %9034 = vmatprep.subr.msk.bf16.mxu0 %vm13708_vm1, %v19159_v46  ;;  %vm1926_vm9 = vmand %vm1668_vm7, %vm1798_vm11  ;;  %vm1670_vm7 = vcmp.ge.s32.totalorder %v11283_v57, %v13578_v3  ;;  %vm1800_vm11 = vcmp.lt.s32.totalorder %v11283_v57, %v13580_v53 }
 0x350   : > { %19574 = vst [vmem:[#allocation46_spill] sm:$0xff] %v19573_v60  ;;  %vm1927_vm8 = vmand %vm1669_vm5, %vm1799_vm4  ;;  %vm1671_vm5 = vcmp.ge.s32.totalorder %v11290_v58, %v13578_v3  ;;  %vm1801_vm4 = vcmp.lt.s32.totalorder %v11290_v58, %v13580_v53 }
 0x351   : > { %vm13719_vm13 = vmpackc.low %vm1927_vm8, %vm1926_vm9  ;;  %vm1818_vm8 = vcmp.lt.s32.totalorder %v1559_v61, %v13580_v53 }
 0x352   : > { %v19576_v4 = vsel %vm13719_vm13, 4294967295, %v19575_v4  ;;  %9035 = vmatpush3.bf16.msk.msra.mxu0 %vm13719_vm13, %v19159_v46  ;;  %vm1944_vm15 = vmand %vm1686_vm0, %vm1816_vm2  ;;  %vm1688_vm2 = vcmp.ge.s32.totalorder %v1559_v61, %v13578_v3  ;;  %vm1819_vm13 = vcmp.lt.s32.totalorder %v1560_v62, %v13580_v53  ;;  %v1584_v61 = vadd.s32 424, %v11003_v2 }
 0x353   : > { %19577 = vst [vmem:[#allocation50_spill] sm:$0xff] %v19576_v4  ;;  %vm1945_vm12 = vmand %vm1687_vm14, %vm1817_vm10  ;;  %vm1689_vm14 = vcmp.ge.s32.totalorder %v1560_v62, %v13578_v3  ;;  %v1567_v62 = vadd.s32 288, %v11003_v2 }
 0x354   : > { %vm13736_vm9 = vmpackc.low %vm1945_vm12, %vm1944_vm15 }
 0x355   : > { %v19579_v27 = vsel %vm13736_vm9, 4294967295, %v19578_v27  ;;  %9036 = vmatprep.subr.msk.bf16.mxu0 %vm13736_vm9, %v19159_v46  ;;  %vm1928_vm0 = vmand %vm1670_vm7, %vm1800_vm11  ;;  %vm1672_vm7 = vcmp.ge.s32.totalorder %v11337_v7, %v13578_v3  ;;  %vm1802_vm11 = vcmp.lt.s32.totalorder %v11337_v7, %v13580_v53 }
 0x356   : > { %19580 = vst [vmem:[#allocation57_spill] sm:$0xff] %v19579_v27  ;;  %vm1929_vm10 = vmand %vm1671_vm5, %vm1801_vm4  ;;  %vm1673_vm5 = vcmp.ge.s32.totalorder %v11344_v9, %v13578_v3  ;;  %vm1803_vm4 = vcmp.lt.s32.totalorder %v11344_v9, %v13580_v53 }
 0x357   : > { %vm13747_vm1 = vmpackc.low %vm1929_vm10, %vm1928_vm0  ;;  %vm1820_vm10 = vcmp.lt.s32.totalorder %v1561_v1, %v13580_v53 }
 0x358   : > { %v19582_v63 = vsel %vm13747_vm1, 4294967295, %v19581_v63  ;;  %9037 = vmatpush3.bf16.msk.msra.mxu0 %vm13747_vm1, %v19159_v46  ;;  %vm1946_vm15 = vmand %vm1688_vm2, %vm1818_vm8  ;;  %vm1690_vm8 = vcmp.ge.s32.totalorder %v1561_v1, %v13578_v3  ;;  %vm1821_vm1 = vcmp.lt.s32.totalorder %v1562_v13, %v13580_v53  ;;  %v1568_v1 = vadd.s32 296, %v11003_v2 }
 0x359   : > { %19583 = vst [vmem:[#allocation58_spill] sm:$0xff] %v19582_v63  ;;  %vm1947_vm12 = vmand %vm1689_vm14, %vm1819_vm13  ;;  %vm1691_vm14 = vcmp.ge.s32.totalorder %v1562_v13, %v13578_v3  ;;  %v19611_v13 = vmov 0 }
 0x35a   : > { %vm13764_vm0 = vmpackc.low %vm1947_vm12, %vm1946_vm15 }
 0x35b   : > { %v19585_v15 = vsel %vm13764_vm0, 4294967295, %v19584_v15  ;;  %9038 = vmatprep.subr.msk.bf16.mxu0 %vm13764_vm0, %v19159_v46  ;;  %vm1930_vm2 = vmand %vm1672_vm7, %vm1802_vm11  ;;  %vm1674_vm7 = vcmp.ge.s32.totalorder %v11413_v23, %v13578_v3  ;;  %vm1804_vm11 = vcmp.lt.s32.totalorder %v11413_v23, %v13580_v53 }
 0x35c   : > { %19586 = vst [vmem:[#allocation59_spill] sm:$0xff] %v19585_v15  ;;  %vm1931_vm13 = vmand %vm1673_vm5, %vm1803_vm4  ;;  %vm1675_vm5 = vcmp.ge.s32.totalorder %v19525_v43, %v13578_v3  ;;  %vm1805_vm4 = vcmp.lt.s32.totalorder %v19525_v43, %v13580_v53 }
 0x35d   : > { %vm13775_vm9 = vmpackc.low %vm1931_vm13, %vm1930_vm2 }
 0x35e   : > { %v19588_v20 = vsel %vm13775_vm9, 4294967295, %v19587_v20  ;;  %9039 = vmatpush3.bf16.msk.msra.mxu0 %vm13775_vm9, %v19159_v46  ;;  %vm1948_vm15 = vmand %vm1690_vm8, %vm1820_vm10  ;;  %vm1871_vm9 = vcmp.lt.s32.totalorder %v1612_v38, %v13580_v53 }
 0x35f   : > { %19589 = vst [vmem:[#allocation60_spill] sm:$0xff] %v19588_v20  ;;  %vm1949_vm12 = vmand %vm1691_vm14, %vm1821_vm1  ;;  %vm1708_vm1 = vcmp.ge.s32.totalorder %v1579_v52, %v13578_v3  ;;  %vm1709_vm14 = vcmp.ge.s32.totalorder %v1580_v28, %v13578_v3 }
 0x360   : > { %vm13790_vm2 = vmpackc.low %vm1949_vm12, %vm1948_vm15  ;;  %vm1838_vm15 = vcmp.lt.s32.totalorder %v1579_v52, %v13580_v53  ;;  %vm1692_vm12 = vcmp.ge.s32.totalorder %v1563_v36, %v13578_v3  ;;  %v19614_v52 = vmov 0 }
 0x361   : > { %v19591_v26 = vsel %vm13790_vm2, 4294967295, %v19590_v26  ;;  %9040 = vmatprep.subr.msk.bf16.mxu0 %vm13790_vm2, %v19159_v46  ;;  %vm1932_vm8 = vmand %vm1674_vm7, %vm1804_vm11  ;;  %vm1839_vm7 = vcmp.lt.s32.totalorder %v1580_v28, %v13580_v53  ;;  %vm1741_vm2 = vcmp.ge.s32.totalorder %v1612_v38, %v13578_v3  ;;  %v1585_v28 = vadd.s32 432, %v11003_v2 }
 0x362   : > { %19592 = vst [vmem:[#allocation61_spill] sm:$0xff] %v19591_v26  ;;  %vm1933_vm10 = vmand %vm1675_vm5, %vm1805_vm4  ;;  %vm1822_vm5 = vcmp.lt.s32.totalorder %v1563_v36, %v13580_v53  ;;  %v1586_v36 = vadd.s32 440, %v11003_v2  ;;  %v1570_v38 = vadd.s32 312, %v11003_v2 }
 0x363   : > { %vm13797_vm13 = vmpackc.low %vm1933_vm10, %vm1932_vm8  ;;  %vm1693_vm8 = vcmp.ge.s32.totalorder %v1564_v45, %v13578_v3  ;;  %vm1823_vm10 = vcmp.lt.s32.totalorder %v1564_v45, %v13580_v53  ;;  %v1569_v45 = vadd.s32 304, %v11003_v2 }
 0x364   : > { %v19594_v21 = vsel %vm13797_vm13, 4294967295, %v19593_v21  ;;  %9041 = vmatpush3.bf16.msk.msra.mxu0 %vm13797_vm13, %v19159_v46  ;;  %vm1966_vm11 = vmand %vm1708_vm1, %vm1838_vm15  ;;  %vm1740_vm15 = vcmp.ge.s32.totalorder %v1611_v47, %v13578_v3 }
 0x365   : > { %19595 = vst [vmem:[#allocation62_spill] sm:$0xff] %v19594_v21  ;;  %vm1967_vm4 = vmand %vm1709_vm14, %vm1839_vm7  ;;  %vm1870_vm14 = vcmp.lt.s32.totalorder %v1611_v47, %v13580_v53  ;;  %v13898_v47 = vpop.permute.xlu1 %2933 }
 0x366   : > { %vm13818_vm13 = vmpackc.low %vm1967_vm4, %vm1966_vm11  ;;  %vm1710_vm4 = vcmp.ge.s32.totalorder %v1581_v51, %v13578_v3 }
 0x367   : > { %v19597_v16 = vsel %vm13818_vm13, 4294967295, %v19596_v16  ;;  %9090 = vmatprep.subr.msk.bf16.mxu1 %vm13818_vm13, %v19159_v46  ;;  %vm1950_vm1 = vmand %vm1692_vm12, %vm1822_vm5 }
 0x368   : > { %19598 = vst [vmem:[#allocation63_spill] sm:$0xff] %v19597_v16  ;;  %vm1951_vm7 = vmand %vm1693_vm8, %vm1823_vm10  ;;  %vm1840_vm8 = vcmp.lt.s32.totalorder %v1581_v51, %v13580_v53  ;;  %vm1711_vm10 = vcmp.ge.s32.totalorder %v1582_v25, %v13578_v3  ;;  %v19670_v16 = vmov 0 }
 0x369   : > { %vm13829_vm0 = vmpackc.low %vm1951_vm7, %vm1950_vm1  ;;  %vm1694_vm1 = vcmp.ge.s32.totalorder %v1565_v8, %v13578_v3  ;;  %vm1695_vm7 = vcmp.ge.s32.totalorder %v1566_v12, %v13578_v3 }
 0x36a   : > { %v19600_v19 = vsel %vm13829_vm0, 4294967295, %v19599_v19  ;;  %9091 = vmatpush3.bf16.msk.msra.mxu1 %vm13829_vm0, %v19159_v46  ;;  %vm1998_vm11 = vmand %vm1740_vm15, %vm1870_vm14  ;;  %vm1824_vm15 = vcmp.lt.s32.totalorder %v1565_v8, %v13580_v53 }
 0x36b   : > { %19601 = vst [vmem:[#allocation64_spill] sm:$0xff] %v19600_v19  ;;  %vm1999_vm12 = vmand %vm1741_vm2, %vm1871_vm9  ;;  %vm1841_vm9 = vcmp.lt.s32.totalorder %v1582_v25, %v13580_v53 }
 0x36c   : > { %vm13838_vm5 = vmpackc.low %vm1999_vm12, %vm1998_vm11  ;;  %vm1825_vm11 = vcmp.lt.s32.totalorder %v1566_v12, %v13580_v53 }
 0x36d   : > { %v19603_v32 = vsel %vm13838_vm5, 4294967295, %v19602_v32  ;;  %9154 = vmatprep.subr.msk.bf16.mxu0 %vm13838_vm5, %v19159_v46  ;;  %vm1968_vm2 = vmand %vm1710_vm4, %vm1840_vm8  ;;  %vm1712_vm8 = vcmp.ge.s32.totalorder %v1583_v10, %v13578_v3 }
 0x36e   : > { %19604 = vst [vmem:[#allocation65_spill] sm:$0xff] %v19603_v32  ;;  %vm1969_vm14 = vmand %vm1711_vm10, %vm1841_vm9  ;;  %vm1842_vm10 = vcmp.lt.s32.totalorder %v1583_v10, %v13580_v53 }
 0x36f   : > { %vm13855_vm12 = vmpackc.low %vm1969_vm14, %vm1968_vm2  ;;  %vm1696_vm2 = vcmp.ge.s32.totalorder %v1567_v62, %v13578_v3  ;;  %vm1697_vm14 = vcmp.ge.s32.totalorder %v1568_v1, %v13578_v3 }
 0x370   : > { %v19606_v17 = vsel %vm13855_vm12, 4294967295, %v19605_v17  ;;  %9092 = vmatprep.subr.msk.bf16.mxu1 %vm13855_vm12, %v19159_v46  ;;  %vm1952_vm0 = vmand %vm1694_vm1, %vm1824_vm15  ;;  %vm1826_vm1 = vcmp.lt.s32.totalorder %v1567_v62, %v13580_v53 }
 0x371   : > { %19607 = vst [vmem:[#allocation66_spill] sm:$0xff] %v19606_v17  ;;  %vm1953_vm5 = vmand %vm1695_vm7, %vm1825_vm11  ;;  %vm1827_vm7 = vcmp.lt.s32.totalorder %v1568_v1, %v13580_v53  ;;  %v19617_v1 = vmov 0 }
 0x372   : > { %vm13862_vm4 = vmpackc.low %vm1953_vm5, %vm1952_vm0  ;;  %vm1713_vm0 = vcmp.ge.s32.totalorder %v1584_v61, %v13578_v3  ;;  %vm1843_vm5 = vcmp.lt.s32.totalorder %v1584_v61, %v13580_v53 }
 0x373   : > { %v19609_v0 = vsel %vm13862_vm4, 4294967295, %v19608_v0  ;;  %9093 = vmatpush3.bf16.msk.msra.mxu1 %vm13862_vm4, %v19159_v46  ;;  %vm1970_vm9 = vmand %vm1712_vm8, %vm1842_vm10  ;;  %vm1714_vm10 = vcmp.ge.s32.totalorder %v1585_v28, %v13578_v3 }
 0x374   : > { %19610 = vst [vmem:[#allocation67_spill] sm:$0xff] %v19609_v0  ;;  %vm1971_vm15 = vmand %vm1713_vm0, %vm1843_vm5  ;;  %vm1844_vm0 = vcmp.lt.s32.totalorder %v1585_v28, %v13580_v53  ;;  %vm18578_vm5 = vcmask 1042432  }
 0x375   : > { %vm13881_vm11 = vmpackc.low %vm1971_vm15, %vm1970_vm9 }
 0x376   : > { %v19612_v13 = vsel %vm13881_vm11, 4294967295, %v19611_v13  ;;  %9094 = vmatprep.subr.msk.bf16.mxu1 %vm13881_vm11, %v19159_v46  ;;  %vm1954_vm4 = vmand %vm1696_vm2, %vm1826_vm1  ;;  %vm1698_vm2 = vcmp.ge.s32.totalorder %v1569_v45, %v13578_v3  ;;  %vm1828_vm1 = vcmp.lt.s32.totalorder %v1569_v45, %v13580_v53 }
 0x377   : > { %19613 = vst [vmem:[#allocation68_spill] sm:$0xff] %v19612_v13  ;;  %vm1955_vm12 = vmand %vm1697_vm14, %vm1827_vm7  ;;  %vm1699_vm14 = vcmp.ge.s32.totalorder %v1570_v38, %v13578_v3  ;;  %vm1829_vm7 = vcmp.lt.s32.totalorder %v1570_v38, %v13580_v53  ;;  %v19620_v38 = vmov 0 }
 0x378   : > { %vm13888_vm8 = vmpackc.low %vm1955_vm12, %vm1954_vm4  ;;  %vm1715_vm12 = vcmp.ge.s32.totalorder %v1586_v36, %v13578_v3  ;;  %vm1845_vm4 = vcmp.lt.s32.totalorder %v1586_v36, %v13580_v53 }
 0x379   : > { %v19615_v52 = vsel %vm13888_vm8, 4294967295, %v19614_v52  ;;  %9095 = vmatpush3.bf16.msk.msra.mxu1 %vm13888_vm8, %v19159_v46  ;;  %vm1972_vm9 = vmand %vm1714_vm10, %vm1844_vm0 }
 0x37a   : > { %19616 = vst [vmem:[#allocation69_spill] sm:$0xff] %v19615_v52  ;;  %vm1973_vm15 = vmand %vm1715_vm12, %vm1845_vm4 }
 0x37b   : > { %vm13912_vm8 = vmpackc.low %vm1973_vm15, %vm1972_vm9 }
 0x37c   : > { %v19618_v1 = vsel %vm13912_vm8, 4294967295, %v19617_v1  ;;  %9096 = vmatprep.subr.msk.bf16.mxu1 %vm13912_vm8, %v19159_v46  ;;  %vm1956_vm10 = vmand %vm1698_vm2, %vm1828_vm1 }
 0x37d   : > { %19619 = vst [vmem:[#allocation70_spill] sm:$0xff] %v19618_v1  ;;  %vm1957_vm0 = vmand %vm1699_vm14, %vm1829_vm7  ;;  %vm1700_vm14 = vcmp.ge.s32.totalorder %v1571_v35, %v13578_v3  ;;  %vm1830_vm7 = vcmp.lt.s32.totalorder %v1571_v35, %v13580_v53 }
 0x37e   : > { %vm13920_vm12 = vmpackc.low %vm1957_vm0, %vm1956_vm10 }
 0x37f   : > { %v19621_v38 = vsel %vm13920_vm12, 4294967295, %v19620_v38  ;;  %9097 = vmatpush3.bf16.msk.msra.mxu1 %vm13920_vm12, %v19159_v46 }
 0x380   : > { %19622 = vst [vmem:[#allocation71_spill] sm:$0xff] %v19621_v38 }
 0x39d   : > { %v2974_v51 = vpop.f32.mrb[12].mxu0 }
 0x39e   : > { %v2975_v25 = vadd.f32 %v2974_v51, %v13898_v47  ;;  %v2976_v8 = vpop.f32.mrb[13].mxu0 }
 0x39f   : > { %v2977_v12 = vadd.f32 %v2976_v8, %v13898_v47  ;;  %v2978_v10 = vpop.f32.mrb[14].mxu0  ;;  %v1587_v8 = vadd.s32 448, %v11003_v2 }
 0x3a0   : > { %v3105_v61 = vsel %vm18578_vm5, %v2975_v25, -inf  ;;  %v2979_v62 = vpop.f32.mrb[15].mxu0 }
 0x3a1   : > { %v3106_v28 = vrot.slane %v3105_v61, 4  ;;  %v3112_v36 = vsel %vm18578_vm5, %v2977_v12, -inf  ;;  %v1588_v62 = vadd.s32 456, %v11003_v2  ;;  %vm1716_vm4 = vcmp.ge.s32.totalorder %v1587_v8, %v13578_v3 }
 0x3a2   : > { %v3113_v45 = vrot.slane %v3112_v36, 4  ;;  %vm1846_vm9 = vcmp.lt.s32.totalorder %v1587_v8, %v13580_v53 }
 0x3a3   : > { %v3107_v51 = vmax.f32 %v3105_v61, %v3106_v28  ;;  %v1572_v61 = vadd.s32 328, %v11003_v2  ;;  %vm1717_vm2 = vcmp.ge.s32.totalorder %v1588_v62, %v13578_v3  ;;  %vm1847_vm1 = vcmp.lt.s32.totalorder %v1588_v62, %v13580_v53  ;;  %vm1974_vm15 = vmand %vm1716_vm4, %vm1846_vm9 }
 0x3a4   : > { %v3114_v10 = vmax.f32 %v3112_v36, %v3113_v45  ;;  %vm1975_vm10 = vmand %vm1717_vm2, %vm1847_vm1 }
 0x3a5   : > { %v3108_v44 = vrot.slane %v3107_v51, 2  ;;  %vm1701_vm0 = vcmp.ge.s32.totalorder %v1572_v61, %v13578_v3  ;;  %vm1831_vm5 = vcmp.lt.s32.totalorder %v1572_v61, %v13580_v53  ;;  %vm13939_vm12 = vmpackc.low %vm1975_vm10, %vm1974_vm15  ;;  %v19630_v61 = vld [vmem:[#allocation51_spill] sm:$0xff] }
 0x3a6   : > { %v3115_v56 = vrot.slane %v3114_v10, 2  ;;  %9098 = vmatprep.subr.msk.bf16.mxu1 %vm13939_vm12, %v19159_v46  ;;  %vm1958_vm4 = vmand %vm1700_vm14, %vm1830_vm7  ;;  %vm19631_vm2 = vcmp.eq.s32.totalorder %v11003_v2, %v19630_v61  ;;  %vm19640_vm14 = vcmp.eq.s32.totalorder %v19322_v11, %v19630_v61 }
 0x3a7   : > { %v3109_v1 = vmax.f32 %v3107_v51, %v3108_v44  ;;  %vm1959_vm9 = vmand %vm1701_vm0, %vm1831_vm5  ;;  %vm19633_vm5 = vcmp.eq.s32.totalorder %v19285_v5, %v19630_v61  ;;  %vm19642_vm0 = vcmp.eq.s32.totalorder %v19323_v39, %v19630_v61 }
 0x3a8   : > { %v3116_v28 = vmax.f32 %v3114_v10, %v3115_v56  ;;  %v19623_v56 = vmov 0  ;;  %vm13946_vm8 = vmpackc.low %vm1959_vm9, %vm1958_vm4  ;;  %v1589_v10 = vadd.s32 464, %v11003_v2 }
 0x3a9   : > { %v3110_v36 = vrot.slane %v3109_v1, 1  ;;  %v19624_v56 = vsel %vm13939_vm12, 4294967295, %v19623_v56  ;;  %9099 = vmatpush3.bf16.msk.msra.mxu1 %vm13946_vm8, %v19159_v46 }
 0x3aa   : > { %v3117_v45 = vrot.slane %v3116_v28, 1  ;;  %19625 = vst [vmem:[#allocation72_spill] sm:$0xff] %v19624_v56  ;;  %vm1718_vm7 = vcmp.ge.s32.totalorder %v1589_v10, %v13578_v3  ;;  %vm1848_vm10 = vcmp.lt.s32.totalorder %v1589_v10, %v13580_v53 }
 0x3ab   : > { %v3111_v38 = vmax.f32 %v3109_v1, %v3110_v36  ;;  %v19626_v1 = vmov 0  ;;  %v19635_v36 = vld [vmem:[#allocation53_spill] sm:$0xff] }
 0x3ac   : > { %v3118_v44 = vmax.f32 %v3116_v28, %v3117_v45  ;;  %v19627_v1 = vsel %vm13946_vm8, 4294967295, %v19626_v1  ;;  %vm19636_vm1 = vcmp.eq.s32.totalorder %v11003_v2, %v19635_v36  ;;  %vm19638_vm15 = vcmp.eq.s32.totalorder %v19285_v5, %v19635_v36 }
 0x3ad   : > { %v3161_v51 = vsub.f32 %v2975_v25, %v3111_v38  ;;  %19628 = vst [vmem:[#allocation73_spill] sm:$0xff] %v19627_v1  ;;  %v1590_v25 = vadd.s32 472, %v11003_v2  ;;  %v19629_v38 = vmov 0.0   ;;  %vm19644_vm4 = vcmp.eq.s32.totalorder %v19322_v11, %v19635_v36 }
 0x3ae   : > { %v3162_v8 = vsub.f32 %v2977_v12, %v3118_v44  ;;  %v13959_v12 = vsel %vm19631_vm2, 1.0, %v19629_v38  ;;  %v13965_v28 = vsel %vm19633_vm5, 1.0, %v19629_v38  ;;  %v13971_v45 = vsel %vm19636_vm1, 1.0, %v19629_v38 }
 0x3af   : > { %v3169_v35 = vmul.f32 1.442695, %v3161_v51  ;;  %19632 = vst [vmem:[#allocation51_spill] sm:$0xff] %v13959_v12  ;;  %19634 = vst [vmem:[#allocation74_spill] sm:$0xff] %v13965_v28  ;;  %v13977_v44 = vsel %vm19638_vm15, 1.0, %v19629_v38  ;;  %v1573_v51 = vadd.s32 336, %v11003_v2  ;;  %vm1719_vm9 = vcmp.ge.s32.totalorder %v1590_v25, %v13578_v3 }
 0x3b0   : > { %v3171_v62 = vmul.f32 1.442695, %v3162_v8  ;;  %19637 = vst [vmem:[#allocation53_spill] sm:$0xff] %v13971_v45  ;;  %19639 = vst [vmem:[#allocation75_spill] sm:$0xff] %v13977_v44  ;;  %v13984_v8 = vsel %vm19640_vm14, 1.0, %v19629_v38  ;;  %v13993_v1 = vsel %vm19642_vm0, 1.0, %v19629_v38  ;;  %vm1849_vm2 = vcmp.lt.s32.totalorder %v1590_v25, %v13580_v53 }
 0x3b1   : > { %10389 = vpow2.f32 %v3169_v35  ;;  %19641 = vst [vmem:[#allocation76_spill] sm:$0xff] %v13984_v8  ;;  %v1574_v35 = vadd.s32 344, %v11003_v2  ;;  %19643 = vst [vmem:[#allocation77_spill] sm:$0xff] %v13993_v1  ;;  %vm19646_vm5 = vcmp.eq.s32.totalorder %v19323_v39, %v19635_v36  ;;  %vm19648_vm1 = vcmp.eq.s32.totalorder %v11121_v33, %v19630_v61 }
 0x3b2   : > { %10391 = vpow2.f32 %v3171_v62  ;;  %v13999_v62 = vsel %vm19644_vm4, 1.0, %v19629_v38  ;;  %v14007_v10 = vsel %vm19646_vm5, 1.0, %v19629_v38  ;;  %v14013_v56 = vsel %vm19648_vm1, 1.0, %v19629_v38  ;;  %vm1976_vm5 = vmand %vm1718_vm7, %vm1848_vm10 }
 0x3b3   : > { %19645 = vst [vmem:[#allocation78_spill] sm:$0xff] %v13999_v62  ;;  %19647 = vst [vmem:[#allocation79_spill] sm:$0xff] %v14007_v10  ;;  %vm19650_vm15 = vcmp.eq.s32.totalorder %v11128_v34, %v19630_v61  ;;  %vm19652_vm14 = vcmp.eq.s32.totalorder %v11121_v33, %v19635_v36  ;;  %vm19654_vm0 = vcmp.eq.s32.totalorder %v11128_v34, %v19635_v36 }
 0x3b4   : > { %19649 = vst [vmem:[#allocation80_spill] sm:$0xff] %v14013_v56  ;;  %v14019_v52 = vsel %vm19650_vm15, 1.0, %v19629_v38  ;;  %v14025_v25 = vsel %vm19652_vm14, 1.0, %v19629_v38  ;;  %v14031_v13 = vsel %vm19654_vm0, 1.0, %v19629_v38  ;;  %vm19656_vm4 = vcmp.eq.s32.totalorder %v11175_v41, %v19630_v61  ;;  %vm1977_vm8 = vmand %vm1719_vm9, %vm1849_vm2 }
 0x3b5   : > { %19651 = vst [vmem:[#allocation81_spill] sm:$0xff] %v14019_v52  ;;  %19653 = vst [vmem:[#allocation82_spill] sm:$0xff] %v14025_v25  ;;  %v14037_v0 = vsel %vm19656_vm4, 1.0, %v19629_v38  ;;  %vm1702_vm1 = vcmp.ge.s32.totalorder %v1573_v51, %v13578_v3  ;;  %vm1832_vm15 = vcmp.lt.s32.totalorder %v1573_v51, %v13580_v53  ;;  %vm19658_vm14 = vcmp.eq.s32.totalorder %v11182_v42, %v19630_v61 }
 0x3b6   : > { %19655 = vst [vmem:[#allocation83_spill] sm:$0xff] %v14031_v13  ;;  %19657 = vst [vmem:[#allocation84_spill] sm:$0xff] %v14037_v0  ;;  %v14045_v17 = vsel %vm19658_vm14, 1.0, %v19629_v38  ;;  %vm19660_vm0 = vcmp.eq.s32.totalorder %v11175_v41, %v19635_v36  ;;  %vm1703_vm4 = vcmp.ge.s32.totalorder %v1574_v35, %v13578_v3  ;;  %vm1833_vm7 = vcmp.lt.s32.totalorder %v1574_v35, %v13580_v53 }
 0x3b7   : > { %19659 = vst [vmem:[#allocation85_spill] sm:$0xff] %v14045_v17  ;;  %v14051_v19 = vsel %vm19660_vm0, 1.0, %v19629_v38  ;;  %vm19662_vm10 = vcmp.eq.s32.totalorder %v11182_v42, %v19635_v36  ;;  %vm19664_vm14 = vcmp.eq.s32.totalorder %v19439_v54, %v19630_v61  ;;  %vm19666_vm9 = vcmp.eq.s32.totalorder %v19440_v59, %v19630_v61  ;;  %vm14079_vm0 = vmpackc.low %vm1977_vm8, %vm1976_vm5 }
 0x3b8   : > { %19661 = vst [vmem:[#allocation86_spill] sm:$0xff] %v14051_v19  ;;  %v14059_v49 = vsel %vm19662_vm10, 1.0, %v19629_v38  ;;  %v14065_v14 = vsel %vm19664_vm14, 1.0, %v19629_v38  ;;  %v14071_v32 = vsel %vm19666_vm9, 1.0, %v19629_v38  ;;  %vm19668_vm2 = vcmp.eq.s32.totalorder %v19439_v54, %v19635_v36  ;;  %9100 = vmatprep.subr.msk.bf16.mxu1 %vm14079_vm0, %v19159_v46  ;;  %vm1960_vm5 = vmand %vm1702_vm1, %vm1832_vm15 }
 0x3b9   : > { %19663 = vst [vmem:[#allocation87_spill] sm:$0xff] %v14059_v49  ;;  %19665 = vst [vmem:[#allocation88_spill] sm:$0xff] %v14065_v14  ;;  %v14077_v21 = vsel %vm19668_vm2, 1.0, %v19629_v38  ;;  %v19671_v16 = vsel %vm14079_vm0, 4294967295, %v19670_v16  ;;  %vm19673_vm10 = vcmp.eq.s32.totalorder %v19440_v59, %v19635_v36  ;;  %vm19675_vm14 = vcmp.eq.s32.totalorder %v11283_v57, %v19630_v61 }
 0x3ba   : > { %19667 = vst [vmem:[#allocation89_spill] sm:$0xff] %v14071_v32  ;;  %19669 = vst [vmem:[#allocation90_spill] sm:$0xff] %v14077_v21  ;;  %v14087_v26 = vsel %vm19673_vm10, 1.0, %v19629_v38  ;;  %v14093_v20 = vsel %vm19675_vm14, 1.0, %v19629_v38  ;;  %vm19677_vm9 = vcmp.eq.s32.totalorder %v11290_v58, %v19630_v61  ;;  %vm19679_vm8 = vcmp.eq.s32.totalorder %v11283_v57, %v19635_v36 }
 0x3bb   : > { %19672 = vst [vmem:[#allocation91_spill] sm:$0xff] %v19671_v16  ;;  %19674 = vst [vmem:[#allocation92_spill] sm:$0xff] %v14087_v26  ;;  %v14099_v15 = vsel %vm19677_vm9, 1.0, %v19629_v38  ;;  %v14105_v63 = vsel %vm19679_vm8, 1.0, %v19629_v38  ;;  %vm19681_vm2 = vcmp.eq.s32.totalorder %v11290_v58, %v19635_v36  ;;  %vm19683_vm10 = vcmp.eq.s32.totalorder %v11337_v7, %v19630_v61  ;;  %v14134_v4 = vpop.eup %10389 }
 0x3bc   : > { %19676 = vst [vmem:[#allocation93_spill] sm:$0xff] %v14093_v20  ;;  %19678 = vst [vmem:[#allocation94_spill] sm:$0xff] %v14099_v15  ;;  %v14118_v27 = vsel %vm19681_vm2, 1.0, %v19629_v38  ;;  %v14124_v57 = vsel %vm19683_vm10, 1.0, %v19629_v38  ;;  %v14127_v16 = vadd.s32 512, %v11003_v2  ;;  %v1591_v51 = vadd.s32 480, %v11003_v2  ;;  %v14155_v55 = vpop.eup %10391 }
 0x3bd   : > { %19680 = vst [vmem:[#allocation95_spill] sm:$0xff] %v14105_v63  ;;  %19682 = vst [vmem:[#allocation96_spill] sm:$0xff] %v14118_v27  ;;  %vm19685_vm15 = vcmp.eq.s32.totalorder %v11344_v9, %v19630_v61  ;;  %v14143_v59 = vadd.s32 520, %v11003_v2  ;;  %v14146_v54 = vadd.s32 656, %v11003_v2  ;;  %v14149_v35 = vadd.s32 664, %v11003_v2 }
 0x3be   : > { %19684 = vst [vmem:[#allocation97_spill] sm:$0xff] %v14124_v57  ;;  %vm1961_vm1 = vmand %vm1703_vm4, %vm1833_vm7  ;;  %v14140_v58 = vsel %vm19685_vm15, 1.0, %v19629_v38  ;;  %vm19690_vm7 = vcmask 1042432   ;;  %vm1720_vm2 = vcmp.ge.s32.totalorder %v1591_v51, %v13578_v3 }
 0x3bf   : > { %19686 = vst [vmem:[#allocation98_spill] sm:$0xff] %v14140_v58  ;;  %vm14151_vm4 = vmpackc.low %vm1961_vm1, %vm1960_vm5  ;;  %v3185_v6 = vsel %vm19690_vm7, %v14134_v4, 0.0  ;;  %vm1872_vm12 = vcmp.lt.s32.totalorder %v14146_v54, %v13580_v53 }
 0x3c0   : > { %v19688_v18 = vsel %vm14151_vm4, 4294967295, %v19687_v18  ;;  %9101 = vmatpush3.bf16.msk.msra.mxu1 %vm14151_vm4, %v19159_v46  ;;  %v3186_v58 = vrot.slane %v3185_v6, 4  ;;  %vm19691_vm14 = vmmov %vm19690_vm7 }
 0x3c1   : > { %19689 = vst [vmem:[#allocation99_spill] sm:$0xff] %v19688_v18  ;;  %v3192_v57 = vsel %vm19691_vm14, %v14155_v55, 0.0  ;;  %vm19692_vm9 = vmmov %vm19690_vm7  ;;  %v1576_v18 = vadd.s32 360, %v11003_v2  ;;  %vm1721_vm14 = vcmp.ge.s32.totalorder %v1592_v48, %v13578_v3 }
 0x3c2   : > { %v3193_v24 = vrot.slane %v3192_v57, 4  ;;  %vm19693_vm10 = vmmov %vm19690_vm7  ;;  %vm1850_vm7 = vcmp.lt.s32.totalorder %v1591_v51, %v13580_v53  ;;  %v1615_v51 = vadd.s32 672, %v11003_v2 }
 0x3c3   : > { %vm1705_vm4 = vcmp.ge.s32.totalorder %v1576_v18, %v13578_v3  ;;  %vm1835_vm0 = vcmp.lt.s32.totalorder %v1576_v18, %v13580_v53  ;;  %v1594_v18 = vadd.s32 504, %v11003_v2 }
 0x3c4   : > { %v3194_v21 = vadd.f32 %v3193_v24, %v3192_v57 }
 0x3c6   : > { %v3195_v30 = vrot.slane %v3194_v21, 2 }
 0x3c9   : > { %v3056_v60 = vpop.f32.mrb[16].mxu0 }
 0x3ca   : > { %v14160_v37 = vadd.f32 %v3056_v60, %v13898_v47  ;;  %v3058_v29 = vpop.f32.mrb[17].mxu0  ;;  %v1575_v60 = vadd.s32 352, %v11003_v2 }
 0x3cb   : > { %v14172_v27 = vadd.f32 %v3058_v29, %v13898_v47  ;;  %v3060_v63 = vpop.f32.mrb[18].mxu0  ;;  %v3187_v29 = vadd.f32 %v3186_v58, %v3185_v6  ;;  %v1598_v6 = vadd.s32 536, %v11003_v2 }
 0x3cc   : > { %v3133_v15 = vsel %vm19692_vm9, %v14160_v37, -inf  ;;  %v3061_v20 = vpop.f32.mrb[19].mxu0  ;;  %vm1851_vm9 = vcmp.lt.s32.totalorder %v1592_v48, %v13580_v53  ;;  %vm1704_vm1 = vcmp.ge.s32.totalorder %v1575_v60, %v13578_v3  ;;  %vm1834_vm15 = vcmp.lt.s32.totalorder %v1575_v60, %v13580_v53 }
 0x3cd   : > { %v3134_v26 = vrot.slane %v3133_v15, 4  ;;  %v3140_v63 = vsel %vm19693_vm10, %v14172_v27, -inf  ;;  %v3188_v20 = vrot.slane %v3187_v29, 2  ;;  %vm1978_vm10 = vmand %vm1720_vm2, %vm1850_vm7  ;;  %v3196_v48 = vadd.f32 %v3195_v30, %v3194_v21 }
 0x3ce   : > { %v3141_v40 = vrot.slane %v3140_v63, 4  ;;  %vm1979_vm5 = vmand %vm1721_vm14, %vm1851_vm9  ;;  %v19697_v60 = vmov 0  ;;  %vm19705_vm14 = vcmp.ge.s32.totalorder %v14143_v59, %v13578_v3  ;;  %vm19717_vm9 = vcmp.eq.s32.totalorder %v11413_v23, %v19630_v61 }
 0x3cf   : > { %v3135_v58 = vmax.f32 %v3133_v15, %v3134_v26  ;;  %v3189_v57 = vadd.f32 %v3188_v20, %v3187_v29  ;;  %vm14205_vm2 = vmpackc.low %vm1979_vm5, %vm1978_vm10  ;;  %v1616_v29 = vadd.s32 680, %v11003_v2  ;;  %v3197_v30 = vrot.slane %v3196_v48, 1 }
 0x3d0   : > { %v3142_v42 = vmax.f32 %v3140_v63, %v3141_v40  ;;  %v19694_v40 = vmov 0  ;;  %9102 = vmatprep.subr.msk.bf16.mxu1 %vm14205_vm2, %v19159_v46  ;;  %vm1962_vm5 = vmand %vm1704_vm1, %vm1834_vm15  ;;  %vm19704_vm1 = vcmp.lt.s32.totalorder %v14143_v59, %v13580_v53  ;;  %v1578_v59 = vadd.s32 376, %v11003_v2 }
 0x3d1   : > { %v3136_v24 = vrot.slane %v3135_v58, 2  ;;  %v19695_v40 = vsel %vm14205_vm2, 4294967295, %v19694_v40  ;;  %v3190_v26 = vrot.slane %v3189_v57, 1  ;;  %vm1963_vm10 = vmand %vm1705_vm4, %vm1835_vm0  ;;  %vm19700_vm0 = vcmp.lt.s32.totalorder %v14127_v16, %v13580_v53 }
 0x3d2   : > { %v3143_v15 = vrot.slane %v3142_v42, 2  ;;  %19696 = vst [vmem:[#allocation100_spill] sm:$0xff] %v19695_v40  ;;  %vm14229_vm7 = vmpackc.low %vm1963_vm10, %vm1962_vm5  ;;  %vm19701_vm4 = vcmp.ge.s32.totalorder %v14127_v16, %v13578_v3  ;;  %vm19727_vm2 = vcmp.ge.s32.totalorder %v1615_v51, %v13578_v3  ;;  %vm19731_vm11 = vcmp.ge.s32.totalorder %v1616_v29, %v13578_v3 }
 0x3d3   : > { %v3191_v63 = vadd.f32 %v3190_v26, %v3189_v57  ;;  %v3137_v20 = vmax.f32 %v3135_v58, %v3136_v24  ;;  %v19698_v60 = vsel %vm14229_vm7, 4294967295, %v19697_v60  ;;  %9103 = vmatpush3.bf16.msk.msra.mxu1 %vm14229_vm7, %v19159_v46  ;;  %vm14245_vm15 = vmand %vm19701_vm4, %vm19700_vm0  ;;  %v1577_v24 = vadd.s32 368, %v11003_v2 }
 0x3d4   : > { %v3144_v21 = vmax.f32 %v3142_v42, %v3143_v15  ;;  %19699 = vst [vmem:[#allocation101_spill] sm:$0xff] %v19698_v60  ;;  %v1593_v42 = vadd.s32 496, %v11003_v2  ;;  %v3198_v15 = vadd.f32 %v3197_v30, %v3196_v48  ;;  %vm14258_vm8 = vmand %vm19705_vm14, %vm19704_vm1  ;;  %vm19708_vm4 = vcmp.ge.s32.totalorder %v14146_v54, %v13578_v3 }
 0x3d5   : > { %10393 = vrcp.f32 %v3191_v63  ;;  %v3138_v48 = vrot.slane %v3137_v20, 1  ;;  %vm14270_vm10 = vmand %vm19708_vm4, %vm1872_vm12  ;;  %vm19711_vm0 = vcmp.eq.s32.totalorder %v11337_v7, %v19635_v36  ;;  %vm19712_vm12 = vcmp.lt.s32.totalorder %v14149_v35, %v13580_v53 }
 0x3d6   : > { %v3145_v40 = vrot.slane %v3144_v21, 1  ;;  %10395 = vrcp.f32 %v3198_v15  ;;  %v14281_v26 = vsel %vm19711_vm0, 1.0, %v19629_v38  ;;  %vm19713_vm4 = vcmp.ge.s32.totalorder %v14149_v35, %v13578_v3 }
 0x3d7   : > { %vm14290_vm5 = vmand %vm19713_vm4, %vm19712_vm12  ;;  %vm19716_vm0 = vcmp.eq.s32.totalorder %v11344_v9, %v19635_v36  ;;  %vm19718_vm12 = vcmp.lt.s32.totalorder %v14163_v50, %v13580_v53  ;;  %vm19719_vm4 = vcmp.ge.s32.totalorder %v14163_v50, %v13578_v3  ;;  %vm19722_vm1 = vcmp.lt.s32.totalorder %v1598_v6, %v13580_v53 }
 0x3d8   : > { %v3146_v57 = vmax.f32 %v3144_v21, %v3145_v40  ;;  %v14300_v21 = vsel %vm19716_vm0, 1.0, %v19629_v38  ;;  %vm14314_vm14 = vmand %vm19719_vm4, %vm19718_vm12  ;;  %vm19723_vm0 = vcmp.ge.s32.totalorder %v1598_v6, %v13578_v3  ;;  %v19724_v63 = vmov 0 }
 0x3d9   : > { %vm14322_vm7 = vmand %vm19723_vm0, %vm19722_vm1  ;;  %v1599_v15 = vadd.s32 544, %v11003_v2  ;;  %v19728_v50 = vmov 0  ;;  %vm19730_vm4 = vcmp.lt.s32.totalorder %v1616_v29, %v13580_v53  ;;  %v19732_v6 = vmov 0 }
 0x3da   : > { %v3166_v30 = vsub.f32 %v14172_v27, %v3146_v57  ;;  %v14306_v27 = vsel %vm19717_vm9, 1.0, %v19629_v38  ;;  %v19725_v63 = vsel %vm14322_vm7, 4294967295, %v19724_v63  ;;  %v1600_v57 = vadd.s32 552, %v11003_v2  ;;  %vm14340_vm1 = vmand %vm19731_vm11, %vm19730_vm4 }
 0x3db   : > { %vm19726_vm9 = vcmp.lt.s32.totalorder %v1615_v51, %v13580_v53  ;;  %v19733_v6 = vsel %vm14340_vm1, 4294967295, %v19732_v6  ;;  %v1617_v60 = vadd.s32 688, %v11003_v2  ;;  %v1618_v9 = vadd.s32 696, %v11003_v2 }
 0x3dc   : > { %vm14332_vm12 = vmand %vm19727_vm2, %vm19726_vm9  ;;  %vm19734_vm0 = vcmp.lt.s32.totalorder %v1593_v42, %v13580_v53  ;;  %vm19735_vm13 = vcmp.ge.s32.totalorder %v1593_v42, %v13578_v3  ;;  %vm1706_vm9 = vcmp.ge.s32.totalorder %v1577_v24, %v13578_v3  ;;  %vm1836_vm3 = vcmp.lt.s32.totalorder %v1577_v24, %v13580_v53 }
 0x3dd   : > { %v19729_v50 = vsel %vm14332_vm12, 4294967295, %v19728_v50  ;;  %vm1980_vm2 = vmand %vm19735_vm13, %vm19734_vm0  ;;  %v3139_v51 = vmax.f32 %v3137_v20, %v3138_v48  ;;  %v1601_v29 = vadd.s32 560, %v11003_v2  ;;  %vm19736_vm11 = vcmp.lt.s32.totalorder %v1594_v18, %v13580_v53 }
 0x3de   : > { %vm19737_vm4 = vcmp.ge.s32.totalorder %v1594_v18, %v13578_v3  ;;  %vm19738_vm13 = vcmp.eq.s32.totalorder %v19525_v43, %v19630_v61  ;;  %vm19739_vm0 = vcmp.eq.s32.totalorder %v11413_v23, %v19635_v36  ;;  %v3179_v48 = vmul.f32 1.442695, %v3166_v30 }
 0x3df   : > { %vm1981_vm6 = vmand %vm19737_vm4, %vm19736_vm11  ;;  %v14363_v42 = vsel %vm19738_vm13, 1.0, %v19629_v38  ;;  %v14369_v20 = vsel %vm19739_vm0, 1.0, %v19629_v38  ;;  %v1602_v18 = vadd.s32 568, %v11003_v2  ;;  %v19741_v7 = vmov 0 }
 0x3e0   : > { %19740 = vst [vmem:[#allocation102_spill] sm:$0xff] %v14369_v20  ;;  %vm14372_vm11 = vmpackc.low %vm1981_vm6, %vm1980_vm2  ;;  %vm19744_vm4 = vcmp.eq.s32.totalorder %v19525_v43, %v19635_v36  ;;  %vm1859_vm2 = vcmp.lt.s32.totalorder %v1600_v57, %v13580_v53  ;;  %vm1747_vm12 = vcmp.ge.s32.totalorder %v1618_v9, %v13578_v3  ;;  %vm1876_vm13 = vcmp.lt.s32.totalorder %v1617_v60, %v13580_v53  ;;  %v10394_v36 = vpop.eup %10393 }
 0x3e1   : > { %v19742_v7 = vsel %vm14372_vm11, 4294967295, %v19741_v7  ;;  %v14380_v61 = vsel %vm19744_vm4, 1.0, %v19629_v38  ;;  %9104 = vmatprep.subr.msk.bf16.mxu1 %vm14372_vm11, %v19159_v46  ;;  %vm1964_vm6 = vmand %vm1706_vm9, %vm1836_vm3  ;;  %vm1746_vm4 = vcmp.ge.s32.totalorder %v1617_v60, %v13578_v3  ;;  %vm19746_vm1 = vcmp.lt.s32.totalorder %v1578_v59, %v13580_v53  ;;  %v10396_v43 = vpop.eup %10395 }
 0x3e2   : > { %19743 = vst [vmem:[#allocation103_spill] sm:$0xff] %v19742_v7  ;;  %19745 = vst [vmem:[#allocation104_spill] sm:$0xff] %v14380_v61  ;;  %vm19747_vm0 = vcmp.ge.s32.totalorder %v1578_v59, %v13578_v3  ;;  %v3165_v30 = vsub.f32 %v14160_v37, %v3139_v51  ;;  %vm1877_vm11 = vcmp.lt.s32.totalorder %v1618_v9, %v13580_v53  ;;  %v19748_v24 = vmov 0 }
 0x3e3   : > { %vm1965_vm7 = vmand %vm19747_vm0, %vm19746_vm1  ;;  %v1643_v7 = vadd.s32 896, %v11003_v2  ;;  %v14409_v23 = vmul.f32 %v10394_v36, %v14134_v4  ;;  %10397 = vpow2.f32 %v3179_v48  ;;  %v19752_v37 = vmov 0 }
 0x3e4   : > { %vm14403_vm9 = vmpackc.low %vm1965_vm7, %vm1964_vm6  ;;  %vm19755_vm7 = vcmp.lt.s32.totalorder %v1599_v15, %v13580_v53  ;;  %vm19756_vm0 = vcmp.ge.s32.totalorder %v1599_v15, %v13578_v3  ;;  %v1644_v4 = vadd.s32 904, %v11003_v2  ;;  %v14433_v58 = vmul.f32 %v10396_v43, %v14155_v55  ;;  %v19766_v55 = vld [vmem:[#allocation52_spill] sm:$0xff] }
 0x3e5   : > { %v19749_v24 = vsel %vm14403_vm9, 4294967295, %v19748_v24  ;;  %19751 = vst [vmem:[#allocation106_spill] sm:$0xff] %v14409_v23  ;;  %vm14415_vm1 = vmpackc.low %vm14258_vm8, %vm14245_vm15  ;;  %9105 = vmatpush3.bf16.msk.msra.mxu1 %vm14403_vm9, %v19159_v46  ;;  %v19760_v16 = vmov 0  ;;  %vm19763_vm15 = vcmp.ge.s32.totalorder %v1600_v57, %v13578_v3  ;;  %vm1861_vm3 = vcmp.lt.s32.totalorder %v1602_v18, %v13580_v53 }
 0x3e6   : > { %19750 = vst [vmem:[#allocation105_spill] sm:$0xff] %v19749_v24  ;;  %v19753_v37 = vsel %vm14415_vm1, 4294967295, %v19752_v37  ;;  %vm14423_vm6 = vmand %vm19756_vm0, %vm19755_vm7  ;;  %vm1860_vm0 = vcmp.lt.s32.totalorder %v1601_v29, %v13580_v53  ;;  %v1619_v43 = vadd.s32 704, %v11003_v2  ;;  %v14456_v40 = vrot.slane %v14409_v23, %v19766_v55 }
 0x3e7   : > { %19754 = vst [vmem:[#allocation107_spill] sm:$0xff] %v19753_v37  ;;  %19759 = vst [vmem:[#allocation108_spill] sm:$0xff] %v14433_v58  ;;  %v1620_v57 = vadd.s32 712, %v11003_v2  ;;  %v14468_v51 = vadd.s32 576, %v11003_v2  ;;  %v14471_v48 = vadd.s32 584, %v11003_v2  ;;  %v14475_v36 = vrot.slane %v14433_v58, %v19766_v55  ;;  %v19923_v37 = vld [vmem:[#allocation90_spill] sm:$0xff] }
 0x3e8   : > { %vm14439_vm8 = vmpackc.low %vm14290_vm5, %vm14270_vm10  ;;  %v3177_v24 = vmul.f32 1.442695, %v3165_v30  ;;  %v3289_v23 = vmul.f32 %v13971_v45, %v14456_v40  ;;  %v3297_v58 = vmul.f32 %v13977_v44, %v14456_v40  ;;  %v19772_v9 = vmov 0 }
 0x3e9   : > { %v19761_v16 = vsel %vm14439_vm8, 4294967295, %v19760_v16  ;;  %vm14447_vm7 = vmand %vm19763_vm15, %vm1859_vm2  ;;  %v3290_v35 = vmul.f32 %v13959_v12, %v14475_v36  ;;  %v3306_v44 = vmul.f32 %v13984_v8, %v14475_v36  ;;  %v19780_v45 = vmov 0  ;;  %v19924_v12 = vld [vmem:[#allocation92_spill] sm:$0xff] }
 0x3ea   : > { %19762 = vst [vmem:[#allocation109_spill] sm:$0xff] %v19761_v16  ;;  %vm14462_vm5 = vmand %vm1746_vm4, %vm1876_vm13  ;;  %vm19771_vm4 = vnez %v19725_v63  ;;  %v3298_v63 = vmul.f32 %v13965_v28, %v14475_v36  ;;  %v19784_v28 = vmov 0  ;;  %v3417_v8 = vpack.c.bf16 %v3297_v58, %v3289_v23 }
 0x3eb   : > { %vm14481_vm10 = vmand %vm1747_vm12, %vm1877_vm11  ;;  %vm19775_vm12 = vcmp.ge.s32.totalorder %v1601_v29, %v13578_v3  ;;  %v3314_v29 = vmul.f32 %v13993_v1, %v14475_v36  ;;  %vm1749_vm9 = vcmp.ge.s32.totalorder %v1620_v57, %v13578_v3  ;;  %10399 = vpow2.f32 %v3177_v24 }
 0x3ec   : > { %vm14495_vm15 = vmpackc.low %vm19771_vm4, %vm14314_vm14  ;;  %vm19778_vm14 = vnez %v19729_v50  ;;  %v3015_v50 = vpop.f32.mrb[16].mxu1  ;;  %v1622_v24 = vadd.s32 728, %v11003_v2  ;;  %v1606_v54 = vadd.s32 600, %v11003_v2  ;;  %v1623_v30 = vadd.s32 736, %v11003_v2 }
 0x3ed   : > { %v19773_v9 = vsel %vm14495_vm15, 4294967295, %v19772_v9  ;;  %vm14503_vm11 = vmand %vm19775_vm12, %vm1860_vm0  ;;  %vm19779_vm0 = vnez %v19733_v6  ;;  %vm19783_vm12 = vcmp.ge.s32.totalorder %v1602_v18, %v13578_v3  ;;  %vm1878_vm15 = vcmp.lt.s32.totalorder %v1619_v43, %v13580_v53  ;;  %v3017_v58 = vpop.f32.mrb[17].mxu1 }
 0x3ee   : > { %19774 = vst [vmem:[#allocation52_spill] sm:$0xff] %v19773_v9  ;;  %vm14521_vm4 = vmpackc.low %vm19779_vm0, %vm19778_vm14  ;;  %vm19786_vm14 = vcmp.lt.s32.totalorder %v1643_v7, %v13580_v53  ;;  %vm19787_vm0 = vcmp.ge.s32.totalorder %v1643_v7, %v13578_v3  ;;  %v3418_v6 = vpack.c.bf16 %v3298_v63, %v3290_v35  ;;  %v3426_v18 = vpack.c.bf16 %v3314_v29, %v3306_v44  ;;  %v3019_v59 = vpop.f32.mrb[18].mxu1  ;;  %v14581_v63 = vpop.eup %10397 }
 0x3ef   : > { %v19781_v45 = vsel %vm14521_vm4, 4294967295, %v19780_v45  ;;  %vm14529_vm13 = vmand %vm19783_vm12, %vm1861_vm3  ;;  %vm1879_vm3 = vcmp.lt.s32.totalorder %v1620_v57, %v13580_v53  ;;  %vm19788_vm12 = vcmp.lt.s32.totalorder %v1644_v4, %v13580_v53  ;;  %v14546_v23 = vadd.f32 %v3015_v50, %v13898_v47  ;;  %v3020_v50 = vpop.f32.mrb[19].mxu1 }
 0x3f0   : > { %19782 = vst [vmem:[#allocation110_spill] sm:$0xff] %v19781_v45  ;;  %v19785_v28 = vsel %vm14529_vm13, 4294967295, %v19784_v28  ;;  %vm2030_vm4 = vmand %vm19787_vm0, %vm19786_vm14  ;;  %vm19789_vm13 = vcmp.ge.s32.totalorder %v1644_v4, %v13578_v3  ;;  %v19790_v7 = vmov 0  ;;  %v1621_v44 = vadd.s32 720, %v11003_v2  ;;  %3833 = vmatprep.mubr.bf16.mxu0 %v3418_v6 }
 0x3f1   : > { %vm2031_vm2 = vmand %vm19789_vm13, %vm19788_vm12  ;;  %v19793_v4 = vmov 0  ;;  %v14565_v35 = vadd.f32 %v3017_v58, %v13898_v47  ;;  %vm19799_vm0 = vcmask 1042432   ;;  %3834 = vmatmul.mubr.bf16.vlgmr.msra.gmra.mrb[20].mxu0 %v3417_v8  ;;  %v3313_v6 = vmul.f32 %v14007_v10, %v14456_v40 }
 0x3f2   : > { %vm14552_vm14 = vmpackc.low %vm14447_vm7, %vm14423_vm6  ;;  %vm19796_vm6 = vcmp.ge.s32.totalorder %v1619_v43, %v13578_v3  ;;  %v3119_v29 = vsel %vm19799_vm0, %v14546_v23, -inf  ;;  %v3305_v43 = vmul.f32 %v13999_v62, %v14456_v40  ;;  %v1605_v59 = vadd.s32 592, %v11003_v2  ;;  %3841 = vmatprep.mubr.bf16.mxu0 %v3426_v18  ;;  %9155 = vmatpush3.bf16.msk.msra.mxu0 %vm14415_vm1, %v19159_v46 }
 0x3f3   : > { %v19791_v7 = vsel %vm14552_vm14, 4294967295, %v19790_v7  ;;  %vm14560_vm13 = vmpackc.low %vm2031_vm2, %vm2030_vm4  ;;  %vm1862_vm2 = vcmp.lt.s32.totalorder %v14468_v51, %v13580_v53  ;;  %vm1863_vm4 = vcmp.lt.s32.totalorder %v14471_v48, %v13580_v53  ;;  %v3120_v8 = vrot.slane %v3119_v29, 4  ;;  %9156 = vmatprep.subr.msk.bf16.mxu0 %vm14439_vm8, %v19159_v46 }
 0x3f4   : > { %19792 = vst [vmem:[#allocation111_spill] sm:$0xff] %v19791_v7  ;;  %v19794_v4 = vsel %vm14560_vm13, 4294967295, %v19793_v4  ;;  %vm14571_vm7 = vmand %vm19796_vm6, %vm1878_vm15  ;;  %9218 = vmatprep.subr.msk.bf16.mxu1 %vm14560_vm13, %v19159_v46  ;;  %v3126_v50 = vsel %vm19799_vm0, %v14565_v35, -inf  ;;  %v3322_v10 = vmul.f32 %v14013_v56, %v14475_v36  ;;  %v3330_v57 = vmul.f32 %v14019_v52, %v14475_v36 }
 0x3f5   : > { %19795 = vst [vmem:[#allocation112_spill] sm:$0xff] %v19794_v4  ;;  %vm14593_vm15 = vmand %vm1749_vm9, %vm1879_vm3  ;;  %v19802_v4 = vmov 0  ;;  %v3127_v62 = vrot.slane %v3126_v50, 4  ;;  %vm19805_vm3 = vnez %v19785_v28  ;;  %v19806_v18 = vmov 0 }
 0x3f6   : > { %vm14614_vm9 = vmpackc.low %vm14481_vm10, %vm14462_vm5  ;;  %v3121_v52 = vmax.f32 %v3119_v29, %v3120_v8  ;;  %v19810_v28 = vmov 0  ;;  %v3425_v16 = vpack.c.bf16 %v3313_v6, %v3305_v43  ;;  %v1624_v29 = vadd.s32 744, %v11003_v2  ;;  %v14684_v43 = vpop.eup %10399 }
 0x3f7   : > { %v19803_v4 = vsel %vm14614_vm9, 4294967295, %v19802_v4  ;;  %vm14625_vm6 = vmpackc.low %vm19805_vm3, %vm14503_vm11  ;;  %vm1880_vm11 = vcmp.lt.s32.totalorder %v1621_v44, %v13580_v53  ;;  %v3128_v56 = vmax.f32 %v3126_v50, %v3127_v62  ;;  %vm19813_vm3 = vcmp.ge.s32.totalorder %v14468_v51, %v13578_v3 }
 0x3f8   : > { %19804 = vst [vmem:[#allocation113_spill] sm:$0xff] %v19803_v4  ;;  %v19807_v18 = vsel %vm14625_vm6, 4294967295, %v19806_v18  ;;  %vm19809_vm10 = vmmov %vm19799_vm0  ;;  %v3122_v58 = vrot.slane %v3121_v52, 2  ;;  %v3434_v8 = vpack.c.bf16 %v3330_v57, %v3322_v10  ;;  %vm19817_vm5 = vcmp.ge.s32.totalorder %v14471_v48, %v13578_v3 }
 0x3f9   : > { %19808 = vst [vmem:[#allocation114_spill] sm:$0xff] %v19807_v18  ;;  %v3220_v60 = vsel %vm19809_vm10, %v14581_v63, 0.0  ;;  %vm14638_vm12 = vmpackc.low %vm14593_vm15, %vm14571_vm7  ;;  %vm19816_vm15 = vnez %v19773_v9  ;;  %v3129_v10 = vrot.slane %v3128_v56, 2  ;;  %vm19820_vm0 = vnez %v19781_v45  ;;  %3842 = vmatmul.mubr.bf16.gmra.mrb[24].mxu0 %v3425_v16 }
 0x3fa   : > { %v19811_v28 = vsel %vm14638_vm12, 4294967295, %v19810_v28  ;;  %vm14650_vm10 = vmand %vm19813_vm3, %vm1862_vm2  ;;  %9157 = vmatpush3.bf16.msk.msra.mxu0 %vm19816_vm15, %v19159_v46  ;;  %v3221_v51 = vrot.slane %v3220_v60, 4  ;;  %vm19821_vm13 = vcmp.ge.s32.totalorder %v1621_v44, %v13578_v3  ;;  %v3123_v6 = vmax.f32 %v3121_v52, %v3122_v58  ;;  %3849 = vmatprep.mubr.bf16.mxu0 %v3434_v8 }
 0x3fb   : > { %19812 = vst [vmem:[#allocation115_spill] sm:$0xff] %v19811_v28  ;;  %vm14665_vm2 = vmand %vm19817_vm5, %vm1863_vm4  ;;  %9158 = vmatprep.subr.msk.bf16.mxu0 %vm19820_vm0, %v19159_v46  ;;  %vm1735_vm4 = vcmp.ge.s32.totalorder %v1606_v54, %v13578_v3  ;;  %vm1865_vm5 = vcmp.lt.s32.totalorder %v1606_v54, %v13580_v53  ;;  %vm19824_vm3 = vcmp.lt.s32.totalorder %v1622_v24, %v13580_v53  ;;  %v1607_v44 = vadd.s32 608, %v11003_v2 }
 0x3fc   : > { %vm14678_vm15 = vmand %vm19821_vm13, %vm1880_vm11  ;;  %vm19825_vm7 = vcmp.ge.s32.totalorder %v1622_v24, %v13578_v3  ;;  %v1608_v57 = vadd.s32 616, %v11003_v2  ;;  %v3130_v45 = vmax.f32 %v3128_v56, %v3129_v10  ;;  %v3321_v9 = vmul.f32 %v14025_v25, %v14456_v40 }
 0x3fd   : > { %vm14690_vm0 = vmand %vm19825_vm7, %vm19824_vm3  ;;  %v3329_v52 = vmul.f32 %v14031_v13, %v14456_v40  ;;  %vm19828_vm11 = vcmp.lt.s32.totalorder %v1605_v59, %v13580_v53  ;;  %vm19829_vm7 = vcmp.ge.s32.totalorder %v1605_v59, %v13578_v3  ;;  %v3124_v58 = vrot.slane %v3123_v6, 1 }
 0x3fe   : > { %vm14705_vm3 = vmand %vm19829_vm7, %vm19828_vm11  ;;  %v3338_v56 = vmul.f32 %v14037_v0, %v14475_v36  ;;  %v3346_v16 = vmul.f32 %v14045_v17, %v14475_v36  ;;  %9159 = vmatpush3.bf16.msk.msra.mxu0 %vm14552_vm14, %v19159_v46  ;;  %vm1882_vm7 = vcmp.lt.s32.totalorder %v1623_v30, %v13580_v53  ;;  %vm19834_vm13 = vcmask 1042432  }
 0x3ff   : > { %vm14721_vm11 = vmand %vm1735_vm4, %vm1865_vm5  ;;  %v3213_v8 = vsel %vm19834_vm13, %v14684_v43, 0.0  ;;  %v3222_v10 = vadd.f32 %v3221_v51, %v3220_v60  ;;  %v3131_v0 = vrot.slane %v3130_v45, 1  ;;  %9160 = vmatprep.subr.msk.bf16.mxu0 %vm14614_vm9, %v19159_v46  ;;  %v19835_v54 = vmov 0 }
 0x400   : > { %vm14735_vm14 = vmpackc.low %vm14665_vm2, %vm14650_vm10  ;;  %v1625_v17 = vadd.s32 752, %v11003_v2  ;;  %v3125_v13 = vmax.f32 %v3123_v6, %v3124_v58  ;;  %v19838_v60 = vmov 0  ;;  %vm1883_vm5 = vcmp.lt.s32.totalorder %v1624_v29, %v13580_v53 }
 0x401   : > { %v19836_v54 = vsel %vm14735_vm14, 4294967295, %v19835_v54  ;;  %vm14744_vm4 = vmpackc.low %vm14690_vm0, %vm14678_vm15  ;;  %v1626_v15 = vadd.s32 760, %v11003_v2  ;;  %v3132_v62 = vmax.f32 %v3130_v45, %v3131_v0  ;;  %v3433_v51 = vpack.c.bf16 %v3329_v52, %v3321_v9 }
 0x402   : > { %19837 = vst [vmem:[#allocation116_spill] sm:$0xff] %v19836_v54  ;;  %v19839_v60 = vsel %vm14744_vm4, 4294967295, %v19838_v60  ;;  %vm14755_vm10 = vmpackc.low %vm14721_vm11, %vm14705_vm3  ;;  %v19841_v48 = vmov 0  ;;  %vm1866_vm15 = vcmp.lt.s32.totalorder %v1607_v44, %v13580_v53  ;;  %v3214_v6 = vrot.slane %v3213_v8, 4  ;;  %9161 = vmatpush3.bf16.msk.msra.mxu0 %vm14625_vm6, %v19159_v46  ;;  %v19914_v54 = vld [vmem:[#allocation30_spill] sm:$0xff] }
 0x403   : > { %19840 = vst [vmem:[#allocation117_spill] sm:$0xff] %v19839_v60  ;;  %v19842_v48 = vsel %vm14755_vm10, 4294967295, %v19841_v48  ;;  %v3163_v50 = vsub.f32 %v14546_v23, %v3125_v13  ;;  %v3442_v58 = vpack.c.bf16 %v3346_v16, %v3338_v56  ;;  %vm19844_vm2 = vcmp.ge.s32.totalorder %v1623_v30, %v13578_v3  ;;  %9162 = vmatprep.subr.msk.bf16.mxu0 %vm14638_vm12, %v19159_v46  ;;  %v19932_v60 = vld [vmem:[#allocation93_spill] sm:$0xff] }
 0x404   : > { %19843 = vst [vmem:[#allocation118_spill] sm:$0xff] %v19842_v48  ;;  %vm14769_vm3 = vmand %vm19844_vm2, %vm1882_vm7  ;;  %v3223_v45 = vrot.slane %v3222_v10, 2  ;;  %v3164_v9 = vsub.f32 %v14565_v35, %v3132_v62  ;;  %vm19847_vm0 = vcmp.ge.s32.totalorder %v1624_v29, %v13578_v3  ;;  %vm1754_vm7 = vcmp.ge.s32.totalorder %v1625_v17, %v13578_v3  ;;  %3850 = vmatmul.mubr.bf16.gmra.mrb[28].mxu0 %v3433_v51 }
 0x405   : > { %vm14782_vm13 = vmand %vm19847_vm0, %vm1883_vm5  ;;  %vm1884_vm2 = vcmp.lt.s32.totalorder %v1625_v17, %v13580_v53  ;;  %v3173_v23 = vmul.f32 1.442695, %v3163_v50  ;;  %vm19850_vm11 = vcmp.ge.s32.totalorder %v1607_v44, %v13578_v3  ;;  %vm1885_vm9 = vcmp.lt.s32.totalorder %v1626_v15, %v13580_v53  ;;  %3857 = vmatprep.mubr.bf16.mxu0 %v3442_v58  ;;  %v19933_v17 = vld [vmem:[#allocation94_spill] sm:$0xff] }
 0x406   : > { %vm14790_vm6 = vmand %vm19850_vm11, %vm1866_vm15  ;;  %v1609_v30 = vadd.s32 624, %v11003_v2  ;;  %vm19853_vm5 = vcmp.eq.s32.totalorder %v11003_v2, %v12190_v22  ;;  %vm19855_vm0 = vcmp.eq.s32.totalorder %v19285_v5, %v12190_v22  ;;  %v3175_v52 = vmul.f32 1.442695, %v3164_v9  ;;  %9163 = vmatpush3.bf16.msk.msra.mxu0 %vm14735_vm14, %v19159_v46 }
 0x407   : > { %v14801_v29 = vsel %vm19853_vm5, 1.0, %v19629_v38  ;;  %v14807_v44 = vsel %vm19855_vm0, 1.0, %v19629_v38  ;;  %vm19857_vm15 = vcmp.lt.s32.totalorder %v1608_v57, %v13580_v53  ;;  %vm19858_vm11 = vcmp.ge.s32.totalorder %v1608_v57, %v13578_v3  ;;  %9164 = vmatprep.subr.msk.bf16.mxu0 %vm14744_vm4, %v19159_v46 }
 0x408   : > { %19854 = vst [vmem:[#allocation119_spill] sm:$0xff] %v14801_v29  ;;  %19856 = vst [vmem:[#allocation120_spill] sm:$0xff] %v14807_v44  ;;  %v1610_v56 = vadd.s32 632, %v11003_v2  ;;  %vm19861_vm5 = vcmp.eq.s32.totalorder %v11003_v2, %v12285_v31  ;;  %vm19863_vm0 = vcmp.eq.s32.totalorder %v19285_v5, %v12285_v31  ;;  %v3215_v62 = vadd.f32 %v3214_v6, %v3213_v8 }
 0x409   : > { %vm14813_vm12 = vmand %vm19858_vm11, %vm19857_vm15  ;;  %v14822_v16 = vsel %vm19861_vm5, 1.0, %v19629_v38  ;;  %v14828_v59 = vsel %vm19863_vm0, 1.0, %v19629_v38  ;;  %10401 = vpow2.f32 %v3173_v23  ;;  %v3224_v51 = vadd.f32 %v3223_v45, %v3222_v10 }
 0x40a   : > { %19862 = vst [vmem:[#allocation121_spill] sm:$0xff] %v14822_v16  ;;  %19864 = vst [vmem:[#allocation122_spill] sm:$0xff] %v14828_v59  ;;  %10403 = vpow2.f32 %v3175_v52  ;;  %v3337_v50 = vmul.f32 %v14051_v19, %v14456_v40  ;;  %v3345_v8 = vmul.f32 %v14059_v49, %v14456_v40  ;;  %vm19867_vm11 = vcmp.ge.s32.totalorder %v1626_v15, %v13578_v3 }
 0x40b   : > { %vm14837_vm15 = vmand %vm1754_vm7, %vm1884_vm2  ;;  %v3354_v10 = vmul.f32 %v14065_v14, %v14475_v36  ;;  %v3362_v6 = vmul.f32 %v14071_v32, %v14475_v36  ;;  %v19870_v58 = vmov 0  ;;  %vm19873_vm0 = vcmp.eq.s32.totalorder %v19322_v11, %v12190_v22  ;;  %9165 = vmatpush3.bf16.msk.msra.mxu0 %vm14755_vm10, %v19159_v46 }
 0x40c   : > { %vm14852_vm7 = vmand %vm19867_vm11, %vm1885_vm9  ;;  %vm1868_vm9 = vcmp.lt.s32.totalorder %v1609_v30, %v13580_v53  ;;  %v14874_v15 = vsel %vm19873_vm0, 1.0, %v19629_v38  ;;  %vm19875_vm11 = vcmp.eq.s32.totalorder %v19323_v39, %v12190_v22  ;;  %v19877_v45 = vmov 0 }
 0x40d   : > { %vm14864_vm2 = vmpackc.low %vm14782_vm13, %vm14769_vm3  ;;  %19874 = vst [vmem:[#allocation124_spill] sm:$0xff] %v14874_v15  ;;  %v14880_v0 = vsel %vm19875_vm11, 1.0, %v19629_v38  ;;  %vm1739_vm3 = vcmp.ge.s32.totalorder %v1610_v56, %v13578_v3  ;;  %vm1869_vm5 = vcmp.lt.s32.totalorder %v1610_v56, %v13580_v53  ;;  %vm19880_vm0 = vcmp.eq.s32.totalorder %v19322_v11, %v12285_v31 }
 0x40e   : > { %v19871_v58 = vsel %vm14864_vm2, 4294967295, %v19870_v58  ;;  %19876 = vst [vmem:[#allocation125_spill] sm:$0xff] %v14880_v0  ;;  %vm14886_vm13 = vmpackc.low %vm14813_vm12, %vm14790_vm6  ;;  %v14896_v9 = vsel %vm19880_vm0, 1.0, %v19629_v38  ;;  %vm19882_vm11 = vcmp.eq.s32.totalorder %v19323_v39, %v12285_v31  ;;  %vm19884_vm12 = vcmp.eq.s32.totalorder %v11121_v33, %v12190_v22  ;;  %9166 = vmatprep.subr.msk.bf16.mxu0 %vm14864_vm2, %v19159_v46 }
 0x40f   : > { %19872 = vst [vmem:[#allocation123_spill] sm:$0xff] %v19871_v58  ;;  %v19878_v45 = vsel %vm14886_vm13, 4294967295, %v19877_v45  ;;  %19881 = vst [vmem:[#allocation127_spill] sm:$0xff] %v14896_v9  ;;  %v14902_v13 = vsel %vm19882_vm11, 1.0, %v19629_v38  ;;  %v14908_v23 = vsel %vm19884_vm12, 1.0, %v19629_v38  ;;  %v3216_v35 = vrot.slane %v3215_v62, 2  ;;  %9167 = vmatpush3.bf16.msk.msra.mxu0 %vm14886_vm13, %v19159_v46 }
 0x410   : > { %19879 = vst [vmem:[#allocation126_spill] sm:$0xff] %v19878_v45  ;;  %19883 = vst [vmem:[#allocation128_spill] sm:$0xff] %v14902_v13  ;;  %v19886_v52 = vmov 0  ;;  %vm19889_vm0 = vcmp.eq.s32.totalorder %v11128_v34, %v12190_v22  ;;  %vm19891_vm11 = vcmp.eq.s32.totalorder %v11121_v33, %v12285_v31  ;;  %v3225_v32 = vrot.slane %v3224_v51, 1 }
 0x411   : > { %19885 = vst [vmem:[#allocation129_spill] sm:$0xff] %v14908_v23  ;;  %vm14917_vm6 = vmpackc.low %vm14852_vm7, %vm14837_vm15  ;;  %v14925_v24 = vsel %vm19889_vm0, 1.0, %v19629_v38  ;;  %v14931_v48 = vsel %vm19891_vm11, 1.0, %v19629_v38  ;;  %v3441_v57 = vpack.c.bf16 %v3345_v8, %v3337_v50  ;;  %vm19893_vm15 = vcmp.ge.s32.totalorder %v1609_v30, %v13578_v3  ;;  %v19900_v8 = vld [vmem:[#allocation36_spill] sm:$0xff] }
 0x412   : > { %v19887_v52 = vsel %vm14917_vm6, 4294967295, %v19886_v52  ;;  %19890 = vst [vmem:[#allocation131_spill] sm:$0xff] %v14925_v24  ;;  %19892 = vst [vmem:[#allocation132_spill] sm:$0xff] %v14931_v48  ;;  %vm19896_vm12 = vcmp.eq.s32.totalorder %v11128_v34, %v12285_v31  ;;  %vm19898_vm0 = vcmp.eq.s32.totalorder %v11175_v41, %v12190_v22  ;;  %vm19901_vm11 = vcmp.eq.s32.totalorder %v19900_v8, %v12190_v22  ;;  %v19938_v48 = vld [vmem:[#allocation33_spill] sm:$0xff] }
 0x413   : > { %19888 = vst [vmem:[#allocation130_spill] sm:$0xff] %v19887_v52  ;;  %vm14940_vm7 = vmand %vm19893_vm15, %vm1868_vm9  ;;  %v14948_v14 = vsel %vm19896_vm12, 1.0, %v19629_v38  ;;  %v14954_v50 = vsel %vm19898_vm0, 1.0, %v19629_v38  ;;  %v14960_v30 = vsel %vm19901_vm11, 1.0, %v19629_v38  ;;  %v3450_v58 = vpack.c.bf16 %v3362_v6, %v3354_v10  ;;  %v19909_v10 = vld [vmem:[#allocation29_spill] sm:$0xff]  ;;  %3858 = vmatmul.mubr.bf16.gmra.mrb[32].mxu0 %v3441_v57  ;;  %9168 = vmatprep.subr.msk.bf16.mxu0 %vm14917_vm6, %v19159_v46 }
 0x414   : > { %19897 = vst [vmem:[#allocation133_spill] sm:$0xff] %v14948_v14  ;;  %19899 = vst [vmem:[#allocation134_spill] sm:$0xff] %v14954_v50  ;;  %vm19905_vm15 = vcmp.eq.s32.totalorder %v11175_v41, %v12285_v31  ;;  %vm19907_vm12 = vcmp.eq.s32.totalorder %v19900_v8, %v12285_v31  ;;  %vm19910_vm0 = vcmp.eq.s32.totalorder %v11003_v2, %v19909_v10  ;;  %v15088_v13 = vadd.s32 920, %v11003_v2 }
 0x415   : > { %19902 = vst [vmem:[#allocation135_spill] sm:$0xff] %v14960_v30  ;;  %vm14966_vm9 = vmand %vm1739_vm3, %vm1869_vm5  ;;  %v14974_v49 = vsel %vm19905_vm15, 1.0, %v19629_v38  ;;  %v14980_v19 = vsel %vm19907_vm12, 1.0, %v19629_v38  ;;  %v14986_v56 = vsel %vm19910_vm0, 1.0, %v19629_v38  ;;  %vm19912_vm5 = vcmp.eq.s32.totalorder %v19285_v5, %v19909_v10  ;;  %3865 = vmatprep.mubr.bf16.mxu0 %v3450_v58  ;;  %v15036_v58 = vpop.eup %10401 }
 0x416   : > { %19906 = vst [vmem:[#allocation136_spill] sm:$0xff] %v14974_v49  ;;  %19908 = vst [vmem:[#allocation137_spill] sm:$0xff] %v14980_v19  ;;  %v14992_v6 = vsel %vm19912_vm5, 1.0, %v19629_v38  ;;  %vm19915_vm3 = vcmp.eq.s32.totalorder %v11003_v2, %v19914_v54  ;;  %vm19917_vm11 = vcmp.eq.s32.totalorder %v19285_v5, %v19914_v54  ;;  %vm19919_vm15 = vcmp.eq.s32.totalorder %v19322_v11, %v19909_v10  ;;  %v3097_v19 = vpop.f32.mrb[20].mxu1 }
 0x417   : > { %19911 = vst [vmem:[#allocation29_spill] sm:$0xff] %v14986_v56  ;;  %19913 = vst [vmem:[#allocation138_spill] sm:$0xff] %v14992_v6  ;;  %v14998_v28 = vsel %vm19915_vm3, 1.0, %v19629_v38  ;;  %v15004_v18 = vsel %vm19917_vm11, 1.0, %v19629_v38  ;;  %v15010_v4 = vsel %vm19919_vm15, 1.0, %v19629_v38  ;;  %v3217_v25 = vadd.f32 %v3216_v35, %v3215_v62  ;;  %v3099_v50 = vpop.f32.mrb[21].mxu1 }
 0x418   : > { %19916 = vst [vmem:[#allocation30_spill] sm:$0xff] %v14998_v28  ;;  %19918 = vst [vmem:[#allocation139_spill] sm:$0xff] %v15004_v18  ;;  %vm19921_vm12 = vcmp.eq.s32.totalorder %v19323_v39, %v19909_v10  ;;  %v3226_v7 = vadd.f32 %v3225_v32, %v3224_v51  ;;  %v3353_v1 = vmul.f32 %v19923_v37, %v14456_v40  ;;  %v19925_v62 = vmov 0  ;;  %v3101_v23 = vpop.f32.mrb[22].mxu1 }
 0x419   : > { %19920 = vst [vmem:[#allocation140_spill] sm:$0xff] %v15010_v4  ;;  %v15019_v57 = vsel %vm19921_vm12, 1.0, %v19629_v38  ;;  %v3361_v5 = vmul.f32 %v19924_v12, %v14456_v40  ;;  %vm15032_vm0 = vmpackc.low %vm14966_vm9, %vm14940_vm7  ;;  %vm19928_vm5 = vcmp.eq.s32.totalorder %v19322_v11, %v19914_v54  ;;  %vm19930_vm3 = vcmp.eq.s32.totalorder %v19323_v39, %v19914_v54  ;;  %v15054_v12 = vpop.eup %10403  ;;  %v3102_v9 = vpop.f32.mrb[23].mxu1 }
 0x41a   : > { %19922 = vst [vmem:[#allocation141_spill] sm:$0xff] %v15019_v57  ;;  %v19926_v62 = vsel %vm15032_vm0, 4294967295, %v19925_v62  ;;  %v15042_v32 = vsel %vm19928_vm5, 1.0, %v19629_v38  ;;  %v15048_v51 = vsel %vm19930_vm3, 1.0, %v19629_v38  ;;  %v3370_v35 = vmul.f32 %v19932_v60, %v14475_v36  ;;  %9169 = vmatpush3.bf16.msk.msra.mxu0 %vm15032_vm0, %v19159_v46 }
 0x41b   : > { %19927 = vst [vmem:[#allocation142_spill] sm:$0xff] %v19926_v62  ;;  %19929 = vst [vmem:[#allocation143_spill] sm:$0xff] %v15042_v32  ;;  %v3378_v52 = vmul.f32 %v19933_v17, %v14475_v36  ;;  %vm19934_vm7 = vcmp.eq.s32.totalorder %v11121_v33, %v19909_v10  ;;  %vm19936_vm9 = vcmask 1042432   ;;  %v15065_v39 = vadd.s32 768, %v11003_v2 }
 0x41c   : > { %19931 = vst [vmem:[#allocation144_spill] sm:$0xff] %v15048_v51  ;;  %v15060_v37 = vsel %vm19934_vm7, 1.0, %v19629_v38  ;;  %v3199_v45 = vsel %vm19936_vm9, %v15036_v58, 0.0  ;;  %v15068_v11 = vadd.s32 776, %v11003_v2  ;;  %v3218_v60 = vrot.slane %v3217_v25, 1  ;;  %vm19937_vm11 = vmmov %vm19936_vm9 }
 0x41d   : > { %19935 = vst [vmem:[#allocation145_spill] sm:$0xff] %v15060_v37  ;;  %v3200_v31 = vrot.slane %v3199_v45, 4  ;;  %v3206_v17 = vsel %vm19937_vm11, %v15054_v12, 0.0  ;;  %v15076_v49 = vadd.s32 912, %v11003_v2  ;;  %10405 = vrcp.f32 %v3226_v7  ;;  %vm19940_vm12 = vmmov %vm19936_vm9  ;;  %v19944_v37 = vld [vmem:[#allocation97_spill] sm:$0xff] }
 0x41e   : > { %v3207_v22 = vrot.slane %v3206_v17, 4  ;;  %v15079_v30 = vadd.f32 %v3097_v19, %v13898_v47  ;;  %v3449_v14 = vpack.c.bf16 %v3361_v5, %v3353_v1  ;;  %vm19939_vm15 = vnez %v19938_v48  ;;  %vm19941_vm5 = vmmov %vm19936_vm9 }
 0x41f   : > { %9282 = vmatprep.subr.msk.bf16.mxu0 %vm19939_vm15, %v19159_v46  ;;  %v3201_v8 = vadd.f32 %v3200_v31, %v3199_v45  ;;  %v15085_v24 = vadd.f32 %v3099_v50, %v13898_v47  ;;  %v3458_v62 = vpack.c.bf16 %v3378_v52, %v3370_v35  ;;  %v15093_v5 = vadd.s32 784, %v11003_v2  ;;  %v19942_v50 = vld [vmem:[#allocation95_spill] sm:$0xff] }
 0x420   : > { %v3208_v7 = vadd.f32 %v3207_v22, %v3206_v17  ;;  %v3147_v19 = vsel %vm19940_vm12, %v15079_v30, -inf  ;;  %3866 = vmatmul.mubr.bf16.gmra.mrb[36].mxu0 %v3449_v14  ;;  %v15096_v1 = vadd.s32 792, %v11003_v2  ;;  %v3219_v31 = vadd.f32 %v3218_v60, %v3217_v25  ;;  %v19943_v14 = vld [vmem:[#allocation96_spill] sm:$0xff]  ;;  %v19945_v25 = vld [vmem:[#allocation98_spill] sm:$0xff] }
 0x421   : > { %v3202_v47 = vrot.slane %v3201_v8, 2  ;;  %v3148_v45 = vrot.slane %v3147_v19, 4  ;;  %v3154_v23 = vsel %vm19941_vm5, %v15085_v24, -inf  ;;  %3873 = vmatprep.mubr.bf16.mxu0 %v3458_v62  ;;  %v3369_v35 = vmul.f32 %v19942_v50, %v14456_v40 }
 0x422   : > { %v3209_v52 = vrot.slane %v3208_v7, 2  ;;  %v3155_v22 = vrot.slane %v3154_v23, 4  ;;  %v3377_v9 = vmul.f32 %v19943_v14, %v14456_v40  ;;  %v3386_v51 = vmul.f32 %v19944_v37, %v14475_v36 }
 0x423   : > { %v3203_v17 = vadd.f32 %v3202_v47, %v3201_v8  ;;  %v3149_v48 = vmax.f32 %v3147_v19, %v3148_v45  ;;  %v3394_v60 = vmul.f32 %v19945_v25, %v14475_v36  ;;  %10407 = vrcp.f32 %v3219_v31 }
 0x424   : > { %v3210_v32 = vadd.f32 %v3209_v52, %v3208_v7  ;;  %v3156_v46 = vmax.f32 %v3154_v23, %v3155_v22  ;;  %v3457_v47 = vpack.c.bf16 %v3377_v9, %v3369_v35  ;;  %v15129_v35 = vadd.s32 928, %v11003_v2 }
 0x425   : > { %v3204_v62 = vrot.slane %v3203_v17, 1  ;;  %v3150_v50 = vrot.slane %v3149_v48, 2  ;;  %v3466_v31 = vpack.c.bf16 %v3394_v60, %v3386_v51  ;;  %v3393_v9 = vmul.f32 %v14300_v21, %v14456_v40 }
 0x426   : > { %v3211_v8 = vrot.slane %v3210_v32, 1  ;;  %v3157_v19 = vrot.slane %v3156_v46, 2  ;;  %vm19946_vm9 = vcmp.lt.s32.totalorder %v15065_v39, %v13580_v53  ;;  %vm19947_vm5 = vcmp.ge.s32.totalorder %v15065_v39, %v13578_v3 }
 0x427   : > { %v3205_v7 = vadd.f32 %v3204_v62, %v3203_v17  ;;  %v3151_v45 = vmax.f32 %v3149_v48, %v3150_v50  ;;  %v10406_v23 = vpop.eup %10405  ;;  %v15139_v48 = vadd.s32 800, %v11003_v2  ;;  %v3385_v50 = vmul.f32 %v14281_v26, %v14456_v40  ;;  %vm15186_vm12 = vmand %vm19947_vm5, %vm19946_vm9 }
 0x428   : > { %v3212_v52 = vadd.f32 %v3211_v8, %v3210_v32  ;;  %v3158_v22 = vmax.f32 %v3156_v46, %v3157_v19  ;;  %3874 = vmatmul.mubr.bf16.gmra.mrb[40].mxu0 %v3457_v47  ;;  %v15136_v46 = vadd.s32 936, %v11003_v2  ;;  %v15142_v32 = vadd.s32 808, %v11003_v2 }
 0x429   : > { %10409 = vrcp.f32 %v3205_v7  ;;  %3881 = vmatprep.mubr.bf16.mxu0 %v3466_v31  ;;  %v15149_v17 = vmul.f32 %v10406_v23, %v14581_v63  ;;  %v3152_v60 = vrot.slane %v3151_v45, 1  ;;  %v3402_v62 = vmul.f32 %v14306_v27, %v14475_v36 }
 0x42a   : > { %10411 = vrcp.f32 %v3212_v52  ;;  %v3159_v51 = vrot.slane %v3158_v22, 1  ;;  %v3410_v8 = vmul.f32 %v14363_v42, %v14475_v36  ;;  %v15158_v47 = vadd.s32 944, %v11003_v2 }
 0x42b   : > { %v15161_v7 = vadd.s32 952, %v11003_v2  ;;  %v3465_v63 = vpack.c.bf16 %v3393_v9, %v3385_v50  ;;  %v15178_v23 = vrot.slane %v15149_v17, %v19766_v55  ;;  %v3153_v52 = vmax.f32 %v3151_v45, %v3152_v60 }
 0x42c   : > { %v3160_v19 = vmax.f32 %v3158_v22, %v3159_v51  ;;  %v3474_v22 = vpack.c.bf16 %v3410_v8, %v3402_v62  ;;  %v15191_v51 = vadd.s32 816, %v11003_v2  ;;  %vm19950_vm3 = vcmp.lt.s32.totalorder %v15068_v11, %v13580_v53 }
 0x42d   : > { %v10408_v31 = vpop.eup %10407  ;;  %vm19951_vm7 = vcmp.ge.s32.totalorder %v15068_v11, %v13578_v3  ;;  %v15208_v39 = vadd.s32 824, %v11003_v2  ;;  %vm19954_vm15 = vcmp.lt.s32.totalorder %v15076_v49, %v13580_v53  ;;  %vm19955_vm0 = vcmp.ge.s32.totalorder %v15076_v49, %v13578_v3 }
 0x42e   : > { %v3168_v36 = vsub.f32 %v15085_v24, %v3160_v19  ;;  %vm15199_vm11 = vmand %vm19951_vm7, %vm19950_vm3  ;;  %v15225_v9 = vadd.s32 960, %v11003_v2  ;;  %v15228_v60 = vadd.s32 968, %v11003_v2  ;;  %v15231_v62 = vmul.f32 %v10408_v31, %v14684_v43 }
 0x42f   : > { %vm15216_vm3 = vmand %vm19955_vm0, %vm19954_vm15  ;;  %v3401_v49 = vmul.f32 %v14369_v20, %v14456_v40  ;;  %v3409_v8 = vmul.f32 %v14380_v61, %v14456_v40  ;;  %vm19959_vm0 = vcmp.lt.s32.totalorder %v15088_v13, %v13580_v53  ;;  %vm19960_vm15 = vcmp.ge.s32.totalorder %v15088_v13, %v13578_v3 }
 0x430   : > { %v3183_v50 = vmul.f32 1.442695, %v3168_v36  ;;  %3882 = vmatmul.mubr.bf16.gmra.mrb[44].mxu0 %v3465_v63  ;;  %19958 = vst [vmem:[#allocation98_spill] sm:$0xff] %v15231_v62  ;;  %vm15243_vm7 = vmand %vm19960_vm15, %vm19959_vm0  ;;  %v3167_v36 = vsub.f32 %v15079_v30, %v3153_v52  ;;  %v3294_v63 = vmul.f32 %v14801_v29, %v15178_v23  ;;  %v3302_v40 = vmul.f32 %v14807_v44, %v15178_v23 }
 0x431   : > { %3889 = vmatprep.mubr.bf16.mxu0 %v3474_v22  ;;  %vm19963_vm9 = vcmp.lt.s32.totalorder %v15093_v5, %v13580_v53  ;;  %vm19964_vm0 = vcmp.ge.s32.totalorder %v15093_v5, %v13578_v3  ;;  %vm15273_vm6 = vmpackc.low %vm15199_vm11, %vm15186_vm12  ;;  %v19968_v52 = vmov 0  ;;  %v19975_v22 = vmov 0 }
 0x432   : > { %vm15260_vm15 = vmand %vm19964_vm0, %vm19963_vm9  ;;  %10413 = vpow2.f32 %v3183_v50  ;;  %v19969_v52 = vsel %vm15273_vm6, 4294967295, %v19968_v52  ;;  %vm19971_vm9 = vcmp.lt.s32.totalorder %v15096_v1, %v13580_v53  ;;  %vm19972_vm0 = vcmp.ge.s32.totalorder %v15096_v1, %v13578_v3 }
 0x433   : > { %v10410_v43 = vpop.eup %10409  ;;  %19970 = vst [vmem:[#allocation147_spill] sm:$0xff] %v19969_v52  ;;  %vm15283_vm5 = vmand %vm19972_vm0, %vm19971_vm9  ;;  %vm19978_vm12 = vcmp.lt.s32.totalorder %v15129_v35, %v13580_v53  ;;  %vm19979_vm9 = vcmp.ge.s32.totalorder %v15129_v35, %v13578_v3  ;;  %v3473_v24 = vpack.c.bf16 %v3409_v8, %v3401_v49  ;;  %v3181_v11 = vmul.f32 1.442695, %v3167_v36  ;;  %v20060_v52 = vld [vmem:[#allocation131_spill] sm:$0xff] }
 0x434   : > { %v10412_v30 = vpop.eup %10411  ;;  %v15267_v31 = vmul.f32 %v10410_v43, %v15036_v58  ;;  %vm15298_vm11 = vmpackc.low %vm15243_vm7, %vm15216_vm3  ;;  %vm19982_vm7 = vcmp.lt.s32.totalorder %v15136_v46, %v13580_v53  ;;  %v3422_v19 = vpack.c.bf16 %v3302_v40, %v3294_v63  ;;  %vm19986_vm2 = vcmp.lt.s32.totalorder %v15139_v48, %v13580_v53 }
 0x435   : > { %v15292_v58 = vmul.f32 %v10412_v30, %v15054_v12  ;;  %v19976_v22 = vsel %vm15298_vm11, 4294967295, %v19975_v22  ;;  %vm15308_vm0 = vmand %vm19979_vm9, %vm19978_vm12  ;;  %v15320_v12 = vrot.slane %v15231_v62, %v19766_v55  ;;  %vm19983_vm12 = vcmp.ge.s32.totalorder %v15136_v46, %v13578_v3 }
 0x436   : > { %19967 = vst [vmem:[#allocation146_spill] sm:$0xff] %v15267_v31  ;;  %19977 = vst [vmem:[#allocation148_spill] sm:$0xff] %v19976_v22  ;;  %v15324_v35 = vrot.slane %v15267_v31, %v19766_v55  ;;  %vm19987_vm13 = vcmp.ge.s32.totalorder %v15139_v48, %v13578_v3  ;;  %v19990_v48 = vmov 0  ;;  %v1635_v36 = vadd.s32 832, %v11003_v2  ;;  %v20133_v31 = vld [vmem:[#allocation56_spill] sm:$0xff] }
 0x437   : > { %vm15332_vm9 = vmand %vm19983_vm12, %vm19982_vm7  ;;  %v15340_v45 = vrot.slane %v15292_v58, %v19766_v55  ;;  %v15378_v63 = vadd.s32 840, %v11003_v2  ;;  %v19997_v5 = vmov 0  ;;  %v3301_v1 = vmul.f32 %v14828_v59, %v15320_v12 }
 0x438   : > { %vm15348_vm10 = vmand %vm19987_vm13, %vm19986_vm2  ;;  %3890 = vmatmul.mubr.bf16.gmra.mrb[48].mxu0 %v3473_v24  ;;  %v3291_v49 = vmul.f32 %v14998_v28, %v15324_v35  ;;  %v3299_v8 = vmul.f32 %v15004_v18, %v15324_v35  ;;  %vm19993_vm2 = vcmp.lt.s32.totalorder %v15142_v32, %v13580_v53  ;;  %vm19994_vm13 = vcmp.ge.s32.totalorder %v15142_v32, %v13578_v3  ;;  %v20070_v28 = vld [vmem:[#allocation37_spill] sm:$0xff] }
 0x439   : > { %vm15362_vm12 = vmpackc.low %vm15283_vm5, %vm15260_vm15  ;;  %4027 = vmatprep.mubr.bf16.mxu0 %v3422_v19  ;;  %v3292_v40 = vmul.f32 %v14986_v56, %v15340_v45  ;;  %v3300_v13 = vmul.f32 %v14992_v6, %v15340_v45  ;;  %v3308_v30 = vmul.f32 %v15010_v4, %v15340_v45  ;;  %v3316_v32 = vmul.f32 %v15019_v57, %v15340_v45 }
 0x43a   : > { %v19991_v48 = vsel %vm15362_vm12, 4294967295, %v19990_v48  ;;  %vm15372_vm7 = vmand %vm19994_vm13, %vm19993_vm2  ;;  %vm20000_vm15 = vcmp.lt.s32.totalorder %v15158_v47, %v13580_v53  ;;  %vm20001_vm2 = vcmp.ge.s32.totalorder %v15158_v47, %v13578_v3  ;;  %v3293_v19 = vmul.f32 %v14822_v16, %v15320_v12 }
 0x43b   : > { %19992 = vst [vmem:[#allocation149_spill] sm:$0xff] %v19991_v48  ;;  %vm15392_vm5 = vmpackc.low %vm15332_vm9, %vm15308_vm0  ;;  %vm20004_vm0 = vcmp.lt.s32.totalorder %v15161_v7, %v13580_v53  ;;  %vm20005_vm9 = vcmp.ge.s32.totalorder %v15161_v7, %v13578_v3  ;;  %v1653_v47 = vadd.s32 976, %v11003_v2  ;;  %v15422_v57 = vadd.s32 984, %v11003_v2 }
 0x43c   : > { %v19998_v5 = vsel %vm15392_vm5, 4294967295, %v19997_v5  ;;  %vm15402_vm13 = vmand %vm20001_vm2, %vm20000_vm15  ;;  %10415 = vpow2.f32 %v3181_v11  ;;  %v3420_v16 = vpack.c.bf16 %v3300_v13, %v3292_v40  ;;  %v3310_v59 = vmul.f32 %v14874_v15, %v15178_v23  ;;  %v20046_v15 = vld [vmem:[#allocation34_spill] sm:$0xff] }
 0x43d   : > { %19999 = vst [vmem:[#allocation150_spill] sm:$0xff] %v19998_v5  ;;  %vm15416_vm3 = vmand %vm20005_vm9, %vm20004_vm0  ;;  %v3318_v4 = vmul.f32 %v14880_v0, %v15178_v23  ;;  %vm20008_vm15 = vcmp.lt.s32.totalorder %v15191_v51, %v13580_v53  ;;  %vm20009_vm2 = vcmp.ge.s32.totalorder %v15191_v51, %v13578_v3  ;;  %vm20012_vm9 = vcmp.eq.s32.totalorder %v11128_v34, %v19909_v10 }
 0x43e   : > { %vm15434_vm0 = vmand %vm20009_vm2, %vm20008_vm15  ;;  %v15442_v11 = vsel %vm20012_vm9, 1.0, %v19629_v38  ;;  %vm20014_vm4 = vcmp.eq.s32.totalorder %v11121_v33, %v19914_v54  ;;  %vm20016_vm14 = vcmp.eq.s32.totalorder %v11128_v34, %v19914_v54  ;;  %v3419_v13 = vpack.c.bf16 %v3299_v8, %v3291_v49  ;;  %3930 = vmatprep.mubr.bf16.mxu1 %v3420_v16 }
 0x43f   : > { %20013 = vst [vmem:[#allocation151_spill] sm:$0xff] %v15442_v11  ;;  %v15448_v40 = vsel %vm20014_vm4, 1.0, %v19629_v38  ;;  %v15454_v51 = vsel %vm20016_vm14, 1.0, %v19629_v38  ;;  %vm15460_vm15 = vmpackc.low %vm15372_vm7, %vm15348_vm10  ;;  %v20018_v0 = vmov 0  ;;  %vm20021_vm2 = vcmp.lt.s32.totalorder %v15208_v39, %v13580_v53 }
 0x440   : > { %20015 = vst [vmem:[#allocation152_spill] sm:$0xff] %v15448_v40  ;;  %20017 = vst [vmem:[#allocation153_spill] sm:$0xff] %v15454_v51  ;;  %v20019_v0 = vsel %vm15460_vm15, 4294967295, %v20018_v0  ;;  %vm20022_vm4 = vcmp.ge.s32.totalorder %v15208_v39, %v13578_v3  ;;  %v3428_v49 = vpack.c.bf16 %v3316_v32, %v3308_v30  ;;  %vm20025_vm14 = vcmp.lt.s32.totalorder %v15225_v9, %v13580_v53  ;;  %v15488_v39 = vpop.eup %10413 }
 0x441   : > { %20020 = vst [vmem:[#allocation154_spill] sm:$0xff] %v20019_v0  ;;  %vm15470_vm9 = vmand %vm20022_vm4, %vm20021_vm2  ;;  %vm20026_vm10 = vcmp.ge.s32.totalorder %v15225_v9, %v13578_v3  ;;  %3931 = vmatmul.mubr.bf16.vlgmr.msra.gmra.mrb[24].mxu1 %v3419_v13  ;;  %v3421_v16 = vpack.c.bf16 %v3301_v1, %v3293_v19  ;;  %vm20029_vm1 = vcmp.lt.s32.totalorder %v15228_v60, %v13580_v53  ;;  %v1637_v8 = vadd.s32 848, %v11003_v2  ;;  %v20040_v19 = vld [vmem:[#allocation144_spill] sm:$0xff] }
 0x442   : > { %vm15480_vm7 = vmand %vm20026_vm10, %vm20025_vm14  ;;  %vm20030_vm14 = vcmp.ge.s32.totalorder %v15228_v60, %v13578_v3  ;;  %vm1895_vm8 = vcmp.lt.s32.totalorder %v15378_v63, %v13580_v53  ;;  %vm20033_vm4 = vcmp.eq.s32.totalorder %v11175_v41, %v19909_v10  ;;  %3938 = vmatprep.mubr.bf16.mxu1 %v3428_v49  ;;  %v3430_v30 = vpack.c.bf16 %v3318_v4, %v3310_v59  ;;  %v20039_v4 = vld [vmem:[#allocation143_spill] sm:$0xff]  ;;  %v20045_v49 = vld [vmem:[#allocation145_spill] sm:$0xff] }
 0x443   : > { %vm15496_vm10 = vmand %vm20030_vm14, %vm20029_vm1  ;;  %v15508_v43 = vsel %vm20033_vm4, 1.0, %v19629_v38  ;;  %v20035_v60 = vmov 1.0|1.0   ;;  %v20036_v32 = vmov 0  ;;  %vm1912_vm4 = vcmp.lt.s32.totalorder %v1653_v47, %v13580_v53  ;;  %4028 = vmatmul.mubr.bf16.vlgmr.msra.gmra.mrb[52].mxu0 %v3421_v16 }
 0x444   : > { %20034 = vst [vmem:[#allocation155_spill] sm:$0xff] %v15508_v43  ;;  %9219 = vmatpush3.bf16.msk.msra.mxu1 %vm15273_vm6, %v20035_v60  ;;  %vm15517_vm1 = vmpackc.low %vm15416_vm3, %vm15402_vm13  ;;  %v3307_v59 = vmul.f32 %v20039_v4, %v15324_v35  ;;  %v3315_v1 = vmul.f32 %v20040_v19, %v15324_v35  ;;  %v20041_v24 = vmov 0  ;;  %v1638_v50 = vadd.s32 856, %v11003_v2  ;;  %4035 = vmatprep.mubr.bf16.mxu0 %v3430_v30 }
 0x445   : > { %v20037_v32 = vsel %vm15517_vm1, 4294967295, %v20036_v32  ;;  %9220 = vmatprep.subr.msk.bf16.mxu1 %vm15298_vm11, %v20035_v60  ;;  %vm15535_vm3 = vmpackc.low %vm15470_vm9, %vm15434_vm0  ;;  %vm20044_vm14 = vcmask 1042432   ;;  %v3324_v16 = vmul.f32 %v20045_v49, %v15340_v45  ;;  %v3332_v7 = vmul.f32 %v15442_v11, %v15340_v45  ;;  %v20051_v49 = vld [vmem:[#allocation127_spill] sm:$0xff]  ;;  %v20052_v11 = vld [vmem:[#allocation128_spill] sm:$0xff] }
 0x446   : > { %20038 = vst [vmem:[#allocation156_spill] sm:$0xff] %v20037_v32  ;;  %v20042_v24 = vsel %vm15535_vm3, 4294967295, %v20041_v24  ;;  %v3234_v13 = vsel %vm20044_vm14, %v15488_v39, 0.0  ;;  %vm20047_vm0 = vnez %v20046_v15  ;;  %vm15555_vm9 = vmpackc.low %vm15496_vm10, %vm15480_vm7  ;;  %v20048_v22 = vmov 0  ;;  %v20053_v15 = vld [vmem:[#allocation35_spill] sm:$0xff]  ;;  %v15615_v48 = vpop.eup %10415 }
 0x447   : > { %20043 = vst [vmem:[#allocation157_spill] sm:$0xff] %v20042_v24  ;;  %9283 = vmatpush3.bf16.msk.msra.mxu0 %vm20047_vm0, %v20035_v60  ;;  %v20049_v22 = vsel %vm15555_vm9, 4294967295, %v20048_v22  ;;  %v15560_v30 = vadd.s32 992, %v11003_v2  ;;  %v3309_v19 = vmul.f32 %v20051_v49, %v15320_v12  ;;  %v3317_v4 = vmul.f32 %v20052_v11, %v15320_v12  ;;  %v20059_v49 = vld [vmem:[#allocation129_spill] sm:$0xff] }
 0x448   : > { %20050 = vst [vmem:[#allocation158_spill] sm:$0xff] %v20049_v22  ;;  %vm20054_vm14 = vnez %v20053_v15  ;;  %vm20055_vm13 = vcmp.lt.s32.totalorder %v1635_v36, %v13580_v53  ;;  %vm20056_vm7 = vcmp.ge.s32.totalorder %v1635_v36, %v13578_v3  ;;  %v15579_v9 = vadd.s32 1000, %v11003_v2  ;;  %9221 = vmatpush3.bf16.msk.msra.mxu1 %vm15362_vm12, %v20035_v60  ;;  %v20115_v22 = vld [vmem:[#allocation55_spill] sm:$0xff] }
 0x449   : > { %9284 = vmatprep.subr.msk.bf16.mxu0 %vm20054_vm14, %v20035_v60  ;;  %vm15573_vm10 = vmand %vm20056_vm7, %vm20055_vm13  ;;  %v3326_v11 = vmul.f32 %v20059_v49, %v15178_v23  ;;  %v3334_v15 = vmul.f32 %v20060_v52, %v15178_v23  ;;  %vm20061_vm13 = vcmp.ge.s32.totalorder %v15378_v63, %v13578_v3  ;;  %v15600_v49 = vadd.s32 864, %v11003_v2  ;;  %9222 = vmatprep.subr.msk.bf16.mxu1 %vm15392_vm5, %v20035_v60 }
 0x44a   : > { %vm15594_vm7 = vmand %vm20061_vm13, %vm1895_vm8  ;;  %v3235_v52 = vrot.slane %v3234_v13, 4  ;;  %v3427_v18 = vpack.c.bf16 %v3315_v1, %v3307_v59  ;;  %vm20064_vm12 = vcmp.ge.s32.totalorder %v1653_v47, %v13578_v3  ;;  %v20067_v59 = vld [vmem:[#allocation36_spill] sm:$0xff]  ;;  %v3436_v5 = vpack.c.bf16 %v3332_v7, %v3324_v16 }
 0x44b   : > { %vm15609_vm14 = vmand %vm20064_vm12, %vm1912_vm4  ;;  %vm20068_vm2 = vcmp.eq.s32.totalorder %v20067_v59, %v19909_v10  ;;  %vm20071_vm5 = vnez %v20070_v28  ;;  %vm20072_vm12 = vcmp.lt.s32.totalorder %v15422_v57, %v13580_v53  ;;  %vm20073_vm4 = vcmp.ge.s32.totalorder %v15422_v57, %v13578_v3  ;;  %v20078_v28 = vld [vmem:[#allocation38_spill] sm:$0xff] }
 0x44c   : > { %v15621_v1 = vsel %vm20068_vm2, 1.0, %v19629_v38  ;;  %9285 = vmatpush3.bf16.msk.msra.mxu0 %vm20071_vm5, %v20035_v60  ;;  %vm15632_vm8 = vmand %vm20073_vm4, %vm20072_vm12  ;;  %v1640_v62 = vadd.s32 872, %v11003_v2  ;;  %vm20076_vm2 = vcmp.eq.s32.totalorder %v11175_v41, %v19914_v54  ;;  %3939 = vmatmul.mubr.bf16.gmra.mrb[28].mxu1 %v3427_v18  ;;  %v3429_v7 = vpack.c.bf16 %v3317_v4, %v3309_v19 }
 0x44d   : > { %20069 = vst [vmem:[#allocation36_spill] sm:$0xff] %v15621_v1  ;;  %v15643_v16 = vsel %vm20076_vm2, 1.0, %v19629_v38  ;;  %vm20079_vm5 = vnez %v20078_v28  ;;  %vm20080_vm12 = vcmp.lt.s32.totalorder %v1637_v8, %v13580_v53  ;;  %vm20081_vm4 = vcmp.ge.s32.totalorder %v1637_v8, %v13578_v3  ;;  %3946 = vmatprep.mubr.bf16.mxu1 %v3436_v5  ;;  %9223 = vmatpush3.bf16.msk.msra.mxu1 %vm15460_vm15, %v20035_v60 }
 0x44e   : > { %20077 = vst [vmem:[#allocation159_spill] sm:$0xff] %v15643_v16  ;;  %9286 = vmatprep.subr.msk.bf16.mxu0 %vm20079_vm5, %v20035_v60  ;;  %vm15652_vm0 = vmand %vm20081_vm4, %vm20080_vm12  ;;  %v3438_v18 = vpack.c.bf16 %v3334_v15, %v3326_v11  ;;  %vm20084_vm5 = vcmp.lt.s32.totalorder %v1638_v50, %v13580_v53  ;;  %vm20085_vm11 = vcmp.ge.s32.totalorder %v1638_v50, %v13578_v3  ;;  %v1657_v5 = vadd.s32 1008, %v11003_v2 }
 0x44f   : > { %vm15667_vm12 = vmand %vm20085_vm11, %vm20084_vm5  ;;  %vm1915_vm4 = vcmp.lt.s32.totalorder %v15579_v9, %v13580_v53  ;;  %vm20088_vm2 = vcmask 1042432   ;;  %v3236_v4 = vadd.f32 %v3235_v52, %v3234_v13  ;;  %4036 = vmatmul.mubr.bf16.gmra.mrb[56].mxu0 %v3429_v7  ;;  %v3323_v19 = vmul.f32 %v15448_v40, %v15324_v35  ;;  %9224 = vmatprep.subr.msk.bf16.mxu1 %vm15517_vm1, %v20035_v60  ;;  %v20092_v7 = vld [vmem:[#allocation39_spill] sm:$0xff] }
 0x450   : > { %v3227_v11 = vsel %vm20088_vm2, %v15615_v48, 0.0  ;;  %v3331_v50 = vmul.f32 %v15454_v51, %v15324_v35  ;;  %vm15689_vm11 = vmpackc.low %vm15594_vm7, %vm15573_vm10  ;;  %v20089_v15 = vmov 0  ;;  %4043 = vmatprep.mubr.bf16.mxu0 %v3438_v18  ;;  %v3340_v52 = vmul.f32 %v15508_v43, %v15340_v45  ;;  %v20097_v18 = vld [vmem:[#allocation132_spill] sm:$0xff] }
 0x451   : > { %v20090_v15 = vsel %vm15689_vm11, 4294967295, %v20089_v15  ;;  %v3348_v13 = vmul.f32 %v15621_v1, %v15340_v45  ;;  %vm20093_vm5 = vnez %v20092_v7  ;;  %vm15704_vm2 = vmpackc.low %vm15632_vm8, %vm15609_vm14  ;;  %v20094_v46 = vmov 0  ;;  %v20098_v1 = vld [vmem:[#allocation133_spill] sm:$0xff]  ;;  %v20099_v7 = vld [vmem:[#allocation54_spill] sm:$0xff]  ;;  %9225 = vmatpush3.bf16.msk.msra.mxu1 %vm15535_vm3, %v20035_v60 }
 0x452   : > { %20091 = vst [vmem:[#allocation160_spill] sm:$0xff] %v20090_v15  ;;  %9287 = vmatpush3.bf16.msk.msra.mxu0 %vm20093_vm5, %v20035_v60  ;;  %v20095_v46 = vsel %vm15704_vm2, 4294967295, %v20094_v46  ;;  %v1658_v36 = vadd.s32 1016, %v11003_v2  ;;  %v3325_v43 = vmul.f32 %v20097_v18, %v15320_v12  ;;  %v3333_v32 = vmul.f32 %v20098_v1, %v15320_v12  ;;  %vm15721_vm14 = vmpackc.low %vm15667_vm12, %vm15652_vm0  ;;  %v20104_v1 = vld [vmem:[#allocation134_spill] sm:$0xff]  ;;  %9226 = vmatprep.subr.msk.bf16.mxu1 %vm15555_vm9, %v20035_v60 }
 0x453   : > { %20096 = vst [vmem:[#allocation161_spill] sm:$0xff] %v20095_v46  ;;  %vm20100_vm7 = vnez %v20099_v7  ;;  %v20101_v63 = vmov 0  ;;  %v3228_v47 = vrot.slane %v3227_v11, 4  ;;  %v3342_v18 = vmul.f32 %v20104_v1, %v15178_v23  ;;  %v20105_v7 = vld [vmem:[#allocation135_spill] sm:$0xff]  ;;  %v20153_v46 = vld [vmem:[#allocation57_spill] sm:$0xff] }
 0x454   : > { %9288 = vmatprep.subr.msk.bf16.mxu0 %vm20100_vm7, %v20035_v60  ;;  %v20102_v63 = vsel %vm15721_vm14, 4294967295, %v20101_v63  ;;  %v3350_v51 = vmul.f32 %v20105_v7, %v15178_v23  ;;  %vm20106_vm0 = vcmp.lt.s32.totalorder %v15560_v30, %v13580_v53  ;;  %vm20107_vm12 = vcmp.ge.s32.totalorder %v15560_v30, %v13578_v3  ;;  %v20127_v7 = vld [vmem:[#allocation46_spill] sm:$0xff] }
 0x455   : > { %20103 = vst [vmem:[#allocation162_spill] sm:$0xff] %v20102_v63  ;;  %vm15741_vm13 = vmand %vm20107_vm12, %vm20106_vm0  ;;  %v1641_v8 = vadd.s32 880, %v11003_v2  ;;  %v3237_v1 = vrot.slane %v3236_v4, 2  ;;  %v3435_v40 = vpack.c.bf16 %v3331_v50, %v3323_v19  ;;  %vm20110_vm10 = vcmp.ge.s32.totalorder %v15579_v9, %v13578_v3  ;;  %9227 = vmatpush3.bf16.msk.msra.mxu1 %vm15689_vm11, %v20035_v60 }
 0x456   : > { %vm15755_vm8 = vmand %vm20110_vm10, %vm1915_vm4  ;;  %vm20113_vm3 = vcmp.eq.s32.totalorder %v20067_v59, %v19914_v54  ;;  %v3444_v50 = vpack.c.bf16 %v3348_v13, %v3340_v52  ;;  %vm20116_vm9 = vnez %v20115_v22  ;;  %vm20117_vm4 = vcmp.lt.s32.totalorder %v15600_v49, %v13580_v53  ;;  %v20121_v52 = vld [vmem:[#allocation40_spill] sm:$0xff]  ;;  %v20124_v22 = vld [vmem:[#allocation41_spill] sm:$0xff]  ;;  %9228 = vmatprep.subr.msk.bf16.mxu1 %vm15704_vm2, %v20035_v60 }
 0x457   : > { %v15765_v19 = vsel %vm20113_vm3, 1.0, %v19629_v38  ;;  %9289 = vmatpush3.bf16.msk.msra.mxu0 %vm20116_vm9, %v20035_v60  ;;  %vm20118_vm10 = vcmp.ge.s32.totalorder %v15600_v49, %v13578_v3  ;;  %vm20122_vm7 = vcmp.eq.s32.totalorder %v20121_v52, %v19909_v10  ;;  %vm20125_vm9 = vcmp.eq.s32.totalorder %v20124_v22, %v19909_v10  ;;  %3947 = vmatmul.mubr.bf16.gmra.mrb[32].mxu1 %v3435_v40  ;;  %vm15856_vm2 = vmpackc.low %vm15755_vm8, %vm15741_vm13 }
 0x458   : > { %20114 = vst [vmem:[#allocation163_spill] sm:$0xff] %v15765_v19  ;;  %vm15776_vm0 = vmand %vm20118_vm10, %vm20117_vm4  ;;  %v15786_v13 = vsel %vm20122_vm7, 1.0, %v19629_v38  ;;  %v15792_v24 = vsel %vm20125_vm9, 1.0, %v19629_v38  ;;  %v3437_v49 = vpack.c.bf16 %v3333_v32, %v3325_v43  ;;  %vm20128_vm4 = vnez %v20127_v7  ;;  %3954 = vmatprep.mubr.bf16.mxu1 %v3444_v50  ;;  %v20146_v50 = vld [vmem:[#allocation50_spill] sm:$0xff] }
 0x459   : > { %20123 = vst [vmem:[#allocation40_spill] sm:$0xff] %v15786_v13  ;;  %20126 = vst [vmem:[#allocation41_spill] sm:$0xff] %v15792_v24  ;;  %9290 = vmatprep.subr.msk.bf16.mxu0 %vm20128_vm4, %v20035_v60  ;;  %vm20129_vm10 = vcmp.lt.s32.totalorder %v1640_v62, %v13580_v53  ;;  %vm20130_vm12 = vcmp.ge.s32.totalorder %v1640_v62, %v13578_v3  ;;  %v1642_v28 = vadd.s32 888, %v11003_v2  ;;  %v20155_v57 = vmov 0  ;;  %9229 = vmatpush3.bf16.msk.msra.mxu1 %vm15721_vm14, %v20035_v60 }
 0x45a   : > { %vm15801_vm3 = vmand %vm20130_vm12, %vm20129_vm10  ;;  %vm20134_vm9 = vcmp.eq.s32.totalorder %v20121_v52, %v20133_v31  ;;  %v3229_v43 = vadd.f32 %v3228_v47, %v3227_v11  ;;  %v3446_v32 = vpack.c.bf16 %v3350_v51, %v3342_v18  ;;  %vm20136_vm7 = vcmp.lt.s32.totalorder %v1657_v5, %v13580_v53  ;;  %4044 = vmatmul.mubr.bf16.gmra.mrb[60].mxu0 %v3437_v49  ;;  %v20151_v49 = vld [vmem:[#allocation136_spill] sm:$0xff] }
 0x45b   : > { %v15810_v40 = vsel %vm20134_vm9, 1.0, %v19629_v38  ;;  %vm20137_vm12 = vcmp.ge.s32.totalorder %v1657_v5, %v13578_v3  ;;  %vm20140_vm9 = vcmp.eq.s32.totalorder %v20124_v22, %v20133_v31  ;;  %v3238_v51 = vadd.f32 %v3237_v1, %v3236_v4  ;;  %vm15872_vm13 = vmpackc.low %vm15801_vm3, %vm15776_vm0  ;;  %9230 = vmatprep.subr.msk.bf16.mxu1 %vm15856_vm2, %v20035_v60  ;;  %v20174_v47 = vld [vmem:[#allocation24_spill] sm:$0xff] }
 0x45c   : > { %20135 = vst [vmem:[#allocation46_spill] sm:$0xff] %v15810_v40  ;;  %vm15819_vm10 = vmand %vm20137_vm12, %vm20136_vm7  ;;  %v15828_v11 = vsel %vm20140_vm9, 1.0, %v19629_v38  ;;  %v3339_v18 = vmul.f32 %v15643_v16, %v15324_v35  ;;  %v3347_v5 = vmul.f32 %v15765_v19, %v15324_v35  ;;  %vm20142_vm7 = vcmp.lt.s32.totalorder %v1658_v36, %v13580_v53  ;;  %4051 = vmatprep.mubr.bf16.mxu0 %v3446_v32 }
 0x45d   : > { %20141 = vst [vmem:[#allocation56_spill] sm:$0xff] %v15828_v11  ;;  %vm20143_vm12 = vcmp.ge.s32.totalorder %v1658_v36, %v13578_v3  ;;  %v3356_v1 = vmul.f32 %v15786_v13, %v15340_v45  ;;  %v3364_v4 = vmul.f32 %v15792_v24, %v15340_v45  ;;  %vm20147_vm9 = vnez %v20146_v50  ;;  %v20152_v13 = vld [vmem:[#allocation137_spill] sm:$0xff] }
 0x45e   : > { %vm15841_vm4 = vmand %vm20143_vm12, %vm20142_vm7  ;;  %9291 = vmatpush3.bf16.msk.msra.mxu0 %vm20147_vm9, %v20035_v60  ;;  %v20148_v36 = vmov 0  ;;  %v3341_v32 = vmul.f32 %v20151_v49, %v15320_v12  ;;  %v3349_v24 = vmul.f32 %v20152_v13, %v15320_v12  ;;  %vm20154_vm12 = vnez %v20153_v46  ;;  %9231 = vmatpush3.bf16.msk.msra.mxu1 %vm15872_vm13, %v20035_v60 }
 0x45f   : > { %v20149_v36 = vsel %vm15856_vm2, 4294967295, %v20148_v36  ;;  %9292 = vmatprep.subr.msk.bf16.mxu0 %vm20154_vm12, %v20035_v60  ;;  %v20156_v57 = vsel %vm15872_vm13, 4294967295, %v20155_v57  ;;  %vm1901_vm7 = vcmp.lt.s32.totalorder %v1642_v28, %v13580_v53  ;;  %v3230_v30 = vrot.slane %v3229_v43, 2  ;;  %vm15889_vm0 = vmpackc.low %vm15841_vm4, %vm15819_vm10 }
 0x460   : > { %20150 = vst [vmem:[#allocation164_spill] sm:$0xff] %v20149_v36  ;;  %20157 = vst [vmem:[#allocation165_spill] sm:$0xff] %v20156_v57  ;;  %v3358_v13 = vmul.f32 %v15810_v40, %v15178_v23  ;;  %v3366_v46 = vmul.f32 %v15828_v11, %v15178_v23  ;;  %v20158_v0 = vmov 0  ;;  %v3239_v9 = vrot.slane %v3238_v51, 1  ;;  %v20177_v11 = vld [vmem:[#allocation42_spill] sm:$0xff]  ;;  %9232 = vmatprep.subr.msk.bf16.mxu1 %vm15889_vm0, %v20035_v60 }
 0x461   : > { %v20159_v0 = vsel %vm15889_vm0, 4294967295, %v20158_v0  ;;  %v3443_v49 = vpack.c.bf16 %v3347_v5, %v3339_v18  ;;  %vm20161_vm3 = vcmp.lt.s32.totalorder %v1641_v8, %v13580_v53  ;;  %vm20162_vm8 = vcmp.ge.s32.totalorder %v1641_v8, %v13578_v3  ;;  %v20169_v53 = vld [vmem:[#allocation58_spill] sm:$0xff] }
 0x462   : > { %20160 = vst [vmem:[#allocation166_spill] sm:$0xff] %v20159_v0  ;;  %vm15900_vm12 = vmand %vm20162_vm8, %vm20161_vm3  ;;  %vm20165_vm4 = vcmp.eq.s32.totalorder %v20121_v52, %v19914_v54  ;;  %vm20167_vm10 = vcmp.eq.s32.totalorder %v20124_v22, %v19914_v54  ;;  %v3452_v5 = vpack.c.bf16 %v3364_v4, %v3356_v1  ;;  %vm20170_vm2 = vnez %v20169_v53  ;;  %v20180_v4 = vld [vmem:[#allocation43_spill] sm:$0xff] }
 0x463   : > { %v15908_v62 = vsel %vm20165_vm4, 1.0, %v19629_v38  ;;  %v15914_v18 = vsel %vm20167_vm10, 1.0, %v19629_v38  ;;  %9293 = vmatpush3.bf16.msk.msra.mxu0 %vm20170_vm2, %v20035_v60  ;;  %vm20171_vm8 = vcmp.ge.s32.totalorder %v1642_v28, %v13578_v3  ;;  %vm20175_vm4 = vcmp.eq.s32.totalorder %v20121_v52, %v20174_v47  ;;  %3955 = vmatmul.mubr.bf16.gmra.mrb[36].mxu1 %v3443_v49  ;;  %v20183_v53 = vld [vmem:[#allocation59_spill] sm:$0xff] }
 0x464   : > { %20166 = vst [vmem:[#allocation167_spill] sm:$0xff] %v15908_v62  ;;  %20168 = vst [vmem:[#allocation168_spill] sm:$0xff] %v15914_v18  ;;  %v15929_v36 = vsel %vm20175_vm4, 1.0, %v19629_v38  ;;  %vm20178_vm10 = vcmp.eq.s32.totalorder %v20177_v11, %v19909_v10  ;;  %vm20181_vm2 = vcmp.eq.s32.totalorder %v20180_v4, %v19909_v10  ;;  %v3445_v28 = vpack.c.bf16 %v3349_v24, %v3341_v32 }
 0x465   : > { %vm15921_vm3 = vmand %vm20171_vm8, %vm1901_vm7  ;;  %20176 = vst [vmem:[#allocation24_spill] sm:$0xff] %v15929_v36  ;;  %v15935_v1 = vsel %vm20178_vm10, 1.0, %v19629_v38  ;;  %v15941_v3 = vsel %vm20181_vm2, 1.0, %v19629_v38  ;;  %vm20184_vm7 = vnez %v20183_v53  ;;  %vm20185_vm8 = vcmp.eq.s32.totalorder %v20124_v22, %v20174_v47  ;;  %3962 = vmatprep.mubr.bf16.mxu1 %v3452_v5  ;;  %v20196_v5 = vld [vmem:[#allocation61_spill] sm:$0xff] }
 0x466   : > { %20179 = vst [vmem:[#allocation42_spill] sm:$0xff] %v15935_v1  ;;  %20182 = vst [vmem:[#allocation43_spill] sm:$0xff] %v15941_v3  ;;  %9294 = vmatprep.subr.msk.bf16.mxu0 %vm20184_vm7, %v20035_v60  ;;  %v15950_v40 = vsel %vm20185_vm8, 1.0, %v19629_v38  ;;  %vm20187_vm4 = vcmp.eq.s32.totalorder %v20177_v11, %v20133_v31  ;;  %v3231_v19 = vadd.f32 %v3230_v30, %v3229_v43  ;;  %4052 = vmatmul.mubr.bf16.gmra.mrb[64].mxu0 %v3445_v28  ;;  %v20194_v30 = vld [vmem:[#allocation60_spill] sm:$0xff] }
 0x467   : > { %20186 = vst [vmem:[#allocation169_spill] sm:$0xff] %v15950_v40  ;;  %v15956_v50 = vsel %vm20187_vm4, 1.0, %v19629_v38  ;;  %v3454_v49 = vpack.c.bf16 %v3366_v46, %v3358_v13  ;;  %vm20189_vm2 = vcmp.eq.s32.totalorder %v20180_v4, %v20133_v31  ;;  %v3240_v32 = vadd.f32 %v3239_v9, %v3238_v51  ;;  %vm15978_vm10 = vmpackc.low %vm15921_vm3, %vm15900_vm12 }
 0x468   : > { %20188 = vst [vmem:[#allocation170_spill] sm:$0xff] %v15956_v50  ;;  %v15965_v24 = vsel %vm20189_vm2, 1.0, %v19629_v38  ;;  %v3355_v53 = vmul.f32 %v15908_v62, %v15324_v35  ;;  %v3363_v43 = vmul.f32 %v15914_v18, %v15324_v35  ;;  %v20191_v46 = vmov 0  ;;  %9233 = vmatpush3.bf16.msk.msra.mxu1 %vm15978_vm10, %v20035_v60 }
 0x469   : > { %20190 = vst [vmem:[#allocation171_spill] sm:$0xff] %v15965_v24  ;;  %v20192_v46 = vsel %vm15978_vm10, 4294967295, %v20191_v46  ;;  %4059 = vmatprep.mubr.bf16.mxu0 %v3454_v49  ;;  %v3372_v13 = vmul.f32 %v15935_v1, %v15340_v45  ;;  %v3380_v51 = vmul.f32 %v15941_v3, %v15340_v45  ;;  %vm20195_vm8 = vnez %v20194_v30  ;;  %v20198_v30 = vld [vmem:[#allocation63_spill] sm:$0xff] }
 0x46a   : > { %20193 = vst [vmem:[#allocation172_spill] sm:$0xff] %v20192_v46  ;;  %9295 = vmatpush3.bf16.msk.msra.mxu0 %vm20195_vm8, %v20035_v60  ;;  %v3357_v63 = vmul.f32 %v15929_v36, %v15320_v12  ;;  %v3365_v9 = vmul.f32 %v15950_v40, %v15320_v12  ;;  %vm20197_vm12 = vnez %v20196_v5  ;;  %v3232_v8 = vrot.slane %v3231_v19, 1 }
 0x46b   : > { %9296 = vmatprep.subr.msk.bf16.mxu0 %vm20197_vm12, %v20035_v60  ;;  %v3374_v28 = vmul.f32 %v15956_v50, %v15178_v23  ;;  %v3382_v49 = vmul.f32 %v15965_v24, %v15178_v23  ;;  %10417 = vrcp.f32 %v3240_v32  ;;  %v3451_v36 = vpack.c.bf16 %v3363_v43, %v3355_v53  ;;  %v20204_v32 = vld [vmem:[#allocation62_spill] sm:$0xff]  ;;  %v20206_v53 = vld [vmem:[#allocation44_spill] sm:$0xff] }
 0x46c   : > { %vm20199_vm3 = vnez %v20198_v30  ;;  %vm20200_vm4 = vcmp.eq.s32.totalorder %v20177_v11, %v19914_v54  ;;  %vm20202_vm2 = vcmp.eq.s32.totalorder %v20180_v4, %v19914_v54  ;;  %v3460_v46 = vpack.c.bf16 %v3380_v51, %v3372_v13  ;;  %v20209_v30 = vld [vmem:[#allocation45_spill] sm:$0xff] }
 0x46d   : > { %9346 = vmatprep.subr.msk.bf16.mxu1 %vm20199_vm3, %v20035_v60  ;;  %v16010_v5 = vsel %vm20200_vm4, 1.0, %v19629_v38  ;;  %v16016_v24 = vsel %vm20202_vm2, 1.0, %v19629_v38  ;;  %vm20205_vm10 = vnez %v20204_v32  ;;  %vm20207_vm3 = vcmp.eq.s32.totalorder %v20206_v53, %v19909_v10  ;;  %3963 = vmatmul.mubr.bf16.gmra.mrb[40].mxu1 %v3451_v36 }
 0x46e   : > { %20201 = vst [vmem:[#allocation173_spill] sm:$0xff] %v16010_v5  ;;  %20203 = vst [vmem:[#allocation174_spill] sm:$0xff] %v16016_v24  ;;  %9297 = vmatpush3.bf16.msk.msra.mxu0 %vm20205_vm10, %v20035_v60  ;;  %v16025_v43 = vsel %vm20207_vm3, 1.0, %v19629_v38  ;;  %vm20210_vm4 = vcmp.eq.s32.totalorder %v20209_v30, %v19909_v10  ;;  %v3453_v40 = vpack.c.bf16 %v3365_v9, %v3357_v63  ;;  %3970 = vmatprep.mubr.bf16.mxu1 %v3460_v46  ;;  %v20220_v46 = vld [vmem:[#allocation65_spill] sm:$0xff] }
 0x46f   : > { %20208 = vst [vmem:[#allocation44_spill] sm:$0xff] %v16025_v43  ;;  %v16031_v50 = vsel %vm20210_vm4, 1.0, %v19629_v38  ;;  %vm20212_vm2 = vcmp.eq.s32.totalorder %v20177_v11, %v20174_v47  ;;  %vm20214_vm10 = vcmp.eq.s32.totalorder %v20180_v4, %v20174_v47  ;;  %v3233_v32 = vadd.f32 %v3232_v8, %v3231_v19 }
 0x470   : > { %20211 = vst [vmem:[#allocation45_spill] sm:$0xff] %v16031_v50  ;;  %v16037_v13 = vsel %vm20212_vm2, 1.0, %v19629_v38  ;;  %v16043_v51 = vsel %vm20214_vm10, 1.0, %v19629_v38  ;;  %v3462_v3 = vpack.c.bf16 %v3382_v49, %v3374_v28  ;;  %vm20216_vm3 = vcmp.eq.s32.totalorder %v20206_v53, %v20133_v31  ;;  %4060 = vmatmul.mubr.bf16.gmra.mrb[68].mxu0 %v3453_v40 }
 0x471   : > { %20213 = vst [vmem:[#allocation175_spill] sm:$0xff] %v16037_v13  ;;  %20215 = vst [vmem:[#allocation176_spill] sm:$0xff] %v16043_v51  ;;  %v16049_v36 = vsel %vm20216_vm3, 1.0, %v19629_v38  ;;  %vm20218_vm4 = vcmp.eq.s32.totalorder %v20209_v30, %v20133_v31  ;;  %v3371_v9 = vmul.f32 %v16010_v5, %v15324_v35  ;;  %v3379_v19 = vmul.f32 %v16016_v24, %v15324_v35 }
 0x472   : > { %20217 = vst [vmem:[#allocation177_spill] sm:$0xff] %v16049_v36  ;;  %v16055_v63 = vsel %vm20218_vm4, 1.0, %v19629_v38  ;;  %vm20221_vm10 = vnez %v20220_v46  ;;  %4067 = vmatprep.mubr.bf16.mxu0 %v3462_v3  ;;  %v3388_v8 = vmul.f32 %v16025_v43, %v15340_v45  ;;  %v3396_v28 = vmul.f32 %v16031_v50, %v15340_v45 }
 0x473   : > { %20219 = vst [vmem:[#allocation178_spill] sm:$0xff] %v16055_v63  ;;  %9410 = vmatprep.subr.msk.bf16.mxu0 %vm20221_vm10, %v20035_v60  ;;  %v3373_v40 = vmul.f32 %v16037_v13, %v15320_v12  ;;  %v3381_v49 = vmul.f32 %v16043_v51, %v15320_v12  ;;  %10419 = vrcp.f32 %v3233_v32  ;;  %v3390_v24 = vmul.f32 %v16049_v36, %v15178_v23  ;;  %v20226_v36 = vld [vmem:[#allocation47_spill] sm:$0xff] }
 0x474   : > { %v3398_v5 = vmul.f32 %v16055_v63, %v15178_v23  ;;  %v3459_v3 = vpack.c.bf16 %v3379_v19, %v3371_v9  ;;  %vm20222_vm2 = vcmp.eq.s32.totalorder %v20206_v53, %v19914_v54  ;;  %vm20224_vm3 = vcmp.eq.s32.totalorder %v20209_v30, %v19914_v54  ;;  %v20229_v9 = vld [vmem:[#allocation48_spill] sm:$0xff] }
 0x475   : > { %v16080_v43 = vsel %vm20222_vm2, 1.0, %v19629_v38  ;;  %v16086_v13 = vsel %vm20224_vm3, 1.0, %v19629_v38  ;;  %v3468_v32 = vpack.c.bf16 %v3396_v28, %v3388_v8  ;;  %v10418_v51 = vpop.eup %10417  ;;  %vm20227_vm4 = vcmp.eq.s32.totalorder %v20226_v36, %v19909_v10 }
 0x476   : > { %20223 = vst [vmem:[#allocation179_spill] sm:$0xff] %v16080_v43  ;;  %20225 = vst [vmem:[#allocation180_spill] sm:$0xff] %v16086_v13  ;;  %v16092_v63 = vsel %vm20227_vm4, 1.0, %v19629_v38  ;;  %vm20230_vm10 = vcmp.eq.s32.totalorder %v20229_v9, %v19909_v10  ;;  %3971 = vmatmul.mubr.bf16.gmra.mrb[44].mxu1 %v3459_v3  ;;  %v3461_v50 = vpack.c.bf16 %v3381_v49, %v3373_v40 }
 0x477   : > { %20228 = vst [vmem:[#allocation47_spill] sm:$0xff] %v16092_v63  ;;  %v16098_v19 = vsel %vm20230_vm10, 1.0, %v19629_v38  ;;  %vm20232_vm2 = vcmp.eq.s32.totalorder %v20206_v53, %v20174_v47  ;;  %vm20234_vm3 = vcmp.eq.s32.totalorder %v20209_v30, %v20174_v47  ;;  %3978 = vmatprep.mubr.bf16.mxu1 %v3468_v32  ;;  %v3470_v46 = vpack.c.bf16 %v3398_v5, %v3390_v24 }
 0x478   : > { %20231 = vst [vmem:[#allocation48_spill] sm:$0xff] %v16098_v19  ;;  %v16104_v8 = vsel %vm20232_vm2, 1.0, %v19629_v38  ;;  %v16110_v28 = vsel %vm20234_vm3, 1.0, %v19629_v38  ;;  %vm20236_vm10 = vcmp.eq.s32.totalorder %v20226_v36, %v20133_v31  ;;  %vm20238_vm4 = vcmp.eq.s32.totalorder %v20229_v9, %v20133_v31  ;;  %4068 = vmatmul.mubr.bf16.gmra.mrb[72].mxu0 %v3461_v50 }
 0x479   : > { %20233 = vst [vmem:[#allocation181_spill] sm:$0xff] %v16104_v8  ;;  %20235 = vst [vmem:[#allocation182_spill] sm:$0xff] %v16110_v28  ;;  %v16116_v10 = vsel %vm20236_vm10, 1.0, %v19629_v38  ;;  %v16122_v40 = vsel %vm20238_vm4, 1.0, %v19629_v38  ;;  %v3387_v49 = vmul.f32 %v16080_v43, %v15324_v35  ;;  %v3395_v3 = vmul.f32 %v16086_v13, %v15324_v35  ;;  %4075 = vmatprep.mubr.bf16.mxu0 %v3470_v46 }
 0x47a   : > { %20237 = vst [vmem:[#allocation183_spill] sm:$0xff] %v16116_v10  ;;  %20239 = vst [vmem:[#allocation184_spill] sm:$0xff] %v16122_v40  ;;  %v16129_v24 = vmul.f32 %v10418_v51, %v15488_v39  ;;  %v3404_v5 = vmul.f32 %v16092_v63, %v15340_v45  ;;  %v3412_v32 = vmul.f32 %v16098_v19, %v15340_v45 }
 0x47b   : > { %v3389_v31 = vmul.f32 %v16104_v8, %v15320_v12  ;;  %v3397_v50 = vmul.f32 %v16110_v28, %v15320_v12  ;;  %v3406_v43 = vmul.f32 %v16116_v10, %v15178_v23  ;;  %v3414_v39 = vmul.f32 %v16122_v40, %v15178_v23  ;;  %v20245_v23 = vld [vmem:[#allocation31_spill] sm:$0xff]  ;;  %v20256_v8 = vld [vmem:[#allocation108_spill] sm:$0xff] }
 0x47c   : > { %20240 = vst [vmem:[#allocation185_spill] sm:$0xff] %v16129_v24  ;;  %v3467_v51 = vpack.c.bf16 %v3395_v3, %v3387_v49  ;;  %vm20241_vm2 = vcmp.eq.s32.totalorder %v20226_v36, %v19914_v54  ;;  %vm20243_vm3 = vcmp.eq.s32.totalorder %v20229_v9, %v19914_v54  ;;  %v16157_v10 = vrot.slane %v16129_v24, %v19766_v55  ;;  %v20248_v3 = vld [vmem:[#allocation22_spill] sm:$0xff] }
 0x47d   : > { %v10420_v46 = vpop.eup %10419  ;;  %v16147_v63 = vsel %vm20241_vm2, 1.0, %v19629_v38  ;;  %v16153_v45 = vsel %vm20243_vm3, 1.0, %v19629_v38  ;;  %v3476_v28 = vpack.c.bf16 %v3412_v32, %v3404_v5  ;;  %vm20246_vm10 = vcmp.eq.s32.totalorder %v11003_v2, %v20245_v23  ;;  %v20255_v32 = vld [vmem:[#allocation49_spill] sm:$0xff] }
 0x47e   : > { %20242 = vst [vmem:[#allocation186_spill] sm:$0xff] %v16147_v63  ;;  %20244 = vst [vmem:[#allocation187_spill] sm:$0xff] %v16153_v45  ;;  %v16163_v49 = vsel %vm20246_vm10, 1.0, %v19629_v38  ;;  %vm20249_vm4 = vcmp.eq.s32.totalorder %v20248_v3, %v20245_v23  ;;  %3979 = vmatmul.mubr.bf16.gmra.mrb[48].mxu1 %v3467_v51  ;;  %v3469_v54 = vpack.c.bf16 %v3397_v50, %v3389_v31 }
 0x47f   : > { %20247 = vst [vmem:[#allocation31_spill] sm:$0xff] %v16163_v49  ;;  %v16169_v40 = vsel %vm20249_vm4, 1.0, %v19629_v38  ;;  %vm20251_vm2 = vcmp.eq.s32.totalorder %v20226_v36, %v20174_v47  ;;  %vm20253_vm3 = vcmp.eq.s32.totalorder %v20229_v9, %v20174_v47  ;;  %v16185_v19 = vrot.slane %v20256_v8, %v20255_v32  ;;  %3986 = vmatprep.mubr.bf16.mxu1 %v3476_v28  ;;  %v20258_v28 = vld [vmem:[#allocation51_spill] sm:$0xff] }
 0x480   : > { %20250 = vst [vmem:[#allocation22_spill] sm:$0xff] %v16169_v40  ;;  %v16175_v24 = vsel %vm20251_vm2, 1.0, %v19629_v38  ;;  %v16181_v5 = vsel %vm20253_vm3, 1.0, %v19629_v38  ;;  %v3478_v13 = vpack.c.bf16 %v3414_v39, %v3406_v43  ;;  %v16188_v31 = vmul.f32 %v10420_v46, %v15615_v48  ;;  %4076 = vmatmul.mubr.bf16.gmra.mrb[76].mxu0 %v3469_v54  ;;  %v20259_v46 = vld [vmem:[#allocation74_spill] sm:$0xff] }
 0x481   : > { %20252 = vst [vmem:[#allocation188_spill] sm:$0xff] %v16175_v24  ;;  %20254 = vst [vmem:[#allocation189_spill] sm:$0xff] %v16181_v5  ;;  %v3403_v50 = vmul.f32 %v16147_v63, %v15324_v35  ;;  %v3411_v51 = vmul.f32 %v16153_v45, %v15324_v35  ;;  %v3296_v47 = vmul.f32 %v16163_v49, %v16157_v10 }
 0x482   : > { %20257 = vst [vmem:[#allocation49_spill] sm:$0xff] %v16188_v31  ;;  %4083 = vmatprep.mubr.bf16.mxu0 %v3478_v13  ;;  %v3304_v8 = vmul.f32 %v16169_v40, %v16157_v10  ;;  %v3405_v43 = vmul.f32 %v16175_v24, %v15320_v12  ;;  %v3413_v48 = vmul.f32 %v16181_v5, %v15320_v12  ;;  %v20260_v40 = vld [vmem:[#allocation32_spill] sm:$0xff] }
 0x483   : > { %v4222_v39 = vmul.f32 %v20258_v28, %v16185_v19  ;;  %v4230_v54 = vmul.f32 %v20259_v46, %v16185_v19  ;;  %v16208_v35 = vrot.slane %v16188_v31, %v19766_v55  ;;  %v3475_v13 = vpack.c.bf16 %v3411_v51, %v3403_v50  ;;  %v20265_v46 = vld [vmem:[#allocation25_spill] sm:$0xff]  ;;  %v20268_v50 = vld [vmem:[#allocation26_spill] sm:$0xff] }
 0x484   : > { %vm20261_vm10 = vcmp.eq.s32.totalorder %v11003_v2, %v20260_v40  ;;  %vm20263_vm4 = vcmp.eq.s32.totalorder %v20248_v3, %v20260_v40  ;;  %v3424_v28 = vpack.c.bf16 %v3304_v8, %v3296_v47  ;;  %vm20266_vm2 = vcmp.eq.s32.totalorder %v20265_v46, %v20245_v23  ;;  %v20271_v51 = vld [vmem:[#allocation106_spill] sm:$0xff] }
 0x485   : > { %v16214_v49 = vsel %vm20261_vm10, 1.0, %v19629_v38  ;;  %v16220_v12 = vsel %vm20263_vm4, 1.0, %v19629_v38  ;;  %v16226_v55 = vsel %vm20266_vm2, 1.0, %v19629_v38  ;;  %vm20269_vm3 = vcmp.eq.s32.totalorder %v20268_v50, %v20245_v23 }
 0x486   : > { %20262 = vst [vmem:[#allocation32_spill] sm:$0xff] %v16214_v49  ;;  %20264 = vst [vmem:[#allocation190_spill] sm:$0xff] %v16220_v12  ;;  %v16232_v2 = vsel %vm20269_vm3, 1.0, %v19629_v38  ;;  %v16236_v31 = vrot.slane %v20271_v51, %v20255_v32  ;;  %3987 = vmatmul.mubr.bf16.gmra.mrb[52].mxu1 %v3475_v13  ;;  %v3477_v3 = vpack.c.bf16 %v3413_v48, %v3405_v43  ;;  %v20272_v51 = vld [vmem:[#allocation53_spill] sm:$0xff]  ;;  %v20273_v43 = vld [vmem:[#allocation75_spill] sm:$0xff] }
 0x487   : > { %20267 = vst [vmem:[#allocation25_spill] sm:$0xff] %v16226_v55  ;;  %20270 = vst [vmem:[#allocation26_spill] sm:$0xff] %v16232_v2  ;;  %4124 = vmatprep.mubr.bf16.mxu1 %v3424_v28  ;;  %v4350_v8 = vpack.c.bf16 %v4230_v54, %v4222_v39  ;;  %v3295_v47 = vmul.f32 %v16214_v49, %v16208_v35  ;;  %v3303_v5 = vmul.f32 %v16220_v12, %v16208_v35  ;;  %v20274_v28 = vld [vmem:[#allocation76_spill] sm:$0xff]  ;;  %v20275_v54 = vld [vmem:[#allocation77_spill] sm:$0xff] }
 0x488   : > { %4084 = vmatmul.mubr.bf16.gmra.mrb[80].mxu0 %v3477_v3  ;;  %v3312_v24 = vmul.f32 %v16226_v55, %v16157_v10  ;;  %v3320_v45 = vmul.f32 %v16232_v2, %v16157_v10  ;;  %v4221_v13 = vmul.f32 %v20272_v51, %v16236_v31  ;;  %v4229_v48 = vmul.f32 %v20273_v43, %v16236_v31 }
 0x489   : > { %4445 = vmatprep.mubr.bf16.mxu0 %v4350_v8  ;;  %v4238_v39 = vmul.f32 %v20274_v28, %v16185_v19  ;;  %v4246_v3 = vmul.f32 %v20275_v54, %v16185_v19  ;;  %v3423_v12 = vpack.c.bf16 %v3303_v5, %v3295_v47  ;;  %vm20276_vm10 = vcmp.eq.s32.totalorder %v20265_v46, %v20260_v40  ;;  %v20286_v54 = vld [vmem:[#allocation66_spill] sm:$0xff] }
 0x48a   : > { %v16258_v8 = vsel %vm20276_vm10, 1.0, %v19629_v38  ;;  %vm20278_vm4 = vcmp.eq.s32.totalorder %v20268_v50, %v20260_v40  ;;  %v3432_v43 = vpack.c.bf16 %v3320_v45, %v3312_v24  ;;  %vm20280_vm2 = vcmp.eq.s32.totalorder %v11121_v33, %v20245_v23  ;;  %v20284_v50 = vld [vmem:[#allocation64_spill] sm:$0xff] }
 0x48b   : > { %20277 = vst [vmem:[#allocation191_spill] sm:$0xff] %v16258_v8  ;;  %v16264_v51 = vsel %vm20278_vm4, 1.0, %v19629_v38  ;;  %v16270_v28 = vsel %vm20280_vm2, 1.0, %v19629_v38  ;;  %vm20282_vm3 = vcmp.eq.s32.totalorder %v11128_v34, %v20245_v23  ;;  %v4349_v46 = vpack.c.bf16 %v4229_v48, %v4221_v13  ;;  %v20290_v48 = vld [vmem:[#allocation78_spill] sm:$0xff] }
 0x48c   : > { %20279 = vst [vmem:[#allocation192_spill] sm:$0xff] %v16264_v51  ;;  %20281 = vst [vmem:[#allocation193_spill] sm:$0xff] %v16270_v28  ;;  %v16276_v5 = vsel %vm20282_vm3, 1.0, %v19629_v38  ;;  %v4358_v47 = vpack.c.bf16 %v4246_v3, %v4238_v39  ;;  %vm20285_vm10 = vnez %v20284_v50  ;;  %v3311_v24 = vmul.f32 %v16258_v8, %v16208_v35  ;;  %v20291_v3 = vld [vmem:[#allocation79_spill] sm:$0xff] }
 0x48d   : > { %20283 = vst [vmem:[#allocation194_spill] sm:$0xff] %v16276_v5  ;;  %v3319_v45 = vmul.f32 %v16264_v51, %v16208_v35  ;;  %vm20287_vm4 = vnez %v20286_v54  ;;  %v3336_v13 = vmul.f32 %v16276_v5, %v16157_v10  ;;  %v4237_v39 = vmul.f32 %v20290_v48, %v16236_v31  ;;  %v20292_v54 = vld [vmem:[#allocation109_spill] sm:$0xff]  ;;  %v20296_v8 = vld [vmem:[#allocation67_spill] sm:$0xff]  ;;  %v20298_v48 = vld [vmem:[#allocation68_spill] sm:$0xff] }
 0x48e   : > { %4125 = vmatmul.mubr.bf16.vlgmr.msra.gmra.mrb[56].mxu1 %v3423_v12  ;;  %v3328_v12 = vmul.f32 %v16270_v28, %v16157_v10  ;;  %vm20293_vm3 = vnez %v20292_v54  ;;  %v20295_v51 = vld [vmem:[#allocation81_spill] sm:$0xff] }
 0x48f   : > { %4132 = vmatprep.mubr.bf16.mxu1 %v3432_v43  ;;  %9347 = vmatpush3.bf16.msk.msra.mxu1 %vm20285_vm10, %v20035_v60  ;;  %v20288_v43 = vld [vmem:[#allocation107_spill] sm:$0xff]  ;;  %v4262_v5 = vmul.f32 %v20295_v51, %v16185_v19  ;;  %vm20300_vm10 = vcmp.eq.s32.totalorder %v11121_v33, %v20260_v40 }
 0x490   : > { %4446 = vmatmul.mubr.bf16.vlgmr.msra.gmra.mrb[84].mxu0 %v4349_v46  ;;  %9348 = vmatprep.subr.msk.bf16.mxu1 %vm20287_vm4, %v20035_v60  ;;  %vm20289_vm2 = vnez %v20288_v43  ;;  %v4245_v46 = vmul.f32 %v20291_v3, %v16236_v31  ;;  %vm20297_vm4 = vnez %v20296_v8  ;;  %v3431_v43 = vpack.c.bf16 %v3319_v45, %v3311_v24  ;;  %v20304_v8 = vld [vmem:[#allocation52_spill] sm:$0xff]  ;;  %v20310_v45 = vld [vmem:[#allocation110_spill] sm:$0xff] }
 0x491   : > { %4453 = vmatprep.mubr.bf16.mxu0 %v4358_v47  ;;  %9411 = vmatpush3.bf16.msk.msra.mxu0 %vm20289_vm2, %v20035_v60  ;;  %v20294_v47 = vld [vmem:[#allocation80_spill] sm:$0xff]  ;;  %vm20299_vm2 = vnez %v20298_v48  ;;  %v16316_v54 = vsel %vm20300_vm10, 1.0, %v19629_v38  ;;  %vm20308_vm10 = vcmp.eq.s32.totalorder %v20067_v59, %v20245_v23 }
 0x492   : > { %9412 = vmatprep.subr.msk.bf16.mxu0 %vm20293_vm3, %v20035_v60  ;;  %v4254_v28 = vmul.f32 %v20294_v47, %v16185_v19  ;;  %20301 = vst [vmem:[#allocation64_spill] sm:$0xff] %v16316_v54  ;;  %vm20302_vm3 = vcmp.eq.s32.totalorder %v11128_v34, %v20260_v40  ;;  %v3440_v47 = vpack.c.bf16 %v3336_v13, %v3328_v12  ;;  %v16337_v33 = vsel %vm20308_vm10, 1.0, %v19629_v38  ;;  %v20312_v13 = vld [vmem:[#allocation69_spill] sm:$0xff] }
 0x493   : > { %9349 = vmatpush3.bf16.msk.msra.mxu1 %vm20297_vm4, %v20035_v60  ;;  %v16322_v51 = vsel %vm20302_vm3, 1.0, %v19629_v38  ;;  %vm20305_vm4 = vnez %v20304_v8  ;;  %20309 = vst [vmem:[#allocation196_spill] sm:$0xff] %v16337_v33  ;;  %v4357_v34 = vpack.c.bf16 %v4245_v46, %v4237_v39  ;;  %vm20311_vm3 = vnez %v20310_v45  ;;  %v20318_v46 = vld [vmem:[#allocation82_spill] sm:$0xff] }
 0x494   : > { %9350 = vmatprep.subr.msk.bf16.mxu1 %vm20299_vm2, %v20035_v60  ;;  %20303 = vst [vmem:[#allocation79_spill] sm:$0xff] %v16322_v51  ;;  %vm20306_vm2 = vcmp.eq.s32.totalorder %v11175_v41, %v20245_v23  ;;  %v4366_v12 = vpack.c.bf16 %v4262_v5, %v4254_v28  ;;  %v3327_v8 = vmul.f32 %v16316_v54, %v16208_v35  ;;  %v20316_v5 = vld [vmem:[#allocation111_spill] sm:$0xff]  ;;  %v20323_v54 = vld [vmem:[#allocation85_spill] sm:$0xff] }
 0x495   : > { %9413 = vmatpush3.bf16.msk.msra.mxu0 %vm20305_vm4, %v20035_v60  ;;  %v16331_v24 = vsel %vm20306_vm2, 1.0, %v19629_v38  ;;  %vm20313_vm4 = vnez %v20312_v13  ;;  %v3335_v48 = vmul.f32 %v16322_v51, %v16208_v35  ;;  %v3352_v28 = vmul.f32 %v16337_v33, %v16157_v10  ;;  %v20324_v13 = vld [vmem:[#allocation71_spill] sm:$0xff] }
 0x496   : > { %20307 = vst [vmem:[#allocation195_spill] sm:$0xff] %v16331_v24  ;;  %4133 = vmatmul.mubr.bf16.gmra.mrb[60].mxu1 %v3431_v43  ;;  %9414 = vmatprep.subr.msk.bf16.mxu0 %vm20311_vm3, %v20035_v60  ;;  %v20314_v43 = vld [vmem:[#allocation70_spill] sm:$0xff]  ;;  %v3344_v39 = vmul.f32 %v16331_v24, %v16157_v10  ;;  %vm20317_vm10 = vnez %v20316_v5  ;;  %v4278_v33 = vmul.f32 %v20323_v54, %v16185_v19 }
 0x497   : > { %4140 = vmatprep.mubr.bf16.mxu1 %v3440_v47  ;;  %9351 = vmatpush3.bf16.msk.msra.mxu1 %vm20313_vm4, %v20035_v60  ;;  %vm20315_vm2 = vnez %v20314_v43  ;;  %v4253_v47 = vmul.f32 %v20318_v46, %v16236_v31  ;;  %v20320_v43 = vld [vmem:[#allocation113_spill] sm:$0xff]  ;;  %vm20325_vm4 = vnez %v20324_v13  ;;  %v3439_v5 = vpack.c.bf16 %v3335_v48, %v3327_v8  ;;  %v20326_v46 = vld [vmem:[#allocation72_spill] sm:$0xff]  ;;  %v20332_v13 = vld [vmem:[#allocation114_spill] sm:$0xff] }
 0x498   : > { %4454 = vmatmul.mubr.bf16.gmra.mrb[88].mxu0 %v4357_v34  ;;  %9352 = vmatprep.subr.msk.bf16.mxu1 %vm20315_vm2, %v20035_v60  ;;  %v20319_v34 = vld [vmem:[#allocation83_spill] sm:$0xff]  ;;  %vm20321_vm2 = vnez %v20320_v43  ;;  %vm20328_vm3 = vcmp.eq.s32.totalorder %v11175_v41, %v20260_v40 }
 0x499   : > { %4461 = vmatprep.mubr.bf16.mxu0 %v4366_v12  ;;  %9415 = vmatpush3.bf16.msk.msra.mxu0 %vm20317_vm10, %v20035_v60  ;;  %v4261_v51 = vmul.f32 %v20319_v34, %v16236_v31  ;;  %v20322_v12 = vld [vmem:[#allocation84_spill] sm:$0xff]  ;;  %vm20327_vm10 = vnez %v20326_v46  ;;  %v16380_v43 = vsel %vm20328_vm3, 1.0, %v19629_v38  ;;  %vm20336_vm3 = vcmp.eq.s32.totalorder %v20124_v22, %v20245_v23  ;;  %v20338_v48 = vld [vmem:[#allocation115_spill] sm:$0xff] }
 0x49a   : > { %9416 = vmatprep.subr.msk.bf16.mxu0 %vm20321_vm2, %v20035_v60  ;;  %v4270_v24 = vmul.f32 %v20322_v12, %v16185_v19  ;;  %20329 = vst [vmem:[#allocation110_spill] sm:$0xff] %v16380_v43  ;;  %vm20330_vm2 = vcmp.eq.s32.totalorder %v20067_v59, %v20260_v40  ;;  %v3448_v12 = vpack.c.bf16 %v3352_v28, %v3344_v39  ;;  %v16401_v41 = vsel %vm20336_vm3, 1.0, %v19629_v38  ;;  %v20340_v28 = vld [vmem:[#allocation73_spill] sm:$0xff] }
 0x49b   : > { %9353 = vmatpush3.bf16.msk.msra.mxu1 %vm20325_vm4, %v20035_v60  ;;  %v16386_v54 = vsel %vm20330_vm2, 1.0, %v19629_v38  ;;  %vm20333_vm4 = vnez %v20332_v13  ;;  %20337 = vst [vmem:[#allocation198_spill] sm:$0xff] %v16401_v41  ;;  %v4365_v59 = vpack.c.bf16 %v4261_v51, %v4253_v47  ;;  %vm20339_vm2 = vnez %v20338_v48  ;;  %v20346_v47 = vld [vmem:[#allocation86_spill] sm:$0xff] }
 0x49c   : > { %9354 = vmatprep.subr.msk.bf16.mxu1 %vm20327_vm10, %v20035_v60  ;;  %20331 = vst [vmem:[#allocation83_spill] sm:$0xff] %v16386_v54  ;;  %vm20334_vm10 = vcmp.eq.s32.totalorder %v20121_v52, %v20245_v23  ;;  %v4374_v39 = vpack.c.bf16 %v4278_v33, %v4270_v24  ;;  %v3343_v13 = vmul.f32 %v16380_v43, %v16208_v35  ;;  %v20344_v33 = vld [vmem:[#allocation116_spill] sm:$0xff]  ;;  %v20351_v43 = vld [vmem:[#allocation89_spill] sm:$0xff] }
 0x49d   : > { %9417 = vmatpush3.bf16.msk.msra.mxu0 %vm20333_vm4, %v20035_v60  ;;  %v16395_v8 = vsel %vm20334_vm10, 1.0, %v19629_v38  ;;  %vm20341_vm4 = vnez %v20340_v28  ;;  %v3351_v46 = vmul.f32 %v16386_v54, %v16208_v35  ;;  %v3368_v24 = vmul.f32 %v16401_v41, %v16157_v10  ;;  %v20352_v28 = vld [vmem:[#allocation99_spill] sm:$0xff] }
 0x49e   : > { %20335 = vst [vmem:[#allocation197_spill] sm:$0xff] %v16395_v8  ;;  %4141 = vmatmul.mubr.bf16.gmra.mrb[64].mxu1 %v3439_v5  ;;  %9418 = vmatprep.subr.msk.bf16.mxu0 %vm20339_vm2, %v20035_v60  ;;  %v20342_v5 = vld [vmem:[#allocation91_spill] sm:$0xff]  ;;  %v3360_v51 = vmul.f32 %v16395_v8, %v16157_v10  ;;  %vm20345_vm3 = vnez %v20344_v33  ;;  %v4294_v41 = vmul.f32 %v20351_v43, %v16185_v19 }
 0x49f   : > { %4148 = vmatprep.mubr.bf16.mxu1 %v3448_v12  ;;  %9355 = vmatpush3.bf16.msk.msra.mxu1 %vm20341_vm4, %v20035_v60  ;;  %vm20343_vm10 = vnez %v20342_v5  ;;  %v4269_v12 = vmul.f32 %v20346_v47, %v16236_v31  ;;  %v20348_v5 = vld [vmem:[#allocation117_spill] sm:$0xff]  ;;  %vm20353_vm4 = vnez %v20352_v28  ;;  %v3447_v33 = vpack.c.bf16 %v3351_v46, %v3343_v13  ;;  %v20354_v47 = vld [vmem:[#allocation100_spill] sm:$0xff]  ;;  %v20360_v28 = vld [vmem:[#allocation118_spill] sm:$0xff] }
 0x4a0   : > { %4462 = vmatmul.mubr.bf16.gmra.mrb[92].mxu0 %v4365_v59  ;;  %9356 = vmatprep.subr.msk.bf16.mxu1 %vm20343_vm10, %v20035_v60  ;;  %v20347_v59 = vld [vmem:[#allocation87_spill] sm:$0xff]  ;;  %vm20349_vm10 = vnez %v20348_v5  ;;  %vm20356_vm2 = vcmp.eq.s32.totalorder %v20121_v52, %v20260_v40 }
 0x4a1   : > { %4469 = vmatprep.mubr.bf16.mxu0 %v4374_v39  ;;  %9419 = vmatpush3.bf16.msk.msra.mxu0 %vm20345_vm3, %v20035_v60  ;;  %v4277_v54 = vmul.f32 %v20347_v59, %v16236_v31  ;;  %v20350_v39 = vld [vmem:[#allocation88_spill] sm:$0xff]  ;;  %vm20355_vm3 = vnez %v20354_v47  ;;  %v16444_v5 = vsel %vm20356_vm2, 1.0, %v19629_v38  ;;  %vm20364_vm2 = vcmp.eq.s32.totalorder %v20180_v4, %v20245_v23  ;;  %v20366_v46 = vld [vmem:[#allocation123_spill] sm:$0xff] }
 0x4a2   : > { %9420 = vmatprep.subr.msk.bf16.mxu0 %vm20349_vm10, %v20035_v60  ;;  %v4286_v8 = vmul.f32 %v20350_v39, %v16185_v19  ;;  %20357 = vst [vmem:[#allocation115_spill] sm:$0xff] %v16444_v5  ;;  %vm20358_vm10 = vcmp.eq.s32.totalorder %v20124_v22, %v20260_v40  ;;  %v3456_v39 = vpack.c.bf16 %v3368_v24, %v3360_v51  ;;  %v16465_v52 = vsel %vm20364_vm2, 1.0, %v19629_v38  ;;  %v20368_v24 = vld [vmem:[#allocation101_spill] sm:$0xff] }
 0x4a3   : > { %9357 = vmatpush3.bf16.msk.msra.mxu1 %vm20353_vm4, %v20035_v60  ;;  %v16450_v43 = vsel %vm20358_vm10, 1.0, %v19629_v38  ;;  %vm20361_vm4 = vnez %v20360_v28  ;;  %20365 = vst [vmem:[#allocation200_spill] sm:$0xff] %v16465_v52  ;;  %v4373_v22 = vpack.c.bf16 %v4277_v54, %v4269_v12  ;;  %vm20367_vm10 = vnez %v20366_v46  ;;  %v20374_v12 = vld [vmem:[#allocation90_spill] sm:$0xff] }
 0x4a4   : > { %9358 = vmatprep.subr.msk.bf16.mxu1 %vm20355_vm3, %v20035_v60  ;;  %20359 = vst [vmem:[#allocation87_spill] sm:$0xff] %v16450_v43  ;;  %vm20362_vm3 = vcmp.eq.s32.totalorder %v20177_v11, %v20245_v23  ;;  %v4382_v51 = vpack.c.bf16 %v4294_v41, %v4286_v8  ;;  %v3359_v28 = vmul.f32 %v16444_v5, %v16208_v35  ;;  %v20372_v41 = vld [vmem:[#allocation126_spill] sm:$0xff] }
 0x4a5   : > { %9421 = vmatpush3.bf16.msk.msra.mxu0 %vm20361_vm4, %v20035_v60  ;;  %v16459_v13 = vsel %vm20362_vm3, 1.0, %v19629_v38  ;;  %vm20369_vm4 = vnez %v20368_v24  ;;  %v3367_v47 = vmul.f32 %v16450_v43, %v16208_v35  ;;  %v3384_v8 = vmul.f32 %v16465_v52, %v16157_v10  ;;  %v20379_v5 = vld [vmem:[#allocation94_spill] sm:$0xff]  ;;  %v20380_v24 = vld [vmem:[#allocation105_spill] sm:$0xff] }
 0x4a6   : > { %20363 = vst [vmem:[#allocation199_spill] sm:$0xff] %v16459_v13  ;;  %4149 = vmatmul.mubr.bf16.gmra.mrb[68].mxu1 %v3447_v33  ;;  %9422 = vmatprep.subr.msk.bf16.mxu0 %vm20367_vm10, %v20035_v60  ;;  %v20370_v33 = vld [vmem:[#allocation103_spill] sm:$0xff]  ;;  %v3376_v54 = vmul.f32 %v16459_v13, %v16157_v10  ;;  %vm20373_vm2 = vnez %v20372_v41  ;;  %v4310_v52 = vmul.f32 %v20379_v5, %v16185_v19 }
 0x4a7   : > { %4156 = vmatprep.mubr.bf16.mxu1 %v3456_v39  ;;  %9359 = vmatpush3.bf16.msk.msra.mxu1 %vm20369_vm4, %v20035_v60  ;;  %vm20371_vm3 = vnez %v20370_v33  ;;  %v4285_v39 = vmul.f32 %v20374_v12, %v16236_v31  ;;  %v20376_v33 = vld [vmem:[#allocation130_spill] sm:$0xff]  ;;  %vm20381_vm4 = vnez %v20380_v24  ;;  %v3455_v41 = vpack.c.bf16 %v3367_v47, %v3359_v28  ;;  %v20382_v12 = vld [vmem:[#allocation112_spill] sm:$0xff]  ;;  %v20390_v47 = vld [vmem:[#allocation33_spill] sm:$0xff] }
 0x4a8   : > { %4470 = vmatmul.mubr.bf16.gmra.mrb[96].mxu0 %v4373_v22  ;;  %9360 = vmatprep.subr.msk.bf16.mxu1 %vm20371_vm3, %v20035_v60  ;;  %v20375_v22 = vld [vmem:[#allocation92_spill] sm:$0xff]  ;;  %vm20377_vm3 = vnez %v20376_v33  ;;  %vm20384_vm10 = vcmp.eq.s32.totalorder %v20177_v11, %v20260_v40  ;;  %v20386_v24 = vld [vmem:[#allocation142_spill] sm:$0xff] }
 0x4a9   : > { %4477 = vmatprep.mubr.bf16.mxu0 %v4382_v51  ;;  %9423 = vmatpush3.bf16.msk.msra.mxu0 %vm20373_vm2, %v20035_v60  ;;  %v4293_v43 = vmul.f32 %v20375_v22, %v16236_v31  ;;  %v20378_v51 = vld [vmem:[#allocation93_spill] sm:$0xff]  ;;  %vm20383_vm2 = vnez %v20382_v12  ;;  %v16508_v33 = vsel %vm20384_vm10, 1.0, %v19629_v38  ;;  %vm20389_vm10 = vcmp.eq.s32.totalorder %v20209_v30, %v20245_v23 }
 0x4aa   : > { %9424 = vmatprep.subr.msk.bf16.mxu0 %vm20377_vm3, %v20035_v60  ;;  %v4302_v13 = vmul.f32 %v20378_v51, %v16185_v19  ;;  %vm20385_vm3 = vcmp.eq.s32.totalorder %v20180_v4, %v20260_v40  ;;  %v3464_v51 = vpack.c.bf16 %v3384_v8, %v3376_v54  ;;  %v16529_v11 = vsel %vm20389_vm10, 1.0, %v19629_v38 }
 0x4ab   : > { %9361 = vmatpush3.bf16.msk.msra.mxu1 %vm20381_vm4, %v20035_v60  ;;  %v16514_v5 = vsel %vm20385_vm3, 1.0, %v19629_v38  ;;  %vm20387_vm4 = vnez %v20386_v24  ;;  %v4381_v4 = vpack.c.bf16 %v4293_v43, %v4285_v39  ;;  %vm20391_vm3 = vnez %v20390_v47 }
 0x4ac   : > { %9474 = vmatprep.subr.msk.bf16.mxu1 %vm20383_vm2, %v20035_v60  ;;  %vm20388_vm2 = vcmp.eq.s32.totalorder %v20206_v53, %v20245_v23  ;;  %v4390_v54 = vpack.c.bf16 %v4310_v52, %v4302_v13  ;;  %v3375_v8 = vmul.f32 %v16508_v33, %v16208_v35  ;;  %v3383_v24 = vmul.f32 %v16514_v5, %v16208_v35 }
 0x4ad   : > { %9425 = vmatpush3.bf16.msk.msra.mxu0 %vm20387_vm4, %v20035_v60  ;;  %v16523_v28 = vsel %vm20388_vm2, 1.0, %v19629_v38  ;;  %v3400_v43 = vmul.f32 %v16529_v11, %v16157_v10  ;;  %v4309_v13 = vmul.f32 %v19943_v14, %v16236_v31  ;;  %v4318_v52 = vmul.f32 %v19944_v37, %v16185_v19 }
 0x4ae   : > { %4157 = vmatmul.mubr.bf16.gmra.mrb[72].mxu1 %v3455_v41  ;;  %9538 = vmatprep.subr.msk.bf16.mxu0 %vm20391_vm3, %v20035_v60  ;;  %v3392_v12 = vmul.f32 %v16523_v28, %v16157_v10  ;;  %v20392_v41 = vld [vmem:[#allocation95_spill] sm:$0xff]  ;;  %vm20393_vm2 = vcmp.eq.s32.totalorder %v20206_v53, %v20260_v40  ;;  %vm20394_vm10 = vcmp.eq.s32.totalorder %v20209_v30, %v20260_v40 }
 0x4af   : > { %4164 = vmatprep.mubr.bf16.mxu1 %v3464_v51  ;;  %v4301_v39 = vmul.f32 %v20392_v41, %v16236_v31  ;;  %v4326_v51 = vmul.f32 %v19945_v25, %v16185_v19  ;;  %v16554_v47 = vsel %vm20393_vm2, 1.0, %v19629_v38  ;;  %vm20395_vm3 = vcmp.eq.s32.totalorder %v20226_v36, %v20245_v23 }
 0x4b0   : > { %4478 = vmatmul.mubr.bf16.gmra.mrb[100].mxu0 %v4381_v4  ;;  %v3463_v4 = vpack.c.bf16 %v3383_v24, %v3375_v8  ;;  %v3472_v14 = vpack.c.bf16 %v3400_v43, %v3392_v12  ;;  %v16566_v37 = vsel %vm20395_vm3, 1.0, %v19629_v38  ;;  %vm20396_vm4 = vcmp.eq.s32.totalorder %v20229_v9, %v20245_v23 }
 0x4b1   : > { %4485 = vmatprep.mubr.bf16.mxu0 %v4390_v54  ;;  %v16560_v54 = vsel %vm20394_vm10, 1.0, %v19629_v38  ;;  %v16572_v53 = vsel %vm20396_vm4, 1.0, %v19629_v38  ;;  %v4389_v24 = vpack.c.bf16 %v4309_v13, %v4301_v39  ;;  %v4398_v8 = vpack.c.bf16 %v4326_v51, %v4318_v52 }
 0x4b2   : > { %v3391_v30 = vmul.f32 %v16554_v47, %v16208_v35  ;;  %v3399_v12 = vmul.f32 %v16560_v54, %v16208_v35  ;;  %v3408_v43 = vmul.f32 %v16566_v37, %v16157_v10  ;;  %v3416_v23 = vmul.f32 %v16572_v53, %v16157_v10 }
 0x4b3   : > { %v4334_v39 = vmul.f32 %v14306_v27, %v16185_v19  ;;  %v4342_v13 = vmul.f32 %v14363_v42, %v16185_v19  ;;  %vm20397_vm4 = vcmp.eq.s32.totalorder %v20226_v36, %v20260_v40  ;;  %vm20398_vm2 = vcmp.eq.s32.totalorder %v20229_v9, %v20260_v40 }
 0x4b4   : > { %v3471_v52 = vpack.c.bf16 %v3399_v12, %v3391_v30  ;;  %v16594_v51 = vsel %vm20397_vm4, 1.0, %v19629_v38  ;;  %v16600_v10 = vsel %vm20398_vm2, 1.0, %v19629_v38  ;;  %v16608_v30 = vrot.slane %v15149_v17, %v20255_v32 }
 0x4b5   : > { %v4406_v36 = vpack.c.bf16 %v4342_v13, %v4334_v39  ;;  %v3407_v12 = vmul.f32 %v16594_v51, %v16208_v35  ;;  %v3415_v9 = vmul.f32 %v16600_v10, %v16208_v35  ;;  %v20399_v35 = vld [vmem:[#allocation146_spill] sm:$0xff] }
 0x4b6   : > { %4165 = vmatmul.mubr.bf16.gmra.mrb[76].mxu1 %v3463_v4  ;;  %v4317_v4 = vmul.f32 %v14281_v26, %v16236_v31  ;;  %v4234_v39 = vmul.f32 %v14807_v44, %v16608_v30  ;;  %v16628_v13 = vrot.slane %v20399_v35, %v20255_v32  ;;  %v20402_v44 = vld [vmem:[#allocation139_spill] sm:$0xff]  ;;  %v20403_v35 = vld [vmem:[#allocation140_spill] sm:$0xff] }
 0x4b7   : > { %4172 = vmatprep.mubr.bf16.mxu1 %v3472_v14  ;;  %v4325_v14 = vmul.f32 %v14300_v21, %v16236_v31 }
 0x4b8   : > { %4486 = vmatmul.mubr.bf16.gmra.mrb[104].mxu0 %v4389_v24  ;;  %v16604_v24 = vrot.slane %v15292_v58, %v20255_v32 }
 0x4b9   : > { %4493 = vmatprep.mubr.bf16.mxu0 %v4398_v8  ;;  %v3480_v8 = vpack.c.bf16 %v3416_v23, %v3408_v43  ;;  %v4397_v19 = vpack.c.bf16 %v4325_v14, %v4317_v4  ;;  %v4333_v23 = vmul.f32 %v14369_v20, %v16236_v31  ;;  %v4341_v4 = vmul.f32 %v14380_v61, %v16236_v31 }
 0x4ba   : > { %v4224_v40 = vmul.f32 %v14986_v56, %v16604_v24  ;;  %v4232_v43 = vmul.f32 %v14992_v6, %v16604_v24  ;;  %v4226_v14 = vmul.f32 %v14801_v29, %v16608_v30  ;;  %v20401_v29 = vld [vmem:[#allocation30_spill] sm:$0xff]  ;;  %v4231_v20 = vmul.f32 %v20402_v44, %v16628_v13  ;;  %v20412_v6 = vld [vmem:[#allocation148_spill] sm:$0xff] }
 0x4bb   : > { %v4405_v38 = vpack.c.bf16 %v4341_v4, %v4333_v23  ;;  %v4223_v61 = vmul.f32 %v20401_v29, %v16628_v13  ;;  %v20406_v23 = vld [vmem:[#allocation122_spill] sm:$0xff]  ;;  %vm20413_vm10 = vnez %v20412_v6  ;;  %v20424_v6 = vld [vmem:[#allocation149_spill] sm:$0xff] }
 0x4bc   : > { %v4354_v31 = vpack.c.bf16 %v4234_v39, %v4226_v14  ;;  %v20408_v39 = vld [vmem:[#allocation125_spill] sm:$0xff]  ;;  %vm20425_vm2 = vnez %v20424_v6 }
 0x4bd   : > { %v4351_v44 = vpack.c.bf16 %v4231_v20, %v4223_v61  ;;  %v20414_v20 = vld [vmem:[#allocation145_spill] sm:$0xff] }
 0x4be   : > { %4173 = vmatmul.mubr.bf16.gmra.mrb[80].mxu1 %v3471_v52  ;;  %v3479_v52 = vpack.c.bf16 %v3415_v9, %v3407_v12  ;;  %v4240_v12 = vmul.f32 %v20403_v35, %v16604_v24  ;;  %v20404_v9 = vld [vmem:[#allocation141_spill] sm:$0xff]  ;;  %v4256_v61 = vmul.f32 %v20414_v20, %v16604_v24  ;;  %v20423_v20 = vld [vmem:[#allocation131_spill] sm:$0xff] }
 0x4bf   : > { %4180 = vmatprep.mubr.bf16.mxu1 %v3480_v8  ;;  %v4352_v8 = vpack.c.bf16 %v4232_v43, %v4224_v40  ;;  %v4248_v40 = vmul.f32 %v20404_v9, %v16604_v24  ;;  %v20405_v43 = vld [vmem:[#allocation121_spill] sm:$0xff]  ;;  %v20494_v9 = vld [vmem:[#allocation180_spill] sm:$0xff] }
 0x4c0   : > { %4494 = vmatmul.mubr.bf16.gmra.mrb[108].mxu0 %v4397_v19  ;;  %v20400_v19 = vld [vmem:[#allocation98_spill] sm:$0xff]  ;;  %v20445_v6 = vld [vmem:[#allocation157_spill] sm:$0xff] }
 0x4c1   : > { %4501 = vmatprep.mubr.bf16.mxu0 %v4406_v36  ;;  %v16632_v36 = vrot.slane %v20400_v19, %v20255_v32  ;;  %v20411_v19 = vld [vmem:[#allocation144_spill] sm:$0xff] }
 0x4c3   : > { %v4233_v4 = vmul.f32 %v20406_v23, %v16632_v36 }
 0x4c6   : > { %4181 = vmatmul.mubr.bf16.gmra.mrb[84].mxu1 %v3479_v52  ;;  %v4225_v52 = vmul.f32 %v20405_v43, %v16632_v36  ;;  %v20410_v43 = vld [vmem:[#allocation143_spill] sm:$0xff] }
 0x4c7   : > { %4542 = vmatprep.mubr.bf16.mxu1 %v4352_v8  ;;  %v4250_v8 = vmul.f32 %v20408_v39, %v16608_v30  ;;  %v4239_v23 = vmul.f32 %v20410_v43, %v16628_v13  ;;  %v20493_v43 = vld [vmem:[#allocation179_spill] sm:$0xff]  ;;  %v20503_v39 = vld [vmem:[#allocation108_spill] sm:$0xff] }
 0x4c8   : > { %4502 = vmatmul.mubr.bf16.gmra.mrb[112].mxu0 %v4405_v38  ;;  %v20407_v38 = vld [vmem:[#allocation124_spill] sm:$0xff]  ;;  %v4353_v29 = vpack.c.bf16 %v4233_v4, %v4225_v52 }
 0x4c9   : > { %4639 = vmatprep.mubr.bf16.mxu0 %v4354_v31  ;;  %v4242_v14 = vmul.f32 %v20407_v38, %v16608_v30  ;;  %v4360_v31 = vpack.c.bf16 %v4248_v40, %v4240_v12  ;;  %v4247_v38 = vmul.f32 %v20411_v19, %v16628_v13  ;;  %v20416_v40 = vld [vmem:[#allocation34_spill] sm:$0xff]  ;;  %v20419_v4 = vld [vmem:[#allocation128_spill] sm:$0xff]  ;;  %v20428_v19 = vld [vmem:[#allocation37_spill] sm:$0xff] }
 0x4ca   : > { %vm20417_vm3 = vnez %v20416_v40 }
 0x4cb   : > { %v4362_v35 = vpack.c.bf16 %v4250_v8, %v4242_v14  ;;  %v4249_v14 = vmul.f32 %v20419_v4, %v16632_v36  ;;  %v20420_v8 = vld [vmem:[#allocation35_spill] sm:$0xff]  ;;  %v4359_v40 = vpack.c.bf16 %v4247_v38, %v4239_v23  ;;  %v20433_v23 = vld [vmem:[#allocation152_spill] sm:$0xff] }
 0x4cc   : > { %vm20421_vm4 = vnez %v20420_v8  ;;  %v4255_v38 = vmul.f32 %v20433_v23, %v16628_v13  ;;  %v20444_v23 = vld [vmem:[#allocation135_spill] sm:$0xff] }
 0x4ce   : > { %4543 = vmatmul.mubr.bf16.vlgmr.msra.gmra.mrb[88].mxu1 %v4351_v44  ;;  %v20415_v44 = vld [vmem:[#allocation151_spill] sm:$0xff] }
 0x4cf   : > { %4550 = vmatprep.mubr.bf16.mxu1 %v4360_v31  ;;  %9475 = vmatpush3.bf16.msk.msra.mxu1 %vm15273_vm6, %v20035_v60  ;;  %v4264_v12 = vmul.f32 %v20415_v44, %v16604_v24  ;;  %v4266_v44 = vmul.f32 %v20423_v20, %v16608_v30 }
 0x4d0   : > { %4640 = vmatmul.mubr.bf16.vlgmr.msra.gmra.mrb[116].mxu0 %v4353_v29  ;;  %9476 = vmatprep.subr.msk.bf16.mxu1 %vm20413_vm10, %v20035_v60  ;;  %v20418_v29 = vld [vmem:[#allocation127_spill] sm:$0xff]  ;;  %vm20429_vm10 = vnez %v20428_v19 }
 0x4d1   : > { %4647 = vmatprep.mubr.bf16.mxu0 %v4362_v35  ;;  %9539 = vmatpush3.bf16.msk.msra.mxu0 %vm20417_vm3, %v20035_v60  ;;  %v4241_v52 = vmul.f32 %v20418_v29, %v16632_v36  ;;  %v20422_v35 = vld [vmem:[#allocation129_spill] sm:$0xff]  ;;  %v20426_v29 = vld [vmem:[#allocation150_spill] sm:$0xff]  ;;  %v4368_v4 = vpack.c.bf16 %v4264_v12, %v4256_v61 }
 0x4d2   : > { %9540 = vmatprep.subr.msk.bf16.mxu0 %vm20421_vm4, %v20035_v60  ;;  %v4258_v31 = vmul.f32 %v20422_v35, %v16608_v30  ;;  %vm20427_vm3 = vnez %v20426_v29  ;;  %v20430_v35 = vld [vmem:[#allocation38_spill] sm:$0xff]  ;;  %v20434_v61 = vld [vmem:[#allocation153_spill] sm:$0xff]  ;;  %v20449_v29 = vld [vmem:[#allocation55_spill] sm:$0xff] }
 0x4d3   : > { %9477 = vmatpush3.bf16.msk.msra.mxu1 %vm20425_vm2, %v20035_v60  ;;  %v4361_v8 = vpack.c.bf16 %v4249_v14, %v4241_v52  ;;  %vm20431_vm4 = vnez %v20430_v35  ;;  %v4263_v19 = vmul.f32 %v20434_v61, %v16628_v13  ;;  %v20436_v52 = vld [vmem:[#allocation155_spill] sm:$0xff]  ;;  %v20441_v12 = vld [vmem:[#allocation54_spill] sm:$0xff] }
 0x4d4   : > { %9478 = vmatprep.subr.msk.bf16.mxu1 %vm20427_vm3, %v20035_v60  ;;  %v4370_v20 = vpack.c.bf16 %v4266_v44, %v4258_v31  ;;  %v20437_v44 = vld [vmem:[#allocation36_spill] sm:$0xff] }
 0x4d5   : > { %9541 = vmatpush3.bf16.msk.msra.mxu0 %vm20429_vm10, %v20035_v60  ;;  %v4280_v14 = vmul.f32 %v20437_v44, %v16604_v24  ;;  %v20439_v31 = vld [vmem:[#allocation132_spill] sm:$0xff]  ;;  %vm20442_vm10 = vnez %v20441_v12  ;;  %v4282_v44 = vmul.f32 %v20444_v23, %v16608_v30  ;;  %v4367_v35 = vpack.c.bf16 %v4263_v19, %v4255_v38  ;;  %v20452_v19 = vld [vmem:[#allocation163_spill] sm:$0xff] }
 0x4d6   : > { %4551 = vmatmul.mubr.bf16.gmra.mrb[92].mxu1 %v4359_v40  ;;  %9542 = vmatprep.subr.msk.bf16.mxu0 %vm20431_vm4, %v20035_v60  ;;  %v4257_v40 = vmul.f32 %v20439_v31, %v16632_v36  ;;  %vm20446_vm4 = vnez %v20445_v6  ;;  %v20447_v31 = vld [vmem:[#allocation158_spill] sm:$0xff]  ;;  %v4271_v38 = vmul.f32 %v15643_v16, %v16628_v13  ;;  %v9042_v16 = vpop.f32.mrb[20].mxu0 }
 0x4d7   : > { %4558 = vmatprep.mubr.bf16.mxu1 %v4368_v4  ;;  %9479 = vmatpush3.bf16.msk.msra.mxu1 %vm15460_vm15, %v20035_v60  ;;  %v4272_v4 = vmul.f32 %v20436_v52, %v16604_v24 }
 0x4d8   : > { %4648 = vmatmul.mubr.bf16.gmra.mrb[120].mxu0 %v4361_v8  ;;  %9480 = vmatprep.subr.msk.bf16.mxu1 %vm15517_vm1, %v20035_v60  ;;  %v20440_v8 = vld [vmem:[#allocation133_spill] sm:$0xff]  ;;  %vm20450_vm1 = vnez %v20449_v29  ;;  %v4279_v29 = vmul.f32 %v20452_v19, %v16628_v13  ;;  %v20463_v19 = vld [vmem:[#allocation56_spill] sm:$0xff] }
 0x4d9   : > { %4655 = vmatprep.mubr.bf16.mxu0 %v4370_v20  ;;  %9543 = vmatpush3.bf16.msk.msra.mxu0 %vm20093_vm5, %v20035_v60  ;;  %v4265_v61 = vmul.f32 %v20440_v8, %v16632_v36  ;;  %v20443_v20 = vld [vmem:[#allocation134_spill] sm:$0xff]  ;;  %vm20448_vm5 = vnez %v20447_v31  ;;  %v4376_v8 = vpack.c.bf16 %v4280_v14, %v4272_v4  ;;  %v20453_v4 = vld [vmem:[#allocation161_spill] sm:$0xff]  ;;  %v20465_v31 = vld [vmem:[#allocation164_spill] sm:$0xff] }
 0x4da   : > { %9544 = vmatprep.subr.msk.bf16.mxu0 %vm20442_vm10, %v20035_v60  ;;  %v4274_v52 = vmul.f32 %v20443_v20, %v16608_v30  ;;  %vm20451_vm10 = vnez %v20127_v7  ;;  %v20455_v7 = vld [vmem:[#allocation40_spill] sm:$0xff]  ;;  %v4375_v15 = vpack.c.bf16 %v4279_v29, %v4271_v38  ;;  %v20476_v14 = vld [vmem:[#allocation171_spill] sm:$0xff] }
 0x4db   : > { %9481 = vmatpush3.bf16.msk.msra.mxu1 %vm20446_vm4, %v20035_v60  ;;  %v4369_v12 = vpack.c.bf16 %v4265_v61, %v4257_v40  ;;  %v4288_v61 = vmul.f32 %v20455_v7, %v16604_v24  ;;  %v20458_v40 = vld [vmem:[#allocation136_spill] sm:$0xff] }
 0x4dc   : > { %9482 = vmatprep.subr.msk.bf16.mxu1 %vm20448_vm5, %v20035_v60  ;;  %v4378_v23 = vpack.c.bf16 %v4282_v44, %v4274_v52  ;;  %v20456_v52 = vld [vmem:[#allocation41_spill] sm:$0xff] }
 0x4dd   : > { %9545 = vmatpush3.bf16.msk.msra.mxu0 %vm20450_vm1, %v20035_v60  ;;  %vm20454_vm1 = vnez %v20453_v4  ;;  %v4296_v44 = vmul.f32 %v20456_v52, %v16604_v24  ;;  %v20460_v4 = vld [vmem:[#allocation57_spill] sm:$0xff]  ;;  %v4298_v52 = vmul.f32 %v20463_v19, %v16608_v30 }
 0x4de   : > { %4559 = vmatmul.mubr.bf16.gmra.mrb[96].mxu1 %v4367_v35  ;;  %9546 = vmatprep.subr.msk.bf16.mxu0 %vm20451_vm10, %v20035_v60  ;;  %v20459_v35 = vld [vmem:[#allocation137_spill] sm:$0xff]  ;;  %vm20461_vm10 = vnez %v20460_v4 }
 0x4df   : > { %4566 = vmatprep.mubr.bf16.mxu1 %v4376_v8  ;;  %9483 = vmatpush3.bf16.msk.msra.mxu1 %vm15689_vm11, %v20035_v60  ;;  %v4273_v8 = vmul.f32 %v20458_v40, %v16632_v36  ;;  %v9043_v40 = vpop.f32.mrb[21].mxu0 }
 0x4e0   : > { %4656 = vmatmul.mubr.bf16.gmra.mrb[124].mxu0 %v4369_v12  ;;  %9484 = vmatprep.subr.msk.bf16.mxu1 %vm20454_vm1, %v20035_v60  ;;  %v4281_v12 = vmul.f32 %v20459_v35, %v16632_v36  ;;  %v4384_v35 = vpack.c.bf16 %v4296_v44, %v4288_v61  ;;  %v16764_v4 = vadd.f32 %v9043_v40, %v9042_v16  ;;  %v9045_v6 = vpop.f32.mrb[22].mxu0  ;;  %v20473_v44 = vld [vmem:[#allocation169_spill] sm:$0xff]  ;;  %v20477_v61 = vld [vmem:[#allocation172_spill] sm:$0xff] }
 0x4e1   : > { %4663 = vmatprep.mubr.bf16.mxu0 %v4378_v23  ;;  %9547 = vmatpush3.bf16.msk.msra.mxu0 %vm20147_vm9, %v20035_v60  ;;  %v20462_v23 = vld [vmem:[#allocation46_spill] sm:$0xff]  ;;  %vm20466_vm9 = vnez %v20465_v31  ;;  %v9046_v20 = vpop.f32.mrb[23].mxu0  ;;  %v4287_v16 = vmul.f32 %v15908_v62, %v16628_v13  ;;  %v4297_v40 = vmul.f32 %v20473_v44, %v16632_v36 }
 0x4e2   : > { %9548 = vmatprep.subr.msk.bf16.mxu0 %vm20461_vm10, %v20035_v60  ;;  %v4290_v7 = vmul.f32 %v20462_v23, %v16608_v30  ;;  %v20467_v23 = vld [vmem:[#allocation58_spill] sm:$0xff]  ;;  %v4377_v19 = vpack.c.bf16 %v4281_v12, %v4273_v8  ;;  %v16772_v29 = vadd.f32 %v9046_v20, %v9045_v6  ;;  %v4304_v6 = vmul.f32 %v15935_v1, %v16604_v24  ;;  %v20470_v20 = vld [vmem:[#allocation43_spill] sm:$0xff] }
 0x4e3   : > { %9485 = vmatpush3.bf16.msk.msra.mxu1 %vm15721_vm14, %v20035_v60  ;;  %vm20468_vm10 = vnez %v20467_v23  ;;  %v20475_v12 = vld [vmem:[#allocation170_spill] sm:$0xff]  ;;  %v20479_v1 = vld [vmem:[#allocation63_spill] sm:$0xff] }
 0x4e4   : > { %9486 = vmatprep.subr.msk.bf16.mxu1 %vm20466_vm9, %v20035_v60  ;;  %v4386_v38 = vpack.c.bf16 %v4298_v52, %v4290_v7  ;;  %v4312_v7 = vmul.f32 %v20470_v20, %v16604_v24  ;;  %v4306_v23 = vmul.f32 %v20475_v12, %v16608_v30 }
 0x4e5   : > { %9549 = vmatpush3.bf16.msk.msra.mxu0 %vm20468_vm10, %v20035_v60 }
 0x4e6   : > { %4567 = vmatmul.mubr.bf16.gmra.mrb[100].mxu1 %v4375_v15  ;;  %9550 = vmatprep.subr.msk.bf16.mxu0 %vm20184_vm7, %v20035_v60  ;;  %v4295_v15 = vmul.f32 %v15914_v18, %v16628_v13  ;;  %vm20478_vm7 = vnez %v20477_v61  ;;  %v4392_v44 = vpack.c.bf16 %v4312_v7, %v4304_v6  ;;  %v20481_v18 = vld [vmem:[#allocation62_spill] sm:$0xff]  ;;  %v20483_v61 = vld [vmem:[#allocation65_spill] sm:$0xff] }
 0x4e7   : > { %4574 = vmatprep.mubr.bf16.mxu1 %v4384_v35  ;;  %9487 = vmatpush3.bf16.msk.msra.mxu1 %vm15872_vm13, %v20035_v60  ;;  %v9048_v35 = vpop.f32.mrb[24].mxu0  ;;  %vm20484_vm10 = vnez %v20483_v61  ;;  %v20486_v7 = vld [vmem:[#allocation174_spill] sm:$0xff] }
 0x4e8   : > { %4664 = vmatmul.mubr.bf16.gmra.mrb[128].mxu0 %v4377_v19  ;;  %9488 = vmatprep.subr.msk.bf16.mxu1 %vm15889_vm0, %v20035_v60  ;;  %v20472_v19 = vld [vmem:[#allocation24_spill] sm:$0xff]  ;;  %v4383_v20 = vpack.c.bf16 %v4295_v15, %v4287_v16  ;;  %v20492_v61 = vld [vmem:[#allocation178_spill] sm:$0xff] }
 0x4e9   : > { %4671 = vmatprep.mubr.bf16.mxu0 %v4386_v38  ;;  %9551 = vmatpush3.bf16.msk.msra.mxu0 %vm20195_vm8, %v20035_v60  ;;  %v4289_v52 = vmul.f32 %v20472_v19, %v16632_v36  ;;  %v4314_v38 = vmul.f32 %v20476_v14, %v16608_v30  ;;  %v9049_v19 = vpop.f32.mrb[25].mxu0  ;;  %vm20480_vm8 = vnez %v20479_v1  ;;  %v20485_v1 = vld [vmem:[#allocation173_spill] sm:$0xff] }
 0x4ea   : > { %9552 = vmatprep.subr.msk.bf16.mxu0 %vm20197_vm12, %v20035_v60  ;;  %v16808_v8 = vadd.f32 %v9049_v19, %v9048_v35  ;;  %v9051_v0 = vpop.f32.mrb[26].mxu0  ;;  %vm20482_vm12 = vnez %v20481_v18  ;;  %v4303_v6 = vmul.f32 %v20485_v1, %v16628_v13  ;;  %v4311_v19 = vmul.f32 %v20486_v7, %v16628_v13  ;;  %v20487_v18 = vld [vmem:[#allocation44_spill] sm:$0xff]  ;;  %v20489_v35 = vld [vmem:[#allocation175_spill] sm:$0xff] }
 0x4eb   : > { %9489 = vmatpush3.bf16.msk.msra.mxu1 %vm20478_vm7, %v20035_v60  ;;  %v4385_v14 = vpack.c.bf16 %v4297_v40, %v4289_v52  ;;  %v9052_v12 = vpop.f32.mrb[27].mxu0  ;;  %v4394_v16 = vpack.c.bf16 %v4314_v38, %v4306_v23  ;;  %v20488_v52 = vld [vmem:[#allocation45_spill] sm:$0xff]  ;;  %v4330_v7 = vmul.f32 %v20492_v61, %v16608_v30  ;;  %v4327_v61 = vmul.f32 %v20494_v9, %v16628_v13 }
 0x4ec   : > { %9602 = vmatprep.subr.msk.bf16.mxu1 %vm20480_vm8, %v20035_v60  ;;  %v16816_v15 = vadd.f32 %v9052_v12, %v9051_v0  ;;  %v4328_v40 = vmul.f32 %v20488_v52, %v16604_v24  ;;  %v20490_v0 = vld [vmem:[#allocation176_spill] sm:$0xff]  ;;  %v9054_v23 = vpop.f32.mrb[28].mxu0  ;;  %v4391_v1 = vpack.c.bf16 %v4311_v19, %v4303_v6  ;;  %v20495_v6 = vld [vmem:[#allocation47_spill] sm:$0xff]  ;;  %vm20518_vm8 = vnez %v20284_v50 }
 0x4ed   : > { %9553 = vmatpush3.bf16.msk.msra.mxu0 %vm20482_vm12, %v20035_v60  ;;  %v4313_v12 = vmul.f32 %v20490_v0, %v16632_v36  ;;  %v4336_v19 = vmul.f32 %v20495_v6, %v16604_v24  ;;  %v20525_v50 = vld [vmem:[#allocation107_spill] sm:$0xff] }
 0x4ee   : > { %4575 = vmatmul.mubr.bf16.gmra.mrb[104].mxu1 %v4383_v20  ;;  %9666 = vmatprep.subr.msk.bf16.mxu0 %vm20484_vm10, %v20035_v60  ;;  %v4320_v20 = vmul.f32 %v20487_v18, %v16604_v24  ;;  %vm20526_vm10 = vnez %v20525_v50 }
 0x4ef   : > { %4582 = vmatprep.mubr.bf16.mxu1 %v4392_v44  ;;  %v4305_v44 = vmul.f32 %v20489_v35, %v16632_v36 }
 0x4f0   : > { %4672 = vmatmul.mubr.bf16.gmra.mrb[132].mxu0 %v4385_v14  ;;  %v20491_v14 = vld [vmem:[#allocation177_spill] sm:$0xff]  ;;  %v4400_v57 = vpack.c.bf16 %v4328_v40, %v4320_v20  ;;  %v20496_v20 = vld [vmem:[#allocation48_spill] sm:$0xff] }
 0x4f1   : > { %4679 = vmatprep.mubr.bf16.mxu0 %v4394_v16  ;;  %v4322_v38 = vmul.f32 %v20491_v14, %v16608_v30  ;;  %v9055_v16 = vpop.f32.mrb[29].mxu0  ;;  %v4393_v31 = vpack.c.bf16 %v4313_v12, %v4305_v44  ;;  %v4319_v14 = vmul.f32 %v20493_v43, %v16628_v13  ;;  %v20497_v40 = vld [vmem:[#allocation181_spill] sm:$0xff]  ;;  %v20500_v12 = vld [vmem:[#allocation184_spill] sm:$0xff] }
 0x4f2   : > { %v16834_v62 = vadd.f32 %v9055_v16, %v9054_v23  ;;  %v9057_v18 = vpop.f32.mrb[30].mxu0  ;;  %v4346_v23 = vmul.f32 %v20500_v12, %v16608_v30  ;;  %v20501_v16 = vld [vmem:[#allocation185_spill] sm:$0xff]  ;;  %v20502_v43 = vld [vmem:[#allocation28_spill] sm:$0xff] }
 0x4f3   : > { %v9058_v52 = vpop.f32.mrb[31].mxu0  ;;  %v4402_v0 = vpack.c.bf16 %v4330_v7, %v4322_v38  ;;  %v4399_v38 = vpack.c.bf16 %v4327_v61, %v4319_v14  ;;  %v16856_v6 = vrot.slane %v20501_v16, %v20255_v32  ;;  %v16862_v56 = vrot.slane %v20503_v39, %v20502_v43  ;;  %v20504_v61 = vld [vmem:[#allocation187_spill] sm:$0xff]  ;;  %v20507_v39 = vld [vmem:[#allocation188_spill] sm:$0xff]  ;;  %v20512_v16 = vld [vmem:[#allocation106_spill] sm:$0xff] }
 0x4f4   : > { %v16836_v35 = vadd.f32 %v9058_v52, %v9057_v18  ;;  %v20498_v18 = vld [vmem:[#allocation182_spill] sm:$0xff]  ;;  %v20499_v52 = vld [vmem:[#allocation183_spill] sm:$0xff]  ;;  %v4335_v14 = vmul.f32 %v16147_v63, %v16628_v13 }
 0x4f5   : > { %v4329_v7 = vmul.f32 %v20498_v18, %v16632_v36  ;;  %v4338_v44 = vmul.f32 %v20499_v52, %v16608_v30 }
 0x4f6   : > { %4583 = vmatmul.mubr.bf16.gmra.mrb[108].mxu1 %v4391_v1  ;;  %v4344_v1 = vmul.f32 %v20496_v20, %v16604_v24 }
 0x4f7   : > { %4590 = vmatprep.mubr.bf16.mxu1 %v4400_v57  ;;  %v4321_v57 = vmul.f32 %v20497_v40, %v16632_v36  ;;  %v4410_v30 = vpack.c.bf16 %v4346_v23, %v4338_v44  ;;  %v20509_v44 = vld [vmem:[#allocation51_spill] sm:$0xff] }
 0x4f8   : > { %4680 = vmatmul.mubr.bf16.gmra.mrb[136].mxu0 %v4393_v31  ;;  %v9060_v31 = vpop.f32.mrb[32].mxu0  ;;  %v4408_v40 = vpack.c.bf16 %v4344_v1, %v4336_v19  ;;  %v20505_v19 = vld [vmem:[#allocation31_spill] sm:$0xff]  ;;  %v4834_v23 = vmul.f32 %v20509_v44, %v16862_v56 }
 0x4f9   : > { %4687 = vmatprep.mubr.bf16.mxu0 %v4402_v0  ;;  %v9061_v0 = vpop.f32.mrb[33].mxu0  ;;  %v4401_v18 = vpack.c.bf16 %v4329_v7, %v4321_v57  ;;  %v4228_v1 = vmul.f32 %v20505_v19, %v16856_v6  ;;  %v20506_v57 = vld [vmem:[#allocation22_spill] sm:$0xff] }
 0x4fa   : > { %v16858_v24 = vadd.f32 %v9061_v0, %v9060_v31  ;;  %v9063_v20 = vpop.f32.mrb[34].mxu0  ;;  %v4343_v31 = vmul.f32 %v20504_v61, %v16628_v13  ;;  %v4236_v7 = vmul.f32 %v20506_v57, %v16856_v6  ;;  %v20510_v0 = vld [vmem:[#allocation74_spill] sm:$0xff] }
 0x4fb   : > { %v9064_v9 = vpop.f32.mrb[35].mxu0  ;;  %v4842_v13 = vmul.f32 %v20510_v0, %v16862_v56 }
 0x4fc   : > { %v16864_v52 = vadd.f32 %v9064_v9, %v9063_v20  ;;  %v4337_v9 = vmul.f32 %v20507_v39, %v16632_v36  ;;  %v20508_v20 = vld [vmem:[#allocation189_spill] sm:$0xff]  ;;  %v4407_v61 = vpack.c.bf16 %v4343_v31, %v4335_v14  ;;  %v4356_v39 = vpack.c.bf16 %v4236_v7, %v4228_v1  ;;  %v20513_v14 = vld [vmem:[#allocation190_spill] sm:$0xff]  ;;  %v20515_v1 = vld [vmem:[#allocation75_spill] sm:$0xff] }
 0x4fd   : > { %v4962_v0 = vpack.c.bf16 %v4842_v13, %v4834_v23 }
 0x4fe   : > { %4591 = vmatmul.mubr.bf16.gmra.mrb[112].mxu1 %v4399_v38  ;;  %v20511_v38 = vld [vmem:[#allocation49_spill] sm:$0xff] }
 0x4ff   : > { %4598 = vmatprep.mubr.bf16.mxu1 %v4408_v40  ;;  %v4345_v40 = vmul.f32 %v20508_v20, %v16632_v36  ;;  %v16890_v36 = vrot.slane %v20512_v16, %v20502_v43  ;;  %v4252_v16 = vmul.f32 %v16232_v2, %v16856_v6 }
 0x500   : > { %4688 = vmatmul.mubr.bf16.gmra.mrb[140].mxu0 %v4401_v18  ;;  %v9066_v18 = vpop.f32.mrb[36].mxu0 }
 0x501   : > { %4695 = vmatprep.mubr.bf16.mxu0 %v4410_v30  ;;  %v16884_v30 = vrot.slane %v20511_v38, %v20255_v32  ;;  %v9067_v19 = vpop.f32.mrb[37].mxu0  ;;  %v4409_v44 = vpack.c.bf16 %v4345_v40, %v4337_v9  ;;  %v4841_v7 = vmul.f32 %v20515_v1, %v16890_v36  ;;  %v20516_v9 = vld [vmem:[#allocation76_spill] sm:$0xff]  ;;  %v20517_v40 = vld [vmem:[#allocation77_spill] sm:$0xff] }
 0x502   : > { %v16886_v57 = vadd.f32 %v9067_v19, %v9066_v18  ;;  %v9069_v63 = vpop.f32.mrb[38].mxu0  ;;  %v4244_v19 = vmul.f32 %v16226_v55, %v16856_v6  ;;  %v4858_v18 = vmul.f32 %v20517_v40, %v16862_v56 }
 0x503   : > { %v9070_v20 = vpop.f32.mrb[39].mxu0  ;;  %v4227_v32 = vmul.f32 %v16214_v49, %v16884_v30  ;;  %v4235_v31 = vmul.f32 %v20513_v14, %v16884_v30  ;;  %v20580_v49 = vld [vmem:[#allocation100_spill] sm:$0xff] }
 0x504   : > { %v16892_v12 = vadd.f32 %v9070_v20, %v9069_v63  ;;  %v4850_v20 = vmul.f32 %v20516_v9, %v16862_v56  ;;  %v4364_v55 = vpack.c.bf16 %v4252_v16, %v4244_v19  ;;  %v20519_v9 = vld [vmem:[#allocation191_spill] sm:$0xff]  ;;  %v20521_v19 = vld [vmem:[#allocation66_spill] sm:$0xff] }
 0x505   : > { %v4355_v13 = vpack.c.bf16 %v4235_v31, %v4227_v32  ;;  %v4243_v40 = vmul.f32 %v20519_v9, %v16884_v30  ;;  %v20520_v32 = vld [vmem:[#allocation192_spill] sm:$0xff]  ;;  %vm20522_vm12 = vnez %v20521_v19  ;;  %v20524_v16 = vld [vmem:[#allocation194_spill] sm:$0xff]  ;;  %v20532_v19 = vld [vmem:[#allocation67_spill] sm:$0xff] }
 0x506   : > { %4599 = vmatmul.mubr.bf16.gmra.mrb[116].mxu1 %v4407_v61  ;;  %v20514_v61 = vld [vmem:[#allocation53_spill] sm:$0xff]  ;;  %v4970_v1 = vpack.c.bf16 %v4858_v18, %v4850_v20  ;;  %v4251_v31 = vmul.f32 %v20520_v32, %v16884_v30  ;;  %v20536_v32 = vld [vmem:[#allocation52_spill] sm:$0xff] }
 0x507   : > { %4736 = vmatprep.mubr.bf16.mxu1 %v4356_v39  ;;  %v4833_v63 = vmul.f32 %v20514_v61, %v16890_v36  ;;  %v9072_v39 = vpop.f32.mrb[40].mxu0  ;;  %v20528_v20 = vld [vmem:[#allocation109_spill] sm:$0xff] }
 0x508   : > { %4696 = vmatmul.mubr.bf16.gmra.mrb[144].mxu0 %v4409_v44  ;;  %v9073_v23 = vpop.f32.mrb[41].mxu0 }
 0x509   : > { %5057 = vmatprep.mubr.bf16.mxu0 %v4962_v0  ;;  %v16910_v44 = vadd.f32 %v9073_v23, %v9072_v39  ;;  %v9075_v0 = vpop.f32.mrb[42].mxu0  ;;  %v4961_v14 = vpack.c.bf16 %v4841_v7, %v4833_v63  ;;  %v4268_v63 = vmul.f32 %v20524_v16, %v16856_v6  ;;  %v4857_v39 = vmul.f32 %v20291_v3, %v16890_v36  ;;  %v20530_v23 = vld [vmem:[#allocation80_spill] sm:$0xff] }
 0x50a   : > { %v9076_v2 = vpop.f32.mrb[43].mxu0  ;;  %v20534_v16 = vld [vmem:[#allocation68_spill] sm:$0xff] }
 0x50b   : > { %v16912_v61 = vadd.f32 %v9076_v2, %v9075_v0  ;;  %v20523_v2 = vld [vmem:[#allocation193_spill] sm:$0xff]  ;;  %v9078_v18 = vpop.f32.mrb[44].mxu0 }
 0x50c   : > { %v20531_v0 = vld [vmem:[#allocation81_spill] sm:$0xff]  ;;  %v9079_v50 = vpop.f32.mrb[45].mxu0 }
 0x50d   : > { %v16948_v3 = vadd.f32 %v9079_v50, %v9078_v18 }
 0x50e   : > { %4737 = vmatmul.mubr.bf16.vlgmr.msra.gmra.mrb[120].mxu1 %v4355_v13  ;;  %v4866_v13 = vmul.f32 %v20530_v23, %v16862_v56 }
 0x50f   : > { %4744 = vmatprep.mubr.bf16.mxu1 %v4364_v55  ;;  %9603 = vmatpush3.bf16.msk.msra.mxu1 %vm20518_vm8, %v20035_v60  ;;  %v4260_v55 = vmul.f32 %v20523_v2, %v16856_v6  ;;  %vm20529_vm8 = vnez %v20528_v20  ;;  %v9081_v20 = vpop.f32.mrb[46].mxu0 }
 0x510   : > { %5058 = vmatmul.mubr.bf16.vlgmr.msra.gmra.mrb[148].mxu0 %v4961_v14  ;;  %9604 = vmatprep.subr.msk.bf16.mxu1 %vm20522_vm12, %v20035_v60  ;;  %v20527_v14 = vld [vmem:[#allocation78_spill] sm:$0xff]  ;;  %vm20533_vm12 = vnez %v20532_v19  ;;  %v9082_v23 = vpop.f32.mrb[47].mxu0 }
 0x511   : > { %5065 = vmatprep.mubr.bf16.mxu0 %v4970_v1  ;;  %9667 = vmatpush3.bf16.msk.msra.mxu0 %vm20526_vm10, %v20035_v60  ;;  %v4849_v7 = vmul.f32 %v20527_v14, %v16890_v36  ;;  %v4874_v1 = vmul.f32 %v20531_v0, %v16862_v56  ;;  %v4363_v14 = vpack.c.bf16 %v4251_v31, %v4243_v40  ;;  %v20549_v19 = vld [vmem:[#allocation82_spill] sm:$0xff] }
 0x512   : > { %9668 = vmatprep.subr.msk.bf16.mxu0 %vm20529_vm8, %v20035_v60  ;;  %vm20535_vm10 = vnez %v20534_v16  ;;  %v4372_v2 = vpack.c.bf16 %v4268_v63, %v4260_v55  ;;  %vm20537_vm8 = vnez %v20536_v32  ;;  %v16956_v40 = vadd.f32 %v9082_v23, %v9081_v20  ;;  %v20539_v16 = vld [vmem:[#allocation69_spill] sm:$0xff]  ;;  %v20541_v55 = vld [vmem:[#allocation64_spill] sm:$0xff]  ;;  %v20542_v63 = vld [vmem:[#allocation79_spill] sm:$0xff]  ;;  %v9084_v23 = vpop.f32.mrb[48].mxu0 }
 0x513   : > { %9605 = vmatpush3.bf16.msk.msra.mxu1 %vm20533_vm12, %v20035_v60  ;;  %v4969_v0 = vpack.c.bf16 %v4857_v39, %v4849_v7  ;;  %vm20538_vm12 = vnez %v20310_v45  ;;  %v4978_v31 = vpack.c.bf16 %v4874_v1, %v4866_v13  ;;  %v4259_v32 = vmul.f32 %v20541_v55, %v16884_v30  ;;  %v20543_v7 = vld [vmem:[#allocation70_spill] sm:$0xff]  ;;  %v20545_v45 = vld [vmem:[#allocation195_spill] sm:$0xff]  ;;  %v20546_v39 = vld [vmem:[#allocation196_spill] sm:$0xff] }
 0x514   : > { %9606 = vmatprep.subr.msk.bf16.mxu1 %vm20535_vm10, %v20035_v60  ;;  %vm20540_vm10 = vnez %v20539_v16  ;;  %v4267_v18 = vmul.f32 %v20542_v63, %v16884_v30  ;;  %v4284_v13 = vmul.f32 %v20546_v39, %v16856_v6  ;;  %v20547_v1 = vld [vmem:[#allocation111_spill] sm:$0xff]  ;;  %v4865_v50 = vmul.f32 %v20549_v19, %v16890_v36  ;;  %v20550_v20 = vld [vmem:[#allocation113_spill] sm:$0xff]  ;;  %v9085_v39 = vpop.f32.mrb[49].mxu0  ;;  %v20559_v55 = vld [vmem:[#allocation114_spill] sm:$0xff] }
 0x515   : > { %9669 = vmatpush3.bf16.msk.msra.mxu0 %vm20537_vm8, %v20035_v60  ;;  %vm20544_vm8 = vnez %v20543_v7  ;;  %v20553_v16 = vld [vmem:[#allocation85_spill] sm:$0xff] }
 0x516   : > { %4745 = vmatmul.mubr.bf16.gmra.mrb[124].mxu1 %v4363_v14  ;;  %9670 = vmatprep.subr.msk.bf16.mxu0 %vm20538_vm12, %v20035_v60  ;;  %vm20548_vm12 = vnez %v20547_v1  ;;  %v4873_v14 = vmul.f32 %v20319_v34, %v16890_v36  ;;  %v4890_v7 = vmul.f32 %v20553_v16, %v16862_v56  ;;  %v20554_v1 = vld [vmem:[#allocation71_spill] sm:$0xff]  ;;  %v4371_v19 = vpack.c.bf16 %v4267_v18, %v4259_v32 }
 0x517   : > { %4752 = vmatprep.mubr.bf16.mxu1 %v4372_v2  ;;  %9607 = vmatpush3.bf16.msk.msra.mxu1 %vm20540_vm10, %v20035_v60  ;;  %v4276_v2 = vmul.f32 %v20545_v45, %v16856_v6  ;;  %vm20551_vm10 = vnez %v20550_v20  ;;  %v20556_v45 = vld [vmem:[#allocation72_spill] sm:$0xff]  ;;  %v16992_v34 = vadd.f32 %v9085_v39, %v9084_v23  ;;  %v9087_v20 = vpop.f32.mrb[50].mxu0  ;;  %v20566_v39 = vld [vmem:[#allocation83_spill] sm:$0xff]  ;;  %v20570_v23 = vld [vmem:[#allocation198_spill] sm:$0xff] }
 0x518   : > { %5066 = vmatmul.mubr.bf16.gmra.mrb[152].mxu0 %v4969_v0  ;;  %9608 = vmatprep.subr.msk.bf16.mxu1 %vm20544_vm8, %v20035_v60  ;;  %v20552_v0 = vld [vmem:[#allocation84_spill] sm:$0xff]  ;;  %vm20555_vm8 = vnez %v20554_v1  ;;  %v4977_v16 = vpack.c.bf16 %v4873_v14, %v4865_v50  ;;  %v20567_v50 = vld [vmem:[#allocation91_spill] sm:$0xff] }
 0x519   : > { %5073 = vmatprep.mubr.bf16.mxu0 %v4978_v31  ;;  %9671 = vmatpush3.bf16.msk.msra.mxu0 %vm20548_vm12, %v20035_v60  ;;  %v4882_v31 = vmul.f32 %v20552_v0, %v16862_v56  ;;  %vm20557_vm12 = vnez %v20556_v45  ;;  %20558 = vst [vmem:[#allocation123_spill] sm:$0xff] %v16992_v34  ;;  %v4380_v63 = vpack.c.bf16 %v4284_v13, %v4276_v2  ;;  %v9088_v0 = vpop.f32.mrb[51].mxu0  ;;  %v20563_v45 = vld [vmem:[#allocation73_spill] sm:$0xff]  ;;  %v20565_v2 = vld [vmem:[#allocation110_spill] sm:$0xff] }
 0x51a   : > { %9672 = vmatprep.subr.msk.bf16.mxu0 %vm20551_vm10, %v20035_v60  ;;  %vm20560_vm10 = vnez %v20559_v55  ;;  %v17000_v32 = vadd.f32 %v9088_v0, %v9087_v20  ;;  %v4275_v55 = vmul.f32 %v20565_v2, %v16884_v30  ;;  %v4283_v13 = vmul.f32 %v20566_v39, %v16884_v30  ;;  %v9170_v39 = vpop.f32.mrb[52].mxu0  ;;  %v20578_v2 = vld [vmem:[#allocation99_spill] sm:$0xff] }
 0x51b   : > { %9609 = vmatpush3.bf16.msk.msra.mxu1 %vm20555_vm8, %v20035_v60  ;;  %vm20561_vm8 = vnez %v20338_v48  ;;  %v4986_v18 = vpack.c.bf16 %v4890_v7, %v4882_v31  ;;  %v9106_v48 = vpop.f32.mrb[24].mxu1  ;;  %v4300_v31 = vmul.f32 %v20570_v23, %v16856_v6  ;;  %v20571_v7 = vld [vmem:[#allocation116_spill] sm:$0xff]  ;;  %v4889_v0 = vmul.f32 %v20347_v59, %v16890_v36  ;;  %v9171_v9 = vpop.f32.mrb[53].mxu0 }
 0x51c   : > { %9610 = vmatprep.subr.msk.bf16.mxu1 %vm20557_vm12, %v20035_v60  ;;  %20562 = vst [vmem:[#allocation92_spill] sm:$0xff] %v17000_v32  ;;  %vm20564_vm12 = vnez %v20563_v45  ;;  %v9107_v1 = vpop.f32.mrb[25].mxu1  ;;  %v20575_v45 = vld [vmem:[#allocation89_spill] sm:$0xff]  ;;  %v4379_v59 = vpack.c.bf16 %v4283_v13, %v4275_v55  ;;  %v9172_v38 = vadd.f32 %v9171_v9, %v9170_v39  ;;  %v20587_v39 = vld [vmem:[#allocation115_spill] sm:$0xff] }
 0x51d   : > { %9673 = vmatpush3.bf16.msk.msra.mxu0 %vm20560_vm10, %v20035_v60  ;;  %vm20568_vm10 = vnez %v20567_v50  ;;  %v4906_v50 = vmul.f32 %v20575_v45, %v16862_v56  ;;  %v9108_v23 = vadd.f32 %v9107_v1, %v9106_v48  ;;  %v20582_v48 = vld [vmem:[#allocation118_spill] sm:$0xff]  ;;  %v20585_v9 = vld [vmem:[#allocation101_spill] sm:$0xff]  ;;  %v4291_v13 = vmul.f32 %v20587_v39, %v16884_v30 }
 0x51e   : > { %4753 = vmatmul.mubr.bf16.gmra.mrb[128].mxu1 %v4371_v19  ;;  %9674 = vmatprep.subr.msk.bf16.mxu0 %vm20561_vm8, %v20035_v60  ;;  %vm20572_vm8 = vnez %v20571_v7  ;;  %v20573_v19 = vld [vmem:[#allocation86_spill] sm:$0xff]  ;;  %v9109_v7 = vpop.f32.mrb[26].mxu1 }
 0x51f   : > { %4760 = vmatprep.mubr.bf16.mxu1 %v4380_v63  ;;  %9611 = vmatpush3.bf16.msk.msra.mxu1 %vm20564_vm12, %v20035_v60  ;;  %v20569_v63 = vld [vmem:[#allocation197_spill] sm:$0xff]  ;;  %v4881_v20 = vmul.f32 %v20573_v19, %v16890_v36  ;;  %v9110_v19 = vpop.f32.mrb[27].mxu1 }
 0x520   : > { %5074 = vmatmul.mubr.bf16.gmra.mrb[156].mxu0 %v4977_v16  ;;  %9612 = vmatprep.subr.msk.bf16.mxu1 %vm20568_vm10, %v20035_v60  ;;  %v4292_v14 = vmul.f32 %v20569_v63, %v16856_v6  ;;  %v20574_v16 = vld [vmem:[#allocation88_spill] sm:$0xff]  ;;  %v20576_v63 = vld [vmem:[#allocation117_spill] sm:$0xff]  ;;  %vm20579_vm10 = vnez %v20578_v2  ;;  %v9111_v45 = vadd.f32 %v9110_v19, %v9109_v7  ;;  %v20595_v7 = vld [vmem:[#allocation90_spill] sm:$0xff] }
 0x521   : > { %5081 = vmatprep.mubr.bf16.mxu0 %v4986_v18  ;;  %9675 = vmatpush3.bf16.msk.msra.mxu0 %vm20572_vm8, %v20035_v60  ;;  %v4898_v18 = vmul.f32 %v20574_v16, %v16862_v56  ;;  %vm20577_vm12 = vnez %v20576_v63  ;;  %vm20581_vm8 = vnez %v20580_v49  ;;  %v3933_v16 = vadd.f32 %v9108_v23, %v16764_v4  ;;  %v9173_v63 = vpop.f32.mrb[54].mxu0 }
 0x522   : > { %9676 = vmatprep.subr.msk.bf16.mxu0 %vm20577_vm12, %v20035_v60  ;;  %v4388_v32 = vpack.c.bf16 %v4300_v31, %v4292_v14  ;;  %vm20583_vm12 = vnez %v20582_v48  ;;  %v9174_v1 = vpop.f32.mrb[55].mxu0  ;;  %v4985_v2 = vpack.c.bf16 %v4889_v0, %v4881_v20  ;;  %v3936_v49 = vadd.f32 %v9111_v45, %v16772_v29  ;;  %v20588_v14 = vld [vmem:[#allocation87_spill] sm:$0xff]  ;;  %v20592_v20 = vld [vmem:[#allocation200_spill] sm:$0xff]  ;;  %v20598_v48 = vld [vmem:[#allocation93_spill] sm:$0xff] }
 0x523   : > { %9613 = vmatpush3.bf16.msk.msra.mxu1 %vm20579_vm10, %v20035_v60  ;;  %v4994_v34 = vpack.c.bf16 %v4906_v50, %v4898_v18  ;;  %vm20584_vm10 = vnez %v20366_v46  ;;  %v17044_v55 = vadd.f32 %v9172_v38, %v3933_v16  ;;  %v9175_v4 = vadd.f32 %v9174_v1, %v9173_v63  ;;  %v20589_v46 = vld [vmem:[#allocation103_spill] sm:$0xff]  ;;  %v9112_v38 = vpop.f32.mrb[28].mxu1  ;;  %v20593_v18 = vld [vmem:[#allocation126_spill] sm:$0xff]  ;;  %v9176_v63 = vpop.f32.mrb[56].mxu0 }
 0x524   : > { %9614 = vmatprep.subr.msk.bf16.mxu1 %vm20581_vm8, %v20035_v60  ;;  %vm20586_vm8 = vnez %v20585_v9  ;;  %v4299_v23 = vmul.f32 %v20588_v14, %v16884_v30  ;;  %v4316_v0 = vmul.f32 %v20592_v20, %v16856_v6  ;;  %v9113_v50 = vpop.f32.mrb[29].mxu1  ;;  %v4897_v19 = vmul.f32 %v20595_v7, %v16890_v36  ;;  %v20596_v16 = vld [vmem:[#allocation130_spill] sm:$0xff] }
 0x525   : > { %9677 = vmatpush3.bf16.msk.msra.mxu0 %vm20583_vm12, %v20035_v60  ;;  %vm20590_vm12 = vnez %v20589_v46  ;;  %v17056_v29 = vadd.f32 %v9175_v4, %v3936_v49  ;;  %v9115_v45 = vpop.f32.mrb[30].mxu1  ;;  %v4914_v1 = vmul.f32 %v20598_v48, %v16862_v56  ;;  %v20600_v4 = vld [vmem:[#allocation105_spill] sm:$0xff]  ;;  %v9177_v46 = vpop.f32.mrb[57].mxu0  ;;  %v20604_v20 = vld [vmem:[#allocation142_spill] sm:$0xff] }
 0x526   : > { %4761 = vmatmul.mubr.bf16.gmra.mrb[132].mxu1 %v4379_v59  ;;  %9678 = vmatprep.subr.msk.bf16.mxu0 %vm20584_vm10, %v20035_v60  ;;  %vm20594_vm10 = vnez %v20593_v18  ;;  %v4905_v59 = vmul.f32 %v20375_v22, %v16890_v36  ;;  %v9116_v9 = vpop.f32.mrb[31].mxu1  ;;  %v4387_v22 = vpack.c.bf16 %v4299_v23, %v4291_v13  ;;  %v20602_v18 = vld [vmem:[#allocation112_spill] sm:$0xff]  ;;  %v9178_v7 = vadd.f32 %v9177_v46, %v9176_v63 }
 0x527   : > { %4768 = vmatprep.mubr.bf16.mxu1 %v4388_v32  ;;  %9615 = vmatpush3.bf16.msk.msra.mxu1 %vm20586_vm8, %v20035_v60  ;;  %v20591_v32 = vld [vmem:[#allocation199_spill] sm:$0xff]  ;;  %vm20597_vm8 = vnez %v20596_v16  ;;  %v9179_v16 = vpop.f32.mrb[58].mxu0 }
 0x528   : > { %5082 = vmatmul.mubr.bf16.gmra.mrb[160].mxu0 %v4985_v2  ;;  %9616 = vmatprep.subr.msk.bf16.mxu1 %vm20590_vm12, %v20035_v60  ;;  %v4308_v31 = vmul.f32 %v20591_v32, %v16856_v6  ;;  %v20599_v2 = vld [vmem:[#allocation94_spill] sm:$0xff]  ;;  %vm20601_vm12 = vnez %v20600_v4  ;;  %v4993_v4 = vpack.c.bf16 %v4905_v59, %v4897_v19  ;;  %v4324_v19 = vmul.f32 %v16523_v28, %v16856_v6 }
 0x529   : > { %5089 = vmatprep.mubr.bf16.mxu0 %v4994_v34  ;;  %9679 = vmatpush3.bf16.msk.msra.mxu0 %vm20594_vm10, %v20035_v60  ;;  %v9114_v34 = vadd.f32 %v9113_v50, %v9112_v38  ;;  %v4922_v49 = vmul.f32 %v20599_v2, %v16862_v56  ;;  %vm20603_vm10 = vnez %v20602_v18  ;;  %v9117_v50 = vadd.f32 %v9116_v9, %v9115_v45  ;;  %v9180_v2 = vpop.f32.mrb[59].mxu0  ;;  %v20606_v45 = vld [vmem:[#allocation96_spill] sm:$0xff] }
 0x52a   : > { %9680 = vmatprep.subr.msk.bf16.mxu0 %vm20597_vm8, %v20035_v60  ;;  %v4396_v48 = vpack.c.bf16 %v4316_v0, %v4308_v31  ;;  %vm20605_vm8 = vnez %v20604_v20  ;;  %v9181_v23 = vadd.f32 %v9180_v2, %v9179_v16  ;;  %v4315_v31 = vmul.f32 %v16514_v5, %v16884_v30  ;;  %v9118_v20 = vpop.f32.mrb[32].mxu1 }
 0x52b   : > { %9617 = vmatpush3.bf16.msk.msra.mxu1 %vm20601_vm12, %v20035_v60  ;;  %v3941_v38 = vadd.f32 %v9114_v34, %v16808_v8  ;;  %v3944_v32 = vadd.f32 %v9117_v50, %v16816_v15  ;;  %v5002_v18 = vpack.c.bf16 %v4922_v49, %v4914_v1  ;;  %v4307_v8 = vmul.f32 %v16508_v33, %v16884_v30  ;;  %v9119_v59 = vpop.f32.mrb[33].mxu1 }
 0x52c   : > { %9730 = vmatprep.subr.msk.bf16.mxu1 %vm20603_vm10, %v20035_v60  ;;  %v4332_v15 = vmul.f32 %v16529_v11, %v16856_v6  ;;  %v4913_v34 = vmul.f32 %v20392_v41, %v16890_v36  ;;  %v4921_v63 = vmul.f32 %v20606_v45, %v16890_v36  ;;  %v9120_v1 = vadd.f32 %v9119_v59, %v9118_v20  ;;  %v9121_v49 = vpop.f32.mrb[34].mxu1 }
 0x52d   : > { %9681 = vmatpush3.bf16.msk.msra.mxu0 %vm20605_vm8, %v20035_v60  ;;  %v17087_v13 = vadd.f32 %v9178_v7, %v3941_v38  ;;  %v17093_v0 = vadd.f32 %v9181_v23, %v3944_v32  ;;  %v9182_v9 = vpop.f32.mrb[60].mxu0  ;;  %v20607_v32 = vld [vmem:[#allocation97_spill] sm:$0xff]  ;;  %v9122_v38 = vpop.f32.mrb[35].mxu1  ;;  %v4395_v7 = vpack.c.bf16 %v4315_v31, %v4307_v8 }
 0x52e   : > { %4769 = vmatmul.mubr.bf16.gmra.mrb[136].mxu1 %v4387_v22  ;;  %v4930_v46 = vmul.f32 %v20607_v32, %v16862_v56  ;;  %v4938_v22 = vmul.f32 %v19945_v25, %v16862_v56  ;;  %v9183_v50 = vpop.f32.mrb[61].mxu0  ;;  %v3949_v16 = vadd.f32 %v9120_v1, %v16834_v62  ;;  %v4323_v25 = vmul.f32 %v16554_v47, %v16884_v30 }
 0x52f   : > { %4776 = vmatprep.mubr.bf16.mxu1 %v4396_v48  ;;  %v9123_v48 = vadd.f32 %v9122_v38, %v9121_v49  ;;  %v9184_v2 = vadd.f32 %v9183_v50, %v9182_v9  ;;  %v9185_v41 = vpop.f32.mrb[62].mxu0  ;;  %v4331_v62 = vmul.f32 %v16560_v54, %v16884_v30  ;;  %v17131_v38 = vrot.slane %v15292_v58, %v20502_v43 }
 0x530   : > { %5090 = vmatmul.mubr.bf16.gmra.mrb[164].mxu0 %v4993_v4  ;;  %v4404_v4 = vpack.c.bf16 %v4332_v15, %v4324_v19  ;;  %v9186_v23 = vpop.f32.mrb[63].mxu0  ;;  %v5010_v32 = vpack.c.bf16 %v4938_v22, %v4930_v46  ;;  %v4340_v19 = vmul.f32 %v16566_v37, %v16856_v6  ;;  %v4946_v46 = vmul.f32 %v14306_v27, %v16862_v56 }
 0x531   : > { %5097 = vmatprep.mubr.bf16.mxu0 %v5002_v18  ;;  %v5001_v18 = vpack.c.bf16 %v4921_v63, %v4913_v34  ;;  %v3952_v20 = vadd.f32 %v9123_v48, %v16836_v35  ;;  %v17109_v59 = vadd.f32 %v9184_v2, %v3949_v16  ;;  %v9187_v45 = vadd.f32 %v9186_v23, %v9185_v41 }
 0x532   : > { %v4348_v35 = vmul.f32 %v16572_v53, %v16856_v6  ;;  %v4929_v34 = vmul.f32 %v14281_v26, %v16890_v36  ;;  %v4937_v63 = vmul.f32 %v14300_v21, %v16890_v36  ;;  %v4954_v22 = vmul.f32 %v14363_v42, %v16862_v56 }
 0x533   : > { %v17115_v8 = vadd.f32 %v9187_v45, %v3952_v20  ;;  %v17136_v41 = vrot.slane %v15149_v17, %v20502_v43  ;;  %v20608_v45 = vld [vmem:[#allocation29_spill] sm:$0xff] }
 0x534   : > { %v4412_v2 = vpack.c.bf16 %v4348_v35, %v4340_v19  ;;  %v5009_v42 = vpack.c.bf16 %v4937_v63, %v4929_v34  ;;  %v5018_v23 = vpack.c.bf16 %v4954_v22, %v4946_v46  ;;  %v20611_v35 = vld [vmem:[#allocation104_spill] sm:$0xff]  ;;  %v20614_v22 = vld [vmem:[#allocation146_spill] sm:$0xff] }
 0x536   : > { %4777 = vmatmul.mubr.bf16.gmra.mrb[140].mxu1 %v4395_v7  ;;  %v9124_v31 = vpop.f32.mrb[36].mxu1  ;;  %v4403_v7 = vpack.c.bf16 %v4331_v62, %v4323_v25 }
 0x537   : > { %4784 = vmatprep.mubr.bf16.mxu1 %v4404_v4  ;;  %v9125_v15 = vpop.f32.mrb[37].mxu1 }
 0x538   : > { %5098 = vmatmul.mubr.bf16.gmra.mrb[168].mxu0 %v5001_v18  ;;  %v9126_v1 = vadd.f32 %v9125_v15, %v9124_v31  ;;  %v9127_v49 = vpop.f32.mrb[38].mxu1  ;;  %v4347_v18 = vmul.f32 %v16600_v10, %v16884_v30  ;;  %v20610_v31 = vld [vmem:[#allocation102_spill] sm:$0xff]  ;;  %v4953_v15 = vmul.f32 %v20611_v35, %v16890_v36 }
 0x539   : > { %5105 = vmatprep.mubr.bf16.mxu0 %v5010_v32  ;;  %v9188_v9 = vpop.f32.mrb[64].mxu0  ;;  %v9128_v6 = vpop.f32.mrb[39].mxu1  ;;  %v4836_v32 = vmul.f32 %v20608_v45, %v17131_v38  ;;  %v4945_v19 = vmul.f32 %v20610_v31, %v16890_v36  ;;  %v20618_v31 = vld [vmem:[#allocation140_spill] sm:$0xff] }
 0x53a   : > { %v9189_v50 = vpop.f32.mrb[65].mxu0  ;;  %v3957_v26 = vadd.f32 %v9126_v1, %v16858_v24  ;;  %v9129_v16 = vadd.f32 %v9128_v6, %v9127_v49  ;;  %v4339_v24 = vmul.f32 %v16594_v51, %v16884_v30  ;;  %v20612_v1 = vld [vmem:[#allocation119_spill] sm:$0xff]  ;;  %v17161_v6 = vrot.slane %v20614_v22, %v20502_v43 }
 0x53b   : > { %v9190_v21 = vadd.f32 %v9189_v50, %v9188_v9  ;;  %v9191_v48 = vpop.f32.mrb[66].mxu0  ;;  %v4838_v49 = vmul.f32 %v20612_v1, %v17136_v41  ;;  %v20613_v9 = vld [vmem:[#allocation120_spill] sm:$0xff] }
 0x53c   : > { %v9192_v27 = vpop.f32.mrb[67].mxu0  ;;  %v3960_v56 = vadd.f32 %v9129_v16, %v16864_v52  ;;  %v20609_v52 = vld [vmem:[#allocation138_spill] sm:$0xff]  ;;  %v4846_v46 = vmul.f32 %v20613_v9, %v17136_v41 }
 0x53d   : > { %v17139_v58 = vadd.f32 %v9190_v21, %v3957_v26  ;;  %v9193_v4 = vadd.f32 %v9192_v27, %v9191_v48  ;;  %v4844_v25 = vmul.f32 %v20609_v52, %v17131_v38  ;;  %v4411_v26 = vpack.c.bf16 %v4347_v18, %v4339_v24  ;;  %v20615_v27 = vld [vmem:[#allocation98_spill] sm:$0xff] }
 0x53e   : > { %4785 = vmatmul.mubr.bf16.gmra.mrb[144].mxu1 %v4403_v7  ;;  %v4966_v24 = vpack.c.bf16 %v4846_v46, %v4838_v49  ;;  %v20622_v49 = vld [vmem:[#allocation124_spill] sm:$0xff]  ;;  %v20623_v46 = vld [vmem:[#allocation125_spill] sm:$0xff] }
 0x53f   : > { %4792 = vmatprep.mubr.bf16.mxu1 %v4412_v2  ;;  %v17145_v20 = vadd.f32 %v9193_v4, %v3960_v56  ;;  %v4964_v2 = vpack.c.bf16 %v4844_v25, %v4836_v32  ;;  %v5017_v4 = vpack.c.bf16 %v4953_v15, %v4945_v19  ;;  %v20617_v32 = vld [vmem:[#allocation139_spill] sm:$0xff]  ;;  %v4852_v19 = vmul.f32 %v20618_v31, %v17131_v38 }
 0x540   : > { %5106 = vmatmul.mubr.bf16.gmra.mrb[172].mxu0 %v5009_v42  ;;  %v9130_v17 = vpop.f32.mrb[40].mxu1  ;;  %v17166_v42 = vrot.slane %v20615_v27, %v20502_v43  ;;  %v4843_v52 = vmul.f32 %v20617_v32, %v17161_v6  ;;  %v4854_v9 = vmul.f32 %v20622_v49, %v17136_v41  ;;  %v4862_v22 = vmul.f32 %v20623_v46, %v17136_v41  ;;  %v20631_v49 = vld [vmem:[#allocation127_spill] sm:$0xff]  ;;  %v20632_v46 = vld [vmem:[#allocation128_spill] sm:$0xff] }
 0x541   : > { %5113 = vmatprep.mubr.bf16.mxu0 %v5018_v23  ;;  %v9131_v62 = vpop.f32.mrb[41].mxu1 }
 0x542   : > { %v9132_v34 = vadd.f32 %v9131_v62, %v9130_v17  ;;  %v9133_v63 = vpop.f32.mrb[42].mxu1 }
 0x543   : > { %v9194_v30 = vpop.f32.mrb[68].mxu0  ;;  %v9134_v50 = vpop.f32.mrb[43].mxu1 }
 0x544   : > { %v9195_v7 = vpop.f32.mrb[69].mxu0  ;;  %v3965_v16 = vadd.f32 %v9132_v34, %v16886_v57  ;;  %v9135_v21 = vadd.f32 %v9134_v50, %v9133_v63  ;;  %v20616_v57 = vld [vmem:[#allocation30_spill] sm:$0xff]  ;;  %v20620_v34 = vld [vmem:[#allocation121_spill] sm:$0xff] }
 0x545   : > { %v9196_v36 = vadd.f32 %v9195_v7, %v9194_v30  ;;  %v9197_v48 = vpop.f32.mrb[70].mxu0  ;;  %v4835_v18 = vmul.f32 %v20616_v57, %v17161_v6  ;;  %v4837_v63 = vmul.f32 %v20620_v34, %v17166_v42  ;;  %v20621_v30 = vld [vmem:[#allocation122_spill] sm:$0xff] }
 0x546   : > { %v9198_v56 = vpop.f32.mrb[71].mxu0  ;;  %4793 = vmatmul.mubr.bf16.gmra.mrb[148].mxu1 %v4411_v26  ;;  %v3968_v23 = vadd.f32 %v9135_v21, %v16892_v12  ;;  %v20619_v12 = vld [vmem:[#allocation141_spill] sm:$0xff]  ;;  %v4845_v1 = vmul.f32 %v20621_v30, %v17166_v42 }
 0x547   : > { %v17169_v17 = vadd.f32 %v9196_v36, %v3965_v16  ;;  %v9199_v45 = vadd.f32 %v9198_v56, %v9197_v48  ;;  %5154 = vmatprep.mubr.bf16.mxu1 %v4964_v2  ;;  %v4860_v35 = vmul.f32 %v20619_v12, %v17131_v38  ;;  %v4963_v36 = vpack.c.bf16 %v4843_v52, %v4835_v18  ;;  %v20626_v52 = vld [vmem:[#allocation144_spill] sm:$0xff] }
 0x548   : > { %5114 = vmatmul.mubr.bf16.gmra.mrb[176].mxu0 %v5017_v4  ;;  %v20627_v12 = vld [vmem:[#allocation148_spill] sm:$0xff] }
 0x549   : > { %v17175_v25 = vadd.f32 %v9199_v45, %v3968_v23  ;;  %v9136_v62 = vpop.f32.mrb[44].mxu1  ;;  %5251 = vmatprep.mubr.bf16.mxu0 %v4966_v24  ;;  %v4972_v4 = vpack.c.bf16 %v4860_v35, %v4852_v19  ;;  %v4965_v45 = vpack.c.bf16 %v4845_v1, %v4837_v63  ;;  %v4974_v24 = vpack.c.bf16 %v4862_v22, %v4854_v9  ;;  %v20630_v63 = vld [vmem:[#allocation151_spill] sm:$0xff] }
 0x54a   : > { %v9137_v15 = vpop.f32.mrb[45].mxu1  ;;  %v4859_v19 = vmul.f32 %v20626_v52, %v17161_v6  ;;  %vm20628_vm12 = vnez %v20627_v12  ;;  %v4876_v30 = vmul.f32 %v20630_v63, %v17131_v38  ;;  %v4853_v9 = vmul.f32 %v20631_v49, %v17166_v42 }
 0x54b   : > { %v9138_v50 = vadd.f32 %v9137_v15, %v9136_v62  ;;  %v9139_v7 = vpop.f32.mrb[46].mxu1  ;;  %v9200_v26 = vpop.f32.mrb[72].mxu0  ;;  %v20629_v15 = vld [vmem:[#allocation145_spill] sm:$0xff]  ;;  %v4861_v22 = vmul.f32 %v20632_v46, %v17166_v42 }
 0x54c   : > { %v9140_v16 = vpop.f32.mrb[47].mxu1  ;;  %v9201_v21 = vpop.f32.mrb[73].mxu0  ;;  %v4868_v34 = vmul.f32 %v20629_v15, %v17131_v38 }
 0x54d   : > { %v3973_v48 = vadd.f32 %v9138_v50, %v16910_v44  ;;  %v9141_v2 = vadd.f32 %v9140_v16, %v9139_v7  ;;  %v9202_v27 = vadd.f32 %v9201_v21, %v9200_v26  ;;  %v9203_v56 = vpop.f32.mrb[74].mxu0  ;;  %v20625_v44 = vld [vmem:[#allocation143_spill] sm:$0xff]  ;;  %v20633_v50 = vld [vmem:[#allocation129_spill] sm:$0xff]  ;;  %v4973_v52 = vpack.c.bf16 %v4861_v22, %v4853_v9  ;;  %v20643_v22 = vld [vmem:[#allocation36_spill] sm:$0xff] }
 0x54e   : > { %v9204_v23 = vpop.f32.mrb[75].mxu0  ;;  %5155 = vmatmul.mubr.bf16.vlgmr.msra.gmra.mrb[152].mxu1 %v4963_v36  ;;  %v4851_v18 = vmul.f32 %v20625_v44, %v17161_v6  ;;  %v4870_v7 = vmul.f32 %v20633_v50, %v17136_v41  ;;  %v20634_v26 = vld [vmem:[#allocation131_spill] sm:$0xff]  ;;  %v4980_v31 = vpack.c.bf16 %v4876_v30, %v4868_v34  ;;  %v20639_v34 = vld [vmem:[#allocation153_spill] sm:$0xff]  ;;  %v4892_v50 = vmul.f32 %v20643_v22, %v17131_v38 }
 0x54f   : > { %v3976_v57 = vadd.f32 %v9141_v2, %v16912_v61  ;;  %v17191_v32 = vadd.f32 %v9202_v27, %v3973_v48  ;;  %v9205_v62 = vadd.f32 %v9204_v23, %v9203_v56  ;;  %5162 = vmatprep.mubr.bf16.mxu1 %v4972_v4  ;;  %9731 = vmatpush3.bf16.msk.msra.mxu1 %vm15273_vm6, %v20035_v60  ;;  %v20642_v9 = vld [vmem:[#allocation155_spill] sm:$0xff] }
 0x550   : > { %5252 = vmatmul.mubr.bf16.vlgmr.msra.gmra.mrb[180].mxu0 %v4965_v45  ;;  %9732 = vmatprep.subr.msk.bf16.mxu1 %vm20628_vm12, %v20035_v60  ;;  %v4878_v16 = vmul.f32 %v20634_v26, %v17136_v41  ;;  %v4971_v4 = vpack.c.bf16 %v4859_v19, %v4851_v18  ;;  %v4875_v30 = vmul.f32 %v20639_v34, %v17161_v6  ;;  %v20644_v26 = vld [vmem:[#allocation132_spill] sm:$0xff] }
 0x551   : > { %v17203_v61 = vadd.f32 %v9205_v62, %v3976_v57  ;;  %v9142_v35 = vpop.f32.mrb[48].mxu1  ;;  %5259 = vmatprep.mubr.bf16.mxu0 %v4974_v24  ;;  %v4884_v46 = vmul.f32 %v20642_v9, %v17131_v38  ;;  %v20651_v9 = vld [vmem:[#allocation92_spill] sm:$0xff] }
 0x552   : > { %v9143_v1 = vpop.f32.mrb[49].mxu1  ;;  %v4982_v12 = vpack.c.bf16 %v4878_v16, %v4870_v7  ;;  %v4869_v16 = vmul.f32 %v20644_v26, %v17166_v42 }
 0x553   : > { %v9144_v21 = vadd.f32 %v9143_v1, %v9142_v35  ;;  %v9145_v36 = vpop.f32.mrb[50].mxu1  ;;  %v9206_v48 = vpop.f32.mrb[76].mxu0  ;;  %9733 = vmatpush3.bf16.msk.msra.mxu1 %vm20425_vm2, %v20035_v60  ;;  %v20640_v1 = vld [vmem:[#allocation156_spill] sm:$0xff] }
 0x554   : > { %v9146_v27 = vpop.f32.mrb[51].mxu1  ;;  %v9207_v56 = vpop.f32.mrb[77].mxu0  ;;  %9734 = vmatprep.subr.msk.bf16.mxu1 %vm20427_vm3, %v20035_v60  ;;  %vm20641_vm6 = vnez %v20640_v1 }
 0x555   : > { %v3981_v45 = vadd.f32 %v9144_v21, %v16948_v3  ;;  %v9147_v24 = vadd.f32 %v9146_v27, %v9145_v36  ;;  %v9208_v57 = vadd.f32 %v9207_v56, %v9206_v48  ;;  %v9209_v62 = vpop.f32.mrb[78].mxu0  ;;  %v20638_v3 = vld [vmem:[#allocation152_spill] sm:$0xff]  ;;  %v20645_v21 = vld [vmem:[#allocation133_spill] sm:$0xff]  ;;  %v20646_v48 = vld [vmem:[#allocation134_spill] sm:$0xff] }
 0x556   : > { %v9210_v44 = vpop.f32.mrb[79].mxu0  ;;  %5163 = vmatmul.mubr.bf16.gmra.mrb[156].mxu1 %v4971_v4  ;;  %v4867_v19 = vmul.f32 %v20638_v3, %v17161_v6  ;;  %v4877_v36 = vmul.f32 %v20645_v21, %v17166_v42  ;;  %v4886_v2 = vmul.f32 %v20646_v48, %v17136_v41  ;;  %v20647_v27 = vld [vmem:[#allocation135_spill] sm:$0xff]  ;;  %v4988_v3 = vpack.c.bf16 %v4892_v50, %v4884_v46 }
 0x557   : > { %v3984_v35 = vadd.f32 %v9147_v24, %v16956_v40  ;;  %v17225_v15 = vadd.f32 %v9208_v57, %v3981_v45  ;;  %v9211_v63 = vadd.f32 %v9210_v44, %v9209_v62  ;;  %5170 = vmatprep.mubr.bf16.mxu1 %v4980_v31  ;;  %9735 = vmatpush3.bf16.msk.msra.mxu1 %vm15460_vm15, %v20035_v60  ;;  %v20654_v46 = vld [vmem:[#allocation163_spill] sm:$0xff]  ;;  %vm20719_vm15 = vmmov 0  }
 0x558   : > { %5260 = vmatmul.mubr.bf16.gmra.mrb[184].mxu0 %v4973_v52  ;;  %9736 = vmatprep.subr.msk.bf16.mxu1 %vm20641_vm6, %v20035_v60  ;;  %v4894_v56 = vmul.f32 %v20647_v27, %v17136_v41  ;;  %v4979_v31 = vpack.c.bf16 %v4875_v30, %v4867_v19  ;;  %v20650_v52 = vld [vmem:[#allocation123_spill] sm:$0xff]  ;;  %v4981_v1 = vpack.c.bf16 %v4877_v36, %v4869_v16 }
 0x559   : > { %v17237_v40 = vadd.f32 %v9211_v63, %v3984_v35  ;;  %v9148_v49 = vpop.f32.mrb[52].mxu1  ;;  %5267 = vmatprep.mubr.bf16.mxu0 %v4982_v12  ;;  %v20653_v30 = vld [vmem:[#allocation159_spill] sm:$0xff]  ;;  %v4891_v50 = vmul.f32 %v20654_v46, %v17161_v6 }
 0x55a   : > { %v9149_v7 = vpop.f32.mrb[53].mxu1  ;;  %v4883_v21 = vmul.f32 %v20653_v30, %v17161_v6 }
 0x55b   : > { %v9150_v4 = vadd.f32 %v9149_v7, %v9148_v49  ;;  %v9151_v23 = vpop.f32.mrb[54].mxu1  ;;  %v9212_v45 = vpop.f32.mrb[80].mxu0  ;;  %9737 = vmatpush3.bf16.msk.msra.mxu1 %vm20446_vm4, %v20035_v60  ;;  %v4990_v49 = vpack.c.bf16 %v4894_v56, %v4886_v2  ;;  %v20656_v2 = vld [vmem:[#allocation40_spill] sm:$0xff]  ;;  %v20657_v56 = vld [vmem:[#allocation41_spill] sm:$0xff] }
 0x55c   : > { %v9152_v57 = vpop.f32.mrb[55].mxu1  ;;  %v9213_v62 = vpop.f32.mrb[81].mxu0  ;;  %9738 = vmatprep.subr.msk.bf16.mxu1 %vm20448_vm5, %v20035_v60  ;;  %v4900_v27 = vmul.f32 %v20656_v2, %v17131_v38 }
 0x55d   : > { %v3989_v12 = vadd.f32 %v9150_v4, %v20650_v52  ;;  %v9153_v35 = vadd.f32 %v9152_v57, %v9151_v23  ;;  %v9214_v63 = vadd.f32 %v9213_v62, %v9212_v45  ;;  %v9215_v18 = vpop.f32.mrb[82].mxu0  ;;  %v4908_v4 = vmul.f32 %v20657_v56, %v17131_v38  ;;  %v20658_v45 = vld [vmem:[#allocation136_spill] sm:$0xff]  ;;  %v20659_v57 = vld [vmem:[#allocation137_spill] sm:$0xff] }
 0x55e   : > { %v9216_v34 = vpop.f32.mrb[83].mxu0  ;;  %5171 = vmatmul.mubr.bf16.gmra.mrb[160].mxu1 %v4979_v31  ;;  %v4885_v24 = vmul.f32 %v20658_v45, %v17166_v42  ;;  %v4893_v62 = vmul.f32 %v20659_v57, %v17166_v42  ;;  %v20666_v45 = vld [vmem:[#allocation168_spill] sm:$0xff] }
 0x55f   : > { %v3992_v22 = vadd.f32 %v9153_v35, %v20651_v9  ;;  %v17259_v7 = vadd.f32 %v9214_v63, %v3989_v12  ;;  %v9217_v26 = vadd.f32 %v9216_v34, %v9215_v18  ;;  %5178 = vmatprep.mubr.bf16.mxu1 %v4988_v3  ;;  %9739 = vmatpush3.bf16.msk.msra.mxu1 %vm15689_vm11, %v20035_v60  ;;  %v20660_v12 = vld [vmem:[#allocation46_spill] sm:$0xff]  ;;  %v20661_v63 = vld [vmem:[#allocation56_spill] sm:$0xff]  ;;  %vm20722_vm11 = vcmask 31744  }
 0x560   : > { %5268 = vmatmul.mubr.bf16.gmra.mrb[188].mxu0 %v4981_v1  ;;  %9740 = vmatprep.subr.msk.bf16.mxu1 %vm20454_vm1, %v20035_v60  ;;  %v4902_v35 = vmul.f32 %v20660_v12, %v17136_v41  ;;  %v4910_v18 = vmul.f32 %v20661_v63, %v17136_v41  ;;  %v4996_v46 = vpack.c.bf16 %v4908_v4, %v4900_v27  ;;  %v20672_v9 = vld [vmem:[#allocation170_spill] sm:$0xff] }
 0x561   : > { %v17271_v36 = vadd.f32 %v9217_v26, %v3992_v22  ;;  %v9234_v48 = vpop.f32.mrb[56].mxu1  ;;  %5275 = vmatprep.mubr.bf16.mxu0 %v4990_v49  ;;  %v4987_v49 = vpack.c.bf16 %v4891_v50, %v4883_v21  ;;  %v4907_v27 = vmul.f32 %v20666_v45, %v17161_v6 }
 0x562   : > { %v9235_v23 = vpop.f32.mrb[57].mxu1  ;;  %v4998_v21 = vpack.c.bf16 %v4910_v18, %v4902_v35  ;;  %v20670_v35 = vld [vmem:[#allocation24_spill] sm:$0xff]  ;;  %v20671_v18 = vld [vmem:[#allocation169_spill] sm:$0xff] }
 0x563   : > { %v9236_v31 = vadd.f32 %v9235_v23, %v9234_v48  ;;  %v9237_v44 = vpop.f32.mrb[58].mxu1  ;;  %v9298_v52 = vpop.f32.mrb[84].mxu0  ;;  %9741 = vmatpush3.bf16.msk.msra.mxu1 %vm15721_vm14, %v20035_v60  ;;  %v4989_v48 = vpack.c.bf16 %v4893_v62, %v4885_v24  ;;  %v20668_v62 = vld [vmem:[#allocation42_spill] sm:$0xff]  ;;  %v4901_v63 = vmul.f32 %v20670_v35, %v17166_v42  ;;  %v4909_v3 = vmul.f32 %v20671_v18, %v17166_v42 }
 0x564   : > { %v9238_v34 = vpop.f32.mrb[59].mxu1  ;;  %v9299_v1 = vpop.f32.mrb[85].mxu0  ;;  %9742 = vmatprep.subr.msk.bf16.mxu1 %vm20466_vm9, %v20035_v60  ;;  %vm20723_vm14 = vcmask 1041408  }
 0x565   : > { %v4127_v22 = vadd.f32 %v9236_v31, %v17044_v55  ;;  %v9239_v26 = vadd.f32 %v9238_v34, %v9237_v44  ;;  %v17292_v19 = vadd.f32 %v9299_v1, %v9298_v52  ;;  %v9301_v30 = vpop.f32.mrb[86].mxu0  ;;  %v20665_v55 = vld [vmem:[#allocation167_spill] sm:$0xff]  ;;  %v4916_v31 = vmul.f32 %v20668_v62, %v17131_v38 }
 0x566   : > { %v9302_v16 = vpop.f32.mrb[87].mxu0  ;;  %5179 = vmatmul.mubr.bf16.gmra.mrb[164].mxu1 %v4987_v49  ;;  %v4899_v23 = vmul.f32 %v20665_v55, %v17161_v6  ;;  %v20669_v44 = vld [vmem:[#allocation43_spill] sm:$0xff] }
 0x567   : > { %v4130_v2 = vadd.f32 %v9239_v26, %v17056_v29  ;;  %v17295_v56 = vadd.f32 %v9302_v16, %v9301_v30  ;;  %5186 = vmatprep.mubr.bf16.mxu1 %v4996_v46  ;;  %9743 = vmatpush3.bf16.msk.msra.mxu1 %vm15872_vm13, %v20035_v60  ;;  %v4924_v52 = vmul.f32 %v20669_v44, %v17131_v38  ;;  %v20673_v26 = vld [vmem:[#allocation171_spill] sm:$0xff]  ;;  %vm20724_vm13 = vmmov %vm20723_vm14 }
 0x568   : > { %5276 = vmatmul.mubr.bf16.gmra.mrb[192].mxu0 %v4989_v48  ;;  %9744 = vmatprep.subr.msk.bf16.mxu1 %vm15889_vm0, %v20035_v60  ;;  %v4926_v30 = vmul.f32 %v20673_v26, %v17136_v41  ;;  %v4997_v44 = vpack.c.bf16 %v4909_v3, %v4901_v63  ;;  %v20681_v26 = vld [vmem:[#allocation176_spill] sm:$0xff]  ;;  %vm20725_vm0 = vmmov %vm20722_vm11 }
 0x569   : > { %v5413_v29 = vadd.f32 %v4130_v2, %v4127_v22  ;;  %v17307_v24 = vpack.c.bf16 %v4130_v2, %v4127_v22  ;;  %v9240_v57 = vpop.f32.mrb[60].mxu1  ;;  %5283 = vmatprep.mubr.bf16.mxu0 %v4998_v21  ;;  %v4918_v22 = vmul.f32 %v20672_v9, %v17136_v41  ;;  %v4995_v2 = vpack.c.bf16 %v4907_v27, %v4899_v23  ;;  %v20676_v23 = vld [vmem:[#allocation173_spill] sm:$0xff]  ;;  %v20680_v9 = vld [vmem:[#allocation175_spill] sm:$0xff]  ;;  %vm20726_vm2 = vmmov %vm20725_vm0 }
 0x56a   : > { %v9241_v12 = vpop.f32.mrb[61].mxu1  ;;  %v20675_v21 = vmov 0.0   ;;  %v4915_v27 = vmul.f32 %v20676_v23, %v17161_v6  ;;  %vm20727_vm3 = vmmov %vm20725_vm0 }
 0x56b   : > { %v9242_v34 = vadd.f32 %v9241_v12, %v9240_v57  ;;  %v9243_v1 = vpop.f32.mrb[62].mxu1  ;;  %v9304_v49 = vpop.f32.mrb[88].mxu0  ;;  %9745 = vmatpush3.bf16.msk.msra.mxu1 %vm20478_vm7, %v20035_v60  ;;  %v5004_v57 = vpack.c.bf16 %v4924_v52, %v4916_v31  ;;  %v5006_v60 = vpack.c.bf16 %v4926_v30, %v4918_v22  ;;  %v4917_v22 = vmul.f32 %v20680_v9, %v17166_v42  ;;  %vm20728_vm4 = vmmov %vm20725_vm0 }
 0x56c   : > { %v9244_v16 = vpop.f32.mrb[63].mxu1  ;;  %v9305_v48 = vpop.f32.mrb[89].mxu0  ;;  %9919 = vmatprep.subr.bf16.mxu1 %v20675_v21  ;;  %v4925_v30 = vmul.f32 %v20681_v26, %v17166_v42  ;;  %vm20729_vm5 = vmmov %vm20724_vm13 }
 0x56d   : > { %v4135_v50 = vadd.f32 %v9242_v34, %v17087_v13  ;;  %v9245_v55 = vadd.f32 %v9244_v16, %v9243_v1  ;;  %v17326_v45 = vadd.f32 %v9305_v48, %v9304_v49  ;;  %v9307_v4 = vpop.f32.mrb[90].mxu0  ;;  %v20677_v13 = vld [vmem:[#allocation174_spill] sm:$0xff]  ;;  %vm20730_vm1 = vmmov %vm20725_vm0 }
 0x56e   : > { %v9308_v62 = vpop.f32.mrb[91].mxu0  ;;  %5187 = vmatmul.mubr.bf16.gmra.mrb[168].mxu1 %v4995_v2  ;;  %v4923_v34 = vmul.f32 %v20677_v13, %v17161_v6  ;;  %v20682_v2 = vld [vmem:[#allocation177_spill] sm:$0xff]  ;;  %vm20731_vm9 = vmmov %vm20725_vm0 }
 0x56f   : > { %v5414_v12 = vadd.f32 %v5413_v29, %v4135_v50  ;;  %v4138_v35 = vadd.f32 %v9245_v55, %v17093_v0  ;;  %v17329_v18 = vadd.f32 %v9308_v62, %v9307_v4  ;;  %5194 = vmatprep.mubr.bf16.mxu1 %v5004_v57  ;;  %v20678_v29 = vld [vmem:[#allocation44_spill] sm:$0xff]  ;;  %v20679_v0 = vld [vmem:[#allocation45_spill] sm:$0xff]  ;;  %v20683_v55 = vld [vmem:[#allocation178_spill] sm:$0xff] }
 0x570   : > { %5284 = vmatmul.mubr.bf16.gmra.mrb[196].mxu0 %v4997_v44  ;;  %v4932_v52 = vmul.f32 %v20678_v29, %v17131_v38  ;;  %v4940_v63 = vmul.f32 %v20679_v0, %v17131_v38  ;;  %v4942_v4 = vmul.f32 %v20683_v55, %v17136_v41  ;;  %v5003_v44 = vpack.c.bf16 %v4923_v34, %v4915_v27  ;;  %v20684_v27 = vld [vmem:[#allocation179_spill] sm:$0xff]  ;;  %v20689_v55 = vld [vmem:[#allocation182_spill] sm:$0xff]  ;;  %vm20732_vm7 = vmmov %vm20725_vm0 }
 0x571   : > { %v5415_v1 = vadd.f32 %v5414_v12, %v4138_v35  ;;  %v17335_v49 = vpack.c.bf16 %v4138_v35, %v4135_v50  ;;  %v9246_v31 = vpop.f32.mrb[64].mxu1  ;;  %5291 = vmatprep.mubr.bf16.mxu0 %v5006_v60  ;;  %v4934_v50 = vmul.f32 %v20682_v2, %v17136_v41  ;;  %v4931_v34 = vmul.f32 %v20684_v27, %v17161_v6  ;;  %v20688_v2 = vld [vmem:[#allocation181_spill] sm:$0xff]  ;;  %vm20733_vm10 = vmmov %vm20729_vm5 }
 0x572   : > { %v9247_v3 = vpop.f32.mrb[65].mxu1  ;;  %v5012_v13 = vpack.c.bf16 %v4940_v63, %v4932_v52  ;;  %vm20734_vm8 = vmmov %vm20725_vm0 }
 0x573   : > { %v9248_v46 = vadd.f32 %v9247_v3, %v9246_v31  ;;  %v9249_v16 = vpop.f32.mrb[66].mxu1  ;;  %v9310_v48 = vpop.f32.mrb[92].mxu0  ;;  %v5005_v31 = vpack.c.bf16 %v4925_v30, %v4917_v22  ;;  %v5014_v26 = vpack.c.bf16 %v4942_v4, %v4934_v50  ;;  %v4933_v50 = vmul.f32 %v20688_v2, %v17166_v42  ;;  %vm20735_vm12 = vmmov %vm20729_vm5 }
 0x574   : > { %v9250_v57 = vpop.f32.mrb[67].mxu1  ;;  %v9311_v62 = vpop.f32.mrb[93].mxu0  ;;  %v4941_v4 = vmul.f32 %v20689_v55, %v17166_v42  ;;  %vm20736_vm6 = vmmov %vm20725_vm0 }
 0x575   : > { %v4143_v12 = vadd.f32 %v9248_v46, %v17109_v59  ;;  %v9251_v35 = vadd.f32 %v9250_v57, %v9249_v16  ;;  %v17350_v60 = vadd.f32 %v9311_v62, %v9310_v48  ;;  %v9313_v23 = vpop.f32.mrb[94].mxu0  ;;  %v20685_v59 = vld [vmem:[#allocation180_spill] sm:$0xff] }
 0x576   : > { %v9314_v29 = vpop.f32.mrb[95].mxu0  ;;  %5195 = vmatmul.mubr.bf16.gmra.mrb[172].mxu1 %v5003_v44  ;;  %v4939_v46 = vmul.f32 %v20685_v59, %v17161_v6 }
 0x577   : > { %v5416_v0 = vadd.f32 %v5415_v1, %v4143_v12  ;;  %v4146_v3 = vadd.f32 %v9251_v35, %v17115_v8  ;;  %v17353_v9 = vadd.f32 %v9314_v29, %v9313_v23  ;;  %5202 = vmatprep.mubr.bf16.mxu1 %v5012_v13  ;;  %v20686_v1 = vld [vmem:[#allocation47_spill] sm:$0xff]  ;;  %v20687_v8 = vld [vmem:[#allocation48_spill] sm:$0xff]  ;;  %v20692_v29 = vld [vmem:[#allocation185_spill] sm:$0xff] }
 0x578   : > { %5292 = vmatmul.mubr.bf16.gmra.mrb[200].mxu0 %v5005_v31  ;;  %v4948_v63 = vmul.f32 %v20686_v1, %v17131_v38  ;;  %v4956_v22 = vmul.f32 %v20687_v8, %v17131_v38  ;;  %v20691_v23 = vld [vmem:[#allocation184_spill] sm:$0xff]  ;;  %v17375_v31 = vrot.slane %v20692_v29, %v20502_v43 }
 0x579   : > { %v5417_v16 = vadd.f32 %v5416_v0, %v4146_v3  ;;  %v17359_v48 = vpack.c.bf16 %v4146_v3, %v4143_v12  ;;  %v9252_v52 = vpop.f32.mrb[68].mxu1  ;;  %5299 = vmatprep.mubr.bf16.mxu0 %v5014_v26  ;;  %v20690_v12 = vld [vmem:[#allocation183_spill] sm:$0xff]  ;;  %v4958_v13 = vmul.f32 %v20691_v23, %v17136_v41  ;;  %v5011_v3 = vpack.c.bf16 %v4939_v46, %v4931_v34  ;;  %v20693_v34 = vld [vmem:[#allocation186_spill] sm:$0xff] }
 0x57a   : > { %v9253_v30 = vpop.f32.mrb[69].mxu1  ;;  %v4950_v35 = vmul.f32 %v20690_v12, %v17136_v41  ;;  %v5020_v1 = vpack.c.bf16 %v4956_v22, %v4948_v63  ;;  %v4947_v46 = vmul.f32 %v20693_v34, %v17161_v6 }
 0x57b   : > { %v9254_v57 = vadd.f32 %v9253_v30, %v9252_v52  ;;  %v9255_v62 = vpop.f32.mrb[70].mxu1  ;;  %v9316_v44 = vpop.f32.mrb[96].mxu0  ;;  %v5013_v30 = vpack.c.bf16 %v4941_v4, %v4933_v50 }
 0x57c   : > { %v9256_v38 = vpop.f32.mrb[71].mxu1  ;;  %v9317_v0 = vpop.f32.mrb[97].mxu0  ;;  %v5022_v12 = vpack.c.bf16 %v4958_v13, %v4950_v35  ;;  %v20697_v35 = vld [vmem:[#allocation188_spill] sm:$0xff]  ;;  %v20698_v13 = vld [vmem:[#allocation189_spill] sm:$0xff] }
 0x57d   : > { %v4151_v26 = vadd.f32 %v9254_v57, %v17139_v58  ;;  %v9257_v27 = vadd.f32 %v9256_v38, %v9255_v62  ;;  %v17378_v59 = vadd.f32 %v9317_v0, %v9316_v44  ;;  %v9319_v52 = vpop.f32.mrb[98].mxu0  ;;  %v20694_v58 = vld [vmem:[#allocation187_spill] sm:$0xff]  ;;  %v4949_v23 = vmul.f32 %v20697_v35, %v17166_v42 }
 0x57e   : > { %v9320_v8 = vpop.f32.mrb[99].mxu0  ;;  %5203 = vmatmul.mubr.bf16.gmra.mrb[176].mxu1 %v5011_v3  ;;  %v4955_v57 = vmul.f32 %v20694_v58, %v17161_v6  ;;  %v4957_v29 = vmul.f32 %v20698_v13, %v17166_v42  ;;  %v20699_v3 = vld [vmem:[#allocation49_spill] sm:$0xff] }
 0x57f   : > { %v5418_v2 = vadd.f32 %v5417_v16, %v4151_v26  ;;  %v4154_v41 = vadd.f32 %v9257_v27, %v17145_v20  ;;  %v17381_v55 = vadd.f32 %v9320_v8, %v9319_v52  ;;  %5210 = vmatprep.mubr.bf16.mxu1 %v5020_v1  ;;  %v20695_v16 = vld [vmem:[#allocation31_spill] sm:$0xff]  ;;  %v20696_v20 = vld [vmem:[#allocation22_spill] sm:$0xff] }
 0x580   : > { %5300 = vmatmul.mubr.bf16.gmra.mrb[204].mxu0 %v5013_v30  ;;  %v4840_v22 = vmul.f32 %v20695_v16, %v17375_v31  ;;  %v4848_v50 = vmul.f32 %v20696_v20, %v17375_v31  ;;  %v5019_v1 = vpack.c.bf16 %v4955_v57, %v4947_v46  ;;  %v5021_v42 = vpack.c.bf16 %v4957_v29, %v4949_v23 }
 0x581   : > { %v5419_v62 = vadd.f32 %v5418_v2, %v4154_v41  ;;  %v17387_v44 = vpack.c.bf16 %v4154_v41, %v4151_v26  ;;  %v9258_v63 = vpop.f32.mrb[72].mxu1  ;;  %5307 = vmatprep.mubr.bf16.mxu0 %v5022_v12  ;;  %v17399_v26 = vrot.slane %v20699_v3, %v20502_v43  ;;  %v20700_v43 = vld [vmem:[#allocation32_spill] sm:$0xff]  ;;  %v20704_v23 = vmov 0  }
 0x582   : > { %v9259_v4 = vpop.f32.mrb[73].mxu1  ;;  %v4968_v12 = vpack.c.bf16 %v4848_v50, %v4840_v22  ;;  %v20702_v50 = vld [vmem:[#allocation25_spill] sm:$0xff] }
 0x583   : > { %v9260_v38 = vadd.f32 %v9259_v4, %v9258_v63  ;;  %v9261_v6 = vpop.f32.mrb[74].mxu1  ;;  %v9322_v0 = vpop.f32.mrb[100].mxu0  ;;  %v4839_v46 = vmul.f32 %v20700_v43, %v17399_v26  ;;  %v4856_v35 = vmul.f32 %v20702_v50, %v17375_v31  ;;  %v20707_v50 = vld [vmem:[#allocation193_spill] sm:$0xff] }
 0x584   : > { %v9262_v27 = vpop.f32.mrb[75].mxu1  ;;  %v9323_v52 = vpop.f32.mrb[101].mxu0 }
 0x585   : > { %v4159_v8 = vadd.f32 %v9260_v38, %v17169_v17  ;;  %v9263_v30 = vadd.f32 %v9262_v27, %v9261_v6  ;;  %v17402_v2 = vadd.f32 %v9323_v52, %v9322_v0  ;;  %v9325_v41 = vpop.f32.mrb[102].mxu0  ;;  %v20701_v17 = vld [vmem:[#allocation190_spill] sm:$0xff] }
 0x586   : > { %v9326_v34 = vpop.f32.mrb[103].mxu0  ;;  %5211 = vmatmul.mubr.bf16.gmra.mrb[180].mxu1 %v5019_v1  ;;  %v4847_v57 = vmul.f32 %v20701_v17, %v17399_v26 }
 0x587   : > { %v5420_v58 = vadd.f32 %v5419_v62, %v4159_v8  ;;  %v4162_v63 = vadd.f32 %v9263_v30, %v17175_v25  ;;  %v17405_v16 = vadd.f32 %v9326_v34, %v9325_v41  ;;  %5348 = vmatprep.mubr.bf16.mxu1 %v4968_v12  ;;  %v20703_v62 = vld [vmem:[#allocation26_spill] sm:$0xff] }
 0x588   : > { %5308 = vmatmul.mubr.bf16.gmra.mrb[208].mxu0 %v5021_v42  ;;  %v4864_v25 = vmul.f32 %v20703_v62, %v17375_v31  ;;  %v4967_v27 = vpack.c.bf16 %v4847_v57, %v4839_v46  ;;  %v20706_v46 = vld [vmem:[#allocation192_spill] sm:$0xff] }
 0x589   : > { %v5421_v20 = vadd.f32 %v5420_v58, %v4162_v63  ;;  %v17411_v4 = vpack.c.bf16 %v4162_v63, %v4159_v8  ;;  %v9264_v22 = vpop.f32.mrb[76].mxu1  ;;  %5532 = vmatprep.mubr.bf16.mxu0 %v20704_v23  ;;  %v20705_v63 = vld [vmem:[#allocation191_spill] sm:$0xff]  ;;  %v4863_v17 = vmul.f32 %v20706_v46, %v17399_v26 }
 0x58a   : > { %v9265_v13 = vpop.f32.mrb[77].mxu1  ;;  %v4976_v41 = vpack.c.bf16 %v4864_v25, %v4856_v35  ;;  %v4855_v43 = vmul.f32 %v20705_v63, %v17399_v26  ;;  %v4872_v35 = vmul.f32 %v20707_v50, %v17375_v31  ;;  %v20709_v63 = vld [vmem:[#allocation64_spill] sm:$0xff] }
 0x58b   : > { %v9266_v29 = vadd.f32 %v9265_v13, %v9264_v22  ;;  %v9267_v38 = vpop.f32.mrb[78].mxu1  ;;  %v9328_v6 = vpop.f32.mrb[104].mxu0  ;;  %v4871_v46 = vmul.f32 %v20709_v63, %v17399_v26 }
 0x58c   : > { %v9268_v0 = vpop.f32.mrb[79].mxu1  ;;  %v9329_v3 = vpop.f32.mrb[105].mxu0 }
 0x58d   : > { %v4167_v52 = vadd.f32 %v9266_v29, %v17191_v32  ;;  %v9269_v1 = vadd.f32 %v9268_v0, %v9267_v38  ;;  %v17419_v8 = vadd.f32 %v9329_v3, %v9328_v6  ;;  %v9331_v30 = vpop.f32.mrb[106].mxu0  ;;  %v4975_v0 = vpack.c.bf16 %v4863_v17, %v4855_v43  ;;  %v20710_v43 = vld [vmem:[#allocation79_spill] sm:$0xff] }
 0x58e   : > { %v9332_v12 = vpop.f32.mrb[107].mxu0  ;;  %5349 = vmatmul.mubr.bf16.vlgmr.msra.gmra.mrb[184].mxu1 %v4967_v27  ;;  %v4879_v17 = vmul.f32 %v20710_v43, %v17399_v26  ;;  %v20713_v43 = vld [vmem:[#allocation110_spill] sm:$0xff] }
 0x58f   : > { %v5422_v34 = vadd.f32 %v5421_v20, %v4167_v52  ;;  %v4170_v42 = vadd.f32 %v9269_v1, %v17203_v61  ;;  %v17422_v58 = vadd.f32 %v9332_v12, %v9331_v30  ;;  %5356 = vmatprep.mubr.bf16.mxu1 %v4976_v41  ;;  %v20708_v20 = vld [vmem:[#allocation194_spill] sm:$0xff] }
 0x590   : > { %v4880_v62 = vmul.f32 %v20708_v20, %v17375_v31 }
 0x591   : > { %v5423_v32 = vadd.f32 %v5422_v34, %v4170_v42  ;;  %v17428_v57 = vpack.c.bf16 %v4170_v42, %v4167_v52  ;;  %v9270_v22 = vpop.f32.mrb[80].mxu1 }
 0x592   : > { %v9271_v61 = vpop.f32.mrb[81].mxu1  ;;  %v4984_v30 = vpack.c.bf16 %v4880_v62, %v4872_v35  ;;  %v20711_v35 = vld [vmem:[#allocation195_spill] sm:$0xff] }
 0x593   : > { %v9272_v25 = vadd.f32 %v9271_v61, %v9270_v22  ;;  %v9273_v13 = vpop.f32.mrb[82].mxu1  ;;  %v9334_v29 = vpop.f32.mrb[108].mxu0  ;;  %v4888_v20 = vmul.f32 %v20711_v35, %v17375_v31 }
 0x594   : > { %v9274_v38 = vpop.f32.mrb[83].mxu1  ;;  %v9335_v6 = vpop.f32.mrb[109].mxu0 }
 0x595   : > { %v4175_v3 = vadd.f32 %v9272_v25, %v17225_v15  ;;  %v9275_v27 = vadd.f32 %v9274_v38, %v9273_v13  ;;  %v17435_v1 = vadd.f32 %v9335_v6, %v9334_v29  ;;  %v9337_v52 = vpop.f32.mrb[110].mxu0  ;;  %v4983_v6 = vpack.c.bf16 %v4879_v17, %v4871_v46  ;;  %v20714_v46 = vld [vmem:[#allocation83_spill] sm:$0xff] }
 0x596   : > { %v9338_v41 = vpop.f32.mrb[111].mxu0  ;;  %5357 = vmatmul.mubr.bf16.gmra.mrb[188].mxu1 %v4975_v0  ;;  %v4895_v17 = vmul.f32 %v20714_v46, %v17399_v26 }
 0x597   : > { %v5424_v12 = vadd.f32 %v5423_v32, %v4175_v3  ;;  %v4178_v34 = vadd.f32 %v9275_v27, %v17237_v40  ;;  %v17438_v42 = vadd.f32 %v9338_v41, %v9337_v52  ;;  %5364 = vmatprep.mubr.bf16.mxu1 %v4984_v30  ;;  %v20712_v32 = vld [vmem:[#allocation196_spill] sm:$0xff] }
 0x598   : > { %v4896_v62 = vmul.f32 %v20712_v32, %v17375_v31 }
 0x599   : > { %v5425_v15 = vadd.f32 %v5424_v12, %v4178_v34  ;;  %v17444_v22 = vpack.c.bf16 %v4178_v34, %v4175_v3  ;;  %v9276_v50 = vpop.f32.mrb[84].mxu1 }
 0x59a   : > { %v9277_v40 = vpop.f32.mrb[85].mxu1  ;;  %v4992_v30 = vpack.c.bf16 %v4896_v62, %v4888_v20  ;;  %v20715_v20 = vld [vmem:[#allocation197_spill] sm:$0xff] }
 0x59b   : > { %v9278_v61 = vadd.f32 %v9277_v40, %v9276_v50  ;;  %v9279_v25 = vpop.f32.mrb[86].mxu1  ;;  %v9340_v13 = vpop.f32.mrb[112].mxu0  ;;  %v4887_v50 = vmul.f32 %v20713_v43, %v17399_v26  ;;  %v4904_v62 = vmul.f32 %v20715_v20, %v17375_v31  ;;  %v20717_v20 = vld [vmem:[#allocation199_spill] sm:$0xff] }
 0x59c   : > { %v9280_v29 = vpop.f32.mrb[87].mxu1  ;;  %v9341_v38 = vpop.f32.mrb[113].mxu0 }
 0x59d   : > { %v4183_v0 = vadd.f32 %v9278_v61, %v17259_v7  ;;  %v9281_v27 = vadd.f32 %v9280_v29, %v9279_v25  ;;  %v17451_v52 = vadd.f32 %v9341_v38, %v9340_v13  ;;  %v9343_v3 = vpop.f32.mrb[114].mxu0 }
 0x59e   : > { %v9344_v41 = vpop.f32.mrb[115].mxu0  ;;  %5365 = vmatmul.mubr.bf16.gmra.mrb[192].mxu1 %v4983_v6  ;;  %v4991_v6 = vpack.c.bf16 %v4895_v17, %v4887_v50  ;;  %v4911_v50 = vmul.f32 %v20588_v14, %v17399_v26 }
 0x59f   : > { %v5426_v12 = vadd.f32 %v5425_v15, %v4183_v0  ;;  %v4186_v34 = vadd.f32 %v9281_v27, %v17271_v36  ;;  %v17454_v63 = vadd.f32 %v9344_v41, %v9343_v3  ;;  %5372 = vmatprep.mubr.bf16.mxu1 %v4992_v30  ;;  %v20716_v15 = vld [vmem:[#allocation198_spill] sm:$0xff] }
 0x5a0   : > { %v4912_v36 = vmul.f32 %v20716_v15, %v17375_v31  ;;  %v20718_v15 = vld [vmem:[#allocation200_spill] sm:$0xff] }
 0x5a1   : > { %v17460_v7 = vadd.f32 %v5426_v12, %v4186_v34  ;;  %v17462_v35 = vpack.c.bf16 %v4186_v34, %v4183_v0  ;;  %v9362_v32 = vpop.f32.mrb[88].mxu1 }
 0x5a2   : > { %v9363_v40 = vpop.f32.mrb[89].mxu1  ;;  %v5000_v41 = vpack.c.bf16 %v4912_v36, %v4904_v62  ;;  %v4920_v62 = vmul.f32 %v20717_v20, %v17375_v31  ;;  %v4928_v36 = vmul.f32 %v20718_v15, %v17375_v31 }
 0x5a3   : > { %v9364_v61 = vadd.f32 %v9363_v40, %v9362_v32  ;;  %v9365_v25 = vpop.f32.mrb[90].mxu1  ;;  %v9426_v13 = vpop.f32.mrb[116].mxu0  ;;  %v4903_v32 = vmul.f32 %v20587_v39, %v17399_v26 }
 0x5a4   : > { %v9366_v29 = vpop.f32.mrb[91].mxu1  ;;  %v9427_v38 = vpop.f32.mrb[117].mxu0 }
 0x5a5   : > { %v4545_v27 = vadd.f32 %v9364_v61, %v17292_v19  ;;  %v9367_v3 = vadd.f32 %v9366_v29, %v9365_v25  ;;  %v9428_v30 = vadd.f32 %v9427_v38, %v9426_v13  ;;  %v9429_v0 = vpop.f32.mrb[118].mxu0  ;;  %v4999_v38 = vpack.c.bf16 %v4911_v50, %v4903_v32 }
 0x5a6   : > { %v9430_v12 = vpop.f32.mrb[119].mxu0  ;;  %5373 = vmatmul.mubr.bf16.gmra.mrb[196].mxu1 %v4991_v6  ;;  %v4936_v50 = vmul.f32 %v16523_v28, %v17375_v31 }
 0x5a7   : > { %v4548_v34 = vadd.f32 %v9367_v3, %v17295_v56  ;;  %v17470_v43 = vadd.f32 %v9428_v30, %v4545_v27  ;;  %v9431_v46 = vadd.f32 %v9430_v12, %v9429_v0  ;;  %5380 = vmatprep.mubr.bf16.mxu1 %v5000_v41  ;;  %v5008_v3 = vpack.c.bf16 %v4928_v36, %v4920_v62 }
 0x5a9   : > { %v17476_v17 = vadd.f32 %v9431_v46, %v4548_v34  ;;  %v9368_v19 = vpop.f32.mrb[92].mxu1  ;;  %v4919_v34 = vmul.f32 %v16508_v33, %v17399_v26  ;;  %v4927_v46 = vmul.f32 %v16514_v5, %v17399_v26 }
 0x5aa   : > { %v9369_v56 = vpop.f32.mrb[93].mxu1 }
 0x5ab   : > { %v9370_v40 = vadd.f32 %v9369_v56, %v9368_v19  ;;  %v9371_v61 = vpop.f32.mrb[94].mxu1  ;;  %v9432_v25 = vpop.f32.mrb[120].mxu0  ;;  %v4944_v19 = vmul.f32 %v16529_v11, %v17375_v31 }
 0x5ac   : > { %v9372_v13 = vpop.f32.mrb[95].mxu1  ;;  %v9433_v29 = vpop.f32.mrb[121].mxu0 }
 0x5ad   : > { %v4553_v39 = vadd.f32 %v9370_v40, %v17326_v45  ;;  %v9373_v6 = vadd.f32 %v9372_v13, %v9371_v61  ;;  %v9434_v14 = vadd.f32 %v9433_v29, %v9432_v25  ;;  %v9435_v27 = vpop.f32.mrb[122].mxu0  ;;  %v5007_v40 = vpack.c.bf16 %v4927_v46, %v4919_v34 }
 0x5ae   : > { %v9436_v30 = vpop.f32.mrb[123].mxu0  ;;  %5381 = vmatmul.mubr.bf16.gmra.mrb[200].mxu1 %v4999_v38  ;;  %v5016_v13 = vpack.c.bf16 %v4944_v19, %v4936_v50 }
 0x5af   : > { %v4556_v0 = vadd.f32 %v9373_v6, %v17329_v18  ;;  %v17484_v41 = vadd.f32 %v9434_v14, %v4553_v39  ;;  %v9437_v12 = vadd.f32 %v9436_v30, %v9435_v27  ;;  %5388 = vmatprep.mubr.bf16.mxu1 %v5008_v3  ;;  %v4935_v39 = vmul.f32 %v16554_v47, %v17399_v26 }
 0x5b0   : > { %v4943_v6 = vmul.f32 %v16560_v54, %v17399_v26  ;;  %v4952_v27 = vmul.f32 %v16566_v37, %v17375_v31  ;;  %v4960_v3 = vmul.f32 %v16572_v53, %v17375_v31  ;;  %v4951_v31 = vmul.f32 %v16594_v51, %v17399_v26 }
 0x5b1   : > { %v17490_v32 = vadd.f32 %v9437_v12, %v4556_v0  ;;  %v9374_v45 = vpop.f32.mrb[96].mxu1 }
 0x5b2   : > { %v9375_v18 = vpop.f32.mrb[97].mxu1 }
 0x5b3   : > { %v9376_v20 = vadd.f32 %v9375_v18, %v9374_v45  ;;  %v9377_v62 = vpop.f32.mrb[98].mxu1  ;;  %v9438_v15 = vpop.f32.mrb[124].mxu0  ;;  %v5015_v45 = vpack.c.bf16 %v4943_v6, %v4935_v39  ;;  %v5024_v18 = vpack.c.bf16 %v4960_v3, %v4952_v27 }
 0x5b4   : > { %v9378_v36 = vpop.f32.mrb[99].mxu1  ;;  %v9439_v56 = vpop.f32.mrb[125].mxu0 }
 0x5b5   : > { %v4561_v33 = vadd.f32 %v9376_v20, %v17350_v60  ;;  %v9379_v61 = vadd.f32 %v9378_v36, %v9377_v62  ;;  %v9440_v5 = vadd.f32 %v9439_v56, %v9438_v15  ;;  %v9441_v25 = vpop.f32.mrb[126].mxu0  ;;  %v4959_v15 = vmul.f32 %v16600_v10, %v17399_v26 }
 0x5b6   : > { %v9442_v29 = vpop.f32.mrb[127].mxu0  ;;  %5389 = vmatmul.mubr.bf16.gmra.mrb[204].mxu1 %v5007_v40 }
 0x5b7   : > { %v4564_v28 = vadd.f32 %v9379_v61, %v17353_v9  ;;  %v17498_v38 = vadd.f32 %v9440_v5, %v4561_v33  ;;  %v9443_v11 = vadd.f32 %v9442_v29, %v9441_v25  ;;  %5396 = vmatprep.mubr.bf16.mxu1 %v5016_v13 }
 0x5b9   : > { %v17504_v14 = vadd.f32 %v9443_v11, %v4564_v28  ;;  %v9380_v60 = vpop.f32.mrb[100].mxu1 }
 0x5ba   : > { %v9381_v9 = vpop.f32.mrb[101].mxu1 }
 0x5bb   : > { %v9382_v30 = vadd.f32 %v9381_v9, %v9380_v60  ;;  %v9383_v0 = vpop.f32.mrb[102].mxu1  ;;  %v9444_v12 = vpop.f32.mrb[128].mxu0 }
 0x5bc   : > { %v9384_v34 = vpop.f32.mrb[103].mxu1  ;;  %v9445_v46 = vpop.f32.mrb[129].mxu0 }
 0x5bd   : > { %v4569_v47 = vadd.f32 %v9382_v30, %v17378_v59  ;;  %v9385_v50 = vadd.f32 %v9384_v34, %v9383_v0  ;;  %v9446_v54 = vadd.f32 %v9445_v46, %v9444_v12  ;;  %v9447_v19 = vpop.f32.mrb[130].mxu0 }
 0x5be   : > { %v9448_v20 = vpop.f32.mrb[131].mxu0  ;;  %5397 = vmatmul.mubr.bf16.gmra.mrb[208].mxu1 %v5015_v45 }
 0x5bf   : > { %v4572_v37 = vadd.f32 %v9385_v50, %v17381_v55  ;;  %v17512_v62 = vadd.f32 %v9446_v54, %v4569_v47  ;;  %v9449_v53 = vadd.f32 %v9448_v20, %v9447_v19  ;;  %5404 = vmatprep.mubr.bf16.mxu1 %v5024_v18  ;;  %v5023_v55 = vpack.c.bf16 %v4959_v15, %v4951_v31 }
 0x5c1   : > { %v17518_v36 = vadd.f32 %v9449_v53, %v4572_v37  ;;  %v9386_v59 = vpop.f32.mrb[104].mxu1 }
 0x5c2   : > { %v9387_v56 = vpop.f32.mrb[105].mxu1 }
 0x5c3   : > { %v9388_v40 = vadd.f32 %v9387_v56, %v9386_v59  ;;  %v9389_v33 = vpop.f32.mrb[106].mxu1  ;;  %v9450_v61 = vpop.f32.mrb[132].mxu0 }
 0x5c4   : > { %v9390_v5 = vpop.f32.mrb[107].mxu1  ;;  %v9451_v25 = vpop.f32.mrb[133].mxu0 }
 0x5c5   : > { %v4577_v13 = vadd.f32 %v9388_v40, %v17402_v2  ;;  %v9391_v29 = vadd.f32 %v9390_v5, %v9389_v33  ;;  %v9452_v28 = vadd.f32 %v9451_v25, %v9450_v61  ;;  %v9453_v11 = vpop.f32.mrb[134].mxu0 }
 0x5c6   : > { %v9454_v39 = vpop.f32.mrb[135].mxu0  ;;  %5405 = vmatmul.mubr.bf16.gmra.mrb[212].mxu1 %v5023_v55 }
 0x5c7   : > { %v4580_v51 = vadd.f32 %v9391_v29, %v17405_v16  ;;  %v17522_v10 = vadd.f32 %v9452_v28, %v4577_v13  ;;  %v9455_v26 = vadd.f32 %v9454_v39, %v9453_v11  ;;  %9935 = vmatprep.mubr.msk.bf16.mxu1 %vm20719_vm15, %v20675_v21 }
 0x5c9   : > { %v17526_v6 = vadd.f32 %v9455_v26, %v4580_v51  ;;  %v9392_v60 = vpop.f32.mrb[108].mxu1 }
 0x5ca   : > { %v9393_v27 = vpop.f32.mrb[109].mxu1 }
 0x5cb   : > { %v9394_v3 = vadd.f32 %v9393_v27, %v9392_v60  ;;  %v9395_v9 = vpop.f32.mrb[110].mxu1  ;;  %v9456_v2 = vpop.f32.mrb[136].mxu0 }
 0x5cc   : > { %v9396_v30 = vpop.f32.mrb[111].mxu1  ;;  %v9457_v0 = vpop.f32.mrb[137].mxu0 }
 0x5cd   : > { %v4585_v12 = vadd.f32 %v9394_v3, %v17419_v8  ;;  %v9397_v34 = vadd.f32 %v9396_v30, %v9395_v9  ;;  %v9458_v46 = vadd.f32 %v9457_v0, %v9456_v2  ;;  %v9459_v16 = vpop.f32.mrb[138].mxu0 }
 0x5ce   : > { %v9460_v45 = vpop.f32.mrb[139].mxu0 }
 0x5cf   : > { %v4588_v47 = vadd.f32 %v9397_v34, %v17422_v58  ;;  %v17530_v50 = vadd.f32 %v9458_v46, %v4585_v12  ;;  %v9461_v54 = vadd.f32 %v9460_v45, %v9459_v16 }
 0x5d1   : > { %v17532_v19 = vadd.f32 %v9461_v54, %v4588_v47  ;;  %v9398_v18 = vpop.f32.mrb[112].mxu1 }
 0x5d2   : > { %v9399_v20 = vpop.f32.mrb[113].mxu1 }
 0x5d3   : > { %v9400_v37 = vadd.f32 %v9399_v20, %v9398_v18  ;;  %v9401_v53 = vpop.f32.mrb[114].mxu1  ;;  %v9462_v31 = vpop.f32.mrb[140].mxu0 }
 0x5d4   : > { %v9402_v15 = vpop.f32.mrb[115].mxu1  ;;  %v9463_v59 = vpop.f32.mrb[141].mxu0 }
 0x5d5   : > { %v4593_v8 = vadd.f32 %v9400_v37, %v17435_v1  ;;  %v9403_v56 = vadd.f32 %v9402_v15, %v9401_v53  ;;  %v9464_v40 = vadd.f32 %v9463_v59, %v9462_v31  ;;  %v9465_v33 = vpop.f32.mrb[142].mxu0 }
 0x5d6   : > { %v9466_v61 = vpop.f32.mrb[143].mxu0 }
 0x5d7   : > { %v4596_v58 = vadd.f32 %v9403_v56, %v17438_v42  ;;  %v17536_v5 = vadd.f32 %v9464_v40, %v4593_v8  ;;  %v9467_v25 = vadd.f32 %v9466_v61, %v9465_v33 }
 0x5d9   : > { %v17538_v55 = vadd.f32 %v9467_v25, %v4596_v58  ;;  %v9404_v13 = vpop.f32.mrb[116].mxu1 }
 0x5da   : > { %v9405_v29 = vpop.f32.mrb[117].mxu1 }
 0x5db   : > { %v9406_v28 = vadd.f32 %v9405_v29, %v9404_v13  ;;  %v9407_v11 = vpop.f32.mrb[118].mxu1  ;;  %v9468_v39 = vpop.f32.mrb[144].mxu0 }
 0x5dc   : > { %v9408_v51 = vpop.f32.mrb[119].mxu1  ;;  %v9469_v26 = vpop.f32.mrb[145].mxu0 }
 0x5dd   : > { %v4601_v1 = vadd.f32 %v9406_v28, %v17451_v52  ;;  %v9409_v60 = vadd.f32 %v9408_v51, %v9407_v11  ;;  %v9470_v27 = vadd.f32 %v9469_v26, %v9468_v39  ;;  %v9471_v3 = vpop.f32.mrb[146].mxu0 }
 0x5de   : > { %v9472_v9 = vpop.f32.mrb[147].mxu0 }
 0x5df   : > { %v4604_v42 = vadd.f32 %v9409_v60, %v17454_v63  ;;  %v17542_v2 = vadd.f32 %v9470_v27, %v4601_v1  ;;  %v9473_v30 = vadd.f32 %v9472_v9, %v9471_v3 }
 0x5e1   : > { %v17544_v0 = vadd.f32 %v9473_v30, %v4604_v42  ;;  %v9490_v12 = vpop.f32.mrb[120].mxu1 }
 0x5e2   : > { %v9491_v34 = vpop.f32.mrb[121].mxu1 }
 0x5e3   : > { %v9492_v46 = vadd.f32 %v9491_v34, %v9490_v12  ;;  %v9493_v16 = vpop.f32.mrb[122].mxu1  ;;  %v9554_v45 = vpop.f32.mrb[148].mxu0 }
 0x5e4   : > { %v9494_v47 = vpop.f32.mrb[123].mxu1  ;;  %v9555_v54 = vpop.f32.mrb[149].mxu0 }
 0x5e5   : > { %v4739_v52 = vadd.f32 %v9492_v46, %v17470_v43  ;;  %v9495_v18 = vadd.f32 %v9494_v47, %v9493_v16  ;;  %v17547_v20 = vadd.f32 %v9555_v54, %v9554_v45  ;;  %v9557_v37 = vpop.f32.mrb[150].mxu0 }
 0x5e6   : > { %v9558_v53 = vpop.f32.mrb[151].mxu0 }
 0x5e7   : > { %v4742_v63 = vadd.f32 %v9495_v18, %v17476_v17  ;;  %v17550_v31 = vadd.f32 %v9558_v53, %v9557_v37 }
 0x5e9   : > { %v5434_v15 = vadd.f32 %v4742_v63, %v4739_v52  ;;  %v17552_v59 = vpack.c.bf16 %v4742_v63, %v4739_v52  ;;  %v9496_v8 = vpop.f32.mrb[124].mxu1 }
 0x5ea   : > { %v9497_v56 = vpop.f32.mrb[125].mxu1 }
 0x5eb   : > { %v9498_v40 = vadd.f32 %v9497_v56, %v9496_v8  ;;  %v9499_v33 = vpop.f32.mrb[126].mxu1  ;;  %v9560_v61 = vpop.f32.mrb[152].mxu0  ;;  %5500 = vmatprep.subr.bf16.mxu0 %v17552_v59 }
 0x5ec   : > { %v9500_v43 = vpop.f32.mrb[127].mxu1  ;;  %v9561_v58 = vpop.f32.mrb[153].mxu0  ;;  %5501 = vmatpush1.bf16.msra.mxu0 %v17307_v24 }
 0x5ed   : > { %v4747_v25 = vadd.f32 %v9498_v40, %v17484_v41  ;;  %v9501_v13 = vadd.f32 %v9500_v43, %v9499_v33  ;;  %v17557_v17 = vadd.f32 %v9561_v58, %v9560_v61  ;;  %v9563_v29 = vpop.f32.mrb[154].mxu0 }
 0x5ee   : > { %v9564_v28 = vpop.f32.mrb[155].mxu0 }
 0x5ef   : > { %v5435_v11 = vadd.f32 %v5434_v15, %v4747_v25  ;;  %v4750_v39 = vadd.f32 %v9501_v13, %v17490_v32  ;;  %v17560_v51 = vadd.f32 %v9564_v28, %v9563_v29 }
 0x5f1   : > { %v5436_v26 = vadd.f32 %v5435_v11, %v4750_v39  ;;  %v17562_v1 = vpack.c.bf16 %v4750_v39, %v4747_v25  ;;  %v9502_v60 = vpop.f32.mrb[128].mxu1 }
 0x5f2   : > { %v9503_v27 = vpop.f32.mrb[129].mxu1 }
 0x5f3   : > { %v9504_v3 = vadd.f32 %v9503_v27, %v9502_v60  ;;  %v9505_v9 = vpop.f32.mrb[130].mxu1  ;;  %v9566_v42 = vpop.f32.mrb[156].mxu0  ;;  %5502 = vmatprep.subr.bf16.mxu0 %v17562_v1 }
 0x5f4   : > { %v9506_v41 = vpop.f32.mrb[131].mxu1  ;;  %v9567_v30 = vpop.f32.mrb[157].mxu0  ;;  %5503 = vmatpush1.bf16.msra.mxu0 %v17335_v49 }
 0x5f5   : > { %v4755_v12 = vadd.f32 %v9504_v3, %v17498_v38  ;;  %v9507_v34 = vadd.f32 %v9506_v41, %v9505_v9  ;;  %v17567_v32 = vadd.f32 %v9567_v30, %v9566_v42  ;;  %v9569_v46 = vpop.f32.mrb[158].mxu0 }
 0x5f6   : > { %v9570_v16 = vpop.f32.mrb[159].mxu0 }
 0x5f7   : > { %v5437_v45 = vadd.f32 %v5436_v26, %v4755_v12  ;;  %v4758_v47 = vadd.f32 %v9507_v34, %v17504_v14  ;;  %v17570_v54 = vadd.f32 %v9570_v16, %v9569_v46 }
 0x5f9   : > { %v5438_v52 = vadd.f32 %v5437_v45, %v4758_v47  ;;  %v17572_v18 = vpack.c.bf16 %v4758_v47, %v4755_v12  ;;  %v9508_v37 = vpop.f32.mrb[132].mxu1 }
 0x5fa   : > { %v9509_v53 = vpop.f32.mrb[133].mxu1 }
 0x5fb   : > { %v9510_v63 = vadd.f32 %v9509_v53, %v9508_v37  ;;  %v9511_v15 = vpop.f32.mrb[134].mxu1  ;;  %v9572_v8 = vpop.f32.mrb[160].mxu0  ;;  %5504 = vmatprep.subr.bf16.mxu0 %v17572_v18 }
 0x5fc   : > { %v9512_v38 = vpop.f32.mrb[135].mxu1  ;;  %v9573_v56 = vpop.f32.mrb[161].mxu0  ;;  %5505 = vmatpush1.bf16.msra.mxu0 %v17359_v48 }
 0x5fd   : > { %v4763_v40 = vadd.f32 %v9510_v63, %v17512_v62  ;;  %v9513_v33 = vadd.f32 %v9512_v38, %v9511_v15  ;;  %v17577_v14 = vadd.f32 %v9573_v56, %v9572_v8  ;;  %v9575_v61 = vpop.f32.mrb[162].mxu0 }
 0x5fe   : > { %v9576_v43 = vpop.f32.mrb[163].mxu0 }
 0x5ff   : > { %v5439_v58 = vadd.f32 %v5438_v52, %v4763_v40  ;;  %v4766_v25 = vadd.f32 %v9513_v33, %v17518_v36  ;;  %v17580_v13 = vadd.f32 %v9576_v43, %v9575_v61 }
 0x601   : > { %v5440_v29 = vadd.f32 %v5439_v58, %v4766_v25  ;;  %v17582_v28 = vpack.c.bf16 %v4766_v25, %v4763_v40  ;;  %v9514_v11 = vpop.f32.mrb[136].mxu1 }
 0x602   : > { %v9515_v39 = vpop.f32.mrb[137].mxu1 }
 0x603   : > { %v9516_v26 = vadd.f32 %v9515_v39, %v9514_v11  ;;  %v9517_v60 = vpop.f32.mrb[138].mxu1  ;;  %v9578_v27 = vpop.f32.mrb[164].mxu0  ;;  %5506 = vmatprep.subr.bf16.mxu0 %v17582_v28 }
 0x604   : > { %v9518_v62 = vpop.f32.mrb[139].mxu1  ;;  %v9579_v3 = vpop.f32.mrb[165].mxu0  ;;  %5507 = vmatpush1.bf16.msra.mxu0 %v17387_v44 }
 0x605   : > { %v4771_v9 = vadd.f32 %v9516_v26, %v17522_v10  ;;  %v9519_v42 = vadd.f32 %v9518_v62, %v9517_v60  ;;  %v17587_v36 = vadd.f32 %v9579_v3, %v9578_v27  ;;  %v9581_v41 = vpop.f32.mrb[166].mxu0 }
 0x606   : > { %v9582_v30 = vpop.f32.mrb[167].mxu0 }
 0x607   : > { %v5441_v12 = vadd.f32 %v5440_v29, %v4771_v9  ;;  %v4774_v34 = vadd.f32 %v9519_v42, %v17526_v6  ;;  %v17590_v46 = vadd.f32 %v9582_v30, %v9581_v41 }
 0x609   : > { %v5442_v16 = vadd.f32 %v5441_v12, %v4774_v34  ;;  %v17592_v45 = vpack.c.bf16 %v4774_v34, %v4771_v9  ;;  %v9520_v47 = vpop.f32.mrb[140].mxu1 }
 0x60a   : > { %v9521_v52 = vpop.f32.mrb[141].mxu1 }
 0x60b   : > { %v9522_v37 = vadd.f32 %v9521_v52, %v9520_v47  ;;  %v9523_v53 = vpop.f32.mrb[142].mxu1  ;;  %v9584_v63 = vpop.f32.mrb[168].mxu0  ;;  %5508 = vmatprep.subr.bf16.mxu0 %v17592_v45 }
 0x60c   : > { %v9524_v10 = vpop.f32.mrb[143].mxu1  ;;  %v9585_v15 = vpop.f32.mrb[169].mxu0  ;;  %5509 = vmatpush1.bf16.msra.mxu0 %v17411_v4 }
 0x60d   : > { %v4779_v8 = vadd.f32 %v9522_v37, %v17530_v50  ;;  %v9525_v38 = vadd.f32 %v9524_v10, %v9523_v53  ;;  %v17597_v6 = vadd.f32 %v9585_v15, %v9584_v63  ;;  %v9587_v56 = vpop.f32.mrb[170].mxu0 }
 0x60e   : > { %v9588_v40 = vpop.f32.mrb[171].mxu0 }
 0x60f   : > { %v5443_v33 = vadd.f32 %v5442_v16, %v4779_v8  ;;  %v4782_v61 = vadd.f32 %v9525_v38, %v17532_v19  ;;  %v17600_v43 = vadd.f32 %v9588_v40, %v9587_v56 }
 0x611   : > { %v5444_v58 = vadd.f32 %v5443_v33, %v4782_v61  ;;  %v17602_v25 = vpack.c.bf16 %v4782_v61, %v4779_v8  ;;  %v9526_v29 = vpop.f32.mrb[144].mxu1 }
 0x612   : > { %v9527_v11 = vpop.f32.mrb[145].mxu1 }
 0x613   : > { %v9528_v39 = vadd.f32 %v9527_v11, %v9526_v29  ;;  %v9529_v26 = vpop.f32.mrb[146].mxu1  ;;  %v9590_v60 = vpop.f32.mrb[172].mxu0  ;;  %5510 = vmatprep.subr.bf16.mxu0 %v17602_v25 }
 0x614   : > { %v9530_v50 = vpop.f32.mrb[147].mxu1  ;;  %v9591_v27 = vpop.f32.mrb[173].mxu0  ;;  %5511 = vmatpush1.bf16.msra.mxu0 %v17428_v57 }
 0x615   : > { %v4787_v62 = vadd.f32 %v9528_v39, %v17536_v5  ;;  %v9531_v3 = vadd.f32 %v9530_v50, %v9529_v26  ;;  %v17607_v19 = vadd.f32 %v9591_v27, %v9590_v60  ;;  %v9593_v9 = vpop.f32.mrb[174].mxu0 }
 0x616   : > { %v9594_v42 = vpop.f32.mrb[175].mxu0 }
 0x617   : > { %v5445_v41 = vadd.f32 %v5444_v58, %v4787_v62  ;;  %v4790_v30 = vadd.f32 %v9531_v3, %v17538_v55  ;;  %v17610_v12 = vadd.f32 %v9594_v42, %v9593_v9 }
 0x619   : > { %v5446_v34 = vadd.f32 %v5445_v41, %v4790_v30  ;;  %v17612_v16 = vpack.c.bf16 %v4790_v30, %v4787_v62  ;;  %v9532_v47 = vpop.f32.mrb[148].mxu1 }
 0x61a   : > { %v9533_v52 = vpop.f32.mrb[149].mxu1 }
 0x61b   : > { %v9534_v37 = vadd.f32 %v9533_v52, %v9532_v47  ;;  %v9535_v53 = vpop.f32.mrb[150].mxu1  ;;  %v9596_v63 = vpop.f32.mrb[176].mxu0  ;;  %5512 = vmatprep.subr.bf16.mxu0 %v17612_v16  ;;  %v20720_v47 = vld [vmem:[#allocation23_spill] sm:$0xff] }
 0x61c   : > { %v9536_v5 = vpop.f32.mrb[151].mxu1  ;;  %v9597_v10 = vpop.f32.mrb[177].mxu0  ;;  %5513 = vmatpush1.bf16.msra.mxu0 %v17444_v22  ;;  %v20721_v52 = vld [vmem:[#allocation27_spill] sm:$0xff] }
 0x61d   : > { %v4795_v15 = vadd.f32 %v9534_v37, %v17542_v2  ;;  %v9537_v8 = vadd.f32 %v9536_v5, %v9535_v53  ;;  %v17617_v55 = vadd.f32 %v9597_v10, %v9596_v63  ;;  %v9599_v38 = vpop.f32.mrb[178].mxu0  ;;  %v5581_v37 = vld [vmem:[#allocation8] sm:$0xf] }
 0x61e   : > { %v9600_v56 = vpop.f32.mrb[179].mxu0 }
 0x61f   : > { %v5447_v40 = vadd.f32 %v5446_v34, %v4795_v15  ;;  %v4798_v33 = vadd.f32 %v9537_v8, %v17544_v0  ;;  %v17620_v61 = vadd.f32 %v9600_v56, %v9599_v38 }
 0x621   : > { %v17622_v58 = vadd.f32 %v5447_v40, %v4798_v33  ;;  %v17624_v29 = vpack.c.bf16 %v4798_v33, %v4795_v15  ;;  %v9618_v11 = vpop.f32.mrb[152].mxu1  ;;  %v5582_v15 = vpack.c.bf16 %v5581_v37, %v5581_v37 }
 0x622   : > { %v9619_v39 = vpop.f32.mrb[153].mxu1 }
 0x623   : > { %v9620_v26 = vadd.f32 %v9619_v39, %v9618_v11  ;;  %v9621_v60 = vpop.f32.mrb[154].mxu1  ;;  %v9682_v50 = vpop.f32.mrb[180].mxu0  ;;  %5514 = vmatprep.subr.bf16.mxu0 %v17624_v29 }
 0x624   : > { %v9622_v2 = vpop.f32.mrb[155].mxu1  ;;  %v9683_v27 = vpop.f32.mrb[181].mxu0  ;;  %5515 = vmatpush1.bf16.msra.mxu0 %v17462_v35 }
 0x625   : > { %v5157_v62 = vadd.f32 %v9620_v26, %v17547_v20  ;;  %v9623_v0 = vadd.f32 %v9622_v2, %v9621_v60  ;;  %v9684_v3 = vadd.f32 %v9683_v27, %v9682_v50  ;;  %v9685_v9 = vpop.f32.mrb[182].mxu0  ;;  %9939 = vmatprep.subr.bf16.mxu0 %v20675_v21 }
 0x626   : > { %v9686_v42 = vpop.f32.mrb[183].mxu0 }
 0x627   : > { %v5160_v41 = vadd.f32 %v9623_v0, %v17550_v31  ;;  %v17631_v30 = vadd.f32 %v9684_v3, %v5157_v62  ;;  %v9687_v34 = vadd.f32 %v9686_v42, %v9685_v9  ;;  %5533 = vmatmul.mubr.bf16.vlgmr.msra.gmra.mrb[212].mxu0 %v20720_v47 }
 0x628   : > { %9940 = vmatpush3.bf16.msra.mxu0 %v20721_v52  ;;  %9941 = vmatprep.mubr.msk.bf16.mxu0 %vm20719_vm15, %v20675_v21 }
 0x629   : > { %v17637_v20 = vadd.f32 %v9687_v34, %v5160_v41  ;;  %v9624_v53 = vpop.f32.mrb[156].mxu1  ;;  %9951 = vmatprep.subr.bf16.mxu0 %v20675_v21 }
 0x62a   : > { %v9625_v63 = vpop.f32.mrb[157].mxu1 }
 0x62b   : > { %v9626_v5 = vadd.f32 %v9625_v63, %v9624_v53  ;;  %v9627_v10 = vpop.f32.mrb[158].mxu1  ;;  %v9688_v31 = vpop.f32.mrb[184].mxu0 }
 0x62c   : > { %v9628_v8 = vpop.f32.mrb[159].mxu1  ;;  %v9689_v38 = vpop.f32.mrb[185].mxu0 }
 0x62d   : > { %v5165_v56 = vadd.f32 %v9626_v5, %v17557_v17  ;;  %v9629_v40 = vadd.f32 %v9628_v8, %v9627_v10  ;;  %v9690_v33 = vadd.f32 %v9689_v38, %v9688_v31  ;;  %v9691_v11 = vpop.f32.mrb[186].mxu0 }
 0x62e   : > { %v9692_v39 = vpop.f32.mrb[187].mxu0 }
 0x62f   : > { %v5168_v26 = vadd.f32 %v9629_v40, %v17560_v51  ;;  %v17642_v60 = vadd.f32 %v9690_v33, %v5165_v56  ;;  %v9693_v50 = vadd.f32 %v9692_v39, %v9691_v11  ;;  %9942 = vmatmul.mubr.msk.bf16.vlgmr.msra.gmra.mrb[216].mxu0 %vm20722_vm11, %v5582_v15  ;;  %vm6190_vm11 = vcmask 1043456  }
 0x630   : > { %9953 = vmatprep.mubr.msk.bf16.mxu0 %vm20719_vm15, %v20675_v21 }
 0x631   : > { %v17647_v2 = vadd.f32 %v9693_v50, %v5168_v26  ;;  %v9630_v27 = vpop.f32.mrb[160].mxu1 }
 0x632   : > { %v9631_v62 = vpop.f32.mrb[161].mxu1 }
 0x633   : > { %v9632_v0 = vadd.f32 %v9631_v62, %v9630_v27  ;;  %v9633_v17 = vpop.f32.mrb[162].mxu1  ;;  %v9694_v3 = vpop.f32.mrb[188].mxu0 }
 0x634   : > { %v9634_v9 = vpop.f32.mrb[163].mxu1  ;;  %v9695_v42 = vpop.f32.mrb[189].mxu0 }
 0x635   : > { %v5173_v41 = vadd.f32 %v9632_v0, %v17567_v32  ;;  %v9635_v51 = vadd.f32 %v9634_v9, %v9633_v17  ;;  %v9696_v34 = vadd.f32 %v9695_v42, %v9694_v3  ;;  %v9697_v37 = vpop.f32.mrb[190].mxu0 }
 0x636   : > { %v9698_v53 = vpop.f32.mrb[191].mxu0 }
 0x637   : > { %v5176_v63 = vadd.f32 %v9635_v51, %v17570_v54  ;;  %v17651_v5 = vadd.f32 %v9696_v34, %v5173_v41  ;;  %v9699_v10 = vadd.f32 %v9698_v53, %v9697_v37 }
 0x639   : > { %v17653_v31 = vadd.f32 %v9699_v10, %v5176_v63  ;;  %v9636_v15 = vpop.f32.mrb[164].mxu1 }
 0x63a   : > { %v9637_v8 = vpop.f32.mrb[165].mxu1 }
 0x63b   : > { %v9638_v38 = vadd.f32 %v9637_v8, %v9636_v15  ;;  %v9639_v56 = vpop.f32.mrb[166].mxu1  ;;  %v9700_v40 = vpop.f32.mrb[192].mxu0 }
 0x63c   : > { %v9640_v33 = vpop.f32.mrb[167].mxu1  ;;  %v9701_v11 = vpop.f32.mrb[193].mxu0 }
 0x63d   : > { %v5181_v32 = vadd.f32 %v9638_v38, %v17577_v14  ;;  %v9641_v39 = vadd.f32 %v9640_v33, %v9639_v56  ;;  %v9702_v26 = vadd.f32 %v9701_v11, %v9700_v40  ;;  %v9703_v50 = vpop.f32.mrb[194].mxu0 }
 0x63e   : > { %v9704_v27 = vpop.f32.mrb[195].mxu0 }
 0x63f   : > { %v5184_v54 = vadd.f32 %v9641_v39, %v17580_v13  ;;  %v17657_v62 = vadd.f32 %v9702_v26, %v5181_v32  ;;  %v9705_v0 = vadd.f32 %v9704_v27, %v9703_v50 }
 0x641   : > { %v17659_v17 = vadd.f32 %v9705_v0, %v5184_v54  ;;  %v9642_v3 = vpop.f32.mrb[168].mxu1 }
 0x642   : > { %v9643_v9 = vpop.f32.mrb[169].mxu1 }
 0x643   : > { %v9644_v42 = vadd.f32 %v9643_v9, %v9642_v3  ;;  %v9645_v41 = vpop.f32.mrb[170].mxu1  ;;  %v9706_v51 = vpop.f32.mrb[196].mxu0 }
 0x644   : > { %v9646_v34 = vpop.f32.mrb[171].mxu1  ;;  %v9707_v37 = vpop.f32.mrb[197].mxu0 }
 0x645   : > { %v5189_v14 = vadd.f32 %v9644_v42, %v17587_v36  ;;  %v9647_v53 = vadd.f32 %v9646_v34, %v9645_v41  ;;  %v9708_v63 = vadd.f32 %v9707_v37, %v9706_v51  ;;  %v9709_v10 = vpop.f32.mrb[198].mxu0 }
 0x646   : > { %v9710_v15 = vpop.f32.mrb[199].mxu0 }
 0x647   : > { %v5192_v13 = vadd.f32 %v9647_v53, %v17590_v46  ;;  %v17663_v8 = vadd.f32 %v9708_v63, %v5189_v14  ;;  %v9711_v38 = vadd.f32 %v9710_v15, %v9709_v10 }
 0x649   : > { %v17665_v56 = vadd.f32 %v9711_v38, %v5192_v13  ;;  %v9648_v40 = vpop.f32.mrb[172].mxu1 }
 0x64a   : > { %v9649_v33 = vpop.f32.mrb[173].mxu1 }
 0x64b   : > { %v9650_v11 = vadd.f32 %v9649_v33, %v9648_v40  ;;  %v9651_v32 = vpop.f32.mrb[174].mxu1  ;;  %v9712_v39 = vpop.f32.mrb[200].mxu0 }
 0x64c   : > { %v9652_v26 = vpop.f32.mrb[175].mxu1  ;;  %v9713_v50 = vpop.f32.mrb[201].mxu0 }
 0x64d   : > { %v5197_v36 = vadd.f32 %v9650_v11, %v17597_v6  ;;  %v9653_v27 = vadd.f32 %v9652_v26, %v9651_v32  ;;  %v9714_v54 = vadd.f32 %v9713_v50, %v9712_v39  ;;  %v9715_v0 = vpop.f32.mrb[202].mxu0 }
 0x64e   : > { %v9716_v3 = vpop.f32.mrb[203].mxu0 }
 0x64f   : > { %v5200_v46 = vadd.f32 %v9653_v27, %v17600_v43  ;;  %v17669_v9 = vadd.f32 %v9714_v54, %v5197_v36  ;;  %v9717_v42 = vadd.f32 %v9716_v3, %v9715_v0 }
 0x651   : > { %v17671_v41 = vadd.f32 %v9717_v42, %v5200_v46  ;;  %v9654_v51 = vpop.f32.mrb[176].mxu1 }
 0x652   : > { %v9655_v34 = vpop.f32.mrb[177].mxu1 }
 0x653   : > { %v9656_v37 = vadd.f32 %v9655_v34, %v9654_v51  ;;  %v9657_v14 = vpop.f32.mrb[178].mxu1  ;;  %v9718_v53 = vpop.f32.mrb[204].mxu0 }
 0x654   : > { %v9658_v63 = vpop.f32.mrb[179].mxu1  ;;  %v9719_v10 = vpop.f32.mrb[205].mxu0 }
 0x655   : > { %v5205_v6 = vadd.f32 %v9656_v37, %v17607_v19  ;;  %v9659_v15 = vadd.f32 %v9658_v63, %v9657_v14  ;;  %v9720_v13 = vadd.f32 %v9719_v10, %v9718_v53  ;;  %v9721_v38 = vpop.f32.mrb[206].mxu0 }
 0x656   : > { %v9722_v40 = vpop.f32.mrb[207].mxu0 }
 0x657   : > { %v5208_v43 = vadd.f32 %v9659_v15, %v17610_v12  ;;  %v17675_v33 = vadd.f32 %v9720_v13, %v5205_v6  ;;  %v9723_v11 = vadd.f32 %v9722_v40, %v9721_v38 }
 0x659   : > { %v17677_v32 = vadd.f32 %v9723_v11, %v5208_v43  ;;  %v9660_v39 = vpop.f32.mrb[180].mxu1 }
 0x65a   : > { %v9661_v26 = vpop.f32.mrb[181].mxu1 }
 0x65b   : > { %v9662_v50 = vadd.f32 %v9661_v26, %v9660_v39  ;;  %v9663_v36 = vpop.f32.mrb[182].mxu1  ;;  %v9724_v27 = vpop.f32.mrb[208].mxu0 }
 0x65c   : > { %v9664_v54 = vpop.f32.mrb[183].mxu1  ;;  %v9725_v0 = vpop.f32.mrb[209].mxu0 }
 0x65d   : > { %v5213_v19 = vadd.f32 %v9662_v50, %v17617_v55  ;;  %v9665_v3 = vadd.f32 %v9664_v54, %v9663_v36  ;;  %v9726_v46 = vadd.f32 %v9725_v0, %v9724_v27  ;;  %v9727_v42 = vpop.f32.mrb[210].mxu0 }
 0x65e   : > { %v9728_v51 = vpop.f32.mrb[211].mxu0 }
 0x65f   : > { %v5216_v12 = vadd.f32 %v9665_v3, %v17620_v61  ;;  %v17681_v34 = vadd.f32 %v9726_v46, %v5213_v19  ;;  %v9729_v37 = vadd.f32 %v9728_v51, %v9727_v42 }
 0x661   : > { %v17683_v14 = vadd.f32 %v9729_v37, %v5216_v12  ;;  %v9746_v53 = vpop.f32.mrb[184].mxu1 }
 0x662   : > { %v9747_v63 = vpop.f32.mrb[185].mxu1 }
 0x663   : > { %v9748_v10 = vadd.f32 %v9747_v63, %v9746_v53  ;;  %v9749_v6 = vpop.f32.mrb[186].mxu1 }
 0x664   : > { %v9750_v15 = vpop.f32.mrb[187].mxu1 }
 0x665   : > { %v5351_v13 = vadd.f32 %v9748_v10, %v17631_v30  ;;  %v9751_v38 = vadd.f32 %v9750_v15, %v9749_v6 }
 0x667   : > { %v5354_v55 = vadd.f32 %v9751_v38, %v17637_v20 }
 0x669   : > { %v5455_v40 = vadd.f32 %v5354_v55, %v5351_v13  ;;  %v17687_v43 = vpack.c.bf16 %v5354_v55, %v5351_v13  ;;  %v9752_v11 = vpop.f32.mrb[188].mxu1 }
 0x66a   : > { %v9753_v61 = vpop.f32.mrb[189].mxu1 }
 0x66b   : > { %v9754_v39 = vadd.f32 %v9753_v61, %v9752_v11  ;;  %v9755_v26 = vpop.f32.mrb[190].mxu1  ;;  %9920 = vmatpush3.bf16.msra.mxu1 %v17687_v43 }
 0x66c   : > { %v9756_v50 = vpop.f32.mrb[191].mxu1  ;;  %9921 = vmatprep.subr.bf16.mxu1 %v20675_v21 }
 0x66d   : > { %v5359_v36 = vadd.f32 %v9754_v39, %v17642_v60  ;;  %v9757_v27 = vadd.f32 %v9756_v50, %v9755_v26 }
 0x66f   : > { %v5456_v54 = vadd.f32 %v5455_v40, %v5359_v36  ;;  %v5362_v30 = vadd.f32 %v9757_v27, %v17647_v2 }
 0x671   : > { %v5457_v0 = vadd.f32 %v5456_v54, %v5362_v30  ;;  %v17693_v20 = vpack.c.bf16 %v5362_v30, %v5359_v36  ;;  %v9758_v19 = vpop.f32.mrb[192].mxu1 }
 0x672   : > { %v9759_v3 = vpop.f32.mrb[193].mxu1 }
 0x673   : > { %v9760_v46 = vadd.f32 %v9759_v3, %v9758_v19  ;;  %v9761_v42 = vpop.f32.mrb[194].mxu1  ;;  %9922 = vmatpush3.bf16.msra.mxu1 %v17693_v20 }
 0x674   : > { %v9762_v51 = vpop.f32.mrb[195].mxu1  ;;  %9923 = vmatprep.subr.bf16.mxu1 %v20675_v21 }
 0x675   : > { %v5367_v12 = vadd.f32 %v9760_v46, %v17651_v5  ;;  %v9763_v37 = vadd.f32 %v9762_v51, %v9761_v42 }
 0x677   : > { %v5458_v60 = vadd.f32 %v5457_v0, %v5367_v12  ;;  %v5370_v53 = vadd.f32 %v9763_v37, %v17653_v31 }
 0x679   : > { %v5459_v63 = vadd.f32 %v5458_v60, %v5370_v53  ;;  %v17699_v2 = vpack.c.bf16 %v5370_v53, %v5367_v12  ;;  %v9764_v10 = vpop.f32.mrb[196].mxu1 }
 0x67a   : > { %v9765_v6 = vpop.f32.mrb[197].mxu1 }
 0x67b   : > { %v9766_v15 = vadd.f32 %v9765_v6, %v9764_v10  ;;  %v9767_v13 = vpop.f32.mrb[198].mxu1  ;;  %9924 = vmatpush3.bf16.msra.mxu1 %v17699_v2 }
 0x67c   : > { %v9768_v38 = vpop.f32.mrb[199].mxu1  ;;  %9925 = vmatprep.subr.bf16.mxu1 %v20675_v21 }
 0x67d   : > { %v5375_v55 = vadd.f32 %v9766_v15, %v17657_v62  ;;  %v9769_v40 = vadd.f32 %v9768_v38, %v9767_v13 }
 0x67f   : > { %v5460_v5 = vadd.f32 %v5459_v63, %v5375_v55  ;;  %v5378_v11 = vadd.f32 %v9769_v40, %v17659_v17 }
 0x681   : > { %v5461_v61 = vadd.f32 %v5460_v5, %v5378_v11  ;;  %v17705_v31 = vpack.c.bf16 %v5378_v11, %v5375_v55  ;;  %v9770_v39 = vpop.f32.mrb[200].mxu1 }
 0x682   : > { %v9771_v26 = vpop.f32.mrb[201].mxu1 }
 0x683   : > { %v9772_v50 = vadd.f32 %v9771_v26, %v9770_v39  ;;  %v9773_v36 = vpop.f32.mrb[202].mxu1  ;;  %9926 = vmatpush3.bf16.msra.mxu1 %v17705_v31 }
 0x684   : > { %v9774_v27 = vpop.f32.mrb[203].mxu1  ;;  %9927 = vmatprep.subr.bf16.mxu1 %v20675_v21 }
 0x685   : > { %v5383_v54 = vadd.f32 %v9772_v50, %v17663_v8  ;;  %v9775_v30 = vadd.f32 %v9774_v27, %v9773_v36 }
 0x687   : > { %v5462_v62 = vadd.f32 %v5461_v61, %v5383_v54  ;;  %v5386_v0 = vadd.f32 %v9775_v30, %v17665_v56 }
 0x689   : > { %v5463_v19 = vadd.f32 %v5462_v62, %v5386_v0  ;;  %v17711_v17 = vpack.c.bf16 %v5386_v0, %v5383_v54  ;;  %v9776_v3 = vpop.f32.mrb[204].mxu1 }
 0x68a   : > { %v9777_v46 = vpop.f32.mrb[205].mxu1 }
 0x68b   : > { %v9778_v42 = vadd.f32 %v9777_v46, %v9776_v3  ;;  %v9779_v51 = vpop.f32.mrb[206].mxu1  ;;  %9928 = vmatpush3.bf16.msra.mxu1 %v17711_v17  ;;  %v5683_v46 = vld [vmem:[#allocation10 + $0x4] sm:$0xf] }
 0x68c   : > { %v9780_v12 = vpop.f32.mrb[207].mxu1  ;;  %9929 = vmatprep.subr.bf16.mxu1 %v20675_v21 }
 0x68d   : > { %v5391_v37 = vadd.f32 %v9778_v42, %v17669_v9  ;;  %v9781_v60 = vadd.f32 %v9780_v12, %v9779_v51 }
 0x68f   : > { %v5464_v8 = vadd.f32 %v5463_v19, %v5391_v37  ;;  %v5394_v53 = vadd.f32 %v9781_v60, %v17671_v41  ;;  %v5632_v19 = vld [vmem:[#allocation10] sm:$0xf] }
 0x691   : > { %v5465_v63 = vadd.f32 %v5464_v8, %v5394_v53  ;;  %v17717_v56 = vpack.c.bf16 %v5394_v53, %v5391_v37  ;;  %v9782_v10 = vpop.f32.mrb[208].mxu1  ;;  %v5633_v37 = vpack.c.bf16 %v5632_v19, %v5632_v19  ;;  %v5684_v8 = vpack.c.bf16 %v5683_v46, %v5683_v46  ;;  %v5787_v53 = vld [vmem:[#allocation8 + $0x4] sm:$0xf] }
 0x692   : > { %v9783_v6 = vpop.f32.mrb[209].mxu1 }
 0x693   : > { %v9784_v15 = vadd.f32 %v9783_v6, %v9782_v10  ;;  %v9785_v13 = vpop.f32.mrb[210].mxu1  ;;  %9930 = vmatpush3.bf16.msra.mxu1 %v17717_v56 }
 0x694   : > { %v9786_v38 = vpop.f32.mrb[211].mxu1  ;;  %9931 = vmatprep.subr.bf16.mxu1 %v20675_v21 }
 0x695   : > { %v5399_v55 = vadd.f32 %v9784_v15, %v17675_v33  ;;  %v9787_v40 = vadd.f32 %v9786_v38, %v9785_v13  ;;  %v5788_v15 = vpack.c.bf16 %v5787_v53, %v5787_v53  ;;  %v5887_v13 = vld [vmem:[#allocation10 + $0x10] sm:$0xf] }
 0x697   : > { %v5466_v9 = vadd.f32 %v5465_v63, %v5399_v55  ;;  %v5402_v5 = vadd.f32 %v9787_v40, %v17677_v32 }
 0x699   : > { %v5467_v11 = vadd.f32 %v5466_v9, %v5402_v5  ;;  %v17723_v41 = vpack.c.bf16 %v5402_v5, %v5399_v55  ;;  %v9788_v61 = vpop.f32.mrb[212].mxu1  ;;  %v5734_v55 = vld [vmem:[#allocation10 + $0x8] sm:$0xf] }
 0x69a   : > { %v9789_v39 = vpop.f32.mrb[213].mxu1 }
 0x69b   : > { %v9790_v26 = vadd.f32 %v9789_v39, %v9788_v61  ;;  %v9791_v50 = vpop.f32.mrb[214].mxu1  ;;  %9932 = vmatpush3.bf16.msra.mxu1 %v17723_v41  ;;  %v5735_v39 = vpack.c.bf16 %v5734_v55, %v5734_v55  ;;  %v10421_v55 = vld [vmem:[%s10975_s22] sm:$0xf]  ;;  %s20753_s22 = sld [smem:[#allocation210_spill]] }
 0x69c   : > { %v9792_v36 = vpop.f32.mrb[215].mxu1  ;;  %9933 = vmatprep.subr.bf16.mxu1 %v20675_v21 }
 0x69d   : > { %v5407_v27 = vadd.f32 %v9790_v26, %v17681_v34  ;;  %v9793_v54 = vadd.f32 %v9792_v36, %v9791_v50  ;;  %v5840_v26 = vld [vmem:[#allocation10 + $0xc] sm:$0xf]  ;;  %v5934_v36 = vld [vmem:[#allocation10 + $0x14] sm:$0xf] }
 0x69e   : > { %v5841_v50 = vpack.c.bf16 %v5840_v26, %v5840_v26 }
 0x69f   : > { %v5468_v33 = vadd.f32 %v5467_v11, %v5407_v27  ;;  %v5410_v30 = vadd.f32 %v9793_v54, %v17683_v14  ;;  %v5587_v54 = vpop.permute.xlu1 %5586 }
 0x6a1   : > { %v17729_v62 = vadd.f32 %v5468_v33, %v5410_v30  ;;  %v17731_v32 = vpack.c.bf16 %v5410_v30, %v5407_v27  ;;  %v5935_v27 = vpack.c.bf16 %v5934_v36, %v5934_v36 }
 0x6a3   : > { %9934 = vmatpush3.bf16.msra.mxu1 %v17731_v32 }
 0x6a4   : > { %9945 = vmatprep.subr.bf16.mxu1 %v20675_v21 }
 0x6a6   : > { %9936 = vmatmul.mubr.bf16.vlgmr.msra.gmra.mrb[216].mxu1 %v20720_v47 }
 0x6a7   : > { %9947 = vmatprep.mubr.msk.bf16.mxu1 %vm20719_vm15, %v20675_v21 }
 0x6fa   : > { %v5534_v0 = vpop.f32.mrb[212].mxu0 }
 0x6fb   : > { %v5634_v34 = vpack.c.bf16 %v5534_v0, %v5534_v0  ;;  %v5536_v3 = vpop.f32.mrb[213].mxu0 }
 0x6fc   : > { %v5685_v42 = vpack.c.bf16 %v5536_v3, %v5536_v3  ;;  %v5538_v14 = vpop.f32.mrb[214].mxu0 }
 0x6fd   : > { %v5639_v51 = vsel %vm20723_vm14, %v5634_v34, 0  ;;  %v5539_v12 = vpop.f32.mrb[215].mxu0  ;;  %vm6186_vm14 = vcmask 64512  }
 0x6fe   : > { %v5690_v60 = vsel %vm20724_vm13, %v5685_v42, 0  ;;  %9946 = vmatpush3.bf16.msra.mxu1 %v5639_v51 }
 0x6ff   : > { %9952 = vmatpush3.bf16.msra.mxu0 %v5690_v60  ;;  %9957 = vmatprep.subr.bf16.mxu1 %v20675_v21 }
 0x700   : > { %9963 = vmatprep.subr.bf16.mxu0 %v20675_v21 }
 0x701   : > { %9948 = vmatmul.mubr.msk.bf16.vlgmr.msra.gmra.mrb[220].mxu1 %vm20725_vm0, %v5633_v37 }
 0x702   : > { %v5626_v47 = vpop.f32.mrb[216].mxu0  ;;  %9954 = vmatmul.mubr.msk.bf16.vlgmr.msra.gmra.mrb[220].mxu0 %vm20726_vm2, %v5684_v8  ;;  %9959 = vmatprep.mubr.msk.bf16.mxu1 %vm20719_vm15, %v20675_v21 }
 0x703   : > { %9964 = vmatpush3.bf16.msra.mxu0 %v20721_v52  ;;  %9965 = vmatprep.mubr.msk.bf16.mxu0 %vm20719_vm15, %v20675_v21  ;;  %v9943_v63 = vpop.f32.mrb[217].mxu0  ;;  %v5888_v52 = vpack.c.bf16 %v5887_v13, %v5887_v13  ;;  %v5627_v33 = vadd.f32 %v5626_v47, %v5587_v54 }
 0x704   : > { %9975 = vmatprep.subr.bf16.mxu0 %v20675_v21  ;;  %v5629_v10 = vpop.f32.mrb[218].mxu0 }
 0x705   : > { %v9944_v6 = vpop.f32.mrb[219].mxu0 }
 0x70a   : > { %9966 = vmatmul.mubr.msk.bf16.vlgmr.msra.gmra.mrb[224].mxu0 %vm20727_vm3, %v5788_v15 }
 0x70b   : > { %9976 = vmatpush3.bf16.msra.mxu0 %v5690_v60  ;;  %9977 = vmatprep.mubr.msk.bf16.mxu0 %vm20719_vm15, %v20675_v21 }
 0x70c   : > { %9987 = vmatprep.subr.bf16.mxu0 %v20675_v21 }
 0x712   : > { %9978 = vmatmul.mubr.msk.bf16.vlgmr.msra.gmra.mrb[228].mxu0 %vm20728_vm4, %v5888_v52 }
 0x713   : > { %9989 = vmatprep.mubr.msk.bf16.mxu0 %vm20719_vm15, %v20675_v21 }
 0x779   : > { %v5575_v38 = vpop.f32.mrb[216].mxu1 }
 0x77a   : > { %v5736_v40 = vpack.c.bf16 %v5575_v38, %v5575_v38  ;;  %v9937_v9 = vpop.f32.mrb[217].mxu1 }
 0x77b   : > { %v5578_v5 = vpop.f32.mrb[218].mxu1 }
 0x77c   : > { %v5741_v11 = vsel %vm20729_vm5, %v5736_v40, 0  ;;  %v9938_v61 = vpop.f32.mrb[219].mxu1 }
 0x77d   : > { %9958 = vmatpush3.bf16.msra.mxu1 %v5741_v11  ;;  %v5982_v61 = vld [vmem:[%s18326_s10] sm:$0xff] }
 0x77e   : > { %9969 = vmatprep.subr.bf16.mxu1 %v20675_v21 }
 0x780   : > { %9960 = vmatmul.mubr.msk.bf16.vlgmr.msra.gmra.mrb[224].mxu1 %vm20730_vm1, %v5735_v39 }
 0x781   : > { %9970 = vmatpush3.bf16.msra.mxu1 %v5639_v51  ;;  %9971 = vmatprep.mubr.msk.bf16.mxu1 %vm20719_vm15, %v20675_v21 }
 0x782   : > { %9981 = vmatprep.subr.bf16.mxu1 %v20675_v21 }
 0x788   : > { %9972 = vmatmul.mubr.msk.bf16.vlgmr.msra.gmra.mrb[228].mxu1 %vm20731_vm9, %v5841_v50 }
 0x789   : > { %9982 = vmatpush3.bf16.msra.mxu1 %v5741_v11  ;;  %9983 = vmatprep.mubr.msk.bf16.mxu1 %vm20719_vm15, %v20675_v21  ;;  %v5794_v11 = vpop.permute.xlu0 %5793 }
 0x78a   : > { %9993 = vmatprep.subr.bf16.mxu1 %v20675_v21 }
 0x790   : > { %9984 = vmatmul.mubr.msk.bf16.vlgmr.msra.gmra.mrb[232].mxu1 %vm20732_vm7, %v5935_v27 }
 0x791   : > { %9995 = vmatprep.mubr.msk.bf16.mxu1 %vm20719_vm15, %v20675_v21 }
 0x7d4   : > { %v5675_v30 = vpop.f32.mrb[220].mxu1 }
 0x7d5   : > { %v5681_v0 = vadd.f32 %v5675_v30, %v5627_v33  ;;  %v5726_v19 = vpop.f32.mrb[220].mxu0  ;;  %v9949_v34 = vpop.f32.mrb[221].mxu1  ;;  %v5983_v33 = vpack.c.bf16 %v5982_v61, %v5982_v61 }
 0x7d6   : > { %v9955_v3 = vpop.f32.mrb[221].mxu0  ;;  %v5678_v46 = vpop.f32.mrb[222].mxu1 }
 0x7d7   : > { %v5732_v42 = vadd.f32 %v5726_v19, %v5681_v0  ;;  %v5729_v14 = vpop.f32.mrb[222].mxu0  ;;  %v9950_v51 = vpop.f32.mrb[223].mxu1 }
 0x7d8   : > { %v9956_v12 = vpop.f32.mrb[223].mxu0 }
 0x7dd   : > { %v5833_v37 = vpop.f32.mrb[224].mxu0 }
 0x7de   : > { %v9967_v60 = vpop.f32.mrb[225].mxu0  ;;  %v5834_v39 = vadd.f32 %v5833_v37, %v5794_v11  ;;  %v8965_v37 = vld [vmem:[%s18326_s10 + $0x8] sm:$0xff] }
 0x7df   : > { %v5836_v8 = vpop.f32.mrb[226].mxu0 }
 0x7e0   : > { %v9968_v53 = vpop.f32.mrb[227].mxu0 }
 0x7e1   : > { %v6040_v53 = vpack.c.bf16 %v8965_v37, %v8965_v37 }
 0x7e5   : > { %v5926_v63 = vpop.f32.mrb[228].mxu0 }
 0x7e6   : > { %v9979_v10 = vpop.f32.mrb[229].mxu0 }
 0x7e7   : > { %v5929_v6 = vpop.f32.mrb[230].mxu0 }
 0x7e8   : > { %v9980_v15 = vpop.f32.mrb[231].mxu0 }
 0x853   : > { %v5777_v47 = vpop.f32.mrb[224].mxu1 }
 0x854   : > { %v5783_v13 = vadd.f32 %v5777_v47, %v5732_v42  ;;  %v9961_v52 = vpop.f32.mrb[225].mxu1 }
 0x855   : > { %v5780_v38 = vpop.f32.mrb[226].mxu1 }
 0x856   : > { %v5784_v40 = vadd.f32 %v10421_v55, %v5783_v13  ;;  %v9962_v9 = vpop.f32.mrb[227].mxu1 }
 0x858   : > { %v5785_v5 = vmax.f32 %v5784_v40, 0.0  ;;  %v6178_v40 = vld [vmem:[%s18328_s12] sm:$0xff] }
 0x859   : > { %v6179_v9 = vpack.c.bf16 %v6178_v40, %v6178_v40 }
 0x85a   : > { %v5984_v26 = vpack.c.bf16 %v5785_v5, %v5785_v5 }
 0x85b   : > { %v5879_v50 = vpop.f32.mrb[228].mxu1 }
 0x85c   : > { %v5885_v36 = vadd.f32 %v5879_v50, %v5834_v39  ;;  %v5995_v27 = vsel %vm20733_vm10, %v5984_v26, 0  ;;  %v9973_v54 = vpop.f32.mrb[229].mxu1 }
 0x85d   : > { %9988 = vmatpush3.bf16.msra.mxu0 %v5995_v27  ;;  %v5882_v30 = vpop.f32.mrb[230].mxu1 }
 0x85e   : > { %v5932_v0 = vadd.f32 %v5926_v63, %v5885_v36  ;;  %6097 = vmatprep.subr.bf16.mxu0 %v17552_v59  ;;  %v9974_v19 = vpop.f32.mrb[231].mxu1  ;;  %v5989_v63 = vpop.permute.xlu1 %5988  ;;  %v6234_v36 = vld [vmem:[%s20737_s27] sm:$0xff]  ;;  %v8970_v30 = vld [vmem:[%s20738_s24 + $0x8] sm:$0xff]  ;;  %s10570_s27 = sshll.u32 %s10657_s0, 4  ;;  %s10571_s27 = int_to_ptr.vmem [resolvable:$false] %s10570_s27 }
 0x85f   : > { %v6286_v37 = vpack.c.bf16 %v8970_v30, %v8970_v30  ;;  %s10572_s21 = scalar_lea.vmem %s10571_s27, 512  ;;  %p10573_p5 = scmp.lt.s32.totalorder %s18267_s2, %s10571_s27 }
 0x860   : > { %9990 = vmatmul.mubr.msk.bf16.vlgmr.msra.gmra.mrb[232].mxu0 %vm20734_vm8, %v5983_v33  ;;  %p10574_p9 = scmp.lt.s32.totalorder %s10572_s21, %s10566_s8 }
 0x861   : > { %6098 = vmatpush1.bf16.msra.mxu0 %v17307_v24  ;;  %6129 = vmatprep.mubr.bf16.mxu0 %v20704_v23 }
 0x862   : > { %6099 = vmatprep.subr.bf16.mxu0 %v17562_v1  ;;  %p10575_p1 = por %p10574_p9, %p10573_p5 }
 0x863   : > { %v5973_v34 = vpop.f32.mrb[232].mxu1 }
 0x864   : > { %v5979_v3 = vadd.f32 %v5973_v34, %v5932_v0  ;;  %v9985_v46 = vpop.f32.mrb[233].mxu1  ;;  %p10576_p2 = pnand %p10575_p1, %p10569_p13 }
 0x865   : > { %6100 = vmatpush1.bf16.msra.mxu0 %v17335_v49  ;;  %v5976_v42 = vpop.f32.mrb[234].mxu1 }
 0x866   : > { %v5980_v14 = vadd.f32 %v10421_v55, %v5979_v3  ;;  %6101 = vmatprep.subr.bf16.mxu0 %v17572_v18  ;;  %v9986_v51 = vpop.f32.mrb[235].mxu1 }
 0x867   : > { %v6235_v51 = vpack.c.bf16 %v6234_v36, %v6234_v36 }
 0x868   : > { %v5981_v12 = vmax.f32 %v5980_v14, 0.0 }
 0x869   : > { %6102 = vmatpush1.bf16.msra.mxu0 %v17359_v48 }
 0x86a   : > { %v6041_v60 = vpack.c.bf16 %v5981_v12, %v5981_v12  ;;  %6103 = vmatprep.subr.bf16.mxu0 %v17582_v28 }
 0x86c   : > { %v6053_v8 = vsel %vm20735_vm12, %v6041_v60, 0 }
 0x86d   : > { %9994 = vmatpush3.bf16.msra.mxu1 %v6053_v8  ;;  %6104 = vmatpush1.bf16.msra.mxu0 %v17387_v44 }
 0x86e   : > { %6105 = vmatprep.subr.bf16.mxu0 %v17592_v45  ;;  %9999 = vmatprep.subr.bf16.mxu1 %v20675_v21 }
 0x870   : > { %9996 = vmatmul.mubr.msk.bf16.vlgmr.msra.gmra.mrb[236].mxu1 %vm20736_vm6, %v6040_v53  ;;  %v8972_v53 = vld [vmem:[%s20738_s24 + $0x10] sm:$0xff] }
 0x871   : > { %6106 = vmatpush1.bf16.msra.mxu0 %v17411_v4  ;;  %10000 = vmatpush3.bf16.msra.mxu1 %v17687_v43 }
 0x872   : > { %6107 = vmatprep.subr.bf16.mxu0 %v17602_v25  ;;  %10001 = vmatprep.subr.bf16.mxu1 %v20675_v21 }
 0x873   : > { %10015 = vmatprep.mubr.msk.bf16.mxu1 %vm20719_vm15, %v20675_v21 }
 0x875   : > { %6108 = vmatpush1.bf16.msra.mxu0 %v17428_v57  ;;  %10002 = vmatpush3.bf16.msra.mxu1 %v17693_v20 }
 0x876   : > { %6109 = vmatprep.subr.bf16.mxu0 %v17612_v16  ;;  %10003 = vmatprep.subr.bf16.mxu1 %v20675_v21 }
 0x879   : > { %6110 = vmatpush1.bf16.msra.mxu0 %v17444_v22  ;;  %10004 = vmatpush3.bf16.msra.mxu1 %v17699_v2 }
 0x87a   : > { %6111 = vmatprep.subr.bf16.mxu0 %v17624_v29  ;;  %10005 = vmatprep.subr.bf16.mxu1 %v20675_v21 }
 0x87d   : > { %6112 = vmatpush1.bf16.msra.mxu0 %v17462_v35  ;;  %10006 = vmatpush3.bf16.msra.mxu1 %v17705_v31 }
 0x87e   : > { %10007 = vmatprep.subr.bf16.mxu1 %v20675_v21  ;;  %10019 = vmatprep.subr.bf16.mxu0 %v20675_v21 }
 0x881   : > { %10008 = vmatpush3.bf16.msra.mxu1 %v17711_v17 }
 0x882   : > { %10009 = vmatprep.subr.bf16.mxu1 %v20675_v21 }
 0x885   : > { %10010 = vmatpush3.bf16.msra.mxu1 %v17717_v56 }
 0x886   : > { %10011 = vmatprep.subr.bf16.mxu1 %v20675_v21 }
 0x889   : > { %10012 = vmatpush3.bf16.msra.mxu1 %v17723_v41 }
 0x88a   : > { %10013 = vmatprep.subr.bf16.mxu1 %v20675_v21 }
 0x88d   : > { %10014 = vmatpush3.bf16.msra.mxu1 %v17731_v32 }
 0x88e   : > { %10025 = vmatprep.subr.bf16.mxu1 %v20675_v21 }
 0x933   : > { %v6031_v10 = vpop.f32.mrb[232].mxu0 }
 0x934   : > { %v6032_v6 = vadd.f32 %v6031_v10, %v5989_v63  ;;  %v9991_v15 = vpop.f32.mrb[233].mxu0 }
 0x935   : > { %v6034_v47 = vpop.f32.mrb[234].mxu0 }
 0x936   : > { %v17818_v13 = vmax.f32 %v6032_v6, 0.0  ;;  %v9992_v52 = vpop.f32.mrb[235].mxu0  ;;  %v6337_v6 = vpack.c.bf16 %v8972_v53, %v8972_v53  ;;  %v6047_v47 = vpop.permute.xlu0 %6046 }
 0x938   : > { %v6096_v38 = vpack.c.bf16 %v17818_v13, %v17818_v13 }
 0x93a   : > { %6130 = vmatmul.mubr.bf16.vlgmr.msra.gmra.mrb[236].mxu0 %v6096_v38  ;;  %10016 = vmatmul.mubr.bf16.vlgmr.msra.gmra.mrb[240].mxu1 %v6096_v38  ;;  %v6192_v55 = vsel %vm6190_vm11, %v6096_v38, 0 }
 0x93b   : > { %10020 = vmatpush3.bf16.msra.mxu0 %v6192_v55  ;;  %10021 = vmatprep.mubr.msk.bf16.mxu0 %vm20719_vm15, %v20675_v21 }
 0x93c   : > { %10031 = vmatprep.subr.bf16.mxu0 %v20675_v21  ;;  %10027 = vmatprep.mubr.msk.bf16.mxu1 %vm20719_vm15, %v20675_v21 }
 0x942   : > { %10022 = vmatmul.mubr.msk.bf16.vlgmr.msra.gmra.mrb[240].mxu0 %vm6186_vm14, %v6179_v9  ;;  %v8974_v9 = vld [vmem:[%s18328_s12 + $0x8] sm:$0xff] }
 0x943   : > { %v6089_v5 = vpop.f32.mrb[236].mxu1  ;;  %10033 = vmatprep.mubr.msk.bf16.mxu0 %vm20719_vm15, %v20675_v21 }
 0x944   : > { %v9997_v11 = vpop.f32.mrb[237].mxu1  ;;  %v6090_v52 = vadd.f32 %v6089_v5, %v6047_v47  ;;  %v6472_v5 = vpack.c.bf16 %v8974_v9, %v8974_v9 }
 0x945   : > { %v6092_v61 = vpop.f32.mrb[238].mxu1  ;;  %v6184_v11 = vpop.permute.xlu1 %6183 }
 0x946   : > { %v9998_v39 = vpop.f32.mrb[239].mxu1  ;;  %v17877_v38 = vmax.f32 %v6090_v52, 0.0 }
 0x948   : > { %v6388_v55 = vpack.c.bf16 %v17877_v38, %v17877_v38 }
 0x94a   : > { %v6484_v40 = vsel %vm6190_vm11, %v6388_v55, 0 }
 0xa0d   : > { %v6131_v26 = vpop.f32.mrb[236].mxu0  ;;  %v6172_v50 = vpop.f32.mrb[240].mxu1 }
 0xa0e   : > { %v6236_v27 = vpack.c.bf16 %v6131_v26, %v6131_v26  ;;  %v6133_v54 = vpop.f32.mrb[237].mxu0  ;;  %v10017_v33 = vpop.f32.mrb[241].mxu1  ;;  %v6338_v46 = vpack.c.bf16 %v6172_v50, %v6172_v50 }
 0xa0f   : > { %v6287_v0 = vpack.c.bf16 %v6133_v54, %v6133_v54  ;;  %v6135_v19 = vpop.f32.mrb[238].mxu0  ;;  %v6175_v34 = vpop.f32.mrb[242].mxu1 }
 0xa10   : > { %v6241_v3 = vsel %vm6190_vm11, %v6236_v27, 0  ;;  %v6136_v42 = vpop.f32.mrb[239].mxu0  ;;  %v10018_v14 = vpop.f32.mrb[243].mxu1  ;;  %v6343_v60 = vsel %vm6190_vm11, %v6338_v46, 0 }
 0xa11   : > { %v6292_v12 = vsel %vm6190_vm11, %v6287_v0, 0  ;;  %10026 = vmatpush3.bf16.msra.mxu1 %v6241_v3  ;;  %v20739_v42 = vld [vmem:[#allocation21_spill] sm:$0xff] }
 0xa12   : > { %10032 = vmatpush3.bf16.msra.mxu0 %v6292_v12  ;;  %10037 = vmatprep.subr.bf16.mxu1 %v20675_v21  ;;  %vm6696_vm13 = vcmp.ge.s32.totalorder %v20739_v42, 16  ;;  %vm6697_vm0 = vcmp.lt.s32.totalorder %v20739_v42, 32  ;;  %vm6682_vm3 = vcmp.lt.s32.totalorder %v20739_v42, 16  ;;  %vm6711_vm4 = vcmp.ge.s32.totalorder %v20739_v42, 32 }
 0xa13   : > { %6389 = vmatprep.subr.bf16.mxu0 %v17552_v59  ;;  %vm17908_vm2 = vmand %vm6696_vm13, %vm6697_vm0  ;;  %vm6712_vm5 = vcmp.lt.s32.totalorder %v20739_v42, 48  ;;  %vm6726_vm9 = vcmp.ge.s32.totalorder %v20739_v42, 48  ;;  %vm6727_vm7 = vcmp.lt.s32.totalorder %v20739_v42, 64  ;;  %vm6741_vm8 = vcmp.ge.s32.totalorder %v20739_v42, 64 }
 0xa14   : > { %10028 = vmatmul.mubr.msk.bf16.vlgmr.msra.gmra.mrb[244].mxu1 %vm6186_vm14, %v6235_v51  ;;  %vm17923_vm1 = vmand %vm6711_vm4, %vm6712_vm5  ;;  %vm6742_vm12 = vcmp.lt.s32.totalorder %v20739_v42, 80  ;;  %vm6756_vm13 = vcmp.ge.s32.totalorder %v20739_v42, 80  ;;  %vm6757_vm0 = vcmp.lt.s32.totalorder %v20739_v42, 96  ;;  %vm6771_vm5 = vcmp.ge.s32.totalorder %v20739_v42, 96 }
 0xa15   : > { %v6228_v8 = vpop.f32.mrb[240].mxu0  ;;  %10034 = vmatmul.mubr.msk.bf16.vlgmr.msra.gmra.mrb[244].mxu0 %vm6186_vm14, %v6286_v37  ;;  %10038 = vmatpush3.bf16.msra.mxu1 %v6343_v60  ;;  %vm17932_vm10 = vmand %vm6726_vm9, %vm6727_vm7  ;;  %vm6772_vm9 = vcmp.lt.s32.totalorder %v20739_v42, 112 }
 0xa16   : > { %6390 = vmatpush1.bf16.msra.mxu0 %v17307_v24  ;;  %10039 = vmatprep.mubr.msk.bf16.mxu1 %vm20719_vm15, %v20675_v21  ;;  %v10023_v63 = vpop.f32.mrb[241].mxu0  ;;  %v6229_v61 = vadd.f32 %v6228_v8, %v6184_v11  ;;  %vm17941_vm6 = vmand %vm6741_vm8, %vm6742_vm12  ;;  %vm6786_vm8 = vcmp.ge.s32.totalorder %v20739_v42, 112 }
 0xa17   : > { %6391 = vmatprep.subr.bf16.mxu0 %v17562_v1  ;;  %10043 = vmatprep.subr.bf16.mxu1 %v20675_v21  ;;  %v6231_v10 = vpop.f32.mrb[242].mxu0  ;;  %vm18044_vm4 = vmand %vm6756_vm13, %vm6757_vm0 }
 0xa18   : > { %6421 = vmatprep.mubr.bf16.mxu0 %v20704_v23  ;;  %v10024_v15 = vpop.f32.mrb[243].mxu0  ;;  %vm18060_vm7 = vmand %vm6771_vm5, %vm6772_vm9 }
 0xa1a   : > { %6392 = vmatpush1.bf16.msra.mxu0 %v17335_v49 }
 0xa1b   : > { %6393 = vmatprep.subr.bf16.mxu0 %v17572_v18 }
 0xa1c   : > { %10040 = vmatmul.mubr.msk.bf16.vlgmr.msra.gmra.mrb[248].mxu1 %vm6186_vm14, %v6337_v6 }
 0xa1d   : > { %10044 = vmatpush3.bf16.msra.mxu1 %v17687_v43  ;;  %10059 = vmatprep.mubr.msk.bf16.mxu1 %vm20719_vm15, %v20675_v21 }
 0xa1e   : > { %6394 = vmatpush1.bf16.msra.mxu0 %v17359_v48  ;;  %10045 = vmatprep.subr.bf16.mxu1 %v20675_v21 }
 0xa1f   : > { %6395 = vmatprep.subr.bf16.mxu0 %v17582_v28 }
 0xa21   : > { %10046 = vmatpush3.bf16.msra.mxu1 %v17693_v20 }
 0xa22   : > { %6396 = vmatpush1.bf16.msra.mxu0 %v17387_v44  ;;  %10047 = vmatprep.subr.bf16.mxu1 %v20675_v21 }
 0xa23   : > { %6397 = vmatprep.subr.bf16.mxu0 %v17592_v45 }
 0xa25   : > { %10048 = vmatpush3.bf16.msra.mxu1 %v17699_v2 }
 0xa26   : > { %6398 = vmatpush1.bf16.msra.mxu0 %v17411_v4  ;;  %10049 = vmatprep.subr.bf16.mxu1 %v20675_v21 }
 0xa27   : > { %6399 = vmatprep.subr.bf16.mxu0 %v17602_v25 }
 0xa29   : > { %10050 = vmatpush3.bf16.msra.mxu1 %v17705_v31 }
 0xa2a   : > { %6400 = vmatpush1.bf16.msra.mxu0 %v17428_v57  ;;  %10051 = vmatprep.subr.bf16.mxu1 %v20675_v21 }
 0xa2b   : > { %6401 = vmatprep.subr.bf16.mxu0 %v17612_v16 }
 0xa2d   : > { %10052 = vmatpush3.bf16.msra.mxu1 %v17711_v17 }
 0xa2e   : > { %6402 = vmatpush1.bf16.msra.mxu0 %v17444_v22  ;;  %10053 = vmatprep.subr.bf16.mxu1 %v20675_v21 }
 0xa2f   : > { %6403 = vmatprep.subr.bf16.mxu0 %v17624_v29 }
 0xa31   : > { %10054 = vmatpush3.bf16.msra.mxu1 %v17717_v56 }
 0xa32   : > { %6404 = vmatpush1.bf16.msra.mxu0 %v17462_v35  ;;  %10055 = vmatprep.subr.bf16.mxu1 %v20675_v21 }
 0xa33   : > { %10063 = vmatprep.subr.bf16.mxu0 %v20675_v21 }
 0xa35   : > { %10056 = vmatpush3.bf16.msra.mxu1 %v17723_v41  ;;  %6422 = vmatmul.mubr.bf16.vlgmr.msra.gmra.mrb[248].mxu0 %v6388_v55 }
 0xa36   : > { %10064 = vmatpush3.bf16.msra.mxu0 %v6484_v40  ;;  %10057 = vmatprep.subr.bf16.mxu1 %v20675_v21 }
 0xa37   : > { %10065 = vmatprep.mubr.msk.bf16.mxu0 %vm20719_vm15, %v20675_v21  ;;  %10075 = vmatprep.subr.bf16.mxu0 %v20675_v21 }
 0xa39   : > { %10058 = vmatpush3.bf16.msra.mxu1 %v17731_v32 }
 0xa3a   : > { %10069 = vmatprep.subr.bf16.mxu1 %v20675_v21 }
 0xa3c   : > { %10060 = vmatmul.mubr.bf16.vlgmr.msra.gmra.mrb[252].mxu1 %v6388_v55  ;;  %v8977_v55 = vld [vmem:[%s20738_s24 + $0x18] sm:$0xff] }
 0xa3d   : > { %10066 = vmatmul.mubr.msk.bf16.vlgmr.msra.gmra.mrb[252].mxu0 %vm6186_vm14, %v6472_v5  ;;  %10071 = vmatprep.mubr.msk.bf16.mxu1 %vm20719_vm15, %v20675_v21  ;;  %v8979_v5 = vld [vmem:[%s20738_s24 + $0x20] sm:$0xff] }
 0xa3e   : > { %10077 = vmatprep.mubr.msk.bf16.mxu0 %vm20719_vm15, %v20675_v21 }
 0xae7   : > { %v6277_v39 = vpop.f32.mrb[244].mxu1 }
 0xae8   : > { %v6283_v26 = vadd.f32 %v6277_v39, %v6229_v61  ;;  %v10029_v50 = vpop.f32.mrb[245].mxu1  ;;  %v6328_v36 = vpop.f32.mrb[244].mxu0 }
 0xae9   : > { %v6280_v27 = vpop.f32.mrb[246].mxu1  ;;  %v10035_v54 = vpop.f32.mrb[245].mxu0  ;;  %v6528_v50 = vpack.c.bf16 %v8977_v55, %v8977_v55 }
 0xaea   : > { %v6334_v33 = vadd.f32 %v6328_v36, %v6283_v26  ;;  %v10030_v30 = vpop.f32.mrb[247].mxu1  ;;  %v6331_v0 = vpop.f32.mrb[246].mxu0  ;;  %v6579_v27 = vpack.c.bf16 %v8979_v5, %v8979_v5 }
 0xaeb   : > { %v10036_v19 = vpop.f32.mrb[247].mxu0 }
 0xaec   : > { %v8981_v19 = vld [vmem:[%s20738_s24 + $0x28] sm:$0xff] }
 0xaef   : > { %v6379_v34 = vpop.f32.mrb[248].mxu1 }
 0xaf0   : > { %v6385_v3 = vadd.f32 %v6379_v34, %v6334_v33  ;;  %v10041_v46 = vpop.f32.mrb[249].mxu1 }
 0xaf1   : > { %v6382_v14 = vpop.f32.mrb[250].mxu1 }
 0xaf2   : > { %v6386_v51 = vadd.f32 %v6385_v3, %v17818_v13  ;;  %v10042_v12 = vpop.f32.mrb[251].mxu1 }
 0xaf3   : > { %v6630_v12 = vpack.c.bf16 %v8981_v19, %v8981_v19 }
 0xaf4   : > { %v17913_v60 = vmax.f32 %v6386_v51, 0.0 }
 0xaf6   : > { %v6701_v8 = vsel %vm17908_vm2, %v17913_v60, -inf  ;;  %v6686_v13 = vsel %vm6682_vm3, %v17913_v60, -inf  ;;  %v6716_v63 = vsel %vm17923_vm1, %v17913_v60, -inf  ;;  %v6731_v6 = vsel %vm17932_vm10, %v17913_v60, -inf }
 0xaf7   : > { %6703 = vmax.xlane.f32.xlu0 %v6701_v8  ;;  %6688 = vmax.xlane.f32.xlu1 %v6686_v13  ;;  %v6746_v47 = vsel %vm17941_vm6, %v17913_v60, -inf  ;;  %v6807_v13 = vpack.c.bf16 %v17913_v60, %v17913_v60 }
 0xafb   : > { %6718 = vmax.xlane.f32.xlu0 %v6716_v63  ;;  %v6901_v63 = vsel %vm6190_vm11, %v6807_v13, 0 }
 0xaff   : > { %6733 = vmax.xlane.f32.xlu0 %v6731_v6 }
 0xb03   : > { %6748 = vmax.xlane.f32.xlu0 %v6746_v47 }
 0xb08   : > { %v6423_v52 = vpop.f32.mrb[248].mxu0 }
 0xb09   : > { %v6529_v40 = vpack.c.bf16 %v6423_v52, %v6423_v52  ;;  %v6425_v9 = vpop.f32.mrb[249].mxu0 }
 0xb0a   : > { %v6580_v11 = vpack.c.bf16 %v6425_v9, %v6425_v9  ;;  %v6427_v61 = vpop.f32.mrb[250].mxu0 }
 0xb0b   : > { %v6534_v39 = vsel %vm6190_vm11, %v6529_v40, 0  ;;  %v6428_v26 = vpop.f32.mrb[251].mxu0  ;;  %v6761_v61 = vsel %vm18044_vm4, %v17913_v60, -inf }
 0xb0c   : > { %v6585_v36 = vsel %vm6190_vm11, %v6580_v11, 0  ;;  %10070 = vmatpush3.bf16.msra.mxu1 %v6534_v39  ;;  %v6776_v26 = vsel %vm18060_vm7, %v17913_v60, -inf  ;;  %v7096_v39 = vld [vmem:[%s20754_s7] sm:$0xff] }
 0xb0d   : > { %10076 = vmatpush3.bf16.msra.mxu0 %v6585_v36  ;;  %10081 = vmatprep.subr.bf16.mxu1 %v20675_v21 }
 0xb0e   : > { %6808 = vmatprep.subr.bf16.mxu0 %v17552_v59 }
 0xb0f   : > { %v6464_v54 = vpop.f32.mrb[252].mxu1  ;;  %10072 = vmatmul.mubr.msk.bf16.vlgmr.msra.gmra.mrb[0].mxu1 %vm6186_vm14, %v6528_v50  ;;  %v6791_v50 = vsel %vm6786_vm8, %v17913_v60, -inf }
 0xb10   : > { %v6631_v33 = vpack.c.bf16 %v6464_v54, %v6464_v54  ;;  %v10061_v30 = vpop.f32.mrb[253].mxu1  ;;  %v17959_v0 = vpop.f32.mrb[252].mxu0  ;;  %10078 = vmatmul.mubr.msk.bf16.vlgmr.msra.gmra.mrb[0].mxu0 %vm6186_vm14, %v6579_v27  ;;  %10083 = vmatprep.mubr.msk.bf16.mxu1 %vm20719_vm15, %v20675_v21  ;;  %v8984_v27 = vld [vmem:[%s20748_s26 + $0x8] sm:$0xff] }
 0xb11   : > { %v6467_v34 = vpop.f32.mrb[254].mxu1  ;;  %6809 = vmatpush1.bf16.msra.mxu0 %v17307_v24  ;;  %6840 = vmatprep.mubr.bf16.mxu0 %v20704_v23  ;;  %v10067_v3 = vpop.f32.mrb[253].mxu0 }
 0xb12   : > { %v6636_v46 = vsel %vm6190_vm11, %v6631_v33, 0  ;;  %v10062_v14 = vpop.f32.mrb[255].mxu1  ;;  %6810 = vmatprep.subr.bf16.mxu0 %v17562_v1  ;;  %v6523_v51 = vpop.f32.mrb[254].mxu0  ;;  %v6945_v34 = vpack.c.bf16 %v8984_v27, %v8984_v27 }
 0xb13   : > { %10082 = vmatpush3.bf16.msra.mxu1 %v6636_v46  ;;  %v10068_v8 = vpop.f32.mrb[255].mxu0 }
 0xb14   : > { %10087 = vmatprep.subr.bf16.mxu1 %v20675_v21  ;;  %v6891_v8 = vld [vmem:[%s20753_s22] sm:$0xff] }
 0xb15   : > { %6811 = vmatpush1.bf16.msra.mxu0 %v17335_v49 }
 0xb16   : > { %6812 = vmatprep.subr.bf16.mxu0 %v17572_v18 }
 0xb17   : > { %10084 = vmatmul.mubr.msk.bf16.vlgmr.msra.gmra.mrb[4].mxu1 %vm6186_vm14, %v6630_v12  ;;  %v8986_v12 = vld [vmem:[%s20748_s26 + $0x10] sm:$0xff] }
 0xb18   : > { %10088 = vmatpush3.bf16.msra.mxu1 %v17687_v43  ;;  %10103 = vmatprep.mubr.msk.bf16.mxu1 %vm20719_vm15, %v20675_v21 }
 0xb19   : > { %6813 = vmatpush1.bf16.msra.mxu0 %v17359_v48  ;;  %10089 = vmatprep.subr.bf16.mxu1 %v20675_v21 }
 0xb1a   : > { %6814 = vmatprep.subr.bf16.mxu0 %v17582_v28 }
 0xb1c   : > { %10090 = vmatpush3.bf16.msra.mxu1 %v17693_v20 }
 0xb1d   : > { %6815 = vmatpush1.bf16.msra.mxu0 %v17387_v44  ;;  %10091 = vmatprep.subr.bf16.mxu1 %v20675_v21 }
 0xb1e   : > { %6816 = vmatprep.subr.bf16.mxu0 %v17592_v45 }
 0xb20   : > { %10092 = vmatpush3.bf16.msra.mxu1 %v17699_v2 }
 0xb21   : > { %6817 = vmatpush1.bf16.msra.mxu0 %v17411_v4  ;;  %10093 = vmatprep.subr.bf16.mxu1 %v20675_v21 }
 0xb22   : > { %6818 = vmatprep.subr.bf16.mxu0 %v17602_v25 }
 0xb24   : > { %10094 = vmatpush3.bf16.msra.mxu1 %v17705_v31 }
 0xb25   : > { %6819 = vmatpush1.bf16.msra.mxu0 %v17428_v57  ;;  %10095 = vmatprep.subr.bf16.mxu1 %v20675_v21 }
 0xb26   : > { %6820 = vmatprep.subr.bf16.mxu0 %v17612_v16 }
 0xb28   : > { %10096 = vmatpush3.bf16.msra.mxu1 %v17711_v17 }
 0xb29   : > { %6821 = vmatpush1.bf16.msra.mxu0 %v17444_v22  ;;  %10097 = vmatprep.subr.bf16.mxu1 %v20675_v21 }
 0xb2a   : > { %6822 = vmatprep.subr.bf16.mxu0 %v17624_v29 }
 0xb2c   : > { %10098 = vmatpush3.bf16.msra.mxu1 %v17717_v56 }
 0xb2d   : > { %6823 = vmatpush1.bf16.msra.mxu0 %v17462_v35  ;;  %10099 = vmatprep.subr.bf16.mxu1 %v20675_v21 }
 0xb2e   : > { %10107 = vmatprep.subr.bf16.mxu0 %v20675_v21 }
 0xb30   : > { %10100 = vmatpush3.bf16.msra.mxu1 %v17723_v41  ;;  %6841 = vmatmul.mubr.bf16.vlgmr.msra.gmra.mrb[8].mxu0 %v6807_v13 }
 0xb31   : > { %10108 = vmatpush3.bf16.msra.mxu0 %v6901_v63  ;;  %10101 = vmatprep.subr.bf16.mxu1 %v20675_v21  ;;  %v6996_v63 = vpack.c.bf16 %v8986_v12, %v8986_v12 }
 0xb32   : > { %10109 = vmatprep.mubr.msk.bf16.mxu0 %vm20719_vm15, %v20675_v21  ;;  %10113 = vmatprep.subr.bf16.mxu0 %v20675_v21 }
 0xb34   : > { %10102 = vmatpush3.bf16.msra.mxu1 %v17731_v32 }
 0xb35   : > { %7289 = vmatprep.subr.bf16.mxu1 %v17552_v59 }
 0xb37   : > { %10104 = vmatmul.mubr.bf16.vlgmr.msra.gmra.mrb[8].mxu1 %v6807_v13 }
 0xb38   : > { %7290 = vmatpush1.bf16.msra.mxu1 %v17307_v24  ;;  %7321 = vmatprep.mubr.bf16.mxu1 %v20704_v23  ;;  %v6889_v24 = vld [vmem:[%s20748_s26] sm:$0xff] }
 0xb39   : > { %7291 = vmatprep.subr.bf16.mxu1 %v17562_v1 }
 0xb3c   : > { %7292 = vmatpush1.bf16.msra.mxu1 %v17335_v49  ;;  %v6890_v49 = vpack.c.bf16 %v6889_v24, %v6889_v24  ;;  %v8988_v24 = vld [vmem:[%s20748_s26 + $0x18] sm:$0xff] }
 0xb3d   : > { %7293 = vmatprep.subr.bf16.mxu1 %v17572_v18 }
 0xb3e   : > { %10110 = vmatmul.mubr.msk.bf16.vlgmr.msra.gmra.mrb[4].mxu0 %vm6186_vm14, %v6890_v49  ;;  %v7047_v49 = vpack.c.bf16 %v8988_v24, %v8988_v24  ;;  %v7097_v24 = vpack.c.bf16 %v7096_v39, %v7096_v39 }
 0xb3f   : > { %10115 = vmatprep.mubr.msk.bf16.mxu0 %vm20719_vm15, %v20675_v21 }
 0xb40   : > { %7294 = vmatpush1.bf16.msra.mxu1 %v17359_v48  ;;  %v6478_v48 = vpop.permute.xlu0 %6477 }
 0xb41   : > { %7295 = vmatprep.subr.bf16.mxu1 %v17582_v28 }
 0xb44   : > { %7296 = vmatpush1.bf16.msra.mxu1 %v17387_v44  ;;  %v6521_v44 = vadd.f32 %v17959_v0, %v6478_v48 }
 0xb45   : > { %7297 = vmatprep.subr.bf16.mxu1 %v17592_v45 }
 0xb48   : > { %7298 = vmatpush1.bf16.msra.mxu1 %v17411_v4 }
 0xb49   : > { %7299 = vmatprep.subr.bf16.mxu1 %v17602_v25 }
 0xb4c   : > { %7300 = vmatpush1.bf16.msra.mxu1 %v17428_v57 }
 0xb4d   : > { %7301 = vmatprep.subr.bf16.mxu1 %v17612_v16 }
 0xb50   : > { %7302 = vmatpush1.bf16.msra.mxu1 %v17444_v22 }
 0xb51   : > { %7303 = vmatprep.subr.bf16.mxu1 %v17624_v29 }
 0xb54   : > { %7304 = vmatpush1.bf16.msra.mxu1 %v17462_v35 }
 0xb55   : > { %10155 = vmatprep.subr.bf16.mxu1 %v20675_v21 }
 0xb84   : > { %v6704_v48 = vpop.xlane.xlu0 %6703 }
 0xbe2   : > { %v6570_v4 = vpop.f32.mrb[0].mxu1 }
 0xbe3   : > { %v6576_v23 = vadd.f32 %v6570_v4, %v6521_v44  ;;  %v10073_v57 = vpop.f32.mrb[1].mxu1  ;;  %v6621_v22 = vpop.f32.mrb[0].mxu0 }
 0xbe4   : > { %v6573_v35 = vpop.f32.mrb[2].mxu1  ;;  %v10079_v59 = vpop.f32.mrb[1].mxu0 }
 0xbe5   : > { %v6627_v1 = vadd.f32 %v6621_v22, %v6576_v23  ;;  %v10074_v18 = vpop.f32.mrb[3].mxu1  ;;  %v6624_v28 = vpop.f32.mrb[2].mxu0 }
 0xbe6   : > { %v10080_v45 = vpop.f32.mrb[3].mxu0  ;;  %v6719_v44 = vpop.xlane.xlu0 %6718 }
 0xbe7   : > { %v6689_v23 = vpop.xlane.xlu1 %6688 }
 0xbea   : > { %v6672_v25 = vpop.f32.mrb[4].mxu1  ;;  %v6734_v4 = vpop.xlane.xlu0 %6733 }
 0xbeb   : > { %v6678_v16 = vadd.f32 %v6672_v25, %v6627_v1  ;;  %v10085_v29 = vpop.f32.mrb[5].mxu1  ;;  %v5428_v1 = vrot.slane %v17460_v7, 4  ;;  %v6707_v25 = vsel %vm17908_vm2, %v6704_v48, 0.0  ;;  %v5470_v48 = vrot.slane %v17729_v62, 4 }
 0xbec   : > { %v6675_v6 = vpop.f32.mrb[6].mxu1 }
 0xbed   : > { %v6679_v47 = vadd.f32 %v6678_v16, %v17877_v38  ;;  %v10086_v52 = vpop.f32.mrb[7].mxu1  ;;  %v5429_v45 = vadd.f32 %v5428_v1, %v17460_v7  ;;  %v6692_v16 = vsel %vm6682_vm3, %v6689_v23, 0.0  ;;  %v5471_v23 = vadd.f32 %v5470_v48, %v17729_v62 }
 0xbee   : > { %v6749_v57 = vpop.xlane.xlu0 %6748  ;;  %v6722_v52 = vsel %vm17923_vm1, %v6719_v44, 0.0 }
 0xbef   : > { %v6680_v55 = vmax.f32 %v6679_v47, 0.0  ;;  %v5430_v7 = vrot.slane %v5429_v45, 2 }
 0xbf1   : > { %v6702_v40 = vsel %vm17908_vm2, %v6680_v55, -inf  ;;  %v6687_v9 = vsel %vm6682_vm3, %v6680_v55, -inf  ;;  %v18042_v5 = vpack.c.bf16 %v6680_v55, %v6680_v55  ;;  %v6717_v38 = vsel %vm17923_vm1, %v6680_v55, -inf }
 0xbf2   : > { %6705 = vmax.xlane.f32.xlu1 %v6702_v40  ;;  %6690 = vmax.xlane.f32.xlu0 %v6687_v9  ;;  %v6762_v36 = vsel %vm18044_vm4, %v6680_v55, -inf  ;;  %v6709_v40 = vadd.f32 %v6707_v25, %v6692_v16  ;;  %v8993_v16 = vld [vmem:[%s20754_s7 + $0x10] sm:$0xff] }
 0xbf3   : > { %7322 = vmatmul.mubr.bf16.vlgmr.msra.gmra.mrb[12].mxu1 %v18042_v5 }
 0xbf4   : > { %10156 = vmatpush3.bf16.msra.mxu1 %v17687_v43  ;;  %10171 = vmatprep.mubr.msk.bf16.mxu1 %vm20719_vm15, %v20675_v21  ;;  %v6732_v43 = vsel %vm17932_vm10, %v6680_v55, -inf }
 0xbf5   : > { %10157 = vmatprep.subr.bf16.mxu1 %v20675_v21 }
 0xbf6   : > { %6720 = vmax.xlane.f32.xlu1 %v6717_v38  ;;  %6763 = vmax.xlane.f32.xlu0 %v6761_v61  ;;  %v6737_v61 = vsel %vm17932_vm10, %v6734_v4, 0.0 }
 0xbf8   : > { %10158 = vmatpush3.bf16.msra.mxu1 %v17693_v20  ;;  %v6747_v20 = vsel %vm17941_vm6, %v6680_v55, -inf }
 0xbf9   : > { %10159 = vmatprep.subr.bf16.mxu1 %v20675_v21 }
 0xbfa   : > { %6735 = vmax.xlane.f32.xlu1 %v6732_v43  ;;  %6778 = vmax.xlane.f32.xlu0 %v6776_v26  ;;  %v6724_v43 = vadd.f32 %v6722_v52, %v6709_v40  ;;  %v7384_v40 = vsel %vm6190_vm11, %v18042_v5, 0 }
 0xbfc   : > { %10160 = vmatpush3.bf16.msra.mxu1 %v17699_v2  ;;  %v6739_v27 = vadd.f32 %v6737_v61, %v6724_v43 }
 0xbfd   : > { %10161 = vmatprep.subr.bf16.mxu1 %v20675_v21 }
 0xbfe   : > { %6750 = vmax.xlane.f32.xlu1 %v6747_v20  ;;  %6793 = vmax.xlane.f32.xlu0 %v6791_v50  ;;  %v6752_v50 = vsel %vm17941_vm6, %v6749_v57, 0.0 }
 0xc00   : > { %10162 = vmatpush3.bf16.msra.mxu1 %v17705_v31  ;;  %v6777_v31 = vsel %vm18060_vm7, %v6680_v55, -inf }
 0xc01   : > { %10163 = vmatprep.subr.bf16.mxu1 %v20675_v21 }
 0xc02   : > { %6765 = vmax.xlane.f32.xlu1 %v6762_v36  ;;  %v5431_v36 = vadd.f32 %v5430_v7, %v5429_v45 }
 0xc03   : > { %v6842_v2 = vpop.f32.mrb[8].mxu0 }
 0xc04   : > { %v6946_v54 = vpack.c.bf16 %v6842_v2, %v6842_v2  ;;  %10164 = vmatpush3.bf16.msra.mxu1 %v17711_v17  ;;  %v6844_v33 = vpop.f32.mrb[9].mxu0  ;;  %v6792_v17 = vsel %vm6786_vm8, %v6680_v55, -inf  ;;  %v5449_v2 = vrot.slane %v17622_v58, 4 }
 0xc05   : > { %v6846_v60 = vpop.f32.mrb[10].mxu0  ;;  %10165 = vmatprep.subr.bf16.mxu1 %v20675_v21  ;;  %v6997_v0 = vpack.c.bf16 %v6844_v33, %v6844_v33 }
 0xc06   : > { %v6951_v30 = vsel %vm6190_vm11, %v6946_v54, 0  ;;  %6780 = vmax.xlane.f32.xlu1 %v6777_v31  ;;  %v6847_v19 = vpop.f32.mrb[11].mxu0  ;;  %v6754_v60 = vadd.f32 %v6752_v50, %v6739_v27  ;;  %v9002_v27 = vld [vmem:[%s20748_s26 + $0x30] sm:$0xff] }
 0xc07   : > { %10114 = vmatpush3.bf16.msra.mxu0 %v6951_v30  ;;  %v7002_v3 = vsel %vm6190_vm11, %v6997_v0, 0 }
 0xc08   : > { %10166 = vmatpush3.bf16.msra.mxu1 %v17717_v56  ;;  %10119 = vmatprep.subr.bf16.mxu0 %v20675_v21 }
 0xc09   : > { %10167 = vmatprep.subr.bf16.mxu1 %v20675_v21 }
 0xc0a   : > { %v6883_v46 = vpop.f32.mrb[8].mxu1  ;;  %6795 = vmax.xlane.f32.xlu1 %v6792_v17  ;;  %10116 = vmatmul.mubr.msk.bf16.vlgmr.msra.gmra.mrb[4].mxu0 %vm6186_vm14, %v6945_v34  ;;  %v5432_v34 = vrot.slane %v5431_v36, 1  ;;  %v5450_v17 = vadd.f32 %v5449_v2, %v17622_v58 }
 0xc0b   : > { %v10105_v14 = vpop.f32.mrb[9].mxu1  ;;  %10120 = vmatpush3.bf16.msra.mxu0 %v7002_v3  ;;  %10121 = vmatprep.mubr.msk.bf16.mxu0 %vm20719_vm15, %v20675_v21  ;;  %v7048_v13 = vpack.c.bf16 %v6883_v46, %v6883_v46 }
 0xc0c   : > { %v6886_v51 = vpop.f32.mrb[10].mxu1  ;;  %10168 = vmatpush3.bf16.msra.mxu1 %v17723_v41  ;;  %10125 = vmatprep.subr.bf16.mxu0 %v20675_v21 }
 0xc0d   : > { %v10106_v56 = vpop.f32.mrb[11].mxu1  ;;  %10169 = vmatprep.subr.bf16.mxu1 %v20675_v21  ;;  %v7053_v41 = vsel %vm6190_vm11, %v7048_v13, 0  ;;  %v5451_v13 = vrot.slane %v5450_v17, 2 }
 0xc10   : > { %10170 = vmatpush3.bf16.msra.mxu1 %v17731_v32  ;;  %v8998_v32 = vld [vmem:[%s20753_s22 + $0x8] sm:$0xff] }
 0xc13   : > { %10172 = vmatmul.mubr.bf16.vlgmr.msra.gmra.mrb[16].mxu1 %v18042_v5  ;;  %v9000_v5 = vld [vmem:[%s20748_s26 + $0x28] sm:$0xff] }
 0xc14   : > { %6894 = vperm.xlu0 %10387, %v6891_v8   ;;  %v5433_v8 = vadd.f32 %v5432_v34, %v5431_v36  ;;  %v7428_v36 = vpack.c.bf16 %v9000_v5, %v9000_v5  ;;  %v9006_v34 = vld [vmem:[%s20754_s7 + $0x20] sm:$0xff] }
 0xc16   : > { %10122 = vmatmul.mubr.msk.bf16.vlgmr.msra.gmra.mrb[4].mxu0 %vm6186_vm14, %v6996_v63 }
 0xc17   : > { %10126 = vmatpush3.bf16.msra.mxu0 %v7053_v41  ;;  %10127 = vmatprep.mubr.msk.bf16.mxu0 %vm20719_vm15, %v20675_v21 }
 0xc18   : > { %10131 = vmatprep.subr.bf16.mxu0 %v20675_v21 }
 0xc1b   : > { %7377 = vperm.xlu1 %10388, %v8998_v32  }
 0xc22   : > { %10128 = vmatmul.mubr.msk.bf16.vlgmr.msra.gmra.mrb[4].mxu0 %vm6186_vm14, %v7047_v49  ;;  %v5452_v49 = vadd.f32 %v5451_v13, %v5450_v17  ;;  %v7581_v17 = vpack.c.bf16 %v9006_v34, %v9006_v34 }
 0xc23   : > { %10133 = vmatprep.mubr.msk.bf16.mxu0 %vm20719_vm15, %v20675_v21 }
 0xc24   : > { %v5453_v4 = vrot.slane %v5452_v49, 1 }
 0xc26   : > { %v5454_v57 = vadd.f32 %v5453_v4, %v5452_v49 }
 0xc7f   : > { %v6706_v22 = vpop.xlane.xlu1 %6705  ;;  %v6691_v35 = vpop.xlane.xlu0 %6690 }
 0xc80   : > { %v6708_v29 = vsel %vm17908_vm2, %v6706_v22, 0.0  ;;  %v6693_v6 = vsel %vm6682_vm3, %v6691_v35, 0.0  ;;  %vm20755_vm2 = vcmask 130048   ;;  %v5472_v22 = vrot.slane %v5471_v23, 2  ;;  %v8991_v35 = vld [vmem:[%s20754_s7 + $0x8] sm:$0xff] }
 0xc81   : > { %v6710_v9 = vadd.f32 %v6708_v29, %v6693_v6  ;;  %v7145_v1 = vpack.c.bf16 %v8991_v35, %v8991_v35  ;;  %vm20756_vm3 = vmmov %vm20755_vm2  ;;  %v7193_v6 = vpack.c.bf16 %v8993_v16, %v8993_v16 }
 0xc83   : > { %v6721_v59 = vpop.xlane.xlu1 %6720  ;;  %v6764_v18 = vpop.xlane.xlu0 %6763 }
 0xc84   : > { %v6723_v55 = vsel %vm17923_vm1, %v6721_v59, 0.0  ;;  %v6767_v33 = vsel %vm18044_vm4, %v6764_v18, 0.0  ;;  %v5473_v18 = vadd.f32 %v5472_v22, %v5471_v23  ;;  %vm20757_vm1 = vmmov %vm20755_vm2 }
 0xc85   : > { %v6725_v26 = vadd.f32 %v6723_v55, %v6710_v9  ;;  %v6769_v3 = vadd.f32 %v6767_v33, %v6754_v60  ;;  %v8995_v55 = vld [vmem:[%s20754_s7 + $0x18] sm:$0xff]  ;;  %v8997_v9 = vld [vmem:[%s20748_s26 + $0x20] sm:$0xff]  ;;  %vm20761_vm12 = vmmov %vm20757_vm1 }
 0xc86   : > { %v5474_v62 = vrot.slane %v5473_v18, 1  ;;  %v7241_v7 = vpack.c.bf16 %v8995_v55, %v8995_v55 }
 0xc87   : > { %v6736_v28 = vpop.xlane.xlu1 %6735  ;;  %v6779_v38 = vpop.xlane.xlu0 %6778 }
 0xc88   : > { %v6738_v37 = vsel %vm17932_vm10, %v6736_v28, 0.0  ;;  %v6782_v19 = vsel %vm18060_vm7, %v6779_v38, 0.0  ;;  %v5475_v25 = vadd.f32 %v5474_v62, %v5473_v18  ;;  %vm20758_vm10 = vmmov %vm20757_vm1 }
 0xc89   : > { %v6740_v54 = vadd.f32 %v6738_v37, %v6725_v26  ;;  %v6784_v11 = vadd.f32 %v6782_v19, %v6769_v3  ;;  %v7372_v26 = vpack.c.bf16 %v8997_v9, %v8997_v9  ;;  %v9004_v19 = vld [vmem:[%s20748_s26 + $0x38] sm:$0xff]  ;;  %v9008_v3 = vld [vmem:[%s20754_s7 + $0x28] sm:$0xff] }
 0xc8b   : > { %v6751_v47 = vpop.xlane.xlu1 %6750  ;;  %v6794_v30 = vpop.xlane.xlu0 %6793 }
 0xc8c   : > { %v6753_v53 = vsel %vm17941_vm6, %v6751_v47, 0.0  ;;  %v6797_v14 = vsel %vm6786_vm8, %v6794_v30, 0.0  ;;  %vm20762_vm6 = vmmov %vm20757_vm1 }
 0xc8d   : > { %v6755_v31 = vadd.f32 %v6753_v53, %v6740_v54  ;;  %v6799_v63 = vadd.f32 %v6797_v14, %v6784_v11  ;;  %v7479_v54 = vpack.c.bf16 %v9002_v27, %v9002_v27  ;;  %v9010_v14 = vld [vmem:[%s20754_s7 + $0x30] sm:$0xff] }
 0xc8e   : > { %v7675_v11 = vpack.c.bf16 %v9010_v14, %v9010_v14 }
 0xc8f   : > { %v6766_v20 = vpop.xlane.xlu1 %6765  ;;  %v6801_v44 = vmul.f32 %v6799_v63, %v5433_v8  ;;  %v6803_v28 = vmul.f32 %v6799_v63, %v5454_v57  ;;  %v6805_v47 = vmul.f32 %v6799_v63, %v5475_v25 }
 0xc90   : > { %v6768_v10 = vsel %vm18044_vm4, %v6766_v20, 0.0 }
 0xc91   : > { %v6770_v46 = vadd.f32 %v6768_v10, %v6755_v31 }
 0xc93   : > { %v6781_v0 = vpop.xlane.xlu1 %6780 }
 0xc94   : > { %v6783_v15 = vsel %vm18060_vm7, %v6781_v0, 0.0 }
 0xc95   : > { %v6785_v51 = vadd.f32 %v6783_v15, %v6770_v46  ;;  %v7530_v15 = vpack.c.bf16 %v9004_v19, %v9004_v19  ;;  %v7628_v46 = vpack.c.bf16 %v9008_v3, %v9008_v3 }
 0xc97   : > { %v6796_v56 = vpop.xlane.xlu1 %6795 }
 0xc98   : > { %v6798_v12 = vsel %vm6786_vm8, %v6796_v56, 0.0 }
 0xc99   : > { %v6800_v41 = vadd.f32 %v6798_v12, %v6785_v51  ;;  %v9012_v51 = vld [vmem:[%s20754_s7 + $0x38] sm:$0xff]  ;;  %v6895_v12 = vpop.permute.xlu0 %6894 }
 0xc9a   : > { %v7722_v56 = vpack.c.bf16 %v9012_v51, %v9012_v51 }
 0xc9b   : > { %v18164_v58 = vpack.c.bf16 %v6800_v41, %v6799_v63  ;;  %v6802_v32 = vmul.f32 %v6800_v41, %v5433_v8  ;;  %v6804_v59 = vmul.f32 %v6800_v41, %v5454_v57  ;;  %v6806_v29 = vmul.f32 %v6800_v41, %v5475_v25 }
 0xc9d   : > { %10132 = vmatpush3.bf16.msra.mxu0 %v18164_v58  ;;  %v18169_v42 = vpack.c.bf16 %v6802_v32, %v6801_v44  ;;  %v18180_v45 = vpack.c.bf16 %v6804_v59, %v6803_v28  ;;  %v18190_v52 = vpack.c.bf16 %v6806_v29, %v6805_v47 }
 0xc9e   : > { %10137 = vmatprep.subr.bf16.mxu0 %v20675_v21 }
 0xca0   : > { %10134 = vmatmul.mubr.msk.bf16.vlgmr.msra.gmra.mrb[4].mxu0 %vm20755_vm2, %v7097_v24 }
 0xca1   : > { %10138 = vmatpush3.bf16.msra.mxu0 %v18169_v42  ;;  %10139 = vmatprep.mubr.msk.bf16.mxu0 %vm20719_vm15, %v20675_v21 }
 0xca2   : > { %10143 = vmatprep.subr.bf16.mxu0 %v20675_v21 }
 0xcac   : > { %10140 = vmatmul.mubr.msk.bf16.vlgmr.msra.gmra.mrb[4].mxu0 %vm20756_vm3, %v7145_v1 }
 0xcad   : > { %10144 = vmatpush3.bf16.msra.mxu0 %v18180_v45  ;;  %10145 = vmatprep.mubr.msk.bf16.mxu0 %vm20719_vm15, %v20675_v21 }
 0xcae   : > { %10149 = vmatprep.subr.bf16.mxu0 %v20675_v21 }
 0xcb8   : > { %10146 = vmatmul.mubr.msk.bf16.vlgmr.msra.gmra.mrb[4].mxu0 %vm20757_vm1, %v7193_v6 }
 0xcb9   : > { %10150 = vmatpush3.bf16.msra.mxu0 %v18190_v52  ;;  %10151 = vmatprep.mubr.msk.bf16.mxu0 %vm20719_vm15, %v20675_v21 }
 0xcba   : > { %10175 = vmatprep.subr.bf16.mxu0 %v20675_v21 }
 0xcc4   : > { %10152 = vmatmul.mubr.msk.bf16.vlgmr.msra.gmra.mrb[4].mxu0 %vm20758_vm10, %v7241_v7 }
 0xcc5   : > { %10176 = vmatpush3.bf16.msra.mxu0 %v7384_v40  ;;  %10177 = vmatprep.mubr.msk.bf16.mxu0 %vm20719_vm15, %v20675_v21 }
 0xcc6   : > { %v7323_v38 = vpop.f32.mrb[12].mxu1  ;;  %10181 = vmatprep.subr.bf16.mxu0 %v20675_v21 }
 0xcc7   : > { %v7325_v61 = vpop.f32.mrb[13].mxu1  ;;  %v7429_v37 = vpack.c.bf16 %v7323_v38, %v7323_v38 }
 0xcc8   : > { %v7327_v43 = vpop.f32.mrb[14].mxu1  ;;  %v7480_v53 = vpack.c.bf16 %v7325_v61, %v7325_v61 }
 0xcc9   : > { %v7328_v20 = vpop.f32.mrb[15].mxu1  ;;  %v7434_v50 = vsel %vm6190_vm11, %v7429_v37, 0 }
 0xcca   : > { %v7485_v2 = vsel %vm6190_vm11, %v7480_v53, 0 }
 0xccc   : > { %10178 = vmatmul.mubr.msk.bf16.vlgmr.msra.gmra.mrb[12].mxu0 %vm6186_vm14, %v7372_v26 }
 0xccd   : > { %10182 = vmatpush3.bf16.msra.mxu0 %v7434_v50  ;;  %10183 = vmatprep.mubr.msk.bf16.mxu0 %vm20719_vm15, %v20675_v21 }
 0xcce   : > { %10187 = vmatprep.subr.bf16.mxu0 %v20675_v21 }
 0xcd8   : > { %10184 = vmatmul.mubr.msk.bf16.vlgmr.msra.gmra.mrb[12].mxu0 %vm6186_vm14, %v7428_v36 }
 0xcd9   : > { %10188 = vmatpush3.bf16.msra.mxu0 %v7485_v2  ;;  %10189 = vmatprep.mubr.msk.bf16.mxu0 %vm20719_vm15, %v20675_v21 }
 0xcda   : > { %10193 = vmatprep.subr.bf16.mxu0 %v20675_v21 }
 0xce4   : > { %10190 = vmatmul.mubr.msk.bf16.vlgmr.msra.gmra.mrb[12].mxu0 %vm6186_vm14, %v7479_v54 }
 0xce5   : > { %10195 = vmatprep.mubr.msk.bf16.mxu0 %vm20719_vm15, %v20675_v21 }
 0xce6   : > { %v7364_v33 = vpop.f32.mrb[16].mxu1 }
 0xce7   : > { %v7531_v10 = vpack.c.bf16 %v7364_v33, %v7364_v33  ;;  %v10173_v60 = vpop.f32.mrb[17].mxu1 }
 0xce8   : > { %v7367_v31 = vpop.f32.mrb[18].mxu1 }
 0xce9   : > { %v7536_v30 = vsel %vm6190_vm11, %v7531_v10, 0  ;;  %v10174_v0 = vpop.f32.mrb[19].mxu1  ;;  %vm20759_vm11 = vmmov %vm20757_vm1 }
 0xcea   : > { %10194 = vmatpush3.bf16.msra.mxu0 %v7536_v30 }
 0xceb   : > { %10199 = vmatprep.subr.bf16.mxu0 %v20675_v21 }
 0xcf0   : > { %10196 = vmatmul.mubr.msk.bf16.vlgmr.msra.gmra.mrb[12].mxu0 %vm6186_vm14, %v7530_v15  ;;  %vm20760_vm14 = vmmov %vm20757_vm1 }
 0xcf1   : > { %10200 = vmatpush3.bf16.msra.mxu0 %v18164_v58  ;;  %10201 = vmatprep.mubr.msk.bf16.mxu0 %vm20719_vm15, %v20675_v21 }
 0xcf2   : > { %10205 = vmatprep.subr.bf16.mxu0 %v20675_v21 }
 0xcfc   : > { %10202 = vmatmul.mubr.msk.bf16.vlgmr.msra.gmra.mrb[12].mxu0 %vm20759_vm11, %v7581_v17 }
 0xcfd   : > { %10206 = vmatpush3.bf16.msra.mxu0 %v18169_v42  ;;  %10207 = vmatprep.mubr.msk.bf16.mxu0 %vm20719_vm15, %v20675_v21 }
 0xcfe   : > { %10211 = vmatprep.subr.bf16.mxu0 %v20675_v21 }
 0xd08   : > { %10208 = vmatmul.mubr.msk.bf16.vlgmr.msra.gmra.mrb[12].mxu0 %vm20760_vm14, %v7628_v46 }
 0xd09   : > { %10212 = vmatpush3.bf16.msra.mxu0 %v18180_v45  ;;  %10213 = vmatprep.mubr.msk.bf16.mxu0 %vm20719_vm15, %v20675_v21 }
 0xd0a   : > { %10217 = vmatprep.subr.bf16.mxu0 %v20675_v21 }
 0xd14   : > { %10214 = vmatmul.mubr.msk.bf16.vlgmr.msra.gmra.mrb[12].mxu0 %vm20761_vm12, %v7675_v11 }
 0xd15   : > { %10218 = vmatpush3.bf16.msra.mxu0 %v18190_v52  ;;  %10219 = vmatprep.mubr.msk.bf16.mxu0 %vm20719_vm15, %v20675_v21  ;;  %v7378_v21 = vpop.permute.xlu1 %7377 }
 0xd20   : > { %10220 = vmatmul.mubr.msk.bf16.vlgmr.msra.gmra.mrb[12].mxu0 %vm20762_vm6, %v7722_v56 }
 0xd97   : > { %v7280_v8 = vpop.f32.mrb[4].mxu0 }
 0xd98   : > { %v10227_v13 = vadd.f32 %v7280_v8, %v6895_v12  ;;  %v10153_v63 = vpop.f32.mrb[5].mxu0 }
 0xd99   : > { %v7283_v41 = vpop.f32.mrb[6].mxu0 }
 0xd9a   : > { %7287 = vst [vmem:[%s669_s17] sm:$0xff] %v10227_v13  ;;  %v10154_v39 = vpop.f32.mrb[7].mxu0 }
 0xdf3   : > { %v7760_v58 = vpop.f32.mrb[12].mxu0 }
 0xdf4   : > { %v10228_v32 = vadd.f32 %v7760_v58, %v7378_v21  ;;  %v10221_v24 = vpop.f32.mrb[13].mxu0 }
 0xdf5   : > { %v7763_v49 = vpop.f32.mrb[14].mxu0 }
 0xdf6   : > { %9014 = vst [vmem:[%s669_s17 + $0x8] sm:$0xff] %v10228_v32  ;;  %v10222_v48 = vpop.f32.mrb[15].mxu0 }
 0xdf7   : > { %10579 = shalt.err (!%p10576_p2)
}
 0xdf8   : > { %s10580_s17 = scalar_lea.hbm %s18272_s18, 256  ;;  %s10584_s16 = scalar_lea.hbm %s20763_s15, 512 }
 0xdf9   : > { %p10581_p12 = scmp.ne.s32.totalorder %s18272_s18, %s10580_s17  ;;  %p10585_p0 = scmp.lt.u32.totalorder %s18272_s18, %s20763_s15 }
 0xdfa   : > { %p10586_p4 = scmp.lt.u32.totalorder %s10584_s16, %s10580_s17  ;;  %p10588_p3 = scmp.lt.u32.totalorder %s10580_s17, %s18272_s18 }
 0xdfb   : > { %p10582_p6 = pnand %p10581_p12, %p20764_p7 }
 0xdfc   : > { %p10587_p8 = por %p10586_p4, %p10585_p0 }
 0xdfd   : > { %p10583_p11 = pneg %p10582_p6 }
 0xdfe   : > { %p10589_p10 = por %p10588_p3, %p10587_p8 }
 0xe00   : > { %p10590_p13 = pnand %p10589_p10, %p10583_p11 }
 0xe02   : > { %10593 = shalt.err (!%p10590_p13)
}
 0xe03   : > { %s10658_s8 = smov 128   ;;  %s10659_s21 = smov 8  }
 0xe04   : > { %10313 = dma.vmem_to_hbm [thread:$0]  (%p20764_p7), %s18267_s2, 256, %s18272_s18, %s7770_s13, %s10658_s8, %s10658_s8, %s10659_s21  }
 0xe05 PF: > { %s20765_s23 = sld [smem:[#allocation17_spill]]  ;;  %s20766_s1 = sld [smem:[#allocation19_spill]] }
 0xe06   : > { %p20768_p9 = scmp.ge.s32.totalorder %s10644_s30, 2 }
 0xe0b   : > { %s7798_s0 = sand.u32 1, %s20765_s23   ;;  %p20767_p5 = scmp.ne.s32.totalorder %s20766_s1, 0 }
 0xe0c   : > { %s7799_s17 = scalar_lea.sflag [#allocation4], %s7798_s0 }
 0xe0d   : > { %p10333_p1 = pnand %p20768_p9, %p20767_p5 }
 0xe0f   : > { %10627 = dma.done.wait (!%p10333_p1), %s7799_s17, 256  }
 0xe10   : > { %10629 = vsyncadd (!%p10333_p1), %s7799_s17, 4294967040  ;;  %s20769_s16 = sld [smem:[#allocation18_spill]]  ;;  %s20770_s29 = sld [smem:[#allocation20_spill]] }
 0xe11   : > { %p35_p2 = scmp.ge.s32.totalorder %s10879_s5, 4   ;;  %s20771_s27 = smov %s10636_s28 }
 0xe12   : > { %s20773_s30 = smov %s10879_s5 }
 0xe13   :  { %37 = sbr.rel (!%p35_p2) target bundleno = 20 (0x14), region = 194 }
 0xe16   : > { %s20772_s28 = smov %s20769_s16 }
 0xe1a   :  { %7804 = vsyncpa [#allocation3], 1 }
 0xe1b   :  { %7806 = vsyncpa [#allocation3 + $0x1], 1 }
 0xe1c   :  { %7807 = vsyncpa [#allocation6], 1 }
 0xe1d   :  { %7809 = vsyncpa [#allocation6 + $0x1], 1 }
 0xe1e   :  { %7810 = vsyncpa [#allocation9], 1 }
 0xe1f   :  { %7811 = vsyncpa [#allocation4], 1 }
 0xe20   :  { %7813 = vsyncpa [#allocation4 + $0x1], 1 }

</bundles_post_ra>
